<compile_context>
chip_gen: v5e
topology: v5e:2x2
jax: 0.10.0
libtpu: 0.0.40
codegen_flags: <defaults>
</compile_context>

<pallas_src>
import functools
import numpy as np

import jax
import jax.numpy as jnp
from jax.experimental import pallas as pl
from jax.experimental.pallas import tpu as pltpu


# ----------------------------------------------------------------------------
# Tiling helpers
# ----------------------------------------------------------------------------

_TN = 256                       # output-column tile (multiple of 128)
_TI = 256                       # feed-forward inner-dim tile
_TQ = 256                       # attention query tile
_LN_EPS = 1e-5
_VMEM_LIMIT = 32 * 1024 * 1024  # explicit scoped-VMEM limit (safe on v5e/v6e/v7x)
_VMEM_BUDGET = 24 * 1024 * 1024 # per-kernel working-set target used for row sizing


def _cparams(*sem):
    return pltpu.CompilerParams(dimension_semantics=sem,
                                vmem_limit_bytes=_VMEM_LIMIT)


def _blk(dim, pref, align):
    """Largest block <= pref that is a multiple of `align` and divides dim, else full dim."""
    if pref >= dim:
        return dim
    if dim % pref == 0:
        return pref
    c = min(pref, (dim // align) * align)
    while c >= align:
        if dim % c == 0:
            return c
        c -= align
    return dim


def _pick_rows(M, per_row_bytes, fixed_bytes, align, cap=2048):
    """Row-tile size: as large as the VMEM budget allows (so weights are streamed
    from HBM as few times as possible), a divisor of M, multiple of `align`."""
    avail = max(_VMEM_BUDGET - fixed_bytes, per_row_bytes * align)
    pref = max(align, min(M, cap, (avail // per_row_bytes) // align * align))
    return _blk(M, int(pref), align)


def _pad_up(n, m):
    return ((n + m - 1) // m) * m


# ----------------------------------------------------------------------------
# Kernel: plain tiled matmul (optional bias, optional fused SiLU)
# ----------------------------------------------------------------------------

def _matmul_kernel(x_ref, w_ref, *rest, act, has_bias):
    if has_bias:
        b_ref, o_ref = rest
    else:
        (o_ref,) = rest
    y = jnp.dot(x_ref[...], w_ref[...], preferred_element_type=jnp.float32)
    if has_bias:
        y = y + b_ref[...]
    if act == "silu":
        y = y * jax.nn.sigmoid(y)
    o_ref[...] = y.astype(o_ref.dtype)


def pallas_matmul(x, w_t, b=None, act=None, out_dtype=jnp.float32, tn=_TN):
    """y = x @ w_t (+ b) (+ SiLU).  x: (M, K), w_t: (K, N) bf16."""
    M, K = x.shape
    N = w_t.shape[1]
    bn = _blk(N, tn, 128)
    align = 16 if x.dtype == jnp.bfloat16 else 8
    per_row = 2 * K * x.dtype.itemsize + 2 * bn * np.dtype(out_dtype).itemsize
    bm = _pick_rows(M, per_row, 2 * K * bn * 2, align)

    in_specs = [pl.BlockSpec((bm, K), lambda i, j: (i, 0)),
                pl.BlockSpec((K, bn), lambda i, j: (0, j))]
    args = [x, w_t]
    if b is not None:
        in_specs.append(pl.BlockSpec((1, bn), lambda i, j: (0, j)))
        args.append(jnp.asarray(b, jnp.float32).reshape(1, N))

    return pl.pallas_call(
        functools.partial(_matmul_kernel, act=act, has_bias=b is not None),
        out_shape=jax.ShapeDtypeStruct((M, N), out_dtype),
        grid=(M // bm, N // bn),
        in_specs=in_specs,
        out_specs=pl.BlockSpec((bm, bn), lambda i, j: (i, j)),
        compiler_params=_cparams("parallel", "parallel"),
    )(*args)


# ----------------------------------------------------------------------------
# Kernel: tiled matmul with fused residual add (no bias)
#   used for: attention to_out projection (+h), 1x1 pre/post convs (+x)
# ----------------------------------------------------------------------------

def _matmul_res_kernel(x_ref, w_ref, r_ref, o_ref):
    y = jnp.dot(x_ref[...], w_ref[...], preferred_element_type=jnp.float32)
    o_ref[...] = (r_ref[...] + y).astype(o_ref.dtype)


def pallas_matmul_residual(x, w_t, residual, out_dtype=jnp.float32, tn=_TN):
    M, K = x.shape
    N = w_t.shape[1]
    bn = _blk(N, tn, 128)
    align = 16 if x.dtype == jnp.bfloat16 else 8
    per_row = (2 * K * x.dtype.itemsize + 2 * bn * residual.dtype.itemsize
               + 2 * bn * np.dtype(out_dtype).itemsize)
    bm = _pick_rows(M, per_row, 2 * K * bn * 2, align)
    return pl.pallas_call(
        _matmul_res_kernel,
        out_shape=jax.ShapeDtypeStruct((M, N), out_dtype),
        grid=(M // bm, N // bn),
        in_specs=[
            pl.BlockSpec((bm, K), lambda i, j: (i, 0)),
            pl.BlockSpec((K, bn), lambda i, j: (0, j)),
            pl.BlockSpec((bm, bn), lambda i, j: (i, j)),
        ],
        out_specs=pl.BlockSpec((bm, bn), lambda i, j: (i, j)),
        compiler_params=_cparams("parallel", "parallel"),
    )(x, w_t, residual)


# ----------------------------------------------------------------------------
# Kernel: pre-LayerNorm fused into a matmul; LN is computed ONCE per row tile
#   (j == 0) into a bf16 VMEM scratch and reused for all column tiles.
#   used for: fused QKV projection, final-LN + project_out
# ----------------------------------------------------------------------------

def _ln_matmul_kernel(x_ref, g_ref, be_ref, w_ref, *rest, eps, has_bias):
    if has_bias:
        b_ref, o_ref, xn_ref = rest
    else:
        o_ref, xn_ref = rest

    @pl.when(pl.program_id(1) == 0)
    def _():
        x = x_ref[...]
        mu = jnp.mean(x, axis=-1, keepdims=True)
        xc = x - mu
        var = jnp.mean(xc * xc, axis=-1, keepdims=True)
        xn = (xc * jax.lax.rsqrt(var + eps)) * g_ref[...] + be_ref[...]
        xn_ref[...] = xn.astype(jnp.bfloat16)

    y = jnp.dot(xn_ref[...], w_ref[...], preferred_element_type=jnp.float32)
    if has_bias:
        y = y + b_ref[...]
    o_ref[...] = y.astype(o_ref.dtype)


def pallas_ln_matmul(x, g, be, w_t, b=None, out_dtype=jnp.float32,
                     tn=_TN, eps=_LN_EPS):
    """y = LayerNorm(x) @ w_t (+ b).  x: (M, K) f32, w_t: (K, N) bf16."""
    M, K = x.shape
    N = w_t.shape[1]
    bn = _blk(N, tn, 128)
    per_row = (2 * K * 4            # x (f32, double-buffered)
               + K * 2              # xn scratch (bf16)
               + 2 * bn * np.dtype(out_dtype).itemsize)
    bm = _pick_rows(M, per_row, 2 * K * bn * 2, 8)

    in_specs = [
        pl.BlockSpec((bm, K), lambda i, j: (i, 0)),
        pl.BlockSpec((1, K), lambda i, j: (0, 0)),
        pl.BlockSpec((1, K), lambda i, j: (0, 0)),
        pl.BlockSpec((K, bn), lambda i, j: (0, j)),
    ]
    args = [x, jnp.asarray(g, jnp.float32).reshape(1, K),
            jnp.asarray(be, jnp.float32).reshape(1, K), w_t]
    if b is not None:
        in_specs.append(pl.BlockSpec((1, bn), lambda i, j: (0, j)))
        args.append(jnp.asarray(b, jnp.float32).reshape(1, N))

    return pl.pallas_call(
        functools.partial(_ln_matmul_kernel, eps=eps, has_bias=b is not None),
        out_shape=jax.ShapeDtypeStruct((M, N), out_dtype),
        grid=(M // bm, N // bn),            # rows outer: LN runs once per row tile
        in_specs=in_specs,
        out_specs=pl.BlockSpec((bm, bn), lambda i, j: (i, j)),
        scratch_shapes=[pltpu.VMEM((bm, K), jnp.bfloat16)],
        compiler_params=_cparams("parallel", "arbitrary"),
    )(*args)


# ----------------------------------------------------------------------------
# Kernel: fused pre-LN -> FF1(val,gate) -> SwiGLU -> FF2 -> residual
#   grid = (row tiles [parallel], inner tiles [arbitrary/accumulate])
# ----------------------------------------------------------------------------

def _ff_kernel(h_ref, g_ref, be_ref, wv_ref, bv_ref, wg_ref, bg_ref,
               w2_ref, b2_ref, o_ref, acc_ref, xn_ref, *, eps):
    j = pl.program_id(1)

    @pl.when(j == 0)
    def _():
        x = h_ref[...]
        mu = jnp.mean(x, axis=-1, keepdims=True)
        xc = x - mu
        var = jnp.mean(xc * xc, axis=-1, keepdims=True)
        xn_ref[...] = ((xc * jax.lax.rsqrt(var + eps)) * g_ref[...] + be_ref[...]
                       ).astype(jnp.bfloat16)
        acc_ref[...] = jnp.zeros_like(acc_ref)

    xn = xn_ref[...]
    val = jnp.dot(xn, wv_ref[...], preferred_element_type=jnp.float32) + bv_ref[...]
    gate = jnp.dot(xn, wg_ref[...], preferred_element_type=jnp.float32) + bg_ref[...]
    s = val * (gate * jax.nn.sigmoid(gate))          # GLU with Swish (SiLU) gate
    acc_ref[...] += jnp.dot(s.astype(jnp.bfloat16), w2_ref[...],
                            preferred_element_type=jnp.float32)

    @pl.when(j == pl.num_programs(1) - 1)
    def _():
        o_ref[...] = h_ref[...] + acc_ref[...] + b2_ref[...]


def pallas_ff(h, g, be, wv_t, bv, wg_t, bg, w2_t, b2, ti=_TI, eps=_LN_EPS):
    M, E = h.shape
    inner = wv_t.shape[1]
    bi = _blk(inner, ti, 128)
    per_row = 2 * E * 4 + E * 2 + E * 4 + 2 * E * 4     # h + xn + acc + out
    fixed = 12 * E * bi                                 # double-buffered wv/wg/w2
    bm = _pick_rows(M, per_row, fixed, 8, cap=1024)
    return pl.pallas_call(
        functools.partial(_ff_kernel, eps=eps),
        out_shape=jax.ShapeDtypeStruct((M, E), jnp.float32),
        grid=(M // bm, inner // bi),
        in_specs=[
            pl.BlockSpec((bm, E), lambda i, j: (i, 0)),
            pl.BlockSpec((1, E), lambda i, j: (0, 0)),
            pl.BlockSpec((1, E), lambda i, j: (0, 0)),
            pl.BlockSpec((E, bi), lambda i, j: (0, j)),
            pl.BlockSpec((1, bi), lambda i, j: (0, j)),
            pl.BlockSpec((E, bi), lambda i, j: (0, j)),
            pl.BlockSpec((1, bi), lambda i, j: (0, j)),
            pl.BlockSpec((bi, E), lambda i, j: (j, 0)),
            pl.BlockSpec((1, E), lambda i, j: (0, 0)),
        ],
        out_specs=pl.BlockSpec((bm, E), lambda i, j: (i, 0)),
        scratch_shapes=[pltpu.VMEM((bm, E), jnp.float32),
                        pltpu.VMEM((bm, E), jnp.bfloat16)],
        compiler_params=_cparams("parallel", "arbitrary"),
    )(h,
      jnp.asarray(g, jnp.float32).reshape(1, E),
      jnp.asarray(be, jnp.float32).reshape(1, E),
      wv_t, jnp.asarray(bv, jnp.float32).reshape(1, inner),
      wg_t, jnp.asarray(bg, jnp.float32).reshape(1, inner),
      w2_t, jnp.asarray(b2, jnp.float32).reshape(1, E))


# ----------------------------------------------------------------------------
# Kernel: multi-head attention with in-kernel rotary (half-rotation basis),
#   lane-dense packed head groups, query-tile grid axis, padded-key masking.
# ----------------------------------------------------------------------------

def _rot_half(x, rot):
    half = rot // 2
    parts = [-x[:, half:rot], x[:, :half]]
    if x.shape[1] > rot:
        parts.append(x[:, rot:])               # multiplied by sin == 0 beyond rot
    return jnp.concatenate(parts, axis=-1)


def _attn_core(qb, kb, vb, cq, sq, ck, sk, o_ref, *, nh, d, rot, scale, s_valid):
    kmask = jax.lax.broadcasted_iota(jnp.int32, (1, kb.shape[0]), 1) < s_valid
    for h in range(nh):                        # static unrolled head loop
        qh = qb[:, h * d:(h + 1) * d].astype(jnp.float32)
        kh = kb[:, h * d:(h + 1) * d].astype(jnp.float32)
        vh = vb[:, h * d:(h + 1) * d]
        qh = qh * cq + _rot_half(qh, rot) * sq
        kh = kh * ck + _rot_half(kh, rot) * sk
        s = jax.lax.dot_general(               # contract head dim, no transpose
            qh.astype(jnp.bfloat16), kh.astype(jnp.bfloat16),
            (((1,), (1,)), ((), ())),
            preferred_element_type=jnp.float32) * scale
        s = jnp.where(kmask, s, -1e30)         # mask padded key positions
        m = jnp.max(s, axis=-1, keepdims=True)
        p = jnp.exp(s - m)
        denom = jnp.sum(p, axis=-1, keepdims=True)
        p = p * pl.reciprocal(denom, approx=True)
        o = jnp.dot(p.astype(jnp.bfloat16), vh, preferred_element_type=jnp.float32)
        o_ref[0, :, h * d:(h + 1) * d] = o.astype(o_ref.dtype)   # direct per-head store


def _attn_kernel_grouped(q_ref, k_ref, v_ref, cq_ref, sq_ref, ck_ref, sk_ref,
                         o_ref, **kw):
    _attn_core(q_ref[0], k_ref[0], v_ref[0],
               cq_ref[...], sq_ref[...], ck_ref[...], sk_ref[...], o_ref, **kw)


def _attn_kernel_fused(qkv_ref, c_ref, s_ref, o_ref, *, hd, **kw):
    qkv = qkv_ref[0]
    _attn_core(qkv[:, 0:hd], qkv[:, hd:2 * hd], qkv[:, 2 * hd:3 * hd],
               c_ref[...], s_ref[...], c_ref[...], s_ref[...], o_ref, **kw)


def pallas_attention(qkv, cos, sin, *, heads, dim_head, rot_dim, s_valid, tq=_TQ):
    """qkv: (B, S_pad, 3*heads*dim_head) bf16; cos/sin: (S_pad, dim_head) f32."""
    B, S, _ = qkv.shape
    D = dim_head
    HD = heads * D
    scale = D ** -0.5

    hpb = max(1, 128 // D)                     # heads per lane-dense column block
    while hpb > 1 and (heads % hpb or (hpb * D) % 128):
        hpb -= 1
    grouped = (heads % hpb == 0) and ((hpb * D) % 128 == 0)

    if grouped:
        G = heads // hpb
        bw = hpb * D
        tq_blk = _blk(S, tq, 16)
        kernel = functools.partial(_attn_kernel_grouped, nh=hpb, d=D, rot=rot_dim,
                                   scale=scale, s_valid=s_valid)
        cs_q = pl.BlockSpec((tq_blk, D), lambda b, g, qi: (qi, 0))
        cs_k = pl.BlockSpec((S, D), lambda b, g, qi: (0, 0))
        return pl.pallas_call(
            kernel,
            out_shape=jax.ShapeDtypeStruct((B, S, HD), jnp.bfloat16),
            grid=(B, G, S // tq_blk),          # q-tile innermost: K/V stay resident
            in_specs=[
                pl.BlockSpec((1, tq_blk, bw), lambda b, g, qi: (b, qi, g)),
                pl.BlockSpec((1, S, bw), lambda b, g, qi: (b, 0, g + G)),
                pl.BlockSpec((1, S, bw), lambda b, g, qi: (b, 0, g + 2 * G)),
                cs_q, cs_q, cs_k, cs_k,
            ],
            out_specs=pl.BlockSpec((1, tq_blk, bw), lambda b, g, qi: (b, qi, g)),
            compiler_params=_cparams("parallel", "parallel", "parallel"),
        )(qkv, qkv, qkv, cos, sin, cos, sin)

    # Fallback (heads do not pack into 128-lane groups): single QKV slab per batch,
    # q/k/v sliced by column offset in-kernel (one DMA of the slab, not three).
    # TODO(synk): flash-style online-softmax over KV tiles for very long sequences.
    kernel = functools.partial(_attn_kernel_fused, hd=HD, nh=heads, d=D,
                               rot=rot_dim, scale=scale, s_valid=s_valid)
    cs = pl.BlockSpec((S, D), lambda b: (0, 0))
    return pl.pallas_call(
        kernel,
        out_shape=jax.ShapeDtypeStruct((B, S, HD), jnp.bfloat16),
        grid=(B,),
        in_specs=[pl.BlockSpec((1, S, 3 * HD), lambda b: (b, 0, 0)), cs, cs],
        out_specs=pl.BlockSpec((1, S, HD), lambda b: (b, 0, 0)),
        compiler_params=_cparams("parallel"),
    )(qkv, cos, sin)


# ----------------------------------------------------------------------------
# Kernel: fused timestep embedding MLP (Linear -> SiLU -> Linear), one launch
# ----------------------------------------------------------------------------

def _ts_kernel(f_ref, w1_ref, b1_ref, w2_ref, b2_ref, o_ref):
    h = jnp.dot(f_ref[...], w1_ref[...], preferred_element_type=jnp.float32) + b1_ref[...]
    h = h * jax.nn.sigmoid(h)
    o_ref[...] = jnp.dot(h.astype(jnp.bfloat16), w2_ref[...],
                         preferred_element_type=jnp.float32) + b2_ref[...]


def pallas_timestep_embed(f, w1_t, b1, w2_t, b2):
    B, F = f.shape
    E = w1_t.shape[1]
    return pl.pallas_call(
        _ts_kernel,
        out_shape=jax.ShapeDtypeStruct((B, E), jnp.float32),
        grid=(1,),
        in_specs=[
            pl.BlockSpec((B, F), lambda i: (0, 0)),
            pl.BlockSpec((F, E), lambda i: (0, 0)),
            pl.BlockSpec((1, E), lambda i: (0, 0)),
            pl.BlockSpec((E, E), lambda i: (0, 0)),
            pl.BlockSpec((1, E), lambda i: (0, 0)),
        ],
        out_specs=pl.BlockSpec((B, E), lambda i: (0, 0)),
        compiler_params=_cparams("arbitrary"),
    )(f, w1_t, jnp.asarray(b1, jnp.float32).reshape(1, E),
      w2_t, jnp.asarray(b2, jnp.float32).reshape(1, E))


# ----------------------------------------------------------------------------
# Rotary tables in the contiguous "half-rotation" basis
# ----------------------------------------------------------------------------

def make_rotary_half(S, rot, D, theta=10000.0):
    inv = 1.0 / (theta ** (jnp.arange(0, rot, 2, dtype=jnp.float32) / rot))
    fr = jnp.arange(S, dtype=jnp.float32)[:, None] * inv[None, :]    # (S, rot//2)
    cos = jnp.concatenate([jnp.cos(fr), jnp.cos(fr)], axis=-1)
    sin = jnp.concatenate([jnp.sin(fr), jnp.sin(fr)], axis=-1)
    if D > rot:
        cos = jnp.concatenate([cos, jnp.ones((S, D - rot), jnp.float32)], axis=-1)
        sin = jnp.concatenate([sin, jnp.zeros((S, D - rot), jnp.float32)], axis=-1)
    return cos, sin


# ----------------------------------------------------------------------------
# Parameters: faithful synthetic init (then *0.5 like DiTUncondWrapper), plus a
# one-time inference prep pass (transpose, bf16 cast, QKV fuse, lane padding,
# rotary even/odd permutation fold into Wq/Wk)
# ----------------------------------------------------------------------------

def init_params(key, io_channels, embed_dim, depth, heads, dim_head,
                ff_mult=4, timestep_features_dim=256):
    std = 0.02
    E = embed_dim
    inner = E * ff_mult
    HD = heads * dim_head
    keys = iter(jax.random.split(key, 16 + depth))

    def nrm(k, shape):
        return jax.random.normal(k, shape, jnp.float32) * std

    p = {}
    # FourierFeatures(1, 256): weight (128, 1), std=1
    p["fourier_w"] = jax.random.normal(next(keys), (timestep_features_dim // 2, 1), jnp.float32)
    # to_timestep_embed: Linear(256,E) -> SiLU -> Linear(E,E)
    p["ts_w1"] = nrm(next(keys), (E, timestep_features_dim)); p["ts_b1"] = jnp.zeros((E,))
    p["ts_w2"] = nrm(next(keys), (E, E));                     p["ts_b2"] = jnp.zeros((E,))
    # preprocess / postprocess 1x1 convs are zero-initialised in the module
    p["pre_w"] = jnp.zeros((io_channels, io_channels))
    p["post_w"] = jnp.zeros((io_channels, io_channels))
    # ContinuousTransformerWrapper project_in / project_out
    p["proj_in_w"] = nrm(next(keys), (E, io_channels));  p["proj_in_b"] = jnp.zeros((E,))
    p["proj_out_w"] = nrm(next(keys), (io_channels, E)); p["proj_out_b"] = jnp.zeros((io_channels,))
    # Encoder final LayerNorm
    p["final_g"] = jnp.ones((E,)); p["final_b"] = jnp.zeros((E,))

    layers = []
    for _ in range(depth):
        lk = jax.random.split(next(keys), 4)
        layers.append({
            "ln1_g": jnp.ones((E,)), "ln1_b": jnp.zeros((E,)),
            "wq": nrm(lk[0], (HD, E)),
            "wk": nrm(lk[1], (HD, E)),
            "wv": nrm(lk[2], (HD, E)),
            "wo": jnp.zeros((E, HD)),                       # zero_init_branch_output=True
            "ln2_g": jnp.ones((E,)), "ln2_b": jnp.zeros((E,)),
            "ff_w1": nrm(lk[3], (2 * inner, E)), "ff_b1": jnp.zeros((2 * inner,)),
            "ff_w2": jnp.zeros((E, inner)), "ff_b2": jnp.zeros((E,)),   # zero init
        })
    p["layers"] = layers

    # DiTUncondWrapper.__init__: every parameter *= 0.5
    return jax.tree_util.tree_map(lambda a: a.astype(jnp.float32) * 0.5, p)


def prepare_inference_params(p, heads, dim_head, io_channels):
    """Pre-transpose + bf16-cast weights, fuse QKV, lane-pad the channel weights
    to 128-wide slabs, fold the rotary even/odd de-interleave into Wq/Wk."""
    D = dim_head
    rot = min(max(D // 2, 32), D)
    perm = np.concatenate([np.arange(0, rot, 2), np.arange(1, rot, 2),
                           np.arange(rot, D)]).astype(np.int64)
    C = io_channels
    C_pad = max(128, _pad_up(C, 128))
    E = int(p["proj_in_w"].shape[0])

    def bt(w):                                  # torch (out, in) -> (in, out) bf16
        return jnp.asarray(np.asarray(w).T, jnp.bfloat16)

    def pad2(a, rows, cols):
        a = np.asarray(a, np.float32)
        out = np.zeros((rows, cols), np.float32)
        out[:a.shape[0], :a.shape[1]] = a
        return out

    proj_out_b = np.zeros((C_pad,), np.float32)
    proj_out_b[:C] = np.asarray(p["proj_out_b"], np.float32)

    q = {
        "fourier_w": p["fourier_w"],
        "ts_w1_t": bt(p["ts_w1"]), "ts_b1": p["ts_b1"],
        "ts_w2_t": bt(p["ts_w2"]), "ts_b2": p["ts_b2"],
        # 1x1 convs as x @ W^T, lane-padded so stores are 128-lane dense
        "pre_w_t": jnp.asarray(pad2(np.asarray(p["pre_w"]).T, C_pad, C_pad), jnp.bfloat16),
        "post_w_t": jnp.asarray(pad2(np.asarray(p["post_w"]).T, C_pad, C_pad), jnp.bfloat16),
        # project_in consumes the lane-padded channel slab directly (zero rows)
        "proj_in_w_t": jnp.asarray(pad2(np.asarray(p["proj_in_w"]).T, C_pad, E), jnp.bfloat16),
        "proj_in_b": p["proj_in_b"],
        # project_out padded to >=128 lane-dense output columns (zero cols / bias)
        "proj_out_w_t": jnp.asarray(pad2(np.asarray(p["proj_out_w"]).T, E, C_pad), jnp.bfloat16),
        "proj_out_b": jnp.asarray(proj_out_b),
        "final_g": p["final_g"], "final_b": p["final_b"],
    }
    layers = []
    for lp in p["layers"]:
        Ecur = lp["wq"].shape[1]
        wq = np.asarray(lp["wq"]).reshape(heads, D, Ecur)[:, perm, :].reshape(heads * D, Ecur)
        wk = np.asarray(lp["wk"]).reshape(heads, D, Ecur)[:, perm, :].reshape(heads * D, Ecur)
        wv = np.asarray(lp["wv"])
        w_qkv_t = jnp.asarray(np.concatenate([wq, wk, wv], axis=0).T, jnp.bfloat16)
        inner = lp["ff_w1"].shape[0] // 2
        layers.append({
            "ln1_g": lp["ln1_g"], "ln1_b": lp["ln1_b"],
            "w_qkv_t": w_qkv_t,
            "wo_t": bt(lp["wo"]),
            "ln2_g": lp["ln2_g"], "ln2_b": lp["ln2_b"],
            "ffv_w_t": jnp.asarray(np.asarray(lp["ff_w1"])[:inner].T, jnp.bfloat16),
            "ffg_w_t": jnp.asarray(np.asarray(lp["ff_w1"])[inner:].T, jnp.bfloat16),
            "ffv_b": lp["ff_b1"][:inner], "ffg_b": lp["ff_b1"][inner:],
            "ff2_w_t": bt(lp["ff_w2"]), "ff2_b": lp["ff_b2"],
        })
    q["layers"] = layers
    return q


# ----------------------------------------------------------------------------
# Forward pass
# ----------------------------------------------------------------------------

def dit_uncond_forward(params, x, t, *, heads, dim_head,
                       skip_pre_conv=False, skip_post_conv=False):
    B, C, T = x.shape
    E = params["proj_in_w_t"].shape[1]
    C_pad = params["proj_in_w_t"].shape[0]
    C_out_pad = params["proj_out_w_t"].shape[1]
    D = dim_head
    HD = heads * D
    rot_dim = min(max(D // 2, 32), D)          # x-transformers rotary partial dim

    # --- timestep embedding: FourierFeatures -> Linear -> SiLU -> Linear ---
    f = 2.0 * np.pi * (t[:, None] * params["fourier_w"][:, 0][None, :])      # (B, 128)
    ff = jnp.concatenate([jnp.cos(f), jnp.sin(f)], axis=-1).astype(jnp.bfloat16)
    te = pallas_timestep_embed(ff, params["ts_w1_t"], params["ts_b1"],
                               params["ts_w2_t"], params["ts_b2"])           # (B, E) f32

    # --- channel-last + lane-dense channel padding ---
    x_btc = jnp.transpose(x, (0, 2, 1)).reshape(B * T, C)
    if C_pad > C:
        x_btc = jnp.pad(x_btc, ((0, 0), (0, C_pad - C)))

    # --- preprocess_conv(x) + x (1x1, no bias); skipped when exactly zero ---
    if not skip_pre_conv:
        x_btc = pallas_matmul_residual(x_btc.astype(jnp.bfloat16),
                                       params["pre_w_t"], x_btc)

    # --- project_in, prepend timestep token, pad sequence for tiling ---
    h_tok = pallas_matmul(x_btc.astype(jnp.bfloat16), params["proj_in_w_t"],
                          params["proj_in_b"])                               # (B*T, E)
    S = T + 1
    S_pad = _pad_up(S, 16)                      # restores >=16-row tiling of M = B*S_pad
    h = jnp.concatenate([te[:, None, :], h_tok.reshape(B, T, E)], axis=1)    # (B, S, E)
    h = jnp.pad(h, ((0, 0), (0, S_pad - S), (0, 0)))                         # (B, S_pad, E)
    M = B * S_pad

    cos, sin = make_rotary_half(S_pad, rot_dim, D)

    for lp in params["layers"]:
        hm = h.reshape(M, E)
        # fused pre-LN + QKV projection (LN computed once per row tile, bf16 out)
        qkv = pallas_ln_matmul(hm, lp["ln1_g"], lp["ln1_b"], lp["w_qkv_t"],
                               out_dtype=jnp.bfloat16)
        a = pallas_attention(qkv.reshape(B, S_pad, 3 * HD), cos, sin,
                             heads=heads, dim_head=D, rot_dim=rot_dim, s_valid=S)
        # to_out projection (no bias, zero-init) fused with the residual add
        h = pallas_matmul_residual(a.reshape(M, HD), lp["wo_t"], hm)
        # fused pre-LN -> FF1 -> SwiGLU -> FF2 -> residual
        h = pallas_ff(h, lp["ln2_g"], lp["ln2_b"],
                      lp["ffv_w_t"], lp["ffv_b"], lp["ffg_w_t"], lp["ffg_b"],
                      lp["ff2_w_t"], lp["ff2_b"])
        h = h.reshape(B, S_pad, E)

    # --- final LayerNorm fused with project_out (lane-dense padded output) ---
    out = pallas_ln_matmul(h.reshape(M, E), params["final_g"], params["final_b"],
                           params["proj_out_w_t"], params["proj_out_b"])     # (M, C_out_pad)
    out = out.reshape(B, S_pad, C_out_pad)[:, 1:T + 1, :].reshape(B * T, C_out_pad)

    # --- postprocess_conv(out) + out (1x1, no bias); skipped when exactly zero ---
    if not skip_post_conv:
        out = pallas_matmul_residual(out.astype(jnp.bfloat16),
                                     params["post_w_t"], out)
    out = out[:, :C].reshape(B, T, C).transpose(0, 2, 1)                     # (B, C, T)
    return out


# ----------------------------------------------------------------------------

if __name__ == "__main__":
    B, C, T = 2, 8, 16                 # batch, io_channels, sequence length
    E, depth, heads, dim_head = 128, 2, 4, 32

    key = jax.random.PRNGKey(0)
    kp, kx, kt = jax.random.split(key, 3)
    raw_params = init_params(kp, C, E, depth, heads, dim_head)
    params = prepare_inference_params(raw_params, heads, dim_head, C)

    # Host-side gate: the pre/post 1x1 convs are zero-initialised -> exact identity.
    skip_pre = not bool(np.any(np.asarray(raw_params["pre_w"]) != 0))
    skip_post = not bool(np.any(np.asarray(raw_params["post_w"]) != 0))

    x = jax.random.normal(kx, (B, C, T), jnp.float32)
    t = jax.random.uniform(kt, (B,), jnp.float32)

    fwd = jax.jit(functools.partial(dit_uncond_forward, heads=heads, dim_head=dim_head,
                                    skip_pre_conv=skip_pre, skip_post_conv=skip_post))
    out = jax.block_until_ready(fwd(params, x, t))
    assert out.shape == (B, C, T), out.shape
    assert bool(jnp.all(jnp.isfinite(out)))
    print("KERNEL_OK")
</pallas_src>

<mosaic_0001>
module attributes {stable_mosaic.version = 11 : i64} {
  func.func @_ts_kernel(%arg0: i32, %arg1: memref<2x256xbf16, #tpu.memory_space<vmem>>, %arg2: memref<256x128xbf16, #tpu.memory_space<vmem>>, %arg3: memref<1x128xf32, #tpu.memory_space<vmem>>, %arg4: memref<128x128xbf16, #tpu.memory_space<vmem>>, %arg5: memref<1x128xf32, #tpu.memory_space<vmem>>, %arg6: memref<2x128xf32, #tpu.memory_space<vmem>>) attributes {dimension_semantics = [#tpu.dimension_semantics<arbitrary>], iteration_bounds = array<i64: 1>, scalar_prefetch = 0 : i64, scratch_operands = 0 : i64, tpu.core_type = #tpu.core_type<tc>, window_params = [{pipeline_mode = #tpu.pipeline_mode<synchronous>, transform_indices = @transform_0, window_bounds = array<i64: 2, 256>}, {pipeline_mode = #tpu.pipeline_mode<synchronous>, transform_indices = @transform_1, window_bounds = array<i64: 256, 128>}, {pipeline_mode = #tpu.pipeline_mode<synchronous>, transform_indices = @transform_2, window_bounds = array<i64: 1, 128>}, {pipeline_mode = #tpu.pipeline_mode<synchronous>, transform_indices = @transform_3, window_bounds = array<i64: 128, 128>}, {pipeline_mode = #tpu.pipeline_mode<synchronous>, transform_indices = @transform_4, window_bounds = array<i64: 1, 128>}, {pipeline_mode = #tpu.pipeline_mode<synchronous>, transform_indices = @transform_5, window_bounds = array<i64: 2, 128>}]} {
    %c0 = arith.constant 0 : index
    %c0_0 = arith.constant 0 : index
    %0 = vector.load %arg1[%c0, %c0_0] : memref<2x256xbf16, #tpu.memory_space<vmem>>, vector<2x256xbf16>
    %c0_1 = arith.constant 0 : index
    %c0_2 = arith.constant 0 : index
    %1 = vector.load %arg2[%c0_1, %c0_2] : memref<256x128xbf16, #tpu.memory_space<vmem>>, vector<256x128xbf16>
    %cst = arith.constant dense<0.000000e+00> : vector<2x128xf32>
    %2 = tpu.matmul %0, %1, %cst {dimension_numbers = #tpu.dot_dimension_numbers<[1], [0], [0], [1], [0, 0, 1, 1], [], []>} : vector<2x256xbf16>, vector<256x128xbf16>, vector<2x128xf32> -> vector<2x128xf32>
    %c0_3 = arith.constant 0 : index
    %c0_4 = arith.constant 0 : index
    %3 = vector.load %arg3[%c0_3, %c0_4] : memref<1x128xf32, #tpu.memory_space<vmem>>, vector<1x128xf32>
    %4 = vector.broadcast %3 : vector<1x128xf32> to vector<2x128xf32>
    %5 = arith.addf %2, %4 : vector<2x128xf32>
    %6 = arith.negf %5 : vector<2x128xf32>
    %7 = math.exp %6 : vector<2x128xf32>
    %cst_5 = arith.constant 1.000000e+00 : f32
    %8 = vector.broadcast %cst_5 : f32 to vector<2x128xf32>
    %9 = arith.addf %8, %7 : vector<2x128xf32>
    %10 = arith.divf %8, %9 : vector<2x128xf32>
    %11 = arith.mulf %5, %10 : vector<2x128xf32>
    %12 = arith.truncf %11 : vector<2x128xf32> to vector<2x128xbf16>
    %c0_6 = arith.constant 0 : index
    %c0_7 = arith.constant 0 : index
    %13 = vector.load %arg4[%c0_6, %c0_7] : memref<128x128xbf16, #tpu.memory_space<vmem>>, vector<128x128xbf16>
    %cst_8 = arith.constant dense<0.000000e+00> : vector<2x128xf32>
    %14 = tpu.matmul %12, %13, %cst_8 {dimension_numbers = #tpu.dot_dimension_numbers<[1], [0], [0], [1], [0, 0, 1, 1], [], []>} : vector<2x128xbf16>, vector<128x128xbf16>, vector<2x128xf32> -> vector<2x128xf32>
    %c0_9 = arith.constant 0 : index
    %c0_10 = arith.constant 0 : index
    %15 = vector.load %arg5[%c0_9, %c0_10] : memref<1x128xf32, #tpu.memory_space<vmem>>, vector<1x128xf32>
    %16 = vector.broadcast %15 : vector<1x128xf32> to vector<2x128xf32>
    %17 = arith.addf %14, %16 : vector<2x128xf32>
    %c0_11 = arith.constant 0 : index
    %c0_12 = arith.constant 0 : index
    %18 = vector.load %arg6[%c0_11, %c0_12] : memref<2x128xf32, #tpu.memory_space<vmem>>, vector<2x128xf32>
    tpu.vector_store %arg6[%c0_11, %c0_12], %17 {strides = array<i32>} : memref<2x128xf32, #tpu.memory_space<vmem>>, vector<2x128xf32>,
    return
  }
  func.func @transform_0(%arg0: i32) -> (i32, i32) {
    %c0_i32 = arith.constant 0 : i32
    %c0_i32_0 = arith.constant 0 : i32
    %c0_i32_1 = arith.constant 0 : i32
    return %c0_i32, %c0_i32_0 : i32, i32
  }
  func.func @transform_1(%arg0: i32) -> (i32, i32) {
    %c0_i32 = arith.constant 0 : i32
    %c0_i32_0 = arith.constant 0 : i32
    %c0_i32_1 = arith.constant 0 : i32
    return %c0_i32, %c0_i32_0 : i32, i32
  }
  func.func @transform_2(%arg0: i32) -> (i32, i32) {
    %c0_i32 = arith.constant 0 : i32
    %c0_i32_0 = arith.constant 0 : i32
    %c0_i32_1 = arith.constant 0 : i32
    return %c0_i32, %c0_i32_0 : i32, i32
  }
  func.func @transform_3(%arg0: i32) -> (i32, i32) {
    %c0_i32 = arith.constant 0 : i32
    %c0_i32_0 = arith.constant 0 : i32
    %c0_i32_1 = arith.constant 0 : i32
    return %c0_i32, %c0_i32_0 : i32, i32
  }
  func.func @transform_4(%arg0: i32) -> (i32, i32) {
    %c0_i32 = arith.constant 0 : i32
    %c0_i32_0 = arith.constant 0 : i32
    %c0_i32_1 = arith.constant 0 : i32
    return %c0_i32, %c0_i32_0 : i32, i32
  }
  func.func @transform_5(%arg0: i32) -> (i32, i32) {
    %c0_i32 = arith.constant 0 : i32
    %c0_i32_0 = arith.constant 0 : i32
    %c0_i32_1 = arith.constant 0 : i32
    return %c0_i32, %c0_i32_0 : i32, i32
  }
}

module attributes {stable_mosaic.version = 11 : i64} {
  func.func @_matmul_kernel(%arg0: i32, %arg1: i32, %arg2: memref<32x128xbf16, #tpu.memory_space<vmem>>, %arg3: memref<128x128xbf16, #tpu.memory_space<vmem>>, %arg4: memref<1x128xf32, #tpu.memory_space<vmem>>, %arg5: memref<32x128xf32, #tpu.memory_space<vmem>>) attributes {dimension_semantics = [#tpu.dimension_semantics<parallel>, #tpu.dimension_semantics<parallel>], iteration_bounds = array<i64: 1, 1>, scalar_prefetch = 0 : i64, scratch_operands = 0 : i64, tpu.core_type = #tpu.core_type<tc>, window_params = [{transform_indices = @transform_0, window_bounds = array<i64: 32, 128>}, {transform_indices = @transform_1, window_bounds = array<i64: 128, 128>}, {transform_indices = @transform_2, window_bounds = array<i64: 1, 128>}, {transform_indices = @transform_3, window_bounds = array<i64: 32, 128>}]} {
    %c0 = arith.constant 0 : index
    %c0_0 = arith.constant 0 : index
    %0 = vector.load %arg2[%c0, %c0_0] : memref<32x128xbf16, #tpu.memory_space<vmem>>, vector<32x128xbf16>
    %c0_1 = arith.constant 0 : index
    %c0_2 = arith.constant 0 : index
    %1 = vector.load %arg3[%c0_1, %c0_2] : memref<128x128xbf16, #tpu.memory_space<vmem>>, vector<128x128xbf16>
    %cst = arith.constant dense<0.000000e+00> : vector<32x128xf32>
    %2 = tpu.matmul %0, %1, %cst {dimension_numbers = #tpu.dot_dimension_numbers<[1], [0], [0], [1], [0, 0, 1, 1], [], []>} : vector<32x128xbf16>, vector<128x128xbf16>, vector<32x128xf32> -> vector<32x128xf32>
    %c0_3 = arith.constant 0 : index
    %c0_4 = arith.constant 0 : index
    %3 = vector.load %arg4[%c0_3, %c0_4] : memref<1x128xf32, #tpu.memory_space<vmem>>, vector<1x128xf32>
    %4 = vector.broadcast %3 : vector<1x128xf32> to vector<32x128xf32>
    %5 = arith.addf %2, %4 : vector<32x128xf32>
    %c0_5 = arith.constant 0 : index
    %c0_6 = arith.constant 0 : index
    %6 = vector.load %arg5[%c0_5, %c0_6] : memref<32x128xf32, #tpu.memory_space<vmem>>, vector<32x128xf32>
    tpu.vector_store %arg5[%c0_5, %c0_6], %5 {strides = array<i32>} : memref<32x128xf32, #tpu.memory_space<vmem>>, vector<32x128xf32>,
    return
  }
  func.func @transform_0(%arg0: i32, %arg1: i32) -> (i32, i32) {
    %c0_i32 = arith.constant 0 : i32
    %c0_i32_0 = arith.constant 0 : i32
    return %arg0, %c0_i32 : i32, i32
  }
  func.func @transform_1(%arg0: i32, %arg1: i32) -> (i32, i32) {
    %c0_i32 = arith.constant 0 : i32
    %c0_i32_0 = arith.constant 0 : i32
    return %c0_i32, %arg1 : i32, i32
  }
  func.func @transform_2(%arg0: i32, %arg1: i32) -> (i32, i32) {
    %c0_i32 = arith.constant 0 : i32
    %c0_i32_0 = arith.constant 0 : i32
    return %c0_i32, %arg1 : i32, i32
  }
  func.func @transform_3(%arg0: i32, %arg1: i32) -> (i32, i32) {
    %c0_i32 = arith.constant 0 : i32
    return %arg0, %arg1 : i32, i32
  }
}

module attributes {stable_mosaic.version = 11 : i64} {
  func.func @_ln_matmul_kernel(%arg0: i32, %arg1: i32, %arg2: memref<64x128xf32, #tpu.memory_space<vmem>>, %arg3: memref<1x128xf32, #tpu.memory_space<vmem>>, %arg4: memref<1x128xf32, #tpu.memory_space<vmem>>, %arg5: memref<128x128xbf16, #tpu.memory_space<vmem>>, %arg6: memref<64x128xbf16, #tpu.memory_space<vmem>>, %arg7: memref<64x128xbf16, #tpu.memory_space<vmem>>) attributes {dimension_semantics = [#tpu.dimension_semantics<parallel>, #tpu.dimension_semantics<arbitrary>], iteration_bounds = array<i64: 1, 3>, scalar_prefetch = 0 : i64, scratch_operands = 1 : i64, tpu.core_type = #tpu.core_type<tc>, window_params = [{transform_indices = @transform_0, window_bounds = array<i64: 64, 128>}, {pipeline_mode = #tpu.pipeline_mode<synchronous>, transform_indices = @transform_1, window_bounds = array<i64: 1, 128>}, {pipeline_mode = #tpu.pipeline_mode<synchronous>, transform_indices = @transform_2, window_bounds = array<i64: 1, 128>}, {transform_indices = @transform_3, window_bounds = array<i64: 128, 128>}, {transform_indices = @transform_4, window_bounds = array<i64: 64, 128>}]} {
    %c0_i32 = arith.constant 0 : i32
    %0 = arith.cmpi eq, %arg1, %c0_i32 : i32
    %1 = arith.extui %0 : i1 to i32
    %c0_i32_0 = arith.constant 0 : i32
    %2 = arith.cmpi ne, %1, %c0_i32_0 : i32
    scf.if %2 {
      %c0_6 = arith.constant 0 : index
      %c0_7 = arith.constant 0 : index
      %8 = vector.load %arg2[%c0_6, %c0_7] : memref<64x128xf32, #tpu.memory_space<vmem>>, vector<64x128xf32>
      %cst_8 = arith.constant dense<0.000000e+00> : vector<64xf32>
      %9 = vector.multi_reduction <add>, %8, %cst_8 [1] : vector<64x128xf32> to vector<64xf32>
      %10 = vector.shape_cast %9 : vector<64xf32> to vector<64x1xf32>
      %cst_9 = arith.constant 1.280000e+02 : f32
      %11 = vector.broadcast %cst_9 : f32 to vector<64x1xf32>
      %12 = arith.divf %10, %11 : vector<64x1xf32>
      %13 = vector.broadcast %12 : vector<64x1xf32> to vector<64x128xf32>
      %14 = arith.subf %8, %13 : vector<64x128xf32>
      %15 = arith.mulf %14, %14 : vector<64x128xf32>
      %cst_10 = arith.constant dense<0.000000e+00> : vector<64xf32>
      %16 = vector.multi_reduction <add>, %15, %cst_10 [1] : vector<64x128xf32> to vector<64xf32>
      %17 = vector.shape_cast %16 : vector<64xf32> to vector<64x1xf32>
      %cst_11 = arith.constant 1.280000e+02 : f32
      %18 = vector.broadcast %cst_11 : f32 to vector<64x1xf32>
      %19 = arith.divf %17, %18 : vector<64x1xf32>
      %cst_12 = arith.constant 9.99999974E-6 : f32
      %20 = vector.broadcast %cst_12 : f32 to vector<64x1xf32>
      %21 = arith.addf %19, %20 : vector<64x1xf32>
      %22 = math.rsqrt %21 : vector<64x1xf32>
      %23 = vector.broadcast %22 : vector<64x1xf32> to vector<64x128xf32>
      %24 = arith.mulf %14, %23 : vector<64x128xf32>
      %c0_13 = arith.constant 0 : index
      %c0_14 = arith.constant 0 : index
      %25 = vector.load %arg3[%c0_13, %c0_14] : memref<1x128xf32, #tpu.memory_space<vmem>>, vector<1x128xf32>
      %26 = vector.broadcast %25 : vector<1x128xf32> to vector<64x128xf32>
      %27 = arith.mulf %24, %26 : vector<64x128xf32>
      %c0_15 = arith.constant 0 : index
      %c0_16 = arith.constant 0 : index
      %28 = vector.load %arg4[%c0_15, %c0_16] : memref<1x128xf32, #tpu.memory_space<vmem>>, vector<1x128xf32>
      %29 = vector.broadcast %28 : vector<1x128xf32> to vector<64x128xf32>
      %30 = arith.addf %27, %29 : vector<64x128xf32>
      %31 = arith.truncf %30 : vector<64x128xf32> to vector<64x128xbf16>
      %c0_17 = arith.constant 0 : index
      %c0_18 = arith.constant 0 : index
      %32 = vector.load %arg7[%c0_17, %c0_18] : memref<64x128xbf16, #tpu.memory_space<vmem>>, vector<64x128xbf16>
      tpu.vector_store %arg7[%c0_17, %c0_18], %31 {strides = array<i32>} : memref<64x128xbf16, #tpu.memory_space<vmem>>, vector<64x128xbf16>,
    } else {
    }
    %c0 = arith.constant 0 : index
    %c0_1 = arith.constant 0 : index
    %3 = vector.load %arg7[%c0, %c0_1] : memref<64x128xbf16, #tpu.memory_space<vmem>>, vector<64x128xbf16>
    %c0_2 = arith.constant 0 : index
    %c0_3 = arith.constant 0 : index
    %4 = vector.load %arg5[%c0_2, %c0_3] : memref<128x128xbf16, #tpu.memory_space<vmem>>, vector<128x128xbf16>
    %cst = arith.constant dense<0.000000e+00> : vector<64x128xf32>
    %5 = tpu.matmul %3, %4, %cst {dimension_numbers = #tpu.dot_dimension_numbers<[1], [0], [0], [1], [0, 0, 1, 1], [], []>} : vector<64x128xbf16>, vector<128x128xbf16>, vector<64x128xf32> -> vector<64x128xf32>
    %6 = arith.truncf %5 : vector<64x128xf32> to vector<64x128xbf16>
    %c0_4 = arith.constant 0 : index
    %c0_5 = arith.constant 0 : index
    %7 = vector.load %arg6[%c0_4, %c0_5] : memref<64x128xbf16, #tpu.memory_space<vmem>>, vector<64x128xbf16>
    tpu.vector_store %arg6[%c0_4, %c0_5], %6 {strides = array<i32>} : memref<64x128xbf16, #tpu.memory_space<vmem>>, vector<64x128xbf16>,
    return
  }
  func.func @transform_0(%arg0: i32, %arg1: i32) -> (i32, i32) {
    %c0_i32 = arith.constant 0 : i32
    %c0_i32_0 = arith.constant 0 : i32
    return %arg0, %c0_i32 : i32, i32
  }
  func.func @transform_1(%arg0: i32, %arg1: i32) -> (i32, i32) {
    %c0_i32 = arith.constant 0 : i32
    %c0_i32_0 = arith.constant 0 : i32
    %c0_i32_1 = arith.constant 0 : i32
    return %c0_i32, %c0_i32_0 : i32, i32
  }
  func.func @transform_2(%arg0: i32, %arg1: i32) -> (i32, i32) {
    %c0_i32 = arith.constant 0 : i32
    %c0_i32_0 = arith.constant 0 : i32
    %c0_i32_1 = arith.constant 0 : i32
    return %c0_i32, %c0_i32_0 : i32, i32
  }
  func.func @transform_3(%arg0: i32, %arg1: i32) -> (i32, i32) {
    %c0_i32 = arith.constant 0 : i32
    %c0_i32_0 = arith.constant 0 : i32
    return %c0_i32, %arg1 : i32, i32
  }
  func.func @transform_4(%arg0: i32, %arg1: i32) -> (i32, i32) {
    %c0_i32 = arith.constant 0 : i32
    return %arg0, %arg1 : i32, i32
  }
}

module attributes {stable_mosaic.version = 11 : i64} {
  func.func @_attn_kernel_grouped(%arg0: i32, %arg1: i32, %arg2: i32, %arg3: memref<1x32x128xbf16, #tpu.memory_space<vmem>>, %arg4: memref<1x32x128xbf16, #tpu.memory_space<vmem>>, %arg5: memref<1x32x128xbf16, #tpu.memory_space<vmem>>, %arg6: memref<32x32xf32, #tpu.memory_space<vmem>>, %arg7: memref<32x32xf32, #tpu.memory_space<vmem>>, %arg8: memref<32x32xf32, #tpu.memory_space<vmem>>, %arg9: memref<32x32xf32, #tpu.memory_space<vmem>>, %arg10: memref<1x32x128xbf16, #tpu.memory_space<vmem>>) attributes {dimension_semantics = [#tpu.dimension_semantics<parallel>, #tpu.dimension_semantics<parallel>, #tpu.dimension_semantics<parallel>], iteration_bounds = array<i64: 2, 1, 1>, scalar_prefetch = 0 : i64, scratch_operands = 0 : i64, tpu.core_type = #tpu.core_type<tc>, window_params = [{transform_indices = @transform_0, window_bounds = array<i64: 1, 32, 128>}, {transform_indices = @transform_1, window_bounds = array<i64: 1, 32, 128>}, {transform_indices = @transform_2, window_bounds = array<i64: 1, 32, 128>}, {transform_indices = @transform_3, window_bounds = array<i64: 32, 32>}, {transform_indices = @transform_4, window_bounds = array<i64: 32, 32>}, {pipeline_mode = #tpu.pipeline_mode<synchronous>, transform_indices = @transform_5, window_bounds = array<i64: 32, 32>}, {pipeline_mode = #tpu.pipeline_mode<synchronous>, transform_indices = @transform_6, window_bounds = array<i64: 32, 32>}, {transform_indices = @transform_7, window_bounds = array<i64: 1, 32, 128>}]} {
    %c0 = arith.constant 0 : index
    %c0_0 = arith.constant 0 : index
    %c0_1 = arith.constant 0 : index
    %0 = vector.load %arg3[%c0, %c0_0, %c0_1] : memref<1x32x128xbf16, #tpu.memory_space<vmem>>, vector<1x32x128xbf16>
    %1 = vector.shape_cast %0 : vector<1x32x128xbf16> to vector<32x128xbf16>
    %c0_2 = arith.constant 0 : index
    %c0_3 = arith.constant 0 : index
    %c0_4 = arith.constant 0 : index
    %2 = vector.load %arg4[%c0_2, %c0_3, %c0_4] : memref<1x32x128xbf16, #tpu.memory_space<vmem>>, vector<1x32x128xbf16>
    %3 = vector.shape_cast %2 : vector<1x32x128xbf16> to vector<32x128xbf16>
    %c0_5 = arith.constant 0 : index
    %c0_6 = arith.constant 0 : index
    %c0_7 = arith.constant 0 : index
    %4 = vector.load %arg5[%c0_5, %c0_6, %c0_7] : memref<1x32x128xbf16, #tpu.memory_space<vmem>>, vector<1x32x128xbf16>
    %5 = vector.shape_cast %4 : vector<1x32x128xbf16> to vector<32x128xbf16>
    %c0_8 = arith.constant 0 : index
    %c0_9 = arith.constant 0 : index
    %6 = vector.load %arg6[%c0_8, %c0_9] : memref<32x32xf32, #tpu.memory_space<vmem>>, vector<32x32xf32>
    %c0_10 = arith.constant 0 : index
    %c0_11 = arith.constant 0 : index
    %7 = vector.load %arg7[%c0_10, %c0_11] : memref<32x32xf32, #tpu.memory_space<vmem>>, vector<32x32xf32>
    %c0_12 = arith.constant 0 : index
    %c0_13 = arith.constant 0 : index
    %8 = vector.load %arg8[%c0_12, %c0_13] : memref<32x32xf32, #tpu.memory_space<vmem>>, vector<32x32xf32>
    %c0_14 = arith.constant 0 : index
    %c0_15 = arith.constant 0 : index
    %9 = vector.load %arg9[%c0_14, %c0_15] : memref<32x32xf32, #tpu.memory_space<vmem>>, vector<32x32xf32>
    %10 = tpu.iota {dimensions = array<i32: 1>} : vector<1x32xi32>
    %c17_i32 = arith.constant 17 : i32
    %11 = vector.broadcast %c17_i32 : i32 to vector<1x32xi32>
    %12 = arith.cmpi slt, %10, %11 : vector<1x32xi32>
    %13 = vector.extract_strided_slice %1 {offsets = [0, 0], sizes = [32, 32], strides = [1, 1]} : vector<32x128xbf16> to vector<32x32xbf16>
    %14 = arith.extf %13 : vector<32x32xbf16> to vector<32x32xf32>
    %15 = vector.extract_strided_slice %3 {offsets = [0, 0], sizes = [32, 32], strides = [1, 1]} : vector<32x128xbf16> to vector<32x32xbf16>
    %16 = arith.extf %15 : vector<32x32xbf16> to vector<32x32xf32>
    %17 = vector.extract_strided_slice %5 {offsets = [0, 0], sizes = [32, 32], strides = [1, 1]} : vector<32x128xbf16> to vector<32x32xbf16>
    %18 = arith.mulf %14, %6 : vector<32x32xf32>
    %19 = vector.extract_strided_slice %14 {offsets = [0, 16], sizes = [32, 16], strides = [1, 1]} : vector<32x32xf32> to vector<32x16xf32>
    %cst = arith.constant 0.000000e+00 : f32
    %20 = vector.broadcast %cst : f32 to vector<32x16xf32>
    %21 = arith.subf %20, %19 : vector<32x16xf32>
    %22 = vector.extract_strided_slice %14 {offsets = [0, 0], sizes = [32, 16], strides = [1, 1]} : vector<32x32xf32> to vector<32x16xf32>
    %23 = tpu.concatenate %21, %22 in 1 : vector<32x16xf32>, vector<32x16xf32> -> vector<32x32xf32>
    %24 = arith.mulf %23, %7 : vector<32x32xf32>
    %25 = arith.addf %18, %24 : vector<32x32xf32>
    %26 = arith.mulf %16, %8 : vector<32x32xf32>
    %27 = vector.extract_strided_slice %16 {offsets = [0, 16], sizes = [32, 16], strides = [1, 1]} : vector<32x32xf32> to vector<32x16xf32>
    %cst_16 = arith.constant 0.000000e+00 : f32
    %28 = vector.broadcast %cst_16 : f32 to vector<32x16xf32>
    %29 = arith.subf %28, %27 : vector<32x16xf32>
    %30 = vector.extract_strided_slice %16 {offsets = [0, 0], sizes = [32, 16], strides = [1, 1]} : vector<32x32xf32> to vector<32x16xf32>
    %31 = tpu.concatenate %29, %30 in 1 : vector<32x16xf32>, vector<32x16xf32> -> vector<32x32xf32>
    %32 = arith.mulf %31, %9 : vector<32x32xf32>
    %33 = arith.addf %26, %32 : vector<32x32xf32>
    %34 = arith.truncf %25 : vector<32x32xf32> to vector<32x32xbf16>
    %35 = arith.truncf %33 : vector<32x32xf32> to vector<32x32xbf16>
    %cst_17 = arith.constant dense<0.000000e+00> : vector<32x32xf32>
    %36 = tpu.matmul %34, %35, %cst_17 {dimension_numbers = #tpu.dot_dimension_numbers<[1], [1], [0], [0], [0, 0, 1, 0], [], []>} : vector<32x32xbf16>, vector<32x32xbf16>, vector<32x32xf32> -> vector<32x32xf32>
    %cst_18 = arith.constant 0.176776692 : f32
    %37 = vector.broadcast %cst_18 : f32 to vector<32x32xf32>
    %38 = arith.mulf %36, %37 : vector<32x32xf32>
    %cst_19 = arith.constant -1.000000e+30 : f32
    %39 = vector.shape_cast %12 : vector<1x32xi1> to vector<1x32xi1>
    %40 = vector.broadcast %39 : vector<1x32xi1> to vector<32x32xi1>
    %41 = vector.broadcast %cst_19 : f32 to vector<32x32xf32>
    %42 = arith.select %40, %38, %41 : vector<32x32xi1>, vector<32x32xf32>
    %cst_20 = arith.constant dense<0xFF800000> : vector<32xf32>
    %43 = vector.multi_reduction <maximumf>, %42, %cst_20 [1] : vector<32x32xf32> to vector<32xf32>
    %44 = vector.shape_cast %43 : vector<32xf32> to vector<32x1xf32>
    %45 = vector.broadcast %44 : vector<32x1xf32> to vector<32x32xf32>
    %46 = arith.subf %42, %45 : vector<32x32xf32>
    %47 = math.exp %46 : vector<32x32xf32>
    %cst_21 = arith.constant dense<0.000000e+00> : vector<32xf32>
    %48 = vector.multi_reduction <add>, %47, %cst_21 [1] : vector<32x32xf32> to vector<32xf32>
    %49 = vector.shape_cast %48 : vector<32xf32> to vector<32x1xf32>
    %50 = tpu.reciprocal %49 {approx = true} : vector<32x1xf32> -> vector<32x1xf32>
    %51 = vector.broadcast %50 : vector<32x1xf32> to vector<32x32xf32>
    %52 = arith.mulf %47, %51 : vector<32x32xf32>
    %53 = arith.truncf %52 : vector<32x32xf32> to vector<32x32xbf16>
    %cst_22 = arith.constant dense<0.000000e+00> : vector<32x32xf32>
    %54 = tpu.matmul %53, %17, %cst_22 {dimension_numbers = #tpu.dot_dimension_numbers<[1], [0], [0], [1], [0, 0, 1, 1], [], []>} : vector<32x32xbf16>, vector<32x32xbf16>, vector<32x32xf32> -> vector<32x32xf32>
    %55 = arith.truncf %54 : vector<32x32xf32> to vector<32x32xbf16>
    %c0_23 = arith.constant 0 : index
    %c0_24 = arith.constant 0 : index
    %c0_25 = arith.constant 0 : index
    %56 = vector.load %arg10[%c0_23, %c0_24, %c0_25] : memref<1x32x128xbf16, #tpu.memory_space<vmem>>, vector<1x32x32xbf16>
    %57 = vector.shape_cast %56 : vector<1x32x32xbf16> to vector<32x32xbf16>
    %58 = vector.shape_cast %55 : vector<32x32xbf16> to vector<1x32x32xbf16>
    tpu.vector_store %arg10[%c0_23, %c0_24, %c0_25], %58 {strides = array<i32>} : memref<1x32x128xbf16, #tpu.memory_space<vmem>>, vector<1x32x32xbf16>,
    %59 = vector.extract_strided_slice %1 {offsets = [0, 32], sizes = [32, 32], strides = [1, 1]} : vector<32x128xbf16> to vector<32x32xbf16>
    %60 = arith.extf %59 : vector<32x32xbf16> to vector<32x32xf32>
    %61 = vector.extract_strided_slice %3 {offsets = [0, 32], sizes = [32, 32], strides = [1, 1]} : vector<32x128xbf16> to vector<32x32xbf16>
    %62 = arith.extf %61 : vector<32x32xbf16> to vector<32x32xf32>
    %63 = vector.extract_strided_slice %5 {offsets = [0, 32], sizes = [32, 32], strides = [1, 1]} : vector<32x128xbf16> to vector<32x32xbf16>
    %64 = arith.mulf %60, %6 : vector<32x32xf32>
    %65 = vector.extract_strided_slice %60 {offsets = [0, 16], sizes = [32, 16], strides = [1, 1]} : vector<32x32xf32> to vector<32x16xf32>
    %cst_26 = arith.constant 0.000000e+00 : f32
    %66 = vector.broadcast %cst_26 : f32 to vector<32x16xf32>
    %67 = arith.subf %66, %65 : vector<32x16xf32>
    %68 = vector.extract_strided_slice %60 {offsets = [0, 0], sizes = [32, 16], strides = [1, 1]} : vector<32x32xf32> to vector<32x16xf32>
    %69 = tpu.concatenate %67, %68 in 1 : vector<32x16xf32>, vector<32x16xf32> -> vector<32x32xf32>
    %70 = arith.mulf %69, %7 : vector<32x32xf32>
    %71 = arith.addf %64, %70 : vector<32x32xf32>
    %72 = arith.mulf %62, %8 : vector<32x32xf32>
    %73 = vector.extract_strided_slice %62 {offsets = [0, 16], sizes = [32, 16], strides = [1, 1]} : vector<32x32xf32> to vector<32x16xf32>
    %cst_27 = arith.constant 0.000000e+00 : f32
    %74 = vector.broadcast %cst_27 : f32 to vector<32x16xf32>
    %75 = arith.subf %74, %73 : vector<32x16xf32>
    %76 = vector.extract_strided_slice %62 {offsets = [0, 0], sizes = [32, 16], strides = [1, 1]} : vector<32x32xf32> to vector<32x16xf32>
    %77 = tpu.concatenate %75, %76 in 1 : vector<32x16xf32>, vector<32x16xf32> -> vector<32x32xf32>
    %78 = arith.mulf %77, %9 : vector<32x32xf32>
    %79 = arith.addf %72, %78 : vector<32x32xf32>
    %80 = arith.truncf %71 : vector<32x32xf32> to vector<32x32xbf16>
    %81 = arith.truncf %79 : vector<32x32xf32> to vector<32x32xbf16>
    %cst_28 = arith.constant dense<0.000000e+00> : vector<32x32xf32>
    %82 = tpu.matmul %80, %81, %cst_28 {dimension_numbers = #tpu.dot_dimension_numbers<[1], [1], [0], [0], [0, 0, 1, 0], [], []>} : vector<32x32xbf16>, vector<32x32xbf16>, vector<32x32xf32> -> vector<32x32xf32>
    %cst_29 = arith.constant 0.176776692 : f32
    %83 = vector.broadcast %cst_29 : f32 to vector<32x32xf32>
    %84 = arith.mulf %82, %83 : vector<32x32xf32>
    %cst_30 = arith.constant -1.000000e+30 : f32
    %85 = vector.shape_cast %12 : vector<1x32xi1> to vector<1x32xi1>
    %86 = vector.broadcast %85 : vector<1x32xi1> to vector<32x32xi1>
    %87 = vector.broadcast %cst_30 : f32 to vector<32x32xf32>
    %88 = arith.select %86, %84, %87 : vector<32x32xi1>, vector<32x32xf32>
    %cst_31 = arith.constant dense<0xFF800000> : vector<32xf32>
    %89 = vector.multi_reduction <maximumf>, %88, %cst_31 [1] : vector<32x32xf32> to vector<32xf32>
    %90 = vector.shape_cast %89 : vector<32xf32> to vector<32x1xf32>
    %91 = vector.broadcast %90 : vector<32x1xf32> to vector<32x32xf32>
    %92 = arith.subf %88, %91 : vector<32x32xf32>
    %93 = math.exp %92 : vector<32x32xf32>
    %cst_32 = arith.constant dense<0.000000e+00> : vector<32xf32>
    %94 = vector.multi_reduction <add>, %93, %cst_32 [1] : vector<32x32xf32> to vector<32xf32>
    %95 = vector.shape_cast %94 : vector<32xf32> to vector<32x1xf32>
    %96 = tpu.reciprocal %95 {approx = true} : vector<32x1xf32> -> vector<32x1xf32>
    %97 = vector.broadcast %96 : vector<32x1xf32> to vector<32x32xf32>
    %98 = arith.mulf %93, %97 : vector<32x32xf32>
    %99 = arith.truncf %98 : vector<32x32xf32> to vector<32x32xbf16>
    %cst_33 = arith.constant dense<0.000000e+00> : vector<32x32xf32>
    %100 = tpu.matmul %99, %63, %cst_33 {dimension_numbers = #tpu.dot_dimension_numbers<[1], [0], [0], [1], [0, 0, 1, 1], [], []>} : vector<32x32xbf16>, vector<32x32xbf16>, vector<32x32xf32> -> vector<32x32xf32>
    %101 = arith.truncf %100 : vector<32x32xf32> to vector<32x32xbf16>
    %c0_34 = arith.constant 0 : index
    %c0_35 = arith.constant 0 : index
    %c32 = arith.constant 32 : index
    %102 = vector.load %arg10[%c0_34, %c0_35, %c32] : memref<1x32x128xbf16, #tpu.memory_space<vmem>>, vector<1x32x32xbf16>
    %103 = vector.shape_cast %102 : vector<1x32x32xbf16> to vector<32x32xbf16>
    %104 = vector.shape_cast %101 : vector<32x32xbf16> to vector<1x32x32xbf16>
    tpu.vector_store %arg10[%c0_34, %c0_35, %c32], %104 {strides = array<i32>} : memref<1x32x128xbf16, #tpu.memory_space<vmem>>, vector<1x32x32xbf16>,
    %105 = vector.extract_strided_slice %1 {offsets = [0, 64], sizes = [32, 32], strides = [1, 1]} : vector<32x128xbf16> to vector<32x32xbf16>
    %106 = arith.extf %105 : vector<32x32xbf16> to vector<32x32xf32>
    %107 = vector.extract_strided_slice %3 {offsets = [0, 64], sizes = [32, 32], strides = [1, 1]} : vector<32x128xbf16> to vector<32x32xbf16>
    %108 = arith.extf %107 : vector<32x32xbf16> to vector<32x32xf32>
    %109 = vector.extract_strided_slice %5 {offsets = [0, 64], sizes = [32, 32], strides = [1, 1]} : vector<32x128xbf16> to vector<32x32xbf16>
    %110 = arith.mulf %106, %6 : vector<32x32xf32>
    %111 = vector.extract_strided_slice %106 {offsets = [0, 16], sizes = [32, 16], strides = [1, 1]} : vector<32x32xf32> to vector<32x16xf32>
    %cst_36 = arith.constant 0.000000e+00 : f32
    %112 = vector.broadcast %cst_36 : f32 to vector<32x16xf32>
    %113 = arith.subf %112, %111 : vector<32x16xf32>
    %114 = vector.extract_strided_slice %106 {offsets = [0, 0], sizes = [32, 16], strides = [1, 1]} : vector<32x32xf32> to vector<32x16xf32>
    %115 = tpu.concatenate %113, %114 in 1 : vector<32x16xf32>, vector<32x16xf32> -> vector<32x32xf32>
    %116 = arith.mulf %115, %7 : vector<32x32xf32>
    %117 = arith.addf %110, %116 : vector<32x32xf32>
    %118 = arith.mulf %108, %8 : vector<32x32xf32>
    %119 = vector.extract_strided_slice %108 {offsets = [0, 16], sizes = [32, 16], strides = [1, 1]} : vector<32x32xf32> to vector<32x16xf32>
    %cst_37 = arith.constant 0.000000e+00 : f32
    %120 = vector.broadcast %cst_37 : f32 to vector<32x16xf32>
    %121 = arith.subf %120, %119 : vector<32x16xf32>
    %122 = vector.extract_strided_slice %108 {offsets = [0, 0], sizes = [32, 16], strides = [1, 1]} : vector<32x32xf32> to vector<32x16xf32>
    %123 = tpu.concatenate %121, %122 in 1 : vector<32x16xf32>, vector<32x16xf32> -> vector<32x32xf32>
    %124 = arith.mulf %123, %9 : vector<32x32xf32>
    %125 = arith.addf %118, %124 : vector<32x32xf32>
    %126 = arith.truncf %117 : vector<32x32xf32> to vector<32x32xbf16>
    %127 = arith.truncf %125 : vector<32x32xf32> to vector<32x32xbf16>
    %cst_38 = arith.constant dense<0.000000e+00> : vector<32x32xf32>
    %128 = tpu.matmul %126, %127, %cst_38 {dimension_numbers = #tpu.dot_dimension_numbers<[1], [1], [0], [0], [0, 0, 1, 0], [], []>} : vector<32x32xbf16>, vector<32x32xbf16>, vector<32x32xf32> -> vector<32x32xf32>
    %cst_39 = arith.constant 0.176776692 : f32
    %129 = vector.broadcast %cst_39 : f32 to vector<32x32xf32>
    %130 = arith.mulf %128, %129 : vector<32x32xf32>
    %cst_40 = arith.constant -1.000000e+30 : f32
    %131 = vector.shape_cast %12 : vector<1x32xi1> to vector<1x32xi1>
    %132 = vector.broadcast %131 : vector<1x32xi1> to vector<32x32xi1>
    %133 = vector.broadcast %cst_40 : f32 to vector<32x32xf32>
    %134 = arith.select %132, %130, %133 : vector<32x32xi1>, vector<32x32xf32>
    %cst_41 = arith.constant dense<0xFF800000> : vector<32xf32>
    %135 = vector.multi_reduction <maximumf>, %134, %cst_41 [1] : vector<32x32xf32> to vector<32xf32>
    %136 = vector.shape_cast %135 : vector<32xf32> to vector<32x1xf32>
    %137 = vector.broadcast %136 : vector<32x1xf32> to vector<32x32xf32>
    %138 = arith.subf %134, %137 : vector<32x32xf32>
    %139 = math.exp %138 : vector<32x32xf32>
    %cst_42 = arith.constant dense<0.000000e+00> : vector<32xf32>
    %140 = vector.multi_reduction <add>, %139, %cst_42 [1] : vector<32x32xf32> to vector<32xf32>
    %141 = vector.shape_cast %140 : vector<32xf32> to vector<32x1xf32>
    %142 = tpu.reciprocal %141 {approx = true} : vector<32x1xf32> -> vector<32x1xf32>
    %143 = vector.broadcast %142 : vector<32x1xf32> to vector<32x32xf32>
    %144 = arith.mulf %139, %143 : vector<32x32xf32>
    %145 = arith.truncf %144 : vector<32x32xf32> to vector<32x32xbf16>
    %cst_43 = arith.constant dense<0.000000e+00> : vector<32x32xf32>
    %146 = tpu.matmul %145, %109, %cst_43 {dimension_numbers = #tpu.dot_dimension_numbers<[1], [0], [0], [1], [0, 0, 1, 1], [], []>} : vector<32x32xbf16>, vector<32x32xbf16>, vector<32x32xf32> -> vector<32x32xf32>
    %147 = arith.truncf %146 : vector<32x32xf32> to vector<32x32xbf16>
    %c0_44 = arith.constant 0 : index
    %c0_45 = arith.constant 0 : index
    %c64 = arith.constant 64 : index
    %148 = vector.load %arg10[%c0_44, %c0_45, %c64] : memref<1x32x128xbf16, #tpu.memory_space<vmem>>, vector<1x32x32xbf16>
    %149 = vector.shape_cast %148 : vector<1x32x32xbf16> to vector<32x32xbf16>
    %150 = vector.shape_cast %147 : vector<32x32xbf16> to vector<1x32x32xbf16>
    tpu.vector_store %arg10[%c0_44, %c0_45, %c64], %150 {strides = array<i32>} : memref<1x32x128xbf16, #tpu.memory_space<vmem>>, vector<1x32x32xbf16>,
    %151 = vector.extract_strided_slice %1 {offsets = [0, 96], sizes = [32, 32], strides = [1, 1]} : vector<32x128xbf16> to vector<32x32xbf16>
    %152 = arith.extf %151 : vector<32x32xbf16> to vector<32x32xf32>
    %153 = vector.extract_strided_slice %3 {offsets = [0, 96], sizes = [32, 32], strides = [1, 1]} : vector<32x128xbf16> to vector<32x32xbf16>
    %154 = arith.extf %153 : vector<32x32xbf16> to vector<32x32xf32>
    %155 = vector.extract_strided_slice %5 {offsets = [0, 96], sizes = [32, 32], strides = [1, 1]} : vector<32x128xbf16> to vector<32x32xbf16>
    %156 = arith.mulf %152, %6 : vector<32x32xf32>
    %157 = vector.extract_strided_slice %152 {offsets = [0, 16], sizes = [32, 16], strides = [1, 1]} : vector<32x32xf32> to vector<32x16xf32>
    %cst_46 = arith.constant 0.000000e+00 : f32
    %158 = vector.broadcast %cst_46 : f32 to vector<32x16xf32>
    %159 = arith.subf %158, %157 : vector<32x16xf32>
    %160 = vector.extract_strided_slice %152 {offsets = [0, 0], sizes = [32, 16], strides = [1, 1]} : vector<32x32xf32> to vector<32x16xf32>
    %161 = tpu.concatenate %159, %160 in 1 : vector<32x16xf32>, vector<32x16xf32> -> vector<32x32xf32>
    %162 = arith.mulf %161, %7 : vector<32x32xf32>
    %163 = arith.addf %156, %162 : vector<32x32xf32>
    %164 = arith.mulf %154, %8 : vector<32x32xf32>
    %165 = vector.extract_strided_slice %154 {offsets = [0, 16], sizes = [32, 16], strides = [1, 1]} : vector<32x32xf32> to vector<32x16xf32>
    %cst_47 = arith.constant 0.000000e+00 : f32
    %166 = vector.broadcast %cst_47 : f32 to vector<32x16xf32>
    %167 = arith.subf %166, %165 : vector<32x16xf32>
    %168 = vector.extract_strided_slice %154 {offsets = [0, 0], sizes = [32, 16], strides = [1, 1]} : vector<32x32xf32> to vector<32x16xf32>
    %169 = tpu.concatenate %167, %168 in 1 : vector<32x16xf32>, vector<32x16xf32> -> vector<32x32xf32>
    %170 = arith.mulf %169, %9 : vector<32x32xf32>
    %171 = arith.addf %164, %170 : vector<32x32xf32>
    %172 = arith.truncf %163 : vector<32x32xf32> to vector<32x32xbf16>
    %173 = arith.truncf %171 : vector<32x32xf32> to vector<32x32xbf16>
    %cst_48 = arith.constant dense<0.000000e+00> : vector<32x32xf32>
    %174 = tpu.matmul %172, %173, %cst_48 {dimension_numbers = #tpu.dot_dimension_numbers<[1], [1], [0], [0], [0, 0, 1, 0], [], []>} : vector<32x32xbf16>, vector<32x32xbf16>, vector<32x32xf32> -> vector<32x32xf32>
    %cst_49 = arith.constant 0.176776692 : f32
    %175 = vector.broadcast %cst_49 : f32 to vector<32x32xf32>
    %176 = arith.mulf %174, %175 : vector<32x32xf32>
    %cst_50 = arith.constant -1.000000e+30 : f32
    %177 = vector.shape_cast %12 : vector<1x32xi1> to vector<1x32xi1>
    %178 = vector.broadcast %177 : vector<1x32xi1> to vector<32x32xi1>
    %179 = vector.broadcast %cst_50 : f32 to vector<32x32xf32>
    %180 = arith.select %178, %176, %179 : vector<32x32xi1>, vector<32x32xf32>
    %cst_51 = arith.constant dense<0xFF800000> : vector<32xf32>
    %181 = vector.multi_reduction <maximumf>, %180, %cst_51 [1] : vector<32x32xf32> to vector<32xf32>
    %182 = vector.shape_cast %181 : vector<32xf32> to vector<32x1xf32>
    %183 = vector.broadcast %182 : vector<32x1xf32> to vector<32x32xf32>
    %184 = arith.subf %180, %183 : vector<32x32xf32>
    %185 = math.exp %184 : vector<32x32xf32>
    %cst_52 = arith.constant dense<0.000000e+00> : vector<32xf32>
    %186 = vector.multi_reduction <add>, %185, %cst_52 [1] : vector<32x32xf32> to vector<32xf32>
    %187 = vector.shape_cast %186 : vector<32xf32> to vector<32x1xf32>
    %188 = tpu.reciprocal %187 {approx = true} : vector<32x1xf32> -> vector<32x1xf32>
    %189 = vector.broadcast %188 : vector<32x1xf32> to vector<32x32xf32>
    %190 = arith.mulf %185, %189 : vector<32x32xf32>
    %191 = arith.truncf %190 : vector<32x32xf32> to vector<32x32xbf16>
    %cst_53 = arith.constant dense<0.000000e+00> : vector<32x32xf32>
    %192 = tpu.matmul %191, %155, %cst_53 {dimension_numbers = #tpu.dot_dimension_numbers<[1], [0], [0], [1], [0, 0, 1, 1], [], []>} : vector<32x32xbf16>, vector<32x32xbf16>, vector<32x32xf32> -> vector<32x32xf32>
    %193 = arith.truncf %192 : vector<32x32xf32> to vector<32x32xbf16>
    %c0_54 = arith.constant 0 : index
    %c0_55 = arith.constant 0 : index
    %c96 = arith.constant 96 : index
    %194 = vector.load %arg10[%c0_54, %c0_55, %c96] : memref<1x32x128xbf16, #tpu.memory_space<vmem>>, vector<1x32x32xbf16>
    %195 = vector.shape_cast %194 : vector<1x32x32xbf16> to vector<32x32xbf16>
    %196 = vector.shape_cast %193 : vector<32x32xbf16> to vector<1x32x32xbf16>
    tpu.vector_store %arg10[%c0_54, %c0_55, %c96], %196 {strides = array<i32>} : memref<1x32x128xbf16, #tpu.memory_space<vmem>>, vector<1x32x32xbf16>,
    return
  }
  func.func @transform_0(%arg0: i32, %arg1: i32, %arg2: i32) -> (i32, i32, i32) {
    %c0_i32 = arith.constant 0 : i32
    return %arg0, %arg2, %arg1 : i32, i32, i32
  }
  func.func @transform_1(%arg0: i32, %arg1: i32, %arg2: i32) -> (i32, i32, i32) {
    %c1_i32 = arith.constant 1 : i32
    %0 = arith.addi %arg1, %c1_i32 : i32
    %c0_i32 = arith.constant 0 : i32
    %c0_i32_0 = arith.constant 0 : i32
    return %arg0, %c0_i32, %0 : i32, i32, i32
  }
  func.func @transform_2(%arg0: i32, %arg1: i32, %arg2: i32) -> (i32, i32, i32) {
    %c2_i32 = arith.constant 2 : i32
    %0 = arith.addi %arg1, %c2_i32 : i32
    %c0_i32 = arith.constant 0 : i32
    %c0_i32_0 = arith.constant 0 : i32
    return %arg0, %c0_i32, %0 : i32, i32, i32
  }
  func.func @transform_3(%arg0: i32, %arg1: i32, %arg2: i32) -> (i32, i32) {
    %c0_i32 = arith.constant 0 : i32
    %c0_i32_0 = arith.constant 0 : i32
    return %arg2, %c0_i32 : i32, i32
  }
  func.func @transform_4(%arg0: i32, %arg1: i32, %arg2: i32) -> (i32, i32) {
    %c0_i32 = arith.constant 0 : i32
    %c0_i32_0 = arith.constant 0 : i32
    return %arg2, %c0_i32 : i32, i32
  }
  func.func @transform_5(%arg0: i32, %arg1: i32, %arg2: i32) -> (i32, i32) {
    %c0_i32 = arith.constant 0 : i32
    %c0_i32_0 = arith.constant 0 : i32
    %c0_i32_1 = arith.constant 0 : i32
    return %c0_i32, %c0_i32_0 : i32, i32
  }
  func.func @transform_6(%arg0: i32, %arg1: i32, %arg2: i32) -> (i32, i32) {
    %c0_i32 = arith.constant 0 : i32
    %c0_i32_0 = arith.constant 0 : i32
    %c0_i32_1 = arith.constant 0 : i32
    return %c0_i32, %c0_i32_0 : i32, i32
  }
  func.func @transform_7(%arg0: i32, %arg1: i32, %arg2: i32) -> (i32, i32, i32) {
    %c0_i32 = arith.constant 0 : i32
    return %arg0, %arg2, %arg1 : i32, i32, i32
  }
}

module attributes {stable_mosaic.version = 11 : i64} {
  func.func @_ff_kernel(%arg0: i32, %arg1: i32, %arg2: memref<64x128xf32, #tpu.memory_space<vmem>>, %arg3: memref<1x128xf32, #tpu.memory_space<vmem>>, %arg4: memref<1x128xf32, #tpu.memory_space<vmem>>, %arg5: memref<128x256xbf16, #tpu.memory_space<vmem>>, %arg6: memref<1x256xf32, #tpu.memory_space<vmem>>, %arg7: memref<128x256xbf16, #tpu.memory_space<vmem>>, %arg8: memref<1x256xf32, #tpu.memory_space<vmem>>, %arg9: memref<256x128xbf16, #tpu.memory_space<vmem>>, %arg10: memref<1x128xf32, #tpu.memory_space<vmem>>, %arg11: memref<64x128xf32, #tpu.memory_space<vmem>>, %arg12: memref<64x128xf32, #tpu.memory_space<vmem>>, %arg13: memref<64x128xbf16, #tpu.memory_space<vmem>>) attributes {dimension_semantics = [#tpu.dimension_semantics<parallel>, #tpu.dimension_semantics<arbitrary>], iteration_bounds = array<i64: 1, 2>, scalar_prefetch = 0 : i64, scratch_operands = 2 : i64, tpu.core_type = #tpu.core_type<tc>, window_params = [{transform_indices = @transform_0, window_bounds = array<i64: 64, 128>}, {pipeline_mode = #tpu.pipeline_mode<synchronous>, transform_indices = @transform_1, window_bounds = array<i64: 1, 128>}, {pipeline_mode = #tpu.pipeline_mode<synchronous>, transform_indices = @transform_2, window_bounds = array<i64: 1, 128>}, {transform_indices = @transform_3, window_bounds = array<i64: 128, 256>}, {transform_indices = @transform_4, window_bounds = array<i64: 1, 256>}, {transform_indices = @transform_5, window_bounds = array<i64: 128, 256>}, {transform_indices = @transform_6, window_bounds = array<i64: 1, 256>}, {transform_indices = @transform_7, window_bounds = array<i64: 256, 128>}, {pipeline_mode = #tpu.pipeline_mode<synchronous>, transform_indices = @transform_8, window_bounds = array<i64: 1, 128>}, {transform_indices = @transform_9, window_bounds = array<i64: 64, 128>}]} {
    %c0_i32 = arith.constant 0 : i32
    %0 = arith.cmpi eq, %arg1, %c0_i32 : i32
    %1 = arith.extui %0 : i1 to i32
    %c0_i32_0 = arith.constant 0 : i32
    %2 = arith.cmpi ne, %1, %c0_i32_0 : i32
    scf.if %2 {
      %c0_20 = arith.constant 0 : index
      %c0_21 = arith.constant 0 : index
      %30 = vector.load %arg2[%c0_20, %c0_21] : memref<64x128xf32, #tpu.memory_space<vmem>>, vector<64x128xf32>
      %cst_22 = arith.constant dense<0.000000e+00> : vector<64xf32>
      %31 = vector.multi_reduction <add>, %30, %cst_22 [1] : vector<64x128xf32> to vector<64xf32>
      %32 = vector.shape_cast %31 : vector<64xf32> to vector<64x1xf32>
      %cst_23 = arith.constant 1.280000e+02 : f32
      %33 = vector.broadcast %cst_23 : f32 to vector<64x1xf32>
      %34 = arith.divf %32, %33 : vector<64x1xf32>
      %35 = vector.broadcast %34 : vector<64x1xf32> to vector<64x128xf32>
      %36 = arith.subf %30, %35 : vector<64x128xf32>
      %37 = arith.mulf %36, %36 : vector<64x128xf32>
      %cst_24 = arith.constant dense<0.000000e+00> : vector<64xf32>
      %38 = vector.multi_reduction <add>, %37, %cst_24 [1] : vector<64x128xf32> to vector<64xf32>
      %39 = vector.shape_cast %38 : vector<64xf32> to vector<64x1xf32>
      %cst_25 = arith.constant 1.280000e+02 : f32
      %40 = vector.broadcast %cst_25 : f32 to vector<64x1xf32>
      %41 = arith.divf %39, %40 : vector<64x1xf32>
      %cst_26 = arith.constant 9.99999974E-6 : f32
      %42 = vector.broadcast %cst_26 : f32 to vector<64x1xf32>
      %43 = arith.addf %41, %42 : vector<64x1xf32>
      %44 = math.rsqrt %43 : vector<64x1xf32>
      %45 = vector.broadcast %44 : vector<64x1xf32> to vector<64x128xf32>
      %46 = arith.mulf %36, %45 : vector<64x128xf32>
      %c0_27 = arith.constant 0 : index
      %c0_28 = arith.constant 0 : index
      %47 = vector.load %arg3[%c0_27, %c0_28] : memref<1x128xf32, #tpu.memory_space<vmem>>, vector<1x128xf32>
      %48 = vector.broadcast %47 : vector<1x128xf32> to vector<64x128xf32>
      %49 = arith.mulf %46, %48 : vector<64x128xf32>
      %c0_29 = arith.constant 0 : index
      %c0_30 = arith.constant 0 : index
      %50 = vector.load %arg4[%c0_29, %c0_30] : memref<1x128xf32, #tpu.memory_space<vmem>>, vector<1x128xf32>
      %51 = vector.broadcast %50 : vector<1x128xf32> to vector<64x128xf32>
      %52 = arith.addf %49, %51 : vector<64x128xf32>
      %53 = arith.truncf %52 : vector<64x128xf32> to vector<64x128xbf16>
      %c0_31 = arith.constant 0 : index
      %c0_32 = arith.constant 0 : index
      %54 = vector.load %arg13[%c0_31, %c0_32] : memref<64x128xbf16, #tpu.memory_space<vmem>>, vector<64x128xbf16>
      tpu.vector_store %arg13[%c0_31, %c0_32], %53 {strides = array<i32>} : memref<64x128xbf16, #tpu.memory_space<vmem>>, vector<64x128xbf16>,
      %cst_33 = arith.constant 0.000000e+00 : f32
      %55 = vector.broadcast %cst_33 : f32 to vector<64x128xf32>
      %c0_34 = arith.constant 0 : index
      %c0_35 = arith.constant 0 : index
      %56 = vector.load %arg12[%c0_34, %c0_35] : memref<64x128xf32, #tpu.memory_space<vmem>>, vector<64x128xf32>
      tpu.vector_store %arg12[%c0_34, %c0_35], %55 {strides = array<i32>} : memref<64x128xf32, #tpu.memory_space<vmem>>, vector<64x128xf32>,
    } else {
    }
    %c0 = arith.constant 0 : index
    %c0_1 = arith.constant 0 : index
    %3 = vector.load %arg13[%c0, %c0_1] : memref<64x128xbf16, #tpu.memory_space<vmem>>, vector<64x128xbf16>
    %c0_2 = arith.constant 0 : index
    %c0_3 = arith.constant 0 : index
    %4 = vector.load %arg5[%c0_2, %c0_3] : memref<128x256xbf16, #tpu.memory_space<vmem>>, vector<128x256xbf16>
    %cst = arith.constant dense<0.000000e+00> : vector<64x256xf32>
    %5 = tpu.matmul %3, %4, %cst {dimension_numbers = #tpu.dot_dimension_numbers<[1], [0], [0], [1], [0, 0, 1, 1], [], []>} : vector<64x128xbf16>, vector<128x256xbf16>, vector<64x256xf32> -> vector<64x256xf32>
    %c0_4 = arith.constant 0 : index
    %c0_5 = arith.constant 0 : index
    %6 = vector.load %arg6[%c0_4, %c0_5] : memref<1x256xf32, #tpu.memory_space<vmem>>, vector<1x256xf32>
    %7 = vector.broadcast %6 : vector<1x256xf32> to vector<64x256xf32>
    %8 = arith.addf %5, %7 : vector<64x256xf32>
    %c0_6 = arith.constant 0 : index
    %c0_7 = arith.constant 0 : index
    %9 = vector.load %arg7[%c0_6, %c0_7] : memref<128x256xbf16, #tpu.memory_space<vmem>>, vector<128x256xbf16>
    %cst_8 = arith.constant dense<0.000000e+00> : vector<64x256xf32>
    %10 = tpu.matmul %3, %9, %cst_8 {dimension_numbers = #tpu.dot_dimension_numbers<[1], [0], [0], [1], [0, 0, 1, 1], [], []>} : vector<64x128xbf16>, vector<128x256xbf16>, vector<64x256xf32> -> vector<64x256xf32>
    %c0_9 = arith.constant 0 : index
    %c0_10 = arith.constant 0 : index
    %11 = vector.load %arg8[%c0_9, %c0_10] : memref<1x256xf32, #tpu.memory_space<vmem>>, vector<1x256xf32>
    %12 = vector.broadcast %11 : vector<1x256xf32> to vector<64x256xf32>
    %13 = arith.addf %10, %12 : vector<64x256xf32>
    %14 = arith.negf %13 : vector<64x256xf32>
    %15 = math.exp %14 : vector<64x256xf32>
    %cst_11 = arith.constant 1.000000e+00 : f32
    %16 = vector.broadcast %cst_11 : f32 to vector<64x256xf32>
    %17 = arith.addf %16, %15 : vector<64x256xf32>
    %18 = arith.divf %16, %17 : vector<64x256xf32>
    %19 = arith.mulf %13, %18 : vector<64x256xf32>
    %20 = arith.mulf %8, %19 : vector<64x256xf32>
    %c0_12 = arith.constant 0 : index
    %c0_13 = arith.constant 0 : index
    %21 = vector.load %arg12[%c0_12, %c0_13] : memref<64x128xf32, #tpu.memory_space<vmem>>, vector<64x128xf32>
    %22 = arith.truncf %20 : vector<64x256xf32> to vector<64x256xbf16>
    %c0_14 = arith.constant 0 : index
    %c0_15 = arith.constant 0 : index
    %23 = vector.load %arg9[%c0_14, %c0_15] : memref<256x128xbf16, #tpu.memory_space<vmem>>, vector<256x128xbf16>
    %cst_16 = arith.constant dense<0.000000e+00> : vector<64x128xf32>
    %24 = tpu.matmul %22, %23, %cst_16 {dimension_numbers = #tpu.dot_dimension_numbers<[1], [0], [0], [1], [0, 0, 1, 1], [], []>} : vector<64x256xbf16>, vector<256x128xbf16>, vector<64x128xf32> -> vector<64x128xf32>
    %25 = arith.addf %21, %24 : vector<64x128xf32>
    %c0_17 = arith.constant 0 : index
    %c0_18 = arith.constant 0 : index
    %26 = vector.load %arg12[%c0_17, %c0_18] : memref<64x128xf32, #tpu.memory_space<vmem>>, vector<64x128xf32>
    tpu.vector_store %arg12[%c0_17, %c0_18], %25 {strides = array<i32>} : memref<64x128xf32, #tpu.memory_space<vmem>>, vector<64x128xf32>,
    %c1_i32 = arith.constant 1 : i32
    %27 = arith.cmpi eq, %arg1, %c1_i32 : i32
    %28 = arith.extui %27 : i1 to i32
    %c0_i32_19 = arith.constant 0 : i32
    %29 = arith.cmpi ne, %28, %c0_i32_19 : i32
    scf.if %29 {
      %c0_20 = arith.constant 0 : index
      %c0_21 = arith.constant 0 : index
      %30 = vector.load %arg2[%c0_20, %c0_21] : memref<64x128xf32, #tpu.memory_space<vmem>>, vector<64x128xf32>
      %c0_22 = arith.constant 0 : index
      %c0_23 = arith.constant 0 : index
      %31 = vector.load %arg12[%c0_22, %c0_23] : memref<64x128xf32, #tpu.memory_space<vmem>>, vector<64x128xf32>
      %32 = arith.addf %30, %31 : vector<64x128xf32>
      %c0_24 = arith.constant 0 : index
      %c0_25 = arith.constant 0 : index
      %33 = vector.load %arg10[%c0_24, %c0_25] : memref<1x128xf32, #tpu.memory_space<vmem>>, vector<1x128xf32>
      %34 = vector.broadcast %33 : vector<1x128xf32> to vector<64x128xf32>
      %35 = arith.addf %32, %34 : vector<64x128xf32>
      %c0_26 = arith.constant 0 : index
      %c0_27 = arith.constant 0 : index
      %36 = vector.load %arg11[%c0_26, %c0_27] : memref<64x128xf32, #tpu.memory_space<vmem>>, vector<64x128xf32>
      tpu.vector_store %arg11[%c0_26, %c0_27], %35 {strides = array<i32>} : memref<64x128xf32, #tpu.memory_space<vmem>>, vector<64x128xf32>,
    } else {
    }
    return
  }
  func.func @transform_0(%arg0: i32, %arg1: i32) -> (i32, i32) {
    %c0_i32 = arith.constant 0 : i32
    %c0_i32_0 = arith.constant 0 : i32
    return %arg0, %c0_i32 : i32, i32
  }
  func.func @transform_1(%arg0: i32, %arg1: i32) -> (i32, i32) {
    %c0_i32 = arith.constant 0 : i32
    %c0_i32_0 = arith.constant 0 : i32
    %c0_i32_1 = arith.constant 0 : i32
    return %c0_i32, %c0_i32_0 : i32, i32
  }
  func.func @transform_2(%arg0: i32, %arg1: i32) -> (i32, i32) {
    %c0_i32 = arith.constant 0 : i32
    %c0_i32_0 = arith.constant 0 : i32
    %c0_i32_1 = arith.constant 0 : i32
    return %c0_i32, %c0_i32_0 : i32, i32
  }
  func.func @transform_3(%arg0: i32, %arg1: i32) -> (i32, i32) {
    %c0_i32 = arith.constant 0 : i32
    %c0_i32_0 = arith.constant 0 : i32
    return %c0_i32, %arg1 : i32, i32
  }
  func.func @transform_4(%arg0: i32, %arg1: i32) -> (i32, i32) {
    %c0_i32 = arith.constant 0 : i32
    %c0_i32_0 = arith.constant 0 : i32
    return %c0_i32, %arg1 : i32, i32
  }
  func.func @transform_5(%arg0: i32, %arg1: i32) -> (i32, i32) {
    %c0_i32 = arith.constant 0 : i32
    %c0_i32_0 = arith.constant 0 : i32
    return %c0_i32, %arg1 : i32, i32
  }
  func.func @transform_6(%arg0: i32, %arg1: i32) -> (i32, i32) {
    %c0_i32 = arith.constant 0 : i32
    %c0_i32_0 = arith.constant 0 : i32
    return %c0_i32, %arg1 : i32, i32
  }
  func.func @transform_7(%arg0: i32, %arg1: i32) -> (i32, i32) {
    %c0_i32 = arith.constant 0 : i32
    %c0_i32_0 = arith.constant 0 : i32
    return %arg1, %c0_i32 : i32, i32
  }
  func.func @transform_8(%arg0: i32, %arg1: i32) -> (i32, i32) {
    %c0_i32 = arith.constant 0 : i32
    %c0_i32_0 = arith.constant 0 : i32
    %c0_i32_1 = arith.constant 0 : i32
    return %c0_i32, %c0_i32_0 : i32, i32
  }
  func.func @transform_9(%arg0: i32, %arg1: i32) -> (i32, i32) {
    %c0_i32 = arith.constant 0 : i32
    %c0_i32_0 = arith.constant 0 : i32
    return %arg0, %c0_i32 : i32, i32
  }
}

module attributes {stable_mosaic.version = 11 : i64} {
  func.func @_matmul_res_kernel(%arg0: i32, %arg1: i32, %arg2: memref<64x128xbf16, #tpu.memory_space<vmem>>, %arg3: memref<128x128xbf16, #tpu.memory_space<vmem>>, %arg4: memref<64x128xf32, #tpu.memory_space<vmem>>, %arg5: memref<64x128xf32, #tpu.memory_space<vmem>>) attributes {dimension_semantics = [#tpu.dimension_semantics<parallel>, #tpu.dimension_semantics<parallel>], iteration_bounds = array<i64: 1, 1>, scalar_prefetch = 0 : i64, scratch_operands = 0 : i64, tpu.core_type = #tpu.core_type<tc>, window_params = [{transform_indices = @transform_0, window_bounds = array<i64: 64, 128>}, {transform_indices = @transform_1, window_bounds = array<i64: 128, 128>}, {transform_indices = @transform_2, window_bounds = array<i64: 64, 128>}, {transform_indices = @transform_3, window_bounds = array<i64: 64, 128>}]} {
    %c0 = arith.constant 0 : index
    %c0_0 = arith.constant 0 : index
    %0 = vector.load %arg2[%c0, %c0_0] : memref<64x128xbf16, #tpu.memory_space<vmem>>, vector<64x128xbf16>
    %c0_1 = arith.constant 0 : index
    %c0_2 = arith.constant 0 : index
    %1 = vector.load %arg3[%c0_1, %c0_2] : memref<128x128xbf16, #tpu.memory_space<vmem>>, vector<128x128xbf16>
    %cst = arith.constant dense<0.000000e+00> : vector<64x128xf32>
    %2 = tpu.matmul %0, %1, %cst {dimension_numbers = #tpu.dot_dimension_numbers<[1], [0], [0], [1], [0, 0, 1, 1], [], []>} : vector<64x128xbf16>, vector<128x128xbf16>, vector<64x128xf32> -> vector<64x128xf32>
    %c0_3 = arith.constant 0 : index
    %c0_4 = arith.constant 0 : index
    %3 = vector.load %arg4[%c0_3, %c0_4] : memref<64x128xf32, #tpu.memory_space<vmem>>, vector<64x128xf32>
    %4 = arith.addf %3, %2 : vector<64x128xf32>
    %c0_5 = arith.constant 0 : index
    %c0_6 = arith.constant 0 : index
    %5 = vector.load %arg5[%c0_5, %c0_6] : memref<64x128xf32, #tpu.memory_space<vmem>>, vector<64x128xf32>
    tpu.vector_store %arg5[%c0_5, %c0_6], %4 {strides = array<i32>} : memref<64x128xf32, #tpu.memory_space<vmem>>, vector<64x128xf32>,
    return
  }
  func.func @transform_0(%arg0: i32, %arg1: i32) -> (i32, i32) {
    %c0_i32 = arith.constant 0 : i32
    %c0_i32_0 = arith.constant 0 : i32
    return %arg0, %c0_i32 : i32, i32
  }
  func.func @transform_1(%arg0: i32, %arg1: i32) -> (i32, i32) {
    %c0_i32 = arith.constant 0 : i32
    %c0_i32_0 = arith.constant 0 : i32
    return %c0_i32, %arg1 : i32, i32
  }
  func.func @transform_2(%arg0: i32, %arg1: i32) -> (i32, i32) {
    %c0_i32 = arith.constant 0 : i32
    return %arg0, %arg1 : i32, i32
  }
  func.func @transform_3(%arg0: i32, %arg1: i32) -> (i32, i32) {
    %c0_i32 = arith.constant 0 : i32
    return %arg0, %arg1 : i32, i32
  }
}

module attributes {stable_mosaic.version = 11 : i64} {
  func.func @_ff_kernel(%arg0: i32, %arg1: i32, %arg2: memref<64x128xf32, #tpu.memory_space<vmem>>, %arg3: memref<1x128xf32, #tpu.memory_space<vmem>>, %arg4: memref<1x128xf32, #tpu.memory_space<vmem>>, %arg5: memref<128x256xbf16, #tpu.memory_space<vmem>>, %arg6: memref<1x256xf32, #tpu.memory_space<vmem>>, %arg7: memref<128x256xbf16, #tpu.memory_space<vmem>>, %arg8: memref<1x256xf32, #tpu.memory_space<vmem>>, %arg9: memref<256x128xbf16, #tpu.memory_space<vmem>>, %arg10: memref<1x128xf32, #tpu.memory_space<vmem>>, %arg11: memref<64x128xf32, #tpu.memory_space<vmem>>, %arg12: memref<64x128xf32, #tpu.memory_space<vmem>>, %arg13: memref<64x128xbf16, #tpu.memory_space<vmem>>) attributes {dimension_semantics = [#tpu.dimension_semantics<parallel>, #tpu.dimension_semantics<arbitrary>], iteration_bounds = array<i64: 1, 2>, scalar_prefetch = 0 : i64, scratch_operands = 2 : i64, tpu.core_type = #tpu.core_type<tc>, window_params = [{transform_indices = @transform_0, window_bounds = array<i64: 64, 128>}, {pipeline_mode = #tpu.pipeline_mode<synchronous>, transform_indices = @transform_1, window_bounds = array<i64: 1, 128>}, {pipeline_mode = #tpu.pipeline_mode<synchronous>, transform_indices = @transform_2, window_bounds = array<i64: 1, 128>}, {transform_indices = @transform_3, window_bounds = array<i64: 128, 256>}, {transform_indices = @transform_4, window_bounds = array<i64: 1, 256>}, {transform_indices = @transform_5, window_bounds = array<i64: 128, 256>}, {transform_indices = @transform_6, window_bounds = array<i64: 1, 256>}, {transform_indices = @transform_7, window_bounds = array<i64: 256, 128>}, {pipeline_mode = #tpu.pipeline_mode<synchronous>, transform_indices = @transform_8, window_bounds = array<i64: 1, 128>}, {transform_indices = @transform_9, window_bounds = array<i64: 64, 128>}]} {
    %c0_i32 = arith.constant 0 : i32
    %0 = arith.cmpi eq, %arg1, %c0_i32 : i32
    %1 = arith.extui %0 : i1 to i32
    %c0_i32_0 = arith.constant 0 : i32
    %2 = arith.cmpi ne, %1, %c0_i32_0 : i32
    scf.if %2 {
      %c0_20 = arith.constant 0 : index
      %c0_21 = arith.constant 0 : index
      %30 = vector.load %arg2[%c0_20, %c0_21] : memref<64x128xf32, #tpu.memory_space<vmem>>, vector<64x128xf32>
      %cst_22 = arith.constant dense<0.000000e+00> : vector<64xf32>
      %31 = vector.multi_reduction <add>, %30, %cst_22 [1] : vector<64x128xf32> to vector<64xf32>
      %32 = vector.shape_cast %31 : vector<64xf32> to vector<64x1xf32>
      %cst_23 = arith.constant 1.280000e+02 : f32
      %33 = vector.broadcast %cst_23 : f32 to vector<64x1xf32>
      %34 = arith.divf %32, %33 : vector<64x1xf32>
      %35 = vector.broadcast %34 : vector<64x1xf32> to vector<64x128xf32>
      %36 = arith.subf %30, %35 : vector<64x128xf32>
      %37 = arith.mulf %36, %36 : vector<64x128xf32>
      %cst_24 = arith.constant dense<0.000000e+00> : vector<64xf32>
      %38 = vector.multi_reduction <add>, %37, %cst_24 [1] : vector<64x128xf32> to vector<64xf32>
      %39 = vector.shape_cast %38 : vector<64xf32> to vector<64x1xf32>
      %cst_25 = arith.constant 1.280000e+02 : f32
      %40 = vector.broadcast %cst_25 : f32 to vector<64x1xf32>
      %41 = arith.divf %39, %40 : vector<64x1xf32>
      %cst_26 = arith.constant 9.99999974E-6 : f32
      %42 = vector.broadcast %cst_26 : f32 to vector<64x1xf32>
      %43 = arith.addf %41, %42 : vector<64x1xf32>
      %44 = math.rsqrt %43 : vector<64x1xf32>
      %45 = vector.broadcast %44 : vector<64x1xf32> to vector<64x128xf32>
      %46 = arith.mulf %36, %45 : vector<64x128xf32>
      %c0_27 = arith.constant 0 : index
      %c0_28 = arith.constant 0 : index
      %47 = vector.load %arg3[%c0_27, %c0_28] : memref<1x128xf32, #tpu.memory_space<vmem>>, vector<1x128xf32>
      %48 = vector.broadcast %47 : vector<1x128xf32> to vector<64x128xf32>
      %49 = arith.mulf %46, %48 : vector<64x128xf32>
      %c0_29 = arith.constant 0 : index
      %c0_30 = arith.constant 0 : index
      %50 = vector.load %arg4[%c0_29, %c0_30] : memref<1x128xf32, #tpu.memory_space<vmem>>, vector<1x128xf32>
      %51 = vector.broadcast %50 : vector<1x128xf32> to vector<64x128xf32>
      %52 = arith.addf %49, %51 : vector<64x128xf32>
      %53 = arith.truncf %52 : vector<64x128xf32> to vector<64x128xbf16>
      %c0_31 = arith.constant 0 : index
      %c0_32 = arith.constant 0 : index
      %54 = vector.load %arg13[%c0_31, %c0_32] : memref<64x128xbf16, #tpu.memory_space<vmem>>, vector<64x128xbf16>
      tpu.vector_store %arg13[%c0_31, %c0_32], %53 {strides = array<i32>} : memref<64x128xbf16, #tpu.memory_space<vmem>>, vector<64x128xbf16>,
      %cst_33 = arith.constant 0.000000e+00 : f32
      %55 = vector.broadcast %cst_33 : f32 to vector<64x128xf32>
      %c0_34 = arith.constant 0 : index
      %c0_35 = arith.constant 0 : index
      %56 = vector.load %arg12[%c0_34, %c0_35] : memref<64x128xf32, #tpu.memory_space<vmem>>, vector<64x128xf32>
      tpu.vector_store %arg12[%c0_34, %c0_35], %55 {strides = array<i32>} : memref<64x128xf32, #tpu.memory_space<vmem>>, vector<64x128xf32>,
    } else {
    }
    %c0 = arith.constant 0 : index
    %c0_1 = arith.constant 0 : index
    %3 = vector.load %arg13[%c0, %c0_1] : memref<64x128xbf16, #tpu.memory_space<vmem>>, vector<64x128xbf16>
    %c0_2 = arith.constant 0 : index
    %c0_3 = arith.constant 0 : index
    %4 = vector.load %arg5[%c0_2, %c0_3] : memref<128x256xbf16, #tpu.memory_space<vmem>>, vector<128x256xbf16>
    %cst = arith.constant dense<0.000000e+00> : vector<64x256xf32>
    %5 = tpu.matmul %3, %4, %cst {dimension_numbers = #tpu.dot_dimension_numbers<[1], [0], [0], [1], [0, 0, 1, 1], [], []>} : vector<64x128xbf16>, vector<128x256xbf16>, vector<64x256xf32> -> vector<64x256xf32>
    %c0_4 = arith.constant 0 : index
    %c0_5 = arith.constant 0 : index
    %6 = vector.load %arg6[%c0_4, %c0_5] : memref<1x256xf32, #tpu.memory_space<vmem>>, vector<1x256xf32>
    %7 = vector.broadcast %6 : vector<1x256xf32> to vector<64x256xf32>
    %8 = arith.addf %5, %7 : vector<64x256xf32>
    %c0_6 = arith.constant 0 : index
    %c0_7 = arith.constant 0 : index
    %9 = vector.load %arg7[%c0_6, %c0_7] : memref<128x256xbf16, #tpu.memory_space<vmem>>, vector<128x256xbf16>
    %cst_8 = arith.constant dense<0.000000e+00> : vector<64x256xf32>
    %10 = tpu.matmul %3, %9, %cst_8 {dimension_numbers = #tpu.dot_dimension_numbers<[1], [0], [0], [1], [0, 0, 1, 1], [], []>} : vector<64x128xbf16>, vector<128x256xbf16>, vector<64x256xf32> -> vector<64x256xf32>
    %c0_9 = arith.constant 0 : index
    %c0_10 = arith.constant 0 : index
    %11 = vector.load %arg8[%c0_9, %c0_10] : memref<1x256xf32, #tpu.memory_space<vmem>>, vector<1x256xf32>
    %12 = vector.broadcast %11 : vector<1x256xf32> to vector<64x256xf32>
    %13 = arith.addf %10, %12 : vector<64x256xf32>
    %14 = arith.negf %13 : vector<64x256xf32>
    %15 = math.exp %14 : vector<64x256xf32>
    %cst_11 = arith.constant 1.000000e+00 : f32
    %16 = vector.broadcast %cst_11 : f32 to vector<64x256xf32>
    %17 = arith.addf %16, %15 : vector<64x256xf32>
    %18 = arith.divf %16, %17 : vector<64x256xf32>
    %19 = arith.mulf %13, %18 : vector<64x256xf32>
    %20 = arith.mulf %8, %19 : vector<64x256xf32>
    %c0_12 = arith.constant 0 : index
    %c0_13 = arith.constant 0 : index
    %21 = vector.load %arg12[%c0_12, %c0_13] : memref<64x128xf32, #tpu.memory_space<vmem>>, vector<64x128xf32>
    %22 = arith.truncf %20 : vector<64x256xf32> to vector<64x256xbf16>
    %c0_14 = arith.constant 0 : index
    %c0_15 = arith.constant 0 : index
    %23 = vector.load %arg9[%c0_14, %c0_15] : memref<256x128xbf16, #tpu.memory_space<vmem>>, vector<256x128xbf16>
    %cst_16 = arith.constant dense<0.000000e+00> : vector<64x128xf32>
    %24 = tpu.matmul %22, %23, %cst_16 {dimension_numbers = #tpu.dot_dimension_numbers<[1], [0], [0], [1], [0, 0, 1, 1], [], []>} : vector<64x256xbf16>, vector<256x128xbf16>, vector<64x128xf32> -> vector<64x128xf32>
    %25 = arith.addf %21, %24 : vector<64x128xf32>
    %c0_17 = arith.constant 0 : index
    %c0_18 = arith.constant 0 : index
    %26 = vector.load %arg12[%c0_17, %c0_18] : memref<64x128xf32, #tpu.memory_space<vmem>>, vector<64x128xf32>
    tpu.vector_store %arg12[%c0_17, %c0_18], %25 {strides = array<i32>} : memref<64x128xf32, #tpu.memory_space<vmem>>, vector<64x128xf32>,
    %c1_i32 = arith.constant 1 : i32
    %27 = arith.cmpi eq, %arg1, %c1_i32 : i32
    %28 = arith.extui %27 : i1 to i32
    %c0_i32_19 = arith.constant 0 : i32
    %29 = arith.cmpi ne, %28, %c0_i32_19 : i32
    scf.if %29 {
      %c0_20 = arith.constant 0 : index
      %c0_21 = arith.constant 0 : index
      %30 = vector.load %arg2[%c0_20, %c0_21] : memref<64x128xf32, #tpu.memory_space<vmem>>, vector<64x128xf32>
      %c0_22 = arith.constant 0 : index
      %c0_23 = arith.constant 0 : index
      %31 = vector.load %arg12[%c0_22, %c0_23] : memref<64x128xf32, #tpu.memory_space<vmem>>, vector<64x128xf32>
      %32 = arith.addf %30, %31 : vector<64x128xf32>
      %c0_24 = arith.constant 0 : index
      %c0_25 = arith.constant 0 : index
      %33 = vector.load %arg10[%c0_24, %c0_25] : memref<1x128xf32, #tpu.memory_space<vmem>>, vector<1x128xf32>
      %34 = vector.broadcast %33 : vector<1x128xf32> to vector<64x128xf32>
      %35 = arith.addf %32, %34 : vector<64x128xf32>
      %c0_26 = arith.constant 0 : index
      %c0_27 = arith.constant 0 : index
      %36 = vector.load %arg11[%c0_26, %c0_27] : memref<64x128xf32, #tpu.memory_space<vmem>>, vector<64x128xf32>
      tpu.vector_store %arg11[%c0_26, %c0_27], %35 {strides = array<i32>} : memref<64x128xf32, #tpu.memory_space<vmem>>, vector<64x128xf32>,
    } else {
    }
    return
  }
  func.func @transform_0(%arg0: i32, %arg1: i32) -> (i32, i32) {
    %c0_i32 = arith.constant 0 : i32
    %c0_i32_0 = arith.constant 0 : i32
    return %arg0, %c0_i32 : i32, i32
  }
  func.func @transform_1(%arg0: i32, %arg1: i32) -> (i32, i32) {
    %c0_i32 = arith.constant 0 : i32
    %c0_i32_0 = arith.constant 0 : i32
    %c0_i32_1 = arith.constant 0 : i32
    return %c0_i32, %c0_i32_0 : i32, i32
  }
  func.func @transform_2(%arg0: i32, %arg1: i32) -> (i32, i32) {
    %c0_i32 = arith.constant 0 : i32
    %c0_i32_0 = arith.constant 0 : i32
    %c0_i32_1 = arith.constant 0 : i32
    return %c0_i32, %c0_i32_0 : i32, i32
  }
  func.func @transform_3(%arg0: i32, %arg1: i32) -> (i32, i32) {
    %c0_i32 = arith.constant 0 : i32
    %c0_i32_0 = arith.constant 0 : i32
    return %c0_i32, %arg1 : i32, i32
  }
  func.func @transform_4(%arg0: i32, %arg1: i32) -> (i32, i32) {
    %c0_i32 = arith.constant 0 : i32
    %c0_i32_0 = arith.constant 0 : i32
    return %c0_i32, %arg1 : i32, i32
  }
  func.func @transform_5(%arg0: i32, %arg1: i32) -> (i32, i32) {
    %c0_i32 = arith.constant 0 : i32
    %c0_i32_0 = arith.constant 0 : i32
    return %c0_i32, %arg1 : i32, i32
  }
  func.func @transform_6(%arg0: i32, %arg1: i32) -> (i32, i32) {
    %c0_i32 = arith.constant 0 : i32
    %c0_i32_0 = arith.constant 0 : i32
    return %c0_i32, %arg1 : i32, i32
  }
  func.func @transform_7(%arg0: i32, %arg1: i32) -> (i32, i32) {
    %c0_i32 = arith.constant 0 : i32
    %c0_i32_0 = arith.constant 0 : i32
    return %arg1, %c0_i32 : i32, i32
  }
  func.func @transform_8(%arg0: i32, %arg1: i32) -> (i32, i32) {
    %c0_i32 = arith.constant 0 : i32
    %c0_i32_0 = arith.constant 0 : i32
    %c0_i32_1 = arith.constant 0 : i32
    return %c0_i32, %c0_i32_0 : i32, i32
  }
  func.func @transform_9(%arg0: i32, %arg1: i32) -> (i32, i32) {
    %c0_i32 = arith.constant 0 : i32
    %c0_i32_0 = arith.constant 0 : i32
    return %arg0, %c0_i32 : i32, i32
  }
}

module attributes {stable_mosaic.version = 11 : i64} {
  func.func @_ln_matmul_kernel(%arg0: i32, %arg1: i32, %arg2: memref<64x128xf32, #tpu.memory_space<vmem>>, %arg3: memref<1x128xf32, #tpu.memory_space<vmem>>, %arg4: memref<1x128xf32, #tpu.memory_space<vmem>>, %arg5: memref<128x128xbf16, #tpu.memory_space<vmem>>, %arg6: memref<1x128xf32, #tpu.memory_space<vmem>>, %arg7: memref<64x128xf32, #tpu.memory_space<vmem>>, %arg8: memref<64x128xbf16, #tpu.memory_space<vmem>>) attributes {dimension_semantics = [#tpu.dimension_semantics<parallel>, #tpu.dimension_semantics<arbitrary>], iteration_bounds = array<i64: 1, 1>, scalar_prefetch = 0 : i64, scratch_operands = 1 : i64, tpu.core_type = #tpu.core_type<tc>, window_params = [{transform_indices = @transform_0, window_bounds = array<i64: 64, 128>}, {pipeline_mode = #tpu.pipeline_mode<synchronous>, transform_indices = @transform_1, window_bounds = array<i64: 1, 128>}, {pipeline_mode = #tpu.pipeline_mode<synchronous>, transform_indices = @transform_2, window_bounds = array<i64: 1, 128>}, {transform_indices = @transform_3, window_bounds = array<i64: 128, 128>}, {transform_indices = @transform_4, window_bounds = array<i64: 1, 128>}, {transform_indices = @transform_5, window_bounds = array<i64: 64, 128>}]} {
    %c0_i32 = arith.constant 0 : i32
    %0 = arith.cmpi eq, %arg1, %c0_i32 : i32
    %1 = arith.extui %0 : i1 to i32
    %c0_i32_0 = arith.constant 0 : i32
    %2 = arith.cmpi ne, %1, %c0_i32_0 : i32
    scf.if %2 {
      %c0_8 = arith.constant 0 : index
      %c0_9 = arith.constant 0 : index
      %10 = vector.load %arg2[%c0_8, %c0_9] : memref<64x128xf32, #tpu.memory_space<vmem>>, vector<64x128xf32>
      %cst_10 = arith.constant dense<0.000000e+00> : vector<64xf32>
      %11 = vector.multi_reduction <add>, %10, %cst_10 [1] : vector<64x128xf32> to vector<64xf32>
      %12 = vector.shape_cast %11 : vector<64xf32> to vector<64x1xf32>
      %cst_11 = arith.constant 1.280000e+02 : f32
      %13 = vector.broadcast %cst_11 : f32 to vector<64x1xf32>
      %14 = arith.divf %12, %13 : vector<64x1xf32>
      %15 = vector.broadcast %14 : vector<64x1xf32> to vector<64x128xf32>
      %16 = arith.subf %10, %15 : vector<64x128xf32>
      %17 = arith.mulf %16, %16 : vector<64x128xf32>
      %cst_12 = arith.constant dense<0.000000e+00> : vector<64xf32>
      %18 = vector.multi_reduction <add>, %17, %cst_12 [1] : vector<64x128xf32> to vector<64xf32>
      %19 = vector.shape_cast %18 : vector<64xf32> to vector<64x1xf32>
      %cst_13 = arith.constant 1.280000e+02 : f32
      %20 = vector.broadcast %cst_13 : f32 to vector<64x1xf32>
      %21 = arith.divf %19, %20 : vector<64x1xf32>
      %cst_14 = arith.constant 9.99999974E-6 : f32
      %22 = vector.broadcast %cst_14 : f32 to vector<64x1xf32>
      %23 = arith.addf %21, %22 : vector<64x1xf32>
      %24 = math.rsqrt %23 : vector<64x1xf32>
      %25 = vector.broadcast %24 : vector<64x1xf32> to vector<64x128xf32>
      %26 = arith.mulf %16, %25 : vector<64x128xf32>
      %c0_15 = arith.constant 0 : index
      %c0_16 = arith.constant 0 : index
      %27 = vector.load %arg3[%c0_15, %c0_16] : memref<1x128xf32, #tpu.memory_space<vmem>>, vector<1x128xf32>
      %28 = vector.broadcast %27 : vector<1x128xf32> to vector<64x128xf32>
      %29 = arith.mulf %26, %28 : vector<64x128xf32>
      %c0_17 = arith.constant 0 : index
      %c0_18 = arith.constant 0 : index
      %30 = vector.load %arg4[%c0_17, %c0_18] : memref<1x128xf32, #tpu.memory_space<vmem>>, vector<1x128xf32>
      %31 = vector.broadcast %30 : vector<1x128xf32> to vector<64x128xf32>
      %32 = arith.addf %29, %31 : vector<64x128xf32>
      %33 = arith.truncf %32 : vector<64x128xf32> to vector<64x128xbf16>
      %c0_19 = arith.constant 0 : index
      %c0_20 = arith.constant 0 : index
      %34 = vector.load %arg8[%c0_19, %c0_20] : memref<64x128xbf16, #tpu.memory_space<vmem>>, vector<64x128xbf16>
      tpu.vector_store %arg8[%c0_19, %c0_20], %33 {strides = array<i32>} : memref<64x128xbf16, #tpu.memory_space<vmem>>, vector<64x128xbf16>,
    } else {
    }
    %c0 = arith.constant 0 : index
    %c0_1 = arith.constant 0 : index
    %3 = vector.load %arg8[%c0, %c0_1] : memref<64x128xbf16, #tpu.memory_space<vmem>>, vector<64x128xbf16>
    %c0_2 = arith.constant 0 : index
    %c0_3 = arith.constant 0 : index
    %4 = vector.load %arg5[%c0_2, %c0_3] : memref<128x128xbf16, #tpu.memory_space<vmem>>, vector<128x128xbf16>
    %cst = arith.constant dense<0.000000e+00> : vector<64x128xf32>
    %5 = tpu.matmul %3, %4, %cst {dimension_numbers = #tpu.dot_dimension_numbers<[1], [0], [0], [1], [0, 0, 1, 1], [], []>} : vector<64x128xbf16>, vector<128x128xbf16>, vector<64x128xf32> -> vector<64x128xf32>
    %c0_4 = arith.constant 0 : index
    %c0_5 = arith.constant 0 : index
    %6 = vector.load %arg6[%c0_4, %c0_5] : memref<1x128xf32, #tpu.memory_space<vmem>>, vector<1x128xf32>
    %7 = vector.broadcast %6 : vector<1x128xf32> to vector<64x128xf32>
    %8 = arith.addf %5, %7 : vector<64x128xf32>
    %c0_6 = arith.constant 0 : index
    %c0_7 = arith.constant 0 : index
    %9 = vector.load %arg7[%c0_6, %c0_7] : memref<64x128xf32, #tpu.memory_space<vmem>>, vector<64x128xf32>
    tpu.vector_store %arg7[%c0_6, %c0_7], %8 {strides = array<i32>} : memref<64x128xf32, #tpu.memory_space<vmem>>, vector<64x128xf32>,
    return
  }
  func.func @transform_0(%arg0: i32, %arg1: i32) -> (i32, i32) {
    %c0_i32 = arith.constant 0 : i32
    %c0_i32_0 = arith.constant 0 : i32
    return %arg0, %c0_i32 : i32, i32
  }
  func.func @transform_1(%arg0: i32, %arg1: i32) -> (i32, i32) {
    %c0_i32 = arith.constant 0 : i32
    %c0_i32_0 = arith.constant 0 : i32
    %c0_i32_1 = arith.constant 0 : i32
    return %c0_i32, %c0_i32_0 : i32, i32
  }
  func.func @transform_2(%arg0: i32, %arg1: i32) -> (i32, i32) {
    %c0_i32 = arith.constant 0 : i32
    %c0_i32_0 = arith.constant 0 : i32
    %c0_i32_1 = arith.constant 0 : i32
    return %c0_i32, %c0_i32_0 : i32, i32
  }
  func.func @transform_3(%arg0: i32, %arg1: i32) -> (i32, i32) {
    %c0_i32 = arith.constant 0 : i32
    %c0_i32_0 = arith.constant 0 : i32
    return %c0_i32, %arg1 : i32, i32
  }
  func.func @transform_4(%arg0: i32, %arg1: i32) -> (i32, i32) {
    %c0_i32 = arith.constant 0 : i32
    %c0_i32_0 = arith.constant 0 : i32
    return %c0_i32, %arg1 : i32, i32
  }
  func.func @transform_5(%arg0: i32, %arg1: i32) -> (i32, i32) {
    %c0_i32 = arith.constant 0 : i32
    return %arg0, %arg1 : i32, i32
  }
}

</mosaic_0001>

<bundles_post_ra>
// kernel: dit_uncond_forward.11
= control target key start
LH: loop header
LB: loop body
LE: loop exit
PB: predicated region body
PF: predicated region fallthrough
CT: control target
= control target key end

     0   :  { %10 = vsyncpa [#allocation3], 0  ;;  %s561_s0 = inlined_call_operand.vmem [shape: bf16[2,256], index: 0, kind: input, shape index: {}]   ;;  %s562_s1 = inlined_call_operand.hbm [shape: bf16[256,128], index: 1, kind: input, shape index: {}]   ;;  %s563_s2 = inlined_call_operand.vmem [shape: f32[1,128], index: 2, kind: input, shape index: {}]   ;;  %s564_s3 = inlined_call_operand.hbm [shape: bf16[128,128], index: 3, kind: input, shape index: {}]   ;;  %s565_s4 = inlined_call_operand.vmem [shape: f32[1,128], index: 4, kind: input, shape index: {}]   ;;  %s566_s5 = inlined_call_operand.vmem [shape: f32[2,128], index: 5, kind: output, shape index: {}]  }
   0x1   :  { %s18_s20 = sshll.u32 %s562_s1, 4  ;;  %s19_s20 = int_to_ptr.hbm [resolvable:$true] %s18_s20 }
   0x2   :  { %11 = vsyncpa [#allocation5], 0  ;;  %s509_s21 = smov [#allocation2]   ;;  %s33_s25 = sshll.u32 %s564_s3, 4  ;;  %s34_s25 = int_to_ptr.hbm [resolvable:$true] %s33_s25 }
   0x3   :  { %s20_s22 = sshll.u32 %s509_s21, 4  ;;  %s510_s26 = smov 64   ;;  %s21_s22 = int_to_ptr.vmem [resolvable:$true] %s20_s22 }
   0x4   :  { %s511_s27 = smov 4   ;;  %s512_s28 = smov [#allocation4]  }
   0x5   :  { %26 = dma.hbm_to_vmem [thread:$0]  %s19_s20, 2048, %s21_s22, [#allocation3], %s510_s26, %s510_s26, %s511_s27  }
   0x6   :  { %s35_s29 = sshll.u32 %s512_s28, 4  ;;  %s36_s29 = int_to_ptr.vmem [resolvable:$true] %s35_s29 }
   0x7   :  { %41 = dma.hbm_to_vmem [thread:$0]  %s34_s25, 1024, %s36_s29, [#allocation5], %s510_s26, %s510_s26, %s511_s27  }
   0x8   :  { %505 = dma.done.wait [#allocation3], 2048  }
   0x9   :  { %506 = vsyncadd [#allocation3], 4294965248 }
   0xa   :  { %507 = dma.done.wait [#allocation5], 1024  }
   0xb   :  { %508 = vsyncadd [#allocation5], 4294966272  ;;  %v430_v0 = vld [vmem:[#allocation2 + $0x38] sm:$0xff]  ;;  %v429_v2 = vld [vmem:[#allocation2 + $0x30] sm:$0xff] }
   0xc   :  { %v438_v1 = vld [vmem:[#allocation2 + $0x78] sm:$0xff]  ;;  %191 = vmatpush.bf16.msra.mxu0 %v430_v0  ;;  %v437_v3 = vld [vmem:[#allocation2 + $0x70] sm:$0xff]  ;;  %v428_v5 = vld [vmem:[#allocation2 + $0x28] sm:$0xff] }
   0xd   :  { %204 = vmatpush.bf16.msra.mxu1 %v438_v1  ;;  %v52_v4 = vld [vmem:[%s561_s0] sm:$0x3]  ;;  %v436_v6 = vld [vmem:[#allocation2 + $0x68] sm:$0xff]  ;;  %v427_v7 = vld [vmem:[#allocation2 + $0x20] sm:$0xff] }
   0xe   :  { %90 = vst [vmem:[#allocation1] ss:$9 sm:$0xff] %v52_v4  ;;  %v435_v8 = vld [vmem:[#allocation2 + $0x60] sm:$0xff]  ;;  %v426_v9 = vld [vmem:[#allocation2 + $0x18] sm:$0xff]  ;;  %v425_v11 = vld [vmem:[#allocation2 + $0x10] sm:$0xff] }
   0xf   :  { %v434_v10 = vld [vmem:[#allocation2 + $0x58] sm:$0xff]  ;;  %v433_v12 = vld [vmem:[#allocation2 + $0x50] sm:$0xff]  ;;  %v424_v13 = vld [vmem:[#allocation2 + $0x8] sm:$0xff] }
  0x10   :  { %192 = vmatpush.bf16.msra.mxu0 %v429_v2  ;;  %v432_v14 = vld [vmem:[#allocation2 + $0x48] sm:$0xff]  ;;  %v423_v15 = vld [vmem:[#allocation2] sm:$0xff]  ;;  %v446_v19 = vld [vmem:[#allocation4 + $0x38] sm:$0xff] }
  0x11   :  { %205 = vmatpush.bf16.msra.mxu1 %v437_v3  ;;  %v431_v16 = vld [vmem:[#allocation2 + $0x40] sm:$0xff]  ;;  %306 = vmatpush.bf16.msra.mxu2 %v446_v19  ;;  %v445_v20 = vld [vmem:[#allocation4 + $0x30] sm:$0xff]  ;;  %v444_v21 = vld [vmem:[#allocation4 + $0x28] sm:$0xff] }
  0x12   :  { %v443_v22 = vld [vmem:[#allocation4 + $0x20] sm:$0xff]  ;;  %v442_v23 = vld [vmem:[#allocation4 + $0x18] sm:$0xff]  ;;  %v441_v24 = vld [vmem:[#allocation4 + $0x10] sm:$0xff] }
  0x13   :  { %v440_v25 = vld [vmem:[#allocation4 + $0x8] sm:$0xff]  ;;  %v451_v26 = vld [vmem:[%s563_s2] ss:$0 sm:$0xff]  ;;  %v439_v27 = vld [vmem:[#allocation4] sm:$0xff] }
  0x14   :  { %193 = vmatpush.bf16.msra.mxu0 %v428_v5  ;;  %v452_v49 = vld [vmem:[%s565_s4] ss:$0 sm:$0xff] }
  0x15   :  { %206 = vmatpush.bf16.msra.mxu1 %v436_v6  ;;  %v91_v17 = vld [vmem:[#allocation1] sm:$0xff]  ;;  %v92_v18 = vld [vmem:[#allocation1 + $0x9] sm:$0xff]  ;;  %307 = vmatpush.bf16.msra.mxu2 %v445_v20 }
  0x18   :  { %194 = vmatpush.bf16.msra.mxu0 %v427_v7 }
  0x19   :  { %207 = vmatpush.bf16.msra.mxu1 %v435_v8  ;;  %308 = vmatpush.bf16.msra.mxu2 %v444_v21 }
  0x1c   :  { %195 = vmatpush.bf16.msra.mxu0 %v426_v9 }
  0x1d   :  { %208 = vmatpush.bf16.msra.mxu1 %v434_v10  ;;  %309 = vmatpush.bf16.msra.mxu2 %v443_v22 }
  0x20   :  { %196 = vmatpush.bf16.msra.mxu0 %v425_v11 }
  0x21   :  { %209 = vmatpush.bf16.msra.mxu1 %v433_v12  ;;  %310 = vmatpush.bf16.msra.mxu2 %v442_v23 }
  0x24   :  { %197 = vmatpush.bf16.msra.mxu0 %v424_v13 }
  0x25   :  { %210 = vmatpush.bf16.msra.mxu1 %v432_v14  ;;  %311 = vmatpush.bf16.msra.mxu2 %v441_v24 }
  0x28   :  { %198 = vmatpush.bf16.msra.mxu0 %v423_v15 }
  0x29   :  { %211 = vmatpush.bf16.msra.mxu1 %v431_v16  ;;  %312 = vmatpush.bf16.msra.mxu2 %v440_v25 }
  0x2b   :  { %199 = vmatmul.bf16.vlgmr.msra.gmra.mxu0 %v91_v17 }
  0x2c   :  { %212 = vmatmul.bf16.vlgmr.msra.gmra.mxu1 %v92_v18 }
  0x2d   :  { %313 = vmatpush.bf16.msra.mxu2 %v439_v27 }
  0xa8   :  { %v200_v28 = vpop.f32.mrf.mxu0 }
  0xa9   :  { %v213_v29 = vpop.f32.mrf.mxu1  ;;  %v201_v30 = vadd.f32 %v451_v26, %v200_v28 }
  0xab   :  { %v214_v31 = vadd.f32 %v213_v29, %v201_v30 }
  0xad   :  { %v390_v32 = vmul.f32 -1.442695, %v214_v31 }
  0xaf   :  { %453 = vpow2.f32 %v390_v32 }
  0xb0   :  { %v202_v33 = vpop.f32.mrf.mxu0 }
  0xb1   :  { %v215_v34 = vpop.f32.mrf.mxu1 }
  0xb5   :  { %v454_v35 = vpop.eup %453 }
  0xb6   :  { %v220_v36 = vadd.f32 1.0, %v454_v35 }
  0xb8   :  { %455 = vrcp.f32 %v220_v36  ;;  %v232_v40 = vand.u32 2147483648, %v220_v36  ;;  %v230_v42 = vand.u32 2147483647, %v220_v36  ;;  %vm226_vm1 = vweird.f32 %v220_v36 }
  0xba   :  { %v233_v44 = vor.u32 1.1754944e-38, %v232_v40  ;;  %vm231_vm3 = vcmp.eq.f32.partialorder %v230_v42, 8.507059e+37 }
  0xbe   :  { %v456_v37 = vpop.eup %455 }
  0xbf   :  { %v222_v38 = vmul.f32 %v456_v37, %v220_v36  ;;  %vm227_vm0 = vweird.f32 %v456_v37 }
  0xc0   :  { %vm228_vm2 = vmor %vm226_vm1, %vm227_vm0 }
  0xc1   :  { %v223_v39 = vsub.f32 1.0, %v222_v38 }
  0xc3   :  { %v224_v41 = vmul.f32 %v456_v37, %v223_v39 }
  0xc5   :  { %v225_v43 = vadd.f32 %v456_v37, %v224_v41 }
  0xc7   :  { %v229_v45 = vsel %vm228_vm2, %v456_v37, %v225_v43 }
  0xc8   :  { %v234_v46 = vsel %vm231_vm3, %v233_v44, %v229_v45 }
  0xc9   :  { %v236_v47 = vmul.f32 %v234_v46, %v214_v31 }
  0xcb   :  { %v237_v48 = vpack.c.bf16 %v236_v47, %v236_v47 }
  0xcd   :  { %314 = vmatmul.bf16.vlgmr.msra.gmra.mxu2 %v237_v48 }
 0x150   :  { %v315_v50 = vpop.f32.mrf.mxu2 }
 0x151   :  { %v316_v51 = vadd.f32 %v452_v49, %v315_v50 }
 0x153   :  { %319 = vst [vmem:[%s566_s5] sm:$0x3] %v316_v51 }
 0x158   :  { %v317_v52 = vpop.f32.mrf.mxu2 }
 0x159   :  { %324 = vsyncpa [#allocation3], 1 }
 0x15a   :  { %325 = vsyncpa [#allocation5], 1 }

// kernel: dit_uncond_forward.12
= control target key start
LH: loop header
LB: loop body
LE: loop exit
PB: predicated region body
PF: predicated region fallthrough
CT: control target
= control target key end

     0   :  { %8 = vsyncpa [#allocation3], 0  ;;  %s230_s15 = smov [#allocation2]   ;;  %s231_s17 = smov 64   ;;  %s277_s0 = inlined_call_operand.vmem [shape: bf16[32,128], index: 0, kind: input, shape index: {}]   ;;  %s278_s1 = inlined_call_operand.hbm [shape: bf16[128,128], index: 1, kind: input, shape index: {}]   ;;  %s279_s2 = inlined_call_operand.vmem [shape: f32[1,128], index: 2, kind: input, shape index: {}]   ;;  %s280_s3 = inlined_call_operand.vmem [shape: f32[32,128], index: 3, kind: output, shape index: {}]  }
   0x1   :  { %s15_s14 = sshll.u32 %s278_s1, 4  ;;  %s17_s16 = sshll.u32 %s230_s15, 4  ;;  %s16_s14 = int_to_ptr.hbm [resolvable:$true] %s15_s14  ;;  %s18_s16 = int_to_ptr.vmem [resolvable:$true] %s17_s16 }
   0x2   :  { %s232_s18 = smov 4  }
   0x3   :  { %23 = dma.hbm_to_vmem [thread:$0]  %s16_s14, 1024, %s18_s16, [#allocation3], %s231_s17, %s231_s17, %s232_s18  }
   0x4   :  { %228 = dma.done.wait [#allocation3], 1024  }
   0x5   :  { %229 = vsyncadd [#allocation3], 4294966272  ;;  %v191_v0 = vld [vmem:[#allocation2 + $0x38] sm:$0xff]  ;;  %v190_v1 = vld [vmem:[#allocation2 + $0x30] sm:$0xff] }
   0x6   :  { %114 = vmatpush.bf16.msra.mxu0 %v191_v0  ;;  %192 = vmatpush.bf16.msra.mxu1 %v191_v0  ;;  %v189_v2 = vld [vmem:[#allocation2 + $0x28] sm:$0xff]  ;;  %v188_v3 = vld [vmem:[#allocation2 + $0x20] sm:$0xff]  ;;  %v187_v4 = vld [vmem:[#allocation2 + $0x18] sm:$0xff] }
   0x7   :  { %v186_v5 = vld [vmem:[#allocation2 + $0x10] sm:$0xff]  ;;  %v185_v6 = vld [vmem:[#allocation2 + $0x8] sm:$0xff]  ;;  %v184_v7 = vld [vmem:[#allocation2] sm:$0xff] }
   0x8   :  { %v182_v8 = vld [vmem:[%s277_s0] sm:$0xff]  ;;  %v183_v9 = vld [vmem:[%s277_s0 + $0x8] sm:$0xff] }
   0x9   :  { %v203_v10 = vld [vmem:[%s279_s2] ss:$0 sm:$0xff] }
   0xa   :  { %115 = vmatpush.bf16.msra.mxu0 %v190_v1  ;;  %193 = vmatpush.bf16.msra.mxu1 %v190_v1 }
   0xe   :  { %116 = vmatpush.bf16.msra.mxu0 %v189_v2  ;;  %194 = vmatpush.bf16.msra.mxu1 %v189_v2 }
  0x12   :  { %117 = vmatpush.bf16.msra.mxu0 %v188_v3  ;;  %195 = vmatpush.bf16.msra.mxu1 %v188_v3 }
  0x16   :  { %118 = vmatpush.bf16.msra.mxu0 %v187_v4  ;;  %196 = vmatpush.bf16.msra.mxu1 %v187_v4 }
  0x1a   :  { %119 = vmatpush.bf16.msra.mxu0 %v186_v5  ;;  %197 = vmatpush.bf16.msra.mxu1 %v186_v5 }
  0x1e   :  { %120 = vmatpush.bf16.msra.mxu0 %v185_v6  ;;  %198 = vmatpush.bf16.msra.mxu1 %v185_v6 }
  0x22   :  { %121 = vmatpush.bf16.msra.mxu0 %v184_v7  ;;  %199 = vmatpush.bf16.msra.mxu1 %v184_v7 }
  0x25   :  { %122 = vmatmul.bf16.vlgmr.msra.gmra.mxu0 %v182_v8  ;;  %127 = vmatmul.bf16.vlgmr.msra.gmra.mxu1 %v183_v9 }
  0xa2   :  { %v123_v11 = vpop.f32.mrf.mxu0  ;;  %v128_v12 = vpop.f32.mrf.mxu1 }
  0xa3   :  { %v124_v13 = vadd.f32 %v203_v10, %v123_v11  ;;  %v129_v14 = vadd.f32 %v203_v10, %v128_v12 }
  0xa5   :  { %133 = vst [vmem:[%s280_s3] sm:$0xff] %v124_v13 }
  0xa6   :  { %135 = vst [vmem:[%s280_s3 + $0x10] sm:$0xff] %v129_v14 }
  0xaa   :  { %v125_v15 = vpop.f32.mrf.mxu0  ;;  %v130_v16 = vpop.f32.mrf.mxu1 }
  0xab   :  { %v126_v17 = vadd.f32 %v203_v10, %v125_v15  ;;  %v131_v18 = vadd.f32 %v203_v10, %v130_v16 }
  0xad   :  { %134 = vst [vmem:[%s280_s3 + $0x8] sm:$0xff] %v126_v17 }
  0xae   :  { %136 = vst [vmem:[%s280_s3 + $0x18] sm:$0xff] %v131_v18 }
  0xaf   :  { %141 = vsyncpa [#allocation3], 1 }

// kernel: dit_uncond_forward.13
= control target key start
LH: loop header
LB: loop body
LE: loop exit
PB: predicated region body
PF: predicated region fallthrough
CT: control target
= control target key end

     0   :  { %9 = vsyncpa [#allocation4], 0  ;;  %s1387_s0 = inlined_call_operand.vmem [shape: f32[64,128], index: 0, kind: input, shape index: {}]   ;;  %s1388_s1 = inlined_call_operand.vmem [shape: f32[1,128], index: 1, kind: input, shape index: {}]   ;;  %s1389_s2 = inlined_call_operand.vmem [shape: f32[1,128], index: 2, kind: input, shape index: {}]   ;;  %s1390_s3 = inlined_call_operand.hbm [shape: bf16[128,384], index: 3, kind: input, shape index: {}]   ;;  %s1391_s4 = inlined_call_operand.vmem [shape: bf16[64,384], index: 4, kind: output, shape index: {}]  }
   0x1   :  { %11 = vsyncpa [#allocation4 + $0x1], 0  ;;  %s1113_s15 = smov 0   ;;  %s1115_s16 = smov 0  }
   0x2   :  { %s1117_s17 = smov 0   ;;  %s1119_s18 = smov 0  }
   0x3   :  { %s1121_s19 = smov 0   ;;  %s1123_s20 = smov 0  }
   0x4 LB: > { %s778_s21 = sadd.s32 4294967295, %s1082_s20   ;;  %s26_s22 = sadd.s32 1, %s1078_s19  ;;  %s1082_s20 = sphi %s1123_s20, %s17_s20   ;;  %s1078_s19 = sphi %s1121_s19, %s1405_s19   ;;  %s1074_s18 = sphi %s1119_s18, %s1404_s18   ;;  %s1070_s17 = sphi %s1117_s17, %s1403_s17   ;;  %s1066_s16 = sphi %s1115_s16, %s1402_s16   ;;  %s1062_s15 = sphi %s1113_s15, %s1401_s15  }
   0x5   : > { %p27_p0 = scmp.ge.s32.totalorder %s26_s22, 3  ;;  %s104_s23 = sadd.s32 1, %s1070_s17 }
   0x6   : > { %p111_p1 = scmp.ne.s32.totalorder %s1070_s17, %s1066_s16  ;;  %p112_p2 = scmp.eq.s32.totalorder %s1082_s20, 0 }
   0x7   : > { %s1407_s22 = smov (%p27_p0, %s26_s22), 0  ;;  %p117_p4 = scmp.ne.s32.totalorder %s1066_s16, %s1062_s15 }
   0x8   : > { %p1149_p3 = por %p112_p2, %p111_p1  ;;  %s101_s25 = ssub.s32 %s1078_s19, %s1407_s22 }
   0x9   : > { %p118_p5 = scmp.eq.s32.totalorder %s778_s21, 0  ;;  %p102_p6 = scmp.eq.s32.totalorder %s101_s25, 0 }
   0xa   : > { %p143_p7 = scmp.eq.s32.totalorder %s778_s21, 2  ;;  %p929_p10 = scmp.lt.s32.totalorder %s1082_s20, 3 }
   0xb   : > { %p1156_p8 = por %p118_p5, %p117_p4  ;;  %s184_s29 = sand.u32 1, %s1070_s17  }
   0xc   : > { %s1161_s27 = scalar_select %p102_p6, %s1070_s17, %s104_s23  }
   0xd   : > { %p1163_p9 = por %p143_p7, %p111_p1  ;;  %s784_s30 = sshll.u32 %s1078_s19, 2 }
   0xe   : > { %s783_s5 = sshll.u32 %s184_s29, 6  ;;  %s192_s8 = scalar_lea.hbm %s1390_s3, %s784_s30 }
   0xf   : > { %s193_s9 = sshll.u32 %s192_s8, 4  ;;  %s188_s10 = scalar_lea.vmem [#allocation3], %s783_s5  ;;  %s194_s9 = int_to_ptr.hbm [resolvable:$true] %s193_s9 }
  0x10   : > { %s195_s11 = sshll.u32 %s188_s10, 4  ;;  %p926_p11 = pnand %p929_p10, %p1149_p3  ;;  %s196_s11 = int_to_ptr.vmem [resolvable:$true] %s195_s11 }
  0x11   : > { %p785_p12 = scmp.ge.s32.totalorder %s1082_s20, 1  ;;  %s185_s12 = scalar_lea.sflag [#allocation4], %s184_s29 }
  0x12   : > { %s1084_s13 = smov 192   ;;  %s1085_s14 = smov 64  }
  0x13   : > { %s1086_s15 = smov 4   ;;  %p203_p13 = scmp.lt.s32.totalorder %s1082_s20, 4 }
  0x14   : > { %928 = dma.hbm_to_vmem [thread:$0]  (!%p926_p11), %s194_s9, 1024, %s196_s11, %s185_s12, %s1084_s13, %s1085_s14, %s1086_s15  }
  0x15   : > { %p204_p0 = pnand %p785_p12, %p203_p13 }
  0x16   : > { %s209_s21 = sand.u32 (!%p204_p0), 1, %s1066_s16  }
  0x17   : > { %207 = sbr.rel (%p204_p0) target bundleno = 518 (0x206), region = 36  ;;  %s786_s23 = sshll.u32 (!%p204_p0), %s209_s21, 6 }
  0x18   : > { %s210_s25 = scalar_lea.sflag (!%p204_p0), [#allocation4], %s209_s21  ;;  %s1178_s30 = scalar_lea.vmem (!%p204_p0), [#allocation3], %s786_s23 }
  0x1c   : > { %1057 = dma.done.wait (%p1156_p8), %s210_s25, 1024  }
  0x1d   : > { %1059 = vsyncadd (%p1156_p8), %s210_s25, 4294966272  ;;  %s787_s24 = sshll.u32 %s209_s21, 5  ;;  %p788_p1 = scmp.ne.s32.totalorder %s1074_s18, 0 }
  0x1e   : > { %s1184_s29 = scalar_lea.vmem [#allocation5], %s787_s24 }
  0x1f   : > { %253 = sbr.rel (%p788_p1) target bundleno = 331 (0x14b), region = 44 }
  0x24   : > { %v258_v0 = vld [vmem:[%s1387_s0 + $0x20] sm:$0xff]  ;;  %v256_v1 = vld [vmem:[%s1387_s0 + $0x10] sm:$0xff]  ;;  %v259_v3 = vld [vmem:[%s1387_s0 + $0x28] sm:$0xff]  ;;  %v1087_v8 = vmov 128.0  }
  0x25   : > { %v254_v2 = vld [vmem:[%s1387_s0] sm:$0xff]  ;;  %270 = vadd.xlane.f32.xlu2 %v258_v0  ;;  %266 = vadd.xlane.f32.xlu1 %v256_v1  ;;  %v257_v4 = vld [vmem:[%s1387_s0 + $0x18] sm:$0xff]  ;;  %v255_v5 = vld [vmem:[%s1387_s0 + $0x8] sm:$0xff]  ;;  %984 = vrcp.f32 %v1087_v8 }
  0x26   : > { %262 = vadd.xlane.f32.xlu0 %v254_v2  ;;  %v261_v6 = vld [vmem:[%s1387_s0 + $0x38] sm:$0xff]  ;;  %v260_v7 = vld [vmem:[%s1387_s0 + $0x30] sm:$0xff] }
  0x2b   : > { %v985_v9 = vpop.eup %984 }
  0x2c   : > { %v279_v10 = vmul.f32 128.0, %v985_v9  ;;  %vm283_vm0 = vweird.f32 %v985_v9 }
  0x2d   : > { %272 = vadd.xlane.f32.xlu2 %v259_v3  ;;  %268 = vadd.xlane.f32.xlu1 %v257_v4 }
  0x2e   : > { %264 = vadd.xlane.f32.xlu0 %v255_v5  ;;  %v280_v11 = vsub.f32 1.0, %v279_v10 }
  0x30   : > { %v281_v12 = vmul.f32 %v985_v9, %v280_v11 }
  0x32   : > { %v282_v13 = vadd.f32 %v985_v9, %v281_v12 }
  0x34   : > { %v1211_v14 = vsel %vm283_vm0, %v985_v9, %v282_v13 }
  0x35   : > { %276 = vadd.xlane.f32.xlu1 %v261_v6 }
  0x36   : > { %274 = vadd.xlane.f32.xlu0 %v260_v7 }
  0x98   : > { %v271_v15 = vpop.xlane.xlu2 %270  ;;  %v267_v16 = vpop.xlane.xlu1 %266 }
  0x99   : > { %v287_v17 = vmul.f32 %v1211_v14, %v267_v16  ;;  %v263_v18 = vpop.xlane.xlu0 %262  ;;  %v289_v32 = vmul.f32 %v1211_v14, %v271_v15 }
  0x9a   : > { %v285_v19 = vmul.f32 %v1211_v14, %v263_v18 }
  0x9b   : > { %v1215_v20 = vsub.f32 %v256_v1, %v287_v17  ;;  %v1239_v37 = vsub.f32 %v258_v0, %v289_v32 }
  0x9c   : > { %v1217_v21 = vsub.f32 %v254_v2, %v285_v19 }
  0x9d   : > { %v303_v22 = vmul.f32 %v1215_v20, %v1215_v20  ;;  %v305_v42 = vmul.f32 %v1239_v37, %v1239_v37 }
  0x9e   : > { %v301_v23 = vmul.f32 %v1217_v21, %v1217_v21 }
  0x9f   : > { %313 = vadd.xlane.f32.xlu1 %v303_v22 }
  0xa0   : > { %309 = vadd.xlane.f32.xlu2 %v301_v23  ;;  %v273_v24 = vpop.xlane.xlu2 %272  ;;  %v269_v25 = vpop.xlane.xlu1 %268 }
  0xa1   : > { %v290_v26 = vmul.f32 %v1211_v14, %v273_v24  ;;  %v288_v27 = vmul.f32 %v1211_v14, %v269_v25  ;;  %v265_v28 = vpop.xlane.xlu0 %264 }
  0xa2   : > { %v286_v29 = vmul.f32 %v1211_v14, %v265_v28 }
  0xa3   : > { %v1226_v30 = vsub.f32 %v259_v3, %v290_v26  ;;  %v1228_v31 = vsub.f32 %v257_v4, %v288_v27 }
  0xa4   : > { %v1231_v33 = vsub.f32 %v255_v5, %v286_v29 }
  0xa5   : > { %v306_v34 = vmul.f32 %v1226_v30, %v1226_v30  ;;  %v304_v35 = vmul.f32 %v1228_v31, %v1228_v31 }
  0xa6   : > { %v302_v36 = vmul.f32 %v1231_v33, %v1231_v33 }
  0xa7   : > { %319 = vadd.xlane.f32.xlu1 %v306_v34 }
  0xa8   : > { %315 = vadd.xlane.f32.xlu2 %v304_v35  ;;  %311 = vadd.xlane.f32.xlu0 %v302_v36  ;;  %v277_v39 = vpop.xlane.xlu1 %276 }
  0xa9   : > { %v275_v38 = vpop.xlane.xlu0 %274  ;;  %v292_v43 = vmul.f32 %v1211_v14, %v277_v39 }
  0xaa   : > { %v291_v40 = vmul.f32 %v1211_v14, %v275_v38 }
  0xab   : > { %v1249_v45 = vsub.f32 %v261_v6, %v292_v43 }
  0xac   : > { %v1242_v41 = vsub.f32 %v260_v7, %v291_v40 }
  0xad   : > { %v308_v46 = vmul.f32 %v1249_v45, %v1249_v45 }
  0xae   : > { %v307_v44 = vmul.f32 %v1242_v41, %v1242_v41 }
  0xb0   : > { %317 = vadd.xlane.f32.xlu0 %v305_v42  ;;  %321 = vadd.xlane.f32.xlu2 %v307_v44  ;;  %v1294_v42 = vld [vmem:[%s1388_s1] ss:$0 sm:$0xff] }
  0xb8   : > { %323 = vadd.xlane.f32.xlu0 %v308_v46 }
 0x112   : > { %v314_v47 = vpop.xlane.xlu1 %313 }
 0x113   : > { %v327_v48 = vmul.f32 %v314_v47, %v1211_v14  ;;  %v310_v49 = vpop.xlane.xlu2 %309 }
 0x114   : > { %v325_v50 = vmul.f32 %v310_v49, %v1211_v14 }
 0x115   : > { %v335_v51 = vadd.f32 1e-05, %v327_v48 }
 0x116   : > { %v333_v52 = vadd.f32 1e-05, %v325_v50 }
 0x117   : > { %986 = vrsqrt.f32 %v335_v51  ;;  %vm367_vm1 = vweird.f32 %v335_v51 }
 0x118   : > { %988 = vrsqrt.f32 %v333_v52  ;;  %vm347_vm5 = vweird.f32 %v333_v52 }
 0x11a   : > { %v320_v53 = vpop.xlane.xlu1 %319 }
 0x11b   : > { %v330_v54 = vmul.f32 %v320_v53, %v1211_v14  ;;  %v316_v55 = vpop.xlane.xlu2 %315  ;;  %v312_v56 = vpop.xlane.xlu0 %311  ;;  %v983_v53 = vld [vmem:[%s1389_s2] ss:$0 sm:$0xff] }
 0x11c   : > { %v328_v57 = vmul.f32 %v316_v55, %v1211_v14  ;;  %v326_v58 = vmul.f32 %v312_v56, %v1211_v14 }
 0x11d   : > { %v987_v59 = vpop.eup %986  ;;  %v1258_v60 = vadd.f32 1e-05, %v330_v54 }
 0x11e   : > { %v989_v61 = vpop.eup %988  ;;  %v362_v62 = vmul.f32 %v987_v59, %v335_v51  ;;  %v336_v63 = vadd.f32 1e-05, %v328_v57  ;;  %v1260_v0 = vadd.f32 1e-05, %v326_v58  ;;  %vm368_vm2 = vweird.f32 %v987_v59 }
 0x11f   : > { %v342_v1 = vmul.f32 %v989_v61, %v333_v52  ;;  %990 = vrsqrt.f32 %v1258_v60  ;;  %vm348_vm3 = vweird.f32 %v989_v61  ;;  %vm1276_vm4 = vmor %vm367_vm1, %vm368_vm2  ;;  %vm397_vm10 = vweird.f32 %v1258_v60 }
 0x120   : > { %v363_v2 = vmul.f32 %v987_v59, %v362_v62  ;;  %992 = vrsqrt.f32 %v336_v63  ;;  %vm1283_vm6 = vmor %vm347_vm5, %vm348_vm3  ;;  %vm377_vm7 = vweird.f32 %v336_v63  ;;  %vm357_vm13 = vweird.f32 %v1260_v0 }
 0x121   : > { %v343_v3 = vmul.f32 %v989_v61, %v342_v1  ;;  %994 = vrsqrt.f32 %v1260_v0 }
 0x122   : > { %v364_v4 = vmul.f32 0.5, %v363_v2 }
 0x123   : > { %v344_v5 = vmul.f32 0.5, %v343_v3  ;;  %v322_v6 = vpop.xlane.xlu2 %321  ;;  %v318_v7 = vpop.xlane.xlu0 %317 }
 0x124   : > { %v365_v8 = vsub.f32 1.5, %v364_v4  ;;  %v331_v9 = vmul.f32 %v322_v6, %v1211_v14  ;;  %v329_v10 = vmul.f32 %v318_v7, %v1211_v14 }
 0x125   : > { %v1266_v11 = vpop.eup %990  ;;  %v345_v12 = vsub.f32 1.5, %v344_v5 }
 0x126   : > { %v993_v13 = vpop.eup %992  ;;  %v366_v15 = vmul.f32 %v987_v59, %v365_v8  ;;  %v392_v16 = vmul.f32 %v1266_v11, %v1258_v60  ;;  %v1270_v17 = vadd.f32 1e-05, %v331_v9  ;;  %v1272_v22 = vadd.f32 1e-05, %v329_v10 }
 0x127   : > { %v995_v18 = vpop.eup %994  ;;  %v372_v19 = vmul.f32 %v993_v13, %v336_v63  ;;  %v346_v23 = vmul.f32 %v989_v61, %v345_v12  ;;  %vm378_vm8 = vweird.f32 %v993_v13  ;;  %vm398_vm11 = vweird.f32 %v1266_v11 }
 0x128   : > { %v393_v24 = vmul.f32 %v1266_v11, %v392_v16  ;;  %v352_v25 = vmul.f32 %v995_v18, %v1260_v0  ;;  %996 = vrsqrt.f32 %v1270_v17  ;;  %v370_v28 = vsel %vm1276_vm4, %v987_v59, %v366_v15  ;;  %vm379_vm12 = vmor %vm377_vm7, %vm378_vm8 }
 0x129   : > { %v373_v27 = vmul.f32 %v993_v13, %v372_v19  ;;  %998 = vrsqrt.f32 %v1272_v22  ;;  %v350_v38 = vsel %vm1283_vm6, %v989_v61, %v346_v23  ;;  %v423_v43 = vmul.f32 %v370_v28, %v1215_v20  ;;  %vm1319_vm15 = vmor %vm397_vm10, %vm398_vm11 }
 0x12a   : > { %v394_v29 = vmul.f32 0.5, %v393_v24  ;;  %v353_v32 = vmul.f32 %v995_v18, %v352_v25  ;;  %vm358_vm9 = vweird.f32 %v995_v18  ;;  %v421_v50 = vmul.f32 %v350_v38, %v1217_v21 }
 0x12b   : > { %v374_v35 = vmul.f32 0.5, %v373_v27  ;;  %v324_v36 = vpop.xlane.xlu0 %323  ;;  %v435_v54 = vmul.f32 %v1294_v42, %v423_v43  ;;  %vm359_vm14 = vmor %vm357_vm13, %vm358_vm9  ;;  %vm407_vm0 = vweird.f32 %v1270_v17  ;;  %vm387_vm4 = vweird.f32 %v1272_v22 }
 0x12c   : > { %v354_v39 = vmul.f32 0.5, %v353_v32  ;;  %v332_v40 = vmul.f32 %v324_v36, %v1211_v14  ;;  %v395_v44 = vsub.f32 1.5, %v394_v29  ;;  %v433_v61 = vmul.f32 %v1294_v42, %v421_v50 }
 0x12d   : > { %v375_v46 = vsub.f32 1.5, %v374_v35  ;;  %v447_v2 = vadd.f32 %v983_v53, %v435_v54 }
 0x12e   : > { %v355_v47 = vsub.f32 1.5, %v354_v39  ;;  %v1297_v48 = vadd.f32 1e-05, %v332_v40  ;;  %v997_v49 = vpop.eup %996  ;;  %v396_v21 = vmul.f32 %v1266_v11, %v395_v44  ;;  %v445_v8 = vadd.f32 %v983_v53, %v433_v61 }
 0x12f   : > { %v376_v14 = vmul.f32 %v993_v13, %v375_v46  ;;  %v402_v20 = vmul.f32 %v997_v49, %v1270_v17  ;;  %v999_v52 = vpop.eup %998  ;;  %vm408_vm1 = vweird.f32 %v997_v49 }
 0x130   : > { %v356_v51 = vmul.f32 %v995_v18, %v355_v47  ;;  %1000 = vrsqrt.f32 %v1297_v48  ;;  %v382_v59 = vmul.f32 %v999_v52, %v1272_v22  ;;  %v400_v4 = vsel %vm1319_vm15, %v1266_v11, %v396_v21  ;;  %vm409_vm3 = vmor %vm407_vm0, %vm408_vm1 }
 0x131   : > { %v380_v55 = vsel %vm379_vm12, %v993_v13, %v376_v14  ;;  %v403_v58 = vmul.f32 %v997_v49, %v402_v20  ;;  %vm388_vm2 = vweird.f32 %v999_v52  ;;  %v426_v15 = vmul.f32 %v400_v4, %v1226_v30 }
 0x132   : > { %v424_v56 = vmul.f32 %v380_v55, %v1228_v31  ;;  %v360_v57 = vsel %vm359_vm14, %v995_v18, %v356_v51  ;;  %v383_v31 = vmul.f32 %v999_v52, %v382_v59  ;;  %vm389_vm5 = vmor %vm387_vm4, %vm388_vm2  ;;  %vm417_vm7 = vweird.f32 %v1297_v48 }
 0x133   : > { %v422_v63 = vmul.f32 %v360_v57, %v1231_v33  ;;  %v404_v1 = vmul.f32 0.5, %v403_v58  ;;  %v438_v25 = vmul.f32 %v1294_v42, %v426_v15 }
 0x134   : > { %v436_v0 = vmul.f32 %v1294_v42, %v424_v56  ;;  %v384_v6 = vmul.f32 0.5, %v383_v31 }
 0x135   : > { %v434_v3 = vmul.f32 %v1294_v42, %v422_v63  ;;  %v405_v5 = vsub.f32 1.5, %v404_v1  ;;  %v450_v22 = vadd.f32 %v983_v53, %v438_v25 }
 0x136   : > { %v448_v60 = vadd.f32 %v983_v53, %v436_v0  ;;  %v1001_v7 = vpop.eup %1000  ;;  %v385_v12 = vsub.f32 1.5, %v384_v6 }
 0x137   : > { %v446_v9 = vadd.f32 %v983_v53, %v434_v3  ;;  %v406_v10 = vmul.f32 %v997_v49, %v405_v5  ;;  %v412_v13 = vmul.f32 %v1001_v7, %v1297_v48  ;;  %vm418_vm6 = vweird.f32 %v1001_v7 }
 0x138   : > { %v861_v33 = vpack.c.bf16 %v448_v60, %v447_v2  ;;  %v386_v11 = vmul.f32 %v999_v52, %v385_v12  ;;  %vm419_vm8 = vmor %vm417_vm7, %vm418_vm6 }
 0x139   : > { %v856_v16 = vpack.c.bf16 %v446_v9, %v445_v8  ;;  %v413_v18 = vmul.f32 %v1001_v7, %v412_v13  ;;  %v410_v19 = vsel %vm409_vm3, %v997_v49, %v406_v10 }
 0x13a   : > { %893 = vst [vmem:[#allocation2] sm:$0xff] %v861_v33   ;;  %v390_v23 = vsel %vm389_vm5, %v999_v52, %v386_v11  ;;  %v427_v30 = vmul.f32 %v410_v19, %v1242_v41 }
 0x13b   : > { %857 = vst [vmem:[#allocation2 + $0x10] sm:$0xff] %v856_v16   ;;  %v414_v24 = vmul.f32 0.5, %v413_v18  ;;  %v425_v26 = vmul.f32 %v390_v23, %v1239_v37 }
 0x13c   : > { %v439_v34 = vmul.f32 %v1294_v42, %v427_v30 }
 0x13d   : > { %v415_v27 = vsub.f32 1.5, %v414_v24  ;;  %v437_v17 = vmul.f32 %v1294_v42, %v425_v26 }
 0x13e   : > { %v451_v38 = vadd.f32 %v983_v53, %v439_v34 }
 0x13f   : > { %v416_v28 = vmul.f32 %v1001_v7, %v415_v27  ;;  %v449_v29 = vadd.f32 %v983_v53, %v437_v17 }
 0x141   : > { %v420_v32 = vsel %vm419_vm8, %v1001_v7, %v416_v28  ;;  %v866_v35 = vpack.c.bf16 %v450_v22, %v449_v29 }
 0x142   : > { %v428_v36 = vmul.f32 %v420_v32, %v1249_v45 }
 0x143   : > { %894 = vst [vmem:[#allocation2 + $0x18] sm:$0xff] %v866_v35  }
 0x144   : > { %v440_v37 = vmul.f32 %v1294_v42, %v428_v36 }
 0x146   : > { %v452_v39 = vadd.f32 %v983_v53, %v440_v37 }
 0x148   : > { %v871_v41 = vpack.c.bf16 %v452_v39, %v451_v38 }
 0x14a   : > { %895 = vst [vmem:[#allocation2 + $0x8] sm:$0xff] %v871_v41  }
 0x14b PF: > { %v852_v40 = vld [vmem:[%s1178_s30 + $0x38] sm:$0xff]  ;;  %v851_v43 = vld [vmem:[%s1178_s30 + $0x30] sm:$0xff]  ;;  %v850_v45 = vld [vmem:[%s1178_s30 + $0x28] sm:$0xff] }
 0x14c   : > { %565 = vmatpush.bf16.msra.mxu0 %v852_v40  ;;  %899 = vmatpush.bf16.msra.mxu1 %v852_v40  ;;  %v849_v42 = vld [vmem:[%s1178_s30 + $0x20] sm:$0xff]  ;;  %v848_v44 = vld [vmem:[%s1178_s30 + $0x18] sm:$0xff]  ;;  %v847_v46 = vld [vmem:[%s1178_s30 + $0x10] sm:$0xff] }
 0x14d   : > { %900 = vmatpush.bf16.msra.mxu2 %v852_v40  ;;  %901 = vmatpush.bf16.msra.mxu3 %v852_v40  ;;  %v846_v47 = vld [vmem:[%s1178_s30 + $0x8] sm:$0xff]  ;;  %v845_v48 = vld [vmem:[%s1178_s30] sm:$0xff]  ;;  %v841_v49 = vld [vmem:[#allocation2 + $0x10] sm:$0xff]  ;;  %s838_s30 = sshll.u32 (%p1163_p9), %s1074_s18, 2 }
 0x14e   : > { %v842_v50 = vld [vmem:[#allocation2] sm:$0xff]  ;;  %v843_v14 = vld [vmem:[#allocation2 + $0x18] sm:$0xff]  ;;  %s621_s26 = scalar_lea.vmem (%p1163_p9), %s1391_s4, %s838_s30 }
 0x150   : > { %566 = vmatpush.bf16.msra.mxu0 %v851_v43  ;;  %902 = vmatpush.bf16.msra.mxu1 %v851_v43 }
 0x151   : > { %903 = vmatpush.bf16.msra.mxu2 %v851_v43  ;;  %904 = vmatpush.bf16.msra.mxu3 %v851_v43  ;;  %v844_v51 = vld [vmem:[#allocation2 + $0x8] sm:$0xff] }
 0x154   : > { %567 = vmatpush.bf16.msra.mxu0 %v850_v45  ;;  %905 = vmatpush.bf16.msra.mxu1 %v850_v45 }
 0x155   : > { %906 = vmatpush.bf16.msra.mxu2 %v850_v45  ;;  %907 = vmatpush.bf16.msra.mxu3 %v850_v45 }
 0x158   : > { %568 = vmatpush.bf16.msra.mxu0 %v849_v42  ;;  %908 = vmatpush.bf16.msra.mxu1 %v849_v42 }
 0x159   : > { %909 = vmatpush.bf16.msra.mxu2 %v849_v42  ;;  %910 = vmatpush.bf16.msra.mxu3 %v849_v42 }
 0x15c   : > { %569 = vmatpush.bf16.msra.mxu0 %v848_v44  ;;  %911 = vmatpush.bf16.msra.mxu1 %v848_v44 }
 0x15d   : > { %912 = vmatpush.bf16.msra.mxu2 %v848_v44  ;;  %913 = vmatpush.bf16.msra.mxu3 %v848_v44 }
 0x160   : > { %570 = vmatpush.bf16.msra.mxu0 %v847_v46  ;;  %914 = vmatpush.bf16.msra.mxu1 %v847_v46 }
 0x161   : > { %915 = vmatpush.bf16.msra.mxu2 %v847_v46  ;;  %916 = vmatpush.bf16.msra.mxu3 %v847_v46 }
 0x164   : > { %571 = vmatpush.bf16.msra.mxu0 %v846_v47  ;;  %917 = vmatpush.bf16.msra.mxu1 %v846_v47 }
 0x165   : > { %918 = vmatpush.bf16.msra.mxu2 %v846_v47  ;;  %919 = vmatpush.bf16.msra.mxu3 %v846_v47 }
 0x168   : > { %572 = vmatpush.bf16.msra.mxu0 %v845_v48  ;;  %920 = vmatpush.bf16.msra.mxu1 %v845_v48 }
 0x169   : > { %921 = vmatpush.bf16.msra.mxu2 %v845_v48  ;;  %922 = vmatpush.bf16.msra.mxu3 %v845_v48 }
 0x16b   : > { %573 = vmatmul.bf16.vlgmr.msra.gmra.mxu0 %v841_v49  ;;  %578 = vmatmul.bf16.vlgmr.msra.gmra.mxu1 %v842_v50 }
 0x16c   : > { %583 = vmatmul.bf16.vlgmr.msra.gmra.mxu2 %v843_v14  ;;  %588 = vmatmul.bf16.vlgmr.msra.gmra.mxu3 %v844_v51 }
 0x1e8   : > { %v574_v20 = vpop.f32.mrf.mxu0  ;;  %v579_v52 = vpop.f32.mrf.mxu1 }
 0x1ef   : > { %v584_v53 = vpop.f32.mrf.mxu2  ;;  %v589_v54 = vpop.f32.mrf.mxu3 }
 0x1f0   : > { %v576_v21 = vpop.f32.mrf.mxu0  ;;  %v581_v55 = vpop.f32.mrf.mxu1 }
 0x1f1   : > { %v876_v56 = vpack.c.bf16 %v576_v21, %v574_v20  ;;  %v881_v57 = vpack.c.bf16 %v581_v55, %v579_v52 }
 0x1f3   : > { %877 = vst [vmem:[%s1184_s29] sm:$0xff] %v876_v56  }
 0x1f4   : > { %896 = vst [vmem:[%s1184_s29 + $0x8] sm:$0xff] %v881_v57  }
 0x1f7   : > { %v586_v58 = vpop.f32.mrf.mxu2  ;;  %v591_v59 = vpop.f32.mrf.mxu3  ;;  %616 = sbr.rel (!%p1163_p9) target bundleno = 518 (0x206), region = 48 }
 0x1f8   : > { %v886_v61 = vpack.c.bf16 %v586_v58, %v584_v53  ;;  %v891_v62 = vpack.c.bf16 %v591_v59, %v589_v54 }
 0x1fa   : > { %897 = vst [vmem:[%s1184_s29 + $0x10] sm:$0xff] %v886_v61   ;;  %v638_v63 = vld [vmem:[%s1184_s29] sm:$0xf] (%p1163_p9)  ;;  %v640_v0 = vld [vmem:[%s1184_s29 + $0x4] sm:$0xf] (%p1163_p9) }
 0x1fb   : > { %898 = vst [vmem:[%s1184_s29 + $0x18] sm:$0xff] %v891_v62   ;;  %v642_v1 = vld [vmem:[%s1184_s29 + $0x8] sm:$0xf] (%p1163_p9)  ;;  %v644_v31 = vld [vmem:[%s1184_s29 + $0xc] sm:$0xf] (%p1163_p9) }
 0x1fc   : > { %639 = vst [vmem:[%s621_s26] sm:$0xf] %v638_v63 }
 0x1fd   : > { %641 = vst [vmem:[%s621_s26 + $0xc] sm:$0xf] %v640_v0 }
 0x1fe   : > { %643 = vst [vmem:[%s621_s26 + $0x18] sm:$0xf] %v642_v1 }
 0x1ff   : > { %645 = vst [vmem:[%s621_s26 + $0x24] sm:$0xf] %v644_v31 }
 0x201   : > { %v646_v2 = vld [vmem:[%s1184_s29 + $0x10] sm:$0xf]  ;;  %v648_v3 = vld [vmem:[%s1184_s29 + $0x14] sm:$0xf] }
 0x202   : > { %v650_v4 = vld [vmem:[%s1184_s29 + $0x18] sm:$0xf]  ;;  %647 = vst [vmem:[%s621_s26 + $0x30] sm:$0xf] %v646_v2  ;;  %v652_v60 = vld [vmem:[%s1184_s29 + $0x1c] sm:$0xf] }
 0x203   : > { %649 = vst [vmem:[%s621_s26 + $0x3c] sm:$0xf] %v648_v3 }
 0x204   : > { %651 = vst [vmem:[%s621_s26 + $0x48] sm:$0xf] %v650_v4 }
 0x205   : > { %653 = vst [vmem:[%s621_s26 + $0x54] sm:$0xf] %v652_v60 }
 0x206 PF: > { %s17_s20 = sadd.s32 1, %s1082_s20   ;;  %s1401_s15 = smov %s1066_s16 }
 0x207   : > { %p14_p2 = scmp.ge.s32.totalorder %s17_s20, 5   ;;  %s1402_s16 = smov %s1070_s17 }
 0x208   : > { %s1403_s17 = smov %s1161_s27  ;;  %s1404_s18 = smov %s1078_s19 }
 0x209   : > { %s1405_s19 = smov %s1407_s22  ;;  %16 = sbr.rel (!%p14_p2) target bundleno = 4 (0x4), region = 124 }
 0x20e   :  { %703 = vsyncpa [#allocation4], 1 }
 0x20f   :  { %705 = vsyncpa [#allocation4 + $0x1], 1 }

// kernel: dit_uncond_forward.15
= control target key start
LH: loop header
LB: loop body
LE: loop exit
PB: predicated region body
PF: predicated region fallthrough
CT: control target
= control target key end

     0   :  { %s355_s1 = inlined_call_operand.vmem [shape: bf16[128,128], index: 1, kind: input, shape index: {}]   ;;  %s356_s0 = inlined_call_operand.vmem [shape: bf16[64,128], index: 0, kind: input, shape index: {}]   ;;  %s357_s2 = inlined_call_operand.vmem [shape: f32[64,128], index: 2, kind: input, shape index: {}]   ;;  %s358_s3 = inlined_call_operand.vmem [shape: f32[64,128], index: 3, kind: output, shape index: {}]  }
   0x1   :  { %v226_v0 = vld [vmem:[%s355_s1 + $0x38] sm:$0xff]  ;;  %v225_v1 = vld [vmem:[%s355_s1 + $0x30] sm:$0xff]  ;;  %v224_v2 = vld [vmem:[%s355_s1 + $0x28] sm:$0xff] }
   0x2   :  { %110 = vmatpush.bf16.msra.mxu0 %v226_v0  ;;  %227 = vmatpush.bf16.msra.mxu1 %v226_v0  ;;  %v223_v3 = vld [vmem:[%s355_s1 + $0x20] sm:$0xff]  ;;  %v222_v4 = vld [vmem:[%s355_s1 + $0x18] sm:$0xff]  ;;  %v221_v5 = vld [vmem:[%s355_s1 + $0x10] sm:$0xff] }
   0x3   :  { %228 = vmatpush.bf16.msra.mxu2 %v226_v0  ;;  %229 = vmatpush.bf16.msra.mxu3 %v226_v0  ;;  %v220_v6 = vld [vmem:[%s355_s1 + $0x8] sm:$0xff]  ;;  %v219_v7 = vld [vmem:[%s355_s1] sm:$0xff]  ;;  %v217_v10 = vld [vmem:[%s356_s0 + $0x10] sm:$0xff] }
   0x4   :  { %v215_v8 = vld [vmem:[%s356_s0] sm:$0xff]  ;;  %v216_v9 = vld [vmem:[%s356_s0 + $0x8] sm:$0xff]  ;;  %v218_v11 = vld [vmem:[%s356_s0 + $0x18] sm:$0xff] }
   0x5   :  { %v139_v12 = vld [vmem:[%s357_s2] sm:$0xff]  ;;  %v141_v13 = vld [vmem:[%s357_s2 + $0x10] sm:$0xff]  ;;  %v140_v20 = vld [vmem:[%s357_s2 + $0x8] sm:$0xff] }
   0x6   :  { %111 = vmatpush.bf16.msra.mxu0 %v225_v1  ;;  %230 = vmatpush.bf16.msra.mxu1 %v225_v1  ;;  %v143_v18 = vld [vmem:[%s357_s2 + $0x20] sm:$0xff]  ;;  %v145_v19 = vld [vmem:[%s357_s2 + $0x30] sm:$0xff]  ;;  %v142_v21 = vld [vmem:[%s357_s2 + $0x18] sm:$0xff] }
   0x7   :  { %231 = vmatpush.bf16.msra.mxu2 %v225_v1  ;;  %232 = vmatpush.bf16.msra.mxu3 %v225_v1  ;;  %v144_v30 = vld [vmem:[%s357_s2 + $0x28] sm:$0xff]  ;;  %v146_v31 = vld [vmem:[%s357_s2 + $0x38] sm:$0xff] }
   0xa   :  { %112 = vmatpush.bf16.msra.mxu0 %v224_v2  ;;  %233 = vmatpush.bf16.msra.mxu1 %v224_v2 }
   0xb   :  { %234 = vmatpush.bf16.msra.mxu2 %v224_v2  ;;  %235 = vmatpush.bf16.msra.mxu3 %v224_v2 }
   0xe   :  { %113 = vmatpush.bf16.msra.mxu0 %v223_v3  ;;  %236 = vmatpush.bf16.msra.mxu1 %v223_v3 }
   0xf   :  { %237 = vmatpush.bf16.msra.mxu2 %v223_v3  ;;  %238 = vmatpush.bf16.msra.mxu3 %v223_v3 }
  0x12   :  { %114 = vmatpush.bf16.msra.mxu0 %v222_v4  ;;  %239 = vmatpush.bf16.msra.mxu1 %v222_v4 }
  0x13   :  { %240 = vmatpush.bf16.msra.mxu2 %v222_v4  ;;  %241 = vmatpush.bf16.msra.mxu3 %v222_v4 }
  0x16   :  { %115 = vmatpush.bf16.msra.mxu0 %v221_v5  ;;  %242 = vmatpush.bf16.msra.mxu1 %v221_v5 }
  0x17   :  { %243 = vmatpush.bf16.msra.mxu2 %v221_v5  ;;  %244 = vmatpush.bf16.msra.mxu3 %v221_v5 }
  0x1a   :  { %116 = vmatpush.bf16.msra.mxu0 %v220_v6  ;;  %245 = vmatpush.bf16.msra.mxu1 %v220_v6 }
  0x1b   :  { %246 = vmatpush.bf16.msra.mxu2 %v220_v6  ;;  %247 = vmatpush.bf16.msra.mxu3 %v220_v6 }
  0x1e   :  { %117 = vmatpush.bf16.msra.mxu0 %v219_v7  ;;  %248 = vmatpush.bf16.msra.mxu1 %v219_v7 }
  0x1f   :  { %249 = vmatpush.bf16.msra.mxu2 %v219_v7  ;;  %250 = vmatpush.bf16.msra.mxu3 %v219_v7 }
  0x21   :  { %118 = vmatmul.bf16.vlgmr.msra.gmra.mxu0 %v215_v8  ;;  %123 = vmatmul.bf16.vlgmr.msra.gmra.mxu1 %v216_v9 }
  0x22   :  { %128 = vmatmul.bf16.vlgmr.msra.gmra.mxu2 %v217_v10  ;;  %133 = vmatmul.bf16.vlgmr.msra.gmra.mxu3 %v218_v11 }
  0x9e   :  { %v119_v14 = vpop.f32.mrf.mxu0  ;;  %v124_v15 = vpop.f32.mrf.mxu1 }
  0x9f   :  { %v147_v16 = vadd.f32 %v139_v12, %v119_v14  ;;  %v149_v17 = vadd.f32 %v141_v13, %v124_v15 }
  0xa1   :  { %155 = vst [vmem:[%s358_s3] sm:$0xff] %v147_v16 }
  0xa2   :  { %157 = vst [vmem:[%s358_s3 + $0x10] sm:$0xff] %v149_v17 }
  0xa5   :  { %v129_v22 = vpop.f32.mrf.mxu2  ;;  %v134_v23 = vpop.f32.mrf.mxu3 }
  0xa6   :  { %v151_v24 = vadd.f32 %v143_v18, %v129_v22  ;;  %v153_v25 = vadd.f32 %v145_v19, %v134_v23  ;;  %v121_v26 = vpop.f32.mrf.mxu0  ;;  %v126_v27 = vpop.f32.mrf.mxu1 }
  0xa7   :  { %v148_v28 = vadd.f32 %v140_v20, %v121_v26  ;;  %v150_v29 = vadd.f32 %v142_v21, %v126_v27 }
  0xa8   :  { %159 = vst [vmem:[%s358_s3 + $0x20] sm:$0xff] %v151_v24 }
  0xa9   :  { %161 = vst [vmem:[%s358_s3 + $0x30] sm:$0xff] %v153_v25 }
  0xaa   :  { %156 = vst [vmem:[%s358_s3 + $0x8] sm:$0xff] %v148_v28 }
  0xab   :  { %158 = vst [vmem:[%s358_s3 + $0x18] sm:$0xff] %v150_v29 }
  0xad   :  { %v131_v32 = vpop.f32.mrf.mxu2  ;;  %v136_v33 = vpop.f32.mrf.mxu3 }
  0xae   :  { %v152_v34 = vadd.f32 %v144_v30, %v131_v32  ;;  %v154_v35 = vadd.f32 %v146_v31, %v136_v33 }
  0xb0   :  { %160 = vst [vmem:[%s358_s3 + $0x28] sm:$0xff] %v152_v34 }
  0xb1   :  { %162 = vst [vmem:[%s358_s3 + $0x38] sm:$0xff] %v154_v35 }

// kernel: dit_uncond_forward.16
= control target key start
LH: loop header
LB: loop body
LE: loop exit
PB: predicated region body
PF: predicated region fallthrough
CT: control target
= control target key end

     0   :  { %s3570_s0 = inlined_call_operand.vmem [shape: f32[64,128], index: 0, kind: input, shape index: {}]   ;;  %s3571_s1 = inlined_call_operand.vmem [shape: f32[1,128], index: 1, kind: input, shape index: {}]   ;;  %s3572_s2 = inlined_call_operand.vmem [shape: f32[1,128], index: 2, kind: input, shape index: {}]   ;;  %s3573_s3 = inlined_call_operand.vmem [shape: bf16[128,512], index: 3, kind: input, shape index: {}]   ;;  %s3574_s4 = inlined_call_operand.vmem [shape: f32[1,512], index: 4, kind: input, shape index: {}]   ;;  %s3575_s5 = inlined_call_operand.hbm [shape: bf16[128,512], index: 5, kind: input, shape index: {}]   ;;  %s3576_s6 = inlined_call_operand.vmem [shape: f32[1,512], index: 6, kind: input, shape index: {}]   ;;  %s3577_s7 = inlined_call_operand.hbm [shape: bf16[512,128], index: 7, kind: input, shape index: {}]   ;;  %s3578_s8 = inlined_call_operand.hbm [shape: f32[1,128], index: 8, kind: input, shape index: {}]   ;;  %s3579_s9 = inlined_call_operand.vmem [shape: f32[64,128], index: 9, kind: output, shape index: {}]  }
   0x1   :  { %3586 = sst [smem:[#allocation16_spill]] %s3570_s0 }
   0x2   :  { %3587 = sst [smem:[#allocation17_spill]] %s3571_s1 }
   0x3   :  { %3588 = sst [smem:[#allocation18_spill]] %s3572_s2 }
   0x4   :  { %3589 = sst [smem:[#allocation19_spill]] %s3573_s3 }
   0x5   :  { %3590 = sst [smem:[#allocation20_spill]] %s3578_s8 }
   0x6   :  { %3591 = sst [smem:[#allocation21_spill]] %s3579_s9 }
   0x7   :  { %14 = vsyncpa [#allocation6], 0 }
   0x8   :  { %16 = vsyncpa [#allocation6 + $0x1], 0 }
   0x9   :  { %17 = vsyncpa [#allocation8], 0 }
   0xa   :  { %19 = vsyncpa [#allocation8 + $0x1], 0  ;;  %s2644_s30 = smov 0   ;;  %s2646_s10 = smov 0  }
   0xb   :  { %s2648_s11 = smov 0   ;;  %s2650_s12 = smov 0  }
   0xc   :  { %s2652_s13 = smov 0   ;;  %s2654_s14 = smov 0  }
   0xd LB: > { %3592 = sst [smem:[#allocation13_spill]] %s2572_s11  ;;  %s3580_s15 = sadd.s32 4294967295, %s2584_s14   ;;  %s2584_s14 = sphi %s2654_s14, %s25_s14   ;;  %s2580_s13 = sphi %s2652_s13, %s3652_s13   ;;  %s2576_s12 = sphi %s2650_s12, %s3651_s12   ;;  %s2572_s11 = sphi %s2648_s11, %s3647_s11   ;;  %s2568_s10 = sphi %s2646_s10, %s3650_s10   ;;  %s2564_s30 = sphi %s2644_s30, %s3649_s30  }
   0xe   : > { %s34_s16 = sadd.s32 1, %s2580_s13  ;;  %s112_s17 = sadd.s32 1, %s2572_s11 }
   0xf   : > { %p35_p0 = scmp.ge.s32.totalorder %s34_s16, 2  ;;  %p119_p1 = scmp.ne.s32.totalorder %s2572_s11, %s2568_s10 }
  0x10   : > { %p120_p2 = scmp.eq.s32.totalorder %s2584_s14, 0  ;;  %p177_p4 = scmp.ne.s32.totalorder %s2568_s10, %s2564_s30 }
  0x11   : > { %s3654_s16 = smov (%p35_p0, %s34_s16), 0  ;;  %p2689_p5 = scmp.eq.s32.totalorder %s3580_s15, 0 }
  0x12   : > { %3593 = sst [smem:[#allocation14_spill]] %s3654_s16  ;;  %p2680_p3 = por %p120_p2, %p119_p1 }
  0x13   : > { %s109_s19 = ssub.s32 %s2580_s13, %s3654_s16  ;;  %p1941_p7 = scmp.ge.s32.totalorder %s2584_s14, 1 }
  0x14   : > { %p110_p6 = scmp.eq.s32.totalorder %s109_s19, 0  ;;  %p2696_p8 = por %p2689_p5, %p177_p4 }
  0x15   : > { %p287_p9 = scmp.lt.s32.totalorder %s2584_s14, 3  ;;  %s3599_s8 = sld [smem:[#allocation20_spill]] }
  0x16   : > { %s2702_s22 = scalar_select %p110_p6, %s2572_s11, %s112_s17  }
  0x17   : > { %p2704_p10 = pnand %p1941_p7, %p287_p9  ;;  %s2586_s27 = smov [#allocation9]  }
  0x18   : > { %3597 = sst [smem:[#allocation15_spill]] %s2702_s22  ;;  %s316_s28 = sshll.u32 %s2586_s27, 4  ;;  %s317_s28 = int_to_ptr.vmem [resolvable:$true] %s316_s28 }
  0x19   : > { %p2293_p11 = pneg %p2704_p10  ;;  %p1944_p13 = scmp.ge.s32.totalorder %s2584_s14, 2 }
  0x1b   : > { %s314_s26 = sshll.u32 %s3599_s8, 4  ;;  %p2294_p12 = pnand %p2293_p11, %p2689_p5  ;;  %s315_s26 = int_to_ptr.hbm [resolvable:$true] %s314_s26 }
  0x1c   : > { %323 = sbr.rel (%p1944_p13) target bundleno = 71 (0x47), region = 32 }
  0x1d   : > { %2296 = dma.hbm_to_vmem [thread:$0]  (!%p2294_p12), %s315_s26, 16, %s317_s28, [#allocation8]  }
  0x21   : > { %326 = sbr.rel (!%p2680_p3) target bundleno = 59 (0x3b), region = 36  ;;  %s328_s29 = sand.u32 (%p2680_p3), 1, %s2572_s11  }
  0x22   : > { %s2191_s30 = sshll.u32 (%p2680_p3), %s2580_s13, 3  ;;  %s1945_s17 = sshll.u32 (%p2680_p3), %s328_s29, 7 }
  0x23   : > { %s3600_s3 = sld [smem:[#allocation19_spill]] (%p2680_p3)  ;;  %s330_s26 = scalar_lea.vmem (%p2680_p3), [#allocation4], %s1945_s17 }
  0x29   : > { %s2723_s25 = scalar_lea.vmem %s3600_s3, %s2191_s30 }
  0x2a   : > { %v392_v0 = vld [vmem:[%s2723_s25] sm:$0xff]  ;;  %v394_v1 = vld [vmem:[%s2723_s25 + $0x10] sm:$0xff] }
  0x2b   : > { %v396_v2 = vld [vmem:[%s2723_s25 + $0x20] sm:$0xff]  ;;  %393 = vst [vmem:[%s330_s26] sm:$0xff] %v392_v0  ;;  %v398_v3 = vld [vmem:[%s2723_s25 + $0x30] sm:$0xff] }
  0x2c   : > { %395 = vst [vmem:[%s330_s26 + $0x8] sm:$0xff] %v394_v1  ;;  %v400_v4 = vld [vmem:[%s2723_s25 + $0x40] sm:$0xff]  ;;  %v402_v5 = vld [vmem:[%s2723_s25 + $0x50] sm:$0xff] }
  0x2d   : > { %397 = vst [vmem:[%s330_s26 + $0x10] sm:$0xff] %v396_v2  ;;  %v404_v6 = vld [vmem:[%s2723_s25 + $0x60] sm:$0xff]  ;;  %v406_v7 = vld [vmem:[%s2723_s25 + $0x70] sm:$0xff] }
  0x2e   : > { %399 = vst [vmem:[%s330_s26 + $0x18] sm:$0xff] %v398_v3  ;;  %v408_v8 = vld [vmem:[%s2723_s25 + $0x80] sm:$0xff]  ;;  %v410_v9 = vld [vmem:[%s2723_s25 + $0x90] sm:$0xff] }
  0x2f   : > { %401 = vst [vmem:[%s330_s26 + $0x20] sm:$0xff] %v400_v4  ;;  %v412_v10 = vld [vmem:[%s2723_s25 + $0xa0] sm:$0xff]  ;;  %v414_v11 = vld [vmem:[%s2723_s25 + $0xb0] sm:$0xff] }
  0x30   : > { %403 = vst [vmem:[%s330_s26 + $0x28] sm:$0xff] %v402_v5  ;;  %v416_v12 = vld [vmem:[%s2723_s25 + $0xc0] sm:$0xff]  ;;  %v418_v13 = vld [vmem:[%s2723_s25 + $0xd0] sm:$0xff] }
  0x31   : > { %405 = vst [vmem:[%s330_s26 + $0x30] sm:$0xff] %v404_v6  ;;  %v420_v14 = vld [vmem:[%s2723_s25 + $0xe0] sm:$0xff]  ;;  %v422_v15 = vld [vmem:[%s2723_s25 + $0xf0] sm:$0xff] }
  0x32   : > { %407 = vst [vmem:[%s330_s26 + $0x38] sm:$0xff] %v406_v7 }
  0x33   : > { %409 = vst [vmem:[%s330_s26 + $0x40] sm:$0xff] %v408_v8 }
  0x34   : > { %411 = vst [vmem:[%s330_s26 + $0x48] sm:$0xff] %v410_v9 }
  0x35   : > { %413 = vst [vmem:[%s330_s26 + $0x50] sm:$0xff] %v412_v10 }
  0x36   : > { %415 = vst [vmem:[%s330_s26 + $0x58] sm:$0xff] %v414_v11 }
  0x37   : > { %417 = vst [vmem:[%s330_s26 + $0x60] sm:$0xff] %v416_v12 }
  0x38   : > { %419 = vst [vmem:[%s330_s26 + $0x68] sm:$0xff] %v418_v13 }
  0x39   : > { %421 = vst [vmem:[%s330_s26 + $0x70] sm:$0xff] %v420_v14 }
  0x3a   : > { %423 = vst [vmem:[%s330_s26 + $0x78] sm:$0xff] %v422_v15 }
  0x3b PF: > { %s438_s27 = sand.u32 1, %s2572_s11   ;;  %s2192_s28 = sshll.u32 %s2580_s13, 3 }
  0x3c   : > { %s1948_s29 = sshll.u32 %s438_s27, 7  ;;  %s447_s19 = scalar_lea.hbm %s3575_s5, %s2192_s28 }
  0x3d   : > { %s448_s24 = sshll.u32 %s447_s19, 4  ;;  %s442_s15 = scalar_lea.vmem [#allocation5], %s1948_s29  ;;  %s449_s24 = int_to_ptr.hbm [resolvable:$true] %s448_s24 }
  0x3e   : > { %s450_s3 = sshll.u32 %s442_s15, 4  ;;  %s468_s25 = sand.u32 1, %s2584_s14   ;;  %s451_s3 = int_to_ptr.vmem [resolvable:$true] %s450_s3 }
  0x3f   : > { %s439_s26 = scalar_lea.sflag [#allocation6], %s438_s27  ;;  %s2587_s8 = smov 256  }
  0x40   : > { %s2588_s16 = smov 128   ;;  %s2589_s22 = smov 8  }
  0x41   : > { %2287 = dma.hbm_to_vmem [thread:$0]  (%p2680_p3), %s449_s24, 2048, %s451_s3, %s439_s26, %s2587_s8, %s2588_s16, %s2589_s22  }
  0x42   : > { %s2193_s11 = sshll.u32 %s2580_s13, 7  ;;  %s472_s9 = scalar_lea.vmem [#allocation7], %s1948_s29 }
  0x43   : > { %s480_s2 = sshll.u32 %s472_s9, 4  ;;  %s477_s28 = scalar_lea.hbm %s3577_s7, %s2193_s11  ;;  %s481_s2 = int_to_ptr.vmem [resolvable:$true] %s480_s2 }
  0x44   : > { %s478_s30 = sshll.u32 %s477_s28, 4  ;;  %s469_s15 = scalar_lea.sflag [#allocation8], %s468_s25  ;;  %s479_s30 = int_to_ptr.hbm [resolvable:$true] %s478_s30 }
  0x45   : > { %s2590_s17 = smov 64   ;;  %s2591_s19 = smov 4  }
  0x46   : > { %2288 = dma.hbm_to_vmem [thread:$0]  (%p2680_p3), %s479_s30, 2048, %s481_s2, %s469_s15, %s2590_s17, %s2590_s17, %s2591_s19  }
  0x47 PF: > { %492 = sbr.rel (%p2704_p10) target bundleno = 835 (0x343), region = 90  ;;  %s495_s3 = sand.u32 (!%p2704_p10), 1, %s2568_s10  }
  0x48   : > { %s1955_s8 = sshll.u32 (!%p2704_p10), %s495_s3, 7  ;;  %s502_s0 = scalar_lea.sflag (!%p2704_p10), [#allocation6], %s495_s3 }
  0x49   : > { %s2758_s9 = scalar_lea.vmem (!%p2704_p10), [#allocation4], %s1955_s8  ;;  %s2760_s1 = scalar_lea.vmem (!%p2704_p10), [#allocation5], %s1955_s8 }
  0x4c   : > { %2551 = dma.done.wait (%p2696_p8), %s502_s0, 2048  }
  0x4d   : > { %2553 = vsyncadd (%p2696_p8), %s502_s0, 4294965248  ;;  %s3601_s2 = sadd.s32 4294967295, %s2584_s14   ;;  %s2768_s18 = scalar_lea.vmem [#allocation7], %s1955_s8 }
  0x4e   : > { %s511_s11 = sand.u32 1, %s3601_s2  }
  0x4f   : > { %s512_s16 = scalar_lea.sflag [#allocation8], %s511_s11 }
  0x50   : > { %2555 = dma.done.wait (%p2696_p8), %s512_s16, 2048  }
  0x51   : > { %2557 = vsyncadd (%p2696_p8), %s512_s16, 4294965248 }
  0x52   : > { %2559 = dma.done.wait (%p2689_p5), [#allocation8], 16  }
  0x53   : > { %2561 = vsyncadd (%p2689_p5), [#allocation8], 4294967280  ;;  %s1959_s22 = sshll.u32 %s2576_s12, 1  ;;  %p1961_p1 = scmp.ne.s32.totalorder %s2576_s12, 0 }
  0x54   : > { %p586_p0 = scmp.lt.s32.totalorder %s1959_s22, 3  ;;  %s3602_s28 = sld [smem:[#allocation16_spill]] (!%p1961_p1) }
  0x55   : > { %606 = sbr.rel (%p1961_p1) target bundleno = 385 (0x181), region = 110  ;;  %s3608_s17 = sld [smem:[#allocation18_spill]] (!%p1961_p1) }
  0x56   : > { %s3656_s22 = smov (!%p586_p0, %s1959_s22), 3 }
  0x57   : > { %s588_s29 = scalar_lea.vmem %s3574_s4, %s3656_s22  ;;  %s594_s25 = scalar_lea.vmem %s3576_s6, %s3656_s22 }
  0x5a   : > { %v611_v16 = vld [vmem:[%s3602_s28 + $0x20] sm:$0xff]  ;;  %v609_v17 = vld [vmem:[%s3602_s28 + $0x10] sm:$0xff]  ;;  %v612_v19 = vld [vmem:[%s3602_s28 + $0x28] sm:$0xff]  ;;  %v2592_v24 = vmov 128.0  }
  0x5b   : > { %v607_v18 = vld [vmem:[%s3602_s28] sm:$0xff]  ;;  %623 = vadd.xlane.f32.xlu2 %v611_v16  ;;  %619 = vadd.xlane.f32.xlu1 %v609_v17  ;;  %v610_v20 = vld [vmem:[%s3602_s28 + $0x18] sm:$0xff]  ;;  %v608_v21 = vld [vmem:[%s3602_s28 + $0x8] sm:$0xff]  ;;  %2357 = vrcp.f32 %v2592_v24 }
  0x5c   : > { %615 = vadd.xlane.f32.xlu0 %v607_v18  ;;  %v614_v22 = vld [vmem:[%s3602_s28 + $0x38] sm:$0xff]  ;;  %v613_v23 = vld [vmem:[%s3602_s28 + $0x30] sm:$0xff]  ;;  %s3607_s28 = sld [smem:[#allocation17_spill]] }
  0x61   : > { %v2358_v25 = vpop.eup %2357 }
  0x62   : > { %v632_v26 = vmul.f32 128.0, %v2358_v25  ;;  %vm636_vm0 = vweird.f32 %v2358_v25 }
  0x63   : > { %625 = vadd.xlane.f32.xlu2 %v612_v19  ;;  %621 = vadd.xlane.f32.xlu1 %v610_v20 }
  0x64   : > { %617 = vadd.xlane.f32.xlu0 %v608_v21  ;;  %v633_v27 = vsub.f32 1.0, %v632_v26 }
  0x66   : > { %v634_v28 = vmul.f32 %v2358_v25, %v633_v27 }
  0x68   : > { %v635_v29 = vadd.f32 %v2358_v25, %v634_v28 }
  0x6a   : > { %v2814_v30 = vsel %vm636_vm0, %v2358_v25, %v635_v29 }
  0x6b   : > { %629 = vadd.xlane.f32.xlu1 %v614_v22 }
  0x6c   : > { %627 = vadd.xlane.f32.xlu0 %v613_v23 }
  0xce   : > { %v624_v31 = vpop.xlane.xlu2 %623  ;;  %v620_v32 = vpop.xlane.xlu1 %619 }
  0xcf   : > { %v640_v33 = vmul.f32 %v2814_v30, %v620_v32  ;;  %v616_v34 = vpop.xlane.xlu0 %615  ;;  %v642_v48 = vmul.f32 %v2814_v30, %v624_v31 }
  0xd0   : > { %v638_v35 = vmul.f32 %v2814_v30, %v616_v34 }
  0xd1   : > { %v2818_v36 = vsub.f32 %v609_v17, %v640_v33  ;;  %v2842_v53 = vsub.f32 %v611_v16, %v642_v48 }
  0xd2   : > { %v2820_v37 = vsub.f32 %v607_v18, %v638_v35 }
  0xd3   : > { %v656_v38 = vmul.f32 %v2818_v36, %v2818_v36  ;;  %v658_v58 = vmul.f32 %v2842_v53, %v2842_v53 }
  0xd4   : > { %v654_v39 = vmul.f32 %v2820_v37, %v2820_v37 }
  0xd5   : > { %666 = vadd.xlane.f32.xlu1 %v656_v38 }
  0xd6   : > { %662 = vadd.xlane.f32.xlu2 %v654_v39  ;;  %v626_v40 = vpop.xlane.xlu2 %625  ;;  %v622_v41 = vpop.xlane.xlu1 %621 }
  0xd7   : > { %v643_v42 = vmul.f32 %v2814_v30, %v626_v40  ;;  %v641_v43 = vmul.f32 %v2814_v30, %v622_v41  ;;  %v618_v44 = vpop.xlane.xlu0 %617 }
  0xd8   : > { %v639_v45 = vmul.f32 %v2814_v30, %v618_v44 }
  0xd9   : > { %v2829_v46 = vsub.f32 %v612_v19, %v643_v42  ;;  %v2831_v47 = vsub.f32 %v610_v20, %v641_v43 }
  0xda   : > { %v2834_v49 = vsub.f32 %v608_v21, %v639_v45 }
  0xdb   : > { %v659_v50 = vmul.f32 %v2829_v46, %v2829_v46  ;;  %v657_v51 = vmul.f32 %v2831_v47, %v2831_v47 }
  0xdc   : > { %v655_v52 = vmul.f32 %v2834_v49, %v2834_v49 }
  0xdd   : > { %672 = vadd.xlane.f32.xlu1 %v659_v50 }
  0xde   : > { %668 = vadd.xlane.f32.xlu2 %v657_v51  ;;  %664 = vadd.xlane.f32.xlu0 %v655_v52  ;;  %v630_v55 = vpop.xlane.xlu1 %629 }
  0xdf   : > { %v628_v54 = vpop.xlane.xlu0 %627  ;;  %v645_v59 = vmul.f32 %v2814_v30, %v630_v55 }
  0xe0   : > { %v644_v56 = vmul.f32 %v2814_v30, %v628_v54 }
  0xe1   : > { %v2852_v61 = vsub.f32 %v614_v22, %v645_v59 }
  0xe2   : > { %v2845_v57 = vsub.f32 %v613_v23, %v644_v56 }
  0xe3   : > { %v661_v62 = vmul.f32 %v2852_v61, %v2852_v61 }
  0xe4   : > { %v660_v60 = vmul.f32 %v2845_v57, %v2845_v57 }
  0xe6   : > { %670 = vadd.xlane.f32.xlu0 %v658_v58  ;;  %674 = vadd.xlane.f32.xlu2 %v660_v60  ;;  %v2897_v58 = vld [vmem:[%s3607_s28] ss:$0 sm:$0xff] }
  0xee   : > { %676 = vadd.xlane.f32.xlu0 %v661_v62 }
 0x148   : > { %v667_v63 = vpop.xlane.xlu1 %666 }
 0x149   : > { %v680_v0 = vmul.f32 %v667_v63, %v2814_v30  ;;  %v663_v1 = vpop.xlane.xlu2 %662 }
 0x14a   : > { %v678_v2 = vmul.f32 %v663_v1, %v2814_v30  ;;  %v2593_v1 = vmov 0.0  }
 0x14b   : > { %v688_v3 = vadd.f32 1e-05, %v680_v0  ;;  %822 = vst [vmem:[#allocation2 + $0x30] sm:$0xff] %v2593_v1 }
 0x14c   : > { %v686_v4 = vadd.f32 1e-05, %v678_v2  ;;  %823 = vst [vmem:[#allocation2] sm:$0xff] %v2593_v1 }
 0x14d   : > { %2359 = vrsqrt.f32 %v688_v3  ;;  %vm720_vm1 = vweird.f32 %v688_v3  ;;  %824 = vst [vmem:[#allocation2 + $0x18] sm:$0xff] %v2593_v1 }
 0x14e   : > { %2361 = vrsqrt.f32 %v686_v4  ;;  %vm700_vm5 = vweird.f32 %v686_v4  ;;  %825 = vst [vmem:[#allocation2 + $0x10] sm:$0xff] %v2593_v1 }
 0x14f   : > { %826 = vst [vmem:[#allocation2 + $0x8] sm:$0xff] %v2593_v1 }
 0x150   : > { %v673_v5 = vpop.xlane.xlu1 %672  ;;  %827 = vst [vmem:[#allocation2 + $0x20] sm:$0xff] %v2593_v1 }
 0x151   : > { %v683_v6 = vmul.f32 %v673_v5, %v2814_v30  ;;  %v669_v7 = vpop.xlane.xlu2 %668  ;;  %v665_v8 = vpop.xlane.xlu0 %664  ;;  %828 = vst [vmem:[#allocation2 + $0x28] sm:$0xff] %v2593_v1 }
 0x152   : > { %v681_v9 = vmul.f32 %v669_v7, %v2814_v30  ;;  %v679_v10 = vmul.f32 %v665_v8, %v2814_v30  ;;  %829 = vst [vmem:[#allocation2 + $0x38] sm:$0xff] %v2593_v1 }
 0x153   : > { %v2360_v11 = vpop.eup %2359  ;;  %v2861_v12 = vadd.f32 1e-05, %v683_v6 }
 0x154   : > { %v2362_v13 = vpop.eup %2361  ;;  %v715_v14 = vmul.f32 %v2360_v11, %v688_v3  ;;  %v689_v15 = vadd.f32 1e-05, %v681_v9  ;;  %v2863_v16 = vadd.f32 1e-05, %v679_v10  ;;  %vm721_vm2 = vweird.f32 %v2360_v11 }
 0x155   : > { %v695_v17 = vmul.f32 %v2362_v13, %v686_v4  ;;  %2363 = vrsqrt.f32 %v2861_v12  ;;  %vm701_vm3 = vweird.f32 %v2362_v13  ;;  %vm2879_vm4 = vmor %vm720_vm1, %vm721_vm2  ;;  %vm750_vm10 = vweird.f32 %v2861_v12 }
 0x156   : > { %v716_v18 = vmul.f32 %v2360_v11, %v715_v14  ;;  %2365 = vrsqrt.f32 %v689_v15  ;;  %vm2886_vm6 = vmor %vm700_vm5, %vm701_vm3  ;;  %vm730_vm7 = vweird.f32 %v689_v15  ;;  %vm710_vm13 = vweird.f32 %v2863_v16 }
 0x157   : > { %v696_v19 = vmul.f32 %v2362_v13, %v695_v17  ;;  %2367 = vrsqrt.f32 %v2863_v16 }
 0x158   : > { %v717_v20 = vmul.f32 0.5, %v716_v18 }
 0x159   : > { %v697_v21 = vmul.f32 0.5, %v696_v19  ;;  %v675_v22 = vpop.xlane.xlu2 %674  ;;  %v671_v23 = vpop.xlane.xlu0 %670 }
 0x15a   : > { %v718_v24 = vsub.f32 1.5, %v717_v20  ;;  %v684_v25 = vmul.f32 %v675_v22, %v2814_v30  ;;  %v682_v26 = vmul.f32 %v671_v23, %v2814_v30 }
 0x15b   : > { %v2869_v27 = vpop.eup %2363  ;;  %v698_v28 = vsub.f32 1.5, %v697_v21 }
 0x15c   : > { %v2366_v29 = vpop.eup %2365  ;;  %v719_v31 = vmul.f32 %v2360_v11, %v718_v24  ;;  %v745_v32 = vmul.f32 %v2869_v27, %v2861_v12  ;;  %v2873_v33 = vadd.f32 1e-05, %v684_v25  ;;  %v2875_v38 = vadd.f32 1e-05, %v682_v26 }
 0x15d   : > { %v2368_v34 = vpop.eup %2367  ;;  %v725_v35 = vmul.f32 %v2366_v29, %v689_v15  ;;  %v699_v39 = vmul.f32 %v2362_v13, %v698_v28  ;;  %vm731_vm8 = vweird.f32 %v2366_v29  ;;  %vm751_vm11 = vweird.f32 %v2869_v27 }
 0x15e   : > { %v746_v40 = vmul.f32 %v2869_v27, %v745_v32  ;;  %v705_v41 = vmul.f32 %v2368_v34, %v2863_v16  ;;  %2369 = vrsqrt.f32 %v2873_v33  ;;  %v723_v44 = vsel %vm2879_vm4, %v2360_v11, %v719_v31  ;;  %vm732_vm12 = vmor %vm730_vm7, %vm731_vm8 }
 0x15f   : > { %v726_v43 = vmul.f32 %v2366_v29, %v725_v35  ;;  %2371 = vrsqrt.f32 %v2875_v38  ;;  %v703_v54 = vsel %vm2886_vm6, %v2362_v13, %v699_v39  ;;  %v776_v59 = vmul.f32 %v723_v44, %v2818_v36  ;;  %vm2929_vm15 = vmor %vm750_vm10, %vm751_vm11 }
 0x160   : > { %v747_v45 = vmul.f32 0.5, %v746_v40  ;;  %v706_v48 = vmul.f32 %v2368_v34, %v705_v41  ;;  %vm711_vm9 = vweird.f32 %v2368_v34  ;;  %v774_v3 = vmul.f32 %v703_v54, %v2820_v37  ;;  %v2915_v37 = vld [vmem:[%s3608_s17] ss:$0 sm:$0xff] }
 0x161   : > { %v727_v51 = vmul.f32 0.5, %v726_v43  ;;  %v677_v52 = vpop.xlane.xlu0 %676  ;;  %v788_v6 = vmul.f32 %v2897_v58, %v776_v59  ;;  %vm712_vm14 = vmor %vm710_vm13, %vm711_vm9  ;;  %vm760_vm0 = vweird.f32 %v2873_v33  ;;  %vm740_vm4 = vweird.f32 %v2875_v38 }
 0x162   : > { %v707_v55 = vmul.f32 0.5, %v706_v48  ;;  %v685_v56 = vmul.f32 %v677_v52, %v2814_v30  ;;  %v748_v60 = vsub.f32 1.5, %v747_v45  ;;  %v786_v14 = vmul.f32 %v2897_v58, %v774_v3 }
 0x163   : > { %v728_v62 = vsub.f32 1.5, %v727_v51  ;;  %v800_v19 = vadd.f32 %v2915_v37, %v788_v6 }
 0x164   : > { %v708_v63 = vsub.f32 1.5, %v707_v55  ;;  %v2900_v0 = vadd.f32 1e-05, %v685_v56  ;;  %v2902_v2 = vpop.eup %2369  ;;  %v749_v7 = vmul.f32 %v2869_v27, %v748_v60  ;;  %v798_v24 = vadd.f32 %v2915_v37, %v786_v14 }
 0x165   : > { %v729_v30 = vmul.f32 %v2366_v29, %v728_v62  ;;  %v755_v4 = vmul.f32 %v2902_v2, %v2873_v33  ;;  %v2372_v5 = vpop.eup %2371  ;;  %vm761_vm1 = vweird.f32 %v2902_v2 }
 0x166   : > { %v709_v36 = vmul.f32 %v2368_v34, %v708_v63  ;;  %2373 = vrsqrt.f32 %v2900_v0  ;;  %v735_v13 = vmul.f32 %v2372_v5, %v2875_v38  ;;  %v753_v12 = vsel %vm2929_vm15, %v2869_v27, %v749_v7  ;;  %vm762_vm3 = vmor %vm760_vm0, %vm761_vm1 }
 0x167   : > { %v733_v8 = vsel %vm732_vm12, %v2366_v29, %v729_v30  ;;  %v756_v11 = vmul.f32 %v2902_v2, %v755_v4  ;;  %vm741_vm2 = vweird.f32 %v2372_v5  ;;  %v779_v27 = vmul.f32 %v753_v12, %v2829_v46 }
 0x168   : > { %v777_v9 = vmul.f32 %v733_v8, %v2831_v47  ;;  %v713_v10 = vsel %vm712_vm14, %v2368_v34, %v709_v36  ;;  %v736_v18 = vmul.f32 %v2372_v5, %v735_v13  ;;  %vm742_vm5 = vmor %vm740_vm4, %vm741_vm2  ;;  %vm770_vm7 = vweird.f32 %v2900_v0 }
 0x169   : > { %v775_v16 = vmul.f32 %v713_v10, %v2834_v49  ;;  %v757_v17 = vmul.f32 0.5, %v756_v11  ;;  %v791_v42 = vmul.f32 %v2897_v58, %v779_v27 }
 0x16a   : > { %v789_v47 = vmul.f32 %v2897_v58, %v777_v9  ;;  %v737_v22 = vmul.f32 0.5, %v736_v18 }
 0x16b   : > { %v787_v20 = vmul.f32 %v2897_v58, %v775_v16  ;;  %v758_v49 = vsub.f32 1.5, %v757_v17  ;;  %v803_v38 = vadd.f32 %v2915_v37, %v791_v42 }
 0x16c   : > { %v801_v21 = vadd.f32 %v2915_v37, %v789_v47  ;;  %v2374_v23 = vpop.eup %2373  ;;  %v738_v29 = vsub.f32 1.5, %v737_v22 }
 0x16d   : > { %v799_v25 = vadd.f32 %v2915_v37, %v787_v20  ;;  %v759_v28 = vmul.f32 %v2902_v2, %v758_v49  ;;  %v765_v31 = vmul.f32 %v2374_v23, %v2900_v0  ;;  %vm771_vm6 = vweird.f32 %v2374_v23 }
 0x16e   : > { %v2254_v26 = vpack.c.bf16 %v801_v21, %v800_v19  ;;  %v739_v34 = vmul.f32 %v2372_v5, %v738_v29  ;;  %vm772_vm8 = vmor %vm770_vm7, %vm771_vm6 }
 0x16f   : > { %v2249_v32 = vpack.c.bf16 %v799_v25, %v798_v24  ;;  %v766_v35 = vmul.f32 %v2374_v23, %v765_v31  ;;  %v763_v39 = vsel %vm762_vm3, %v2902_v2, %v759_v28 }
 0x170   : > { %2266 = vst [vmem:[#allocation3 + $0x18] sm:$0xff] %v2254_v26   ;;  %v743_v40 = vsel %vm742_vm5, %v2372_v5, %v739_v34  ;;  %v780_v44 = vmul.f32 %v763_v39, %v2845_v57 }
 0x171   : > { %2250 = vst [vmem:[#allocation3] sm:$0xff] %v2249_v32   ;;  %v767_v41 = vmul.f32 0.5, %v766_v35  ;;  %v778_v43 = vmul.f32 %v743_v40, %v2842_v53 }
 0x172   : > { %v792_v51 = vmul.f32 %v2897_v58, %v780_v44 }
 0x173   : > { %v768_v46 = vsub.f32 1.5, %v767_v41  ;;  %v790_v33 = vmul.f32 %v2897_v58, %v778_v43 }
 0x174   : > { %v804_v57 = vadd.f32 %v2915_v37, %v792_v51 }
 0x175   : > { %v769_v45 = vmul.f32 %v2374_v23, %v768_v46  ;;  %v802_v48 = vadd.f32 %v2915_v37, %v790_v33 }
 0x177   : > { %v773_v50 = vsel %vm772_vm8, %v2374_v23, %v769_v45  ;;  %v2259_v52 = vpack.c.bf16 %v803_v38, %v802_v48 }
 0x178   : > { %v781_v53 = vmul.f32 %v773_v50, %v2852_v61 }
 0x179   : > { %2267 = vst [vmem:[#allocation3 + $0x10] sm:$0xff] %v2259_v52  }
 0x17a   : > { %v793_v54 = vmul.f32 %v2897_v58, %v781_v53 }
 0x17c   : > { %v805_v55 = vadd.f32 %v2915_v37, %v793_v54 }
 0x17e   : > { %v2264_v56 = vpack.c.bf16 %v805_v55, %v804_v57 }
 0x180   : > { %2268 = vst [vmem:[#allocation3 + $0x8] sm:$0xff] %v2264_v56  }
 0x181 PF: > { %v2036_v61 = vld [vmem:[%s2758_s9 + $0x70] sm:$0xf]  ;;  %v2213_v59 = vld [vmem:[%s2758_s9 + $0x74] sm:$0xf0]  ;;  %v2212_v58 = vld [vmem:[%s2758_s9 + $0x74] sm:$0xf] }
 0x182   : > { %v2037_v60 = vor.u32 %v2213_v59, %v2036_v61  ;;  %v2038_v62 = vld [vmem:[%s2758_s9 + $0x78] sm:$0xf0]  ;;  %v2028_v63 = vld [vmem:[%s2758_s9 + $0x60] sm:$0xf]  ;;  %v2211_v0 = vld [vmem:[%s2758_s9 + $0x64] sm:$0xf0] }
 0x183   : > { %v2041_v1 = vor.u32 %v2212_v58, %v2038_v62  ;;  %v2210_v2 = vld [vmem:[%s2758_s9 + $0x64] sm:$0xf]  ;;  %v2030_v3 = vld [vmem:[%s2758_s9 + $0x68] sm:$0xf0]  ;;  %v2029_v30 = vor.u32 %v2211_v0, %v2028_v63  ;;  %v2020_v4 = vld [vmem:[%s2758_s9 + $0x50] sm:$0xf] }
 0x184   : > { %2269 = vmatpush.bf16.msra.mxu2 %v2037_v60  ;;  %964 = vmatpush.bf16.msra.mxu0 %v2037_v60  ;;  %v2033_v36 = vor.u32 %v2210_v2, %v2030_v3  ;;  %v2209_v5 = vld [vmem:[%s2758_s9 + $0x54] sm:$0xf0]  ;;  %v2208_v37 = vld [vmem:[%s2758_s9 + $0x54] sm:$0xf]  ;;  %v2022_v6 = vld [vmem:[%s2758_s9 + $0x58] sm:$0xf0] }
 0x185   : > { %2277 = vmatpush.bf16.msra.mxu3 %v2041_v1  ;;  %993 = vmatpush.bf16.msra.mxu1 %v2041_v1  ;;  %v2021_v7 = vor.u32 %v2209_v5, %v2020_v4  ;;  %v2025_v8 = vor.u32 %v2208_v37, %v2022_v6  ;;  %v2012_v9 = vld [vmem:[%s2758_s9 + $0x40] sm:$0xf]  ;;  %v2207_v10 = vld [vmem:[%s2758_s9 + $0x44] sm:$0xf0]  ;;  %v2206_v11 = vld [vmem:[%s2758_s9 + $0x44] sm:$0xf] }
 0x186   : > { %v2014_v13 = vld [vmem:[%s2758_s9 + $0x48] sm:$0xf0]  ;;  %v2013_v14 = vor.u32 %v2207_v10, %v2012_v9  ;;  %v2004_v16 = vld [vmem:[%s2758_s9 + $0x30] sm:$0xf]  ;;  %v2205_v47 = vld [vmem:[%s2758_s9 + $0x34] sm:$0xf0] }
 0x187   : > { %v2017_v15 = vor.u32 %v2206_v11, %v2014_v13  ;;  %v2204_v17 = vld [vmem:[%s2758_s9 + $0x34] sm:$0xf]  ;;  %v2006_v18 = vld [vmem:[%s2758_s9 + $0x38] sm:$0xf0]  ;;  %v2005_v19 = vor.u32 %v2205_v47, %v2004_v16  ;;  %v1996_v12 = vld [vmem:[%s2758_s9 + $0x20] sm:$0xf] }
 0x188   : > { %2270 = vmatpush.bf16.msra.mxu2 %v2029_v30  ;;  %965 = vmatpush.bf16.msra.mxu0 %v2029_v30  ;;  %v2009_v20 = vor.u32 %v2204_v17, %v2006_v18  ;;  %v2203_v21 = vld [vmem:[%s2758_s9 + $0x24] sm:$0xf0]  ;;  %v2202_v49 = vld [vmem:[%s2758_s9 + $0x24] sm:$0xf]  ;;  %v1998_v22 = vld [vmem:[%s2758_s9 + $0x28] sm:$0xf0] }
 0x189   : > { %2278 = vmatpush.bf16.msra.mxu3 %v2033_v36  ;;  %994 = vmatpush.bf16.msra.mxu1 %v2033_v36  ;;  %v1997_v23 = vor.u32 %v2203_v21, %v1996_v12  ;;  %v2001_v24 = vor.u32 %v2202_v49, %v1998_v22  ;;  %v1988_v25 = vld [vmem:[%s2758_s9 + $0x10] sm:$0xf]  ;;  %v2201_v26 = vld [vmem:[%s2758_s9 + $0x14] sm:$0xf0]  ;;  %v2200_v28 = vld [vmem:[%s2758_s9 + $0x14] sm:$0xf] }
 0x18a   : > { %v1990_v29 = vld [vmem:[%s2758_s9 + $0x18] sm:$0xf0]  ;;  %v1989_v31 = vor.u32 %v2201_v26, %v1988_v25  ;;  %v1980_v32 = vld [vmem:[%s2758_s9] sm:$0xf]  ;;  %v2199_v34 = vld [vmem:[%s2758_s9 + $0x4] sm:$0xf0] }
 0x18b   : > { %v1993_v27 = vor.u32 %v2200_v28, %v1990_v29  ;;  %v2198_v35 = vld [vmem:[%s2758_s9 + $0x4] sm:$0xf]  ;;  %v1982_v39 = vld [vmem:[%s2758_s9 + $0x8] sm:$0xf0]  ;;  %v2100_v40 = vld [vmem:[%s2760_s1 + $0x70] sm:$0xf]  ;;  %v1981_v46 = vor.u32 %v2199_v34, %v1980_v32 }
 0x18c   : > { %2271 = vmatpush.bf16.msra.mxu2 %v2021_v7  ;;  %966 = vmatpush.bf16.msra.mxu0 %v2021_v7  ;;  %v2229_v41 = vld [vmem:[%s2760_s1 + $0x74] sm:$0xf0]  ;;  %v2228_v42 = vld [vmem:[%s2760_s1 + $0x74] sm:$0xf]  ;;  %v2102_v43 = vld [vmem:[%s2760_s1 + $0x78] sm:$0xf0]  ;;  %v1985_v44 = vor.u32 %v2198_v35, %v1982_v39 }
 0x18d   : > { %2279 = vmatpush.bf16.msra.mxu3 %v2025_v8  ;;  %995 = vmatpush.bf16.msra.mxu1 %v2025_v8  ;;  %v2101_v33 = vor.u32 %v2229_v41, %v2100_v40  ;;  %v2105_v45 = vor.u32 %v2228_v42, %v2102_v43  ;;  %v2092_v38 = vld [vmem:[%s2760_s1 + $0x60] sm:$0xf]  ;;  %v2227_v48 = vld [vmem:[%s2760_s1 + $0x64] sm:$0xf0]  ;;  %v3002_v50 = vld [vmem:[#allocation3 + $0x10] sm:$0xff]  ;;  %p2186_p2 = scmp.ne.s32.totalorder %s2576_s12, 1 }
 0x18e   : > { %v2226_v51 = vld [vmem:[%s2760_s1 + $0x64] sm:$0xf]  ;;  %v2094_v52 = vld [vmem:[%s2760_s1 + $0x68] sm:$0xf0]  ;;  %v2093_v53 = vor.u32 %v2227_v48, %v2092_v38  ;;  %v2084_v55 = vld [vmem:[%s2760_s1 + $0x50] sm:$0xf] }
 0x18f   : > { %v3006_v54 = vld [vmem:[#allocation3] sm:$0xff]  ;;  %v2097_v57 = vor.u32 %v2226_v51, %v2094_v52  ;;  %v2225_v56 = vld [vmem:[%s2760_s1 + $0x54] sm:$0xf0]  ;;  %v2224_v61 = vld [vmem:[%s2760_s1 + $0x54] sm:$0xf]  ;;  %s3644_s30 = sld [smem:[#allocation21_spill]] (!%p2186_p2) }
 0x190   : > { %2272 = vmatpush.bf16.msra.mxu2 %v2013_v14  ;;  %967 = vmatpush.bf16.msra.mxu0 %v2013_v14  ;;  %v2086_v59 = vld [vmem:[%s2760_s1 + $0x58] sm:$0xf0]  ;;  %v2085_v58 = vor.u32 %v2225_v56, %v2084_v55  ;;  %v2076_v62 = vld [vmem:[%s2760_s1 + $0x40] sm:$0xf]  ;;  %v2223_v63 = vld [vmem:[%s2760_s1 + $0x44] sm:$0xf0] }
 0x191   : > { %2280 = vmatpush.bf16.msra.mxu3 %v2017_v15  ;;  %996 = vmatpush.bf16.msra.mxu1 %v2017_v15  ;;  %v2089_v60 = vor.u32 %v2224_v61, %v2086_v59  ;;  %v2222_v0 = vld [vmem:[%s2760_s1 + $0x44] sm:$0xf]  ;;  %v2078_v1 = vld [vmem:[%s2760_s1 + $0x48] sm:$0xf0]  ;;  %v2077_v2 = vor.u32 %v2223_v63, %v2076_v62  ;;  %v2068_v30 = vld [vmem:[%s2760_s1 + $0x30] sm:$0xf] }
 0x192   : > { %v2081_v3 = vor.u32 %v2222_v0, %v2078_v1  ;;  %v2221_v36 = vld [vmem:[%s2760_s1 + $0x34] sm:$0xf0]  ;;  %v2220_v4 = vld [vmem:[%s2760_s1 + $0x34] sm:$0xf]  ;;  %v2070_v5 = vld [vmem:[%s2760_s1 + $0x38] sm:$0xf0] }
 0x193   : > { %v2069_v37 = vor.u32 %v2221_v36, %v2068_v30  ;;  %v2073_v6 = vor.u32 %v2220_v4, %v2070_v5  ;;  %v2060_v7 = vld [vmem:[%s2760_s1 + $0x20] sm:$0xf]  ;;  %v2219_v8 = vld [vmem:[%s2760_s1 + $0x24] sm:$0xf0]  ;;  %v2218_v10 = vld [vmem:[%s2760_s1 + $0x24] sm:$0xf] }
 0x194   : > { %2273 = vmatpush.bf16.msra.mxu2 %v2005_v19  ;;  %968 = vmatpush.bf16.msra.mxu0 %v2005_v19  ;;  %v2197_v9 = vld [vmem:[#allocation3 + $0x8] sm:$0xff]  ;;  %v2061_v13 = vor.u32 %v2219_v8, %v2060_v7  ;;  %v2195_v14 = vld [vmem:[#allocation3 + $0x18] sm:$0xff]  ;;  %v2052_v16 = vld [vmem:[%s2760_s1 + $0x10] sm:$0xf] }
 0x195   : > { %2281 = vmatpush.bf16.msra.mxu3 %v2009_v20  ;;  %997 = vmatpush.bf16.msra.mxu1 %v2009_v20  ;;  %v2062_v11 = vld [vmem:[%s2760_s1 + $0x28] sm:$0xf0]  ;;  %v2217_v47 = vld [vmem:[%s2760_s1 + $0x14] sm:$0xf0]  ;;  %v2216_v17 = vld [vmem:[%s2760_s1 + $0x14] sm:$0xf]  ;;  %s3645_s15 = smov (!%p2186_p2), %s3644_s30 }
 0x196   : > { %v2065_v15 = vor.u32 %v2218_v10, %v2062_v11  ;;  %v2054_v18 = vld [vmem:[%s2760_s1 + $0x18] sm:$0xf0]  ;;  %v2053_v19 = vor.u32 %v2217_v47, %v2052_v16  ;;  %v2044_v12 = vld [vmem:[%s2760_s1] sm:$0xf]  ;;  %v2215_v21 = vld [vmem:[%s2760_s1 + $0x4] sm:$0xf0] }
 0x197   : > { %v2057_v20 = vor.u32 %v2216_v17, %v2054_v18  ;;  %v2214_v49 = vld [vmem:[%s2760_s1 + $0x4] sm:$0xf]  ;;  %v2046_v22 = vld [vmem:[%s2760_s1 + $0x8] sm:$0xf0]  ;;  %v2245_v32 = vld [vmem:[%s2768_s18 + $0x78] sm:$0xff] }
 0x198   : > { %2274 = vmatpush.bf16.msra.mxu2 %v1997_v23  ;;  %969 = vmatpush.bf16.msra.mxu0 %v1997_v23  ;;  %v2045_v23 = vor.u32 %v2215_v21, %v2044_v12  ;;  %v2236_v35 = vld [vmem:[%s2768_s18 + $0x30] sm:$0xff]  ;;  %v1038_v42 = vld [vmem:[%s594_s25] sm:$0x3]  ;;  %v2235_v43 = vld [vmem:[%s2768_s18 + $0x28] sm:$0xff] }
 0x199   : > { %2282 = vmatpush.bf16.msra.mxu3 %v2001_v24  ;;  %998 = vmatpush.bf16.msra.mxu1 %v2001_v24  ;;  %v2049_v24 = vor.u32 %v2214_v49, %v2046_v22  ;;  %v2244_v39 = vld [vmem:[%s2768_s18 + $0x70] sm:$0xff]  ;;  %v2234_v51 = vld [vmem:[%s2768_s18 + $0x20] sm:$0xff]  ;;  %v2241_v55 = vld [vmem:[%s2768_s18 + $0x58] sm:$0xff] }
 0x19a   : > { %v2242_v52 = vld [vmem:[%s2768_s18 + $0x60] sm:$0xff]  ;;  %v2240_v62 = vld [vmem:[%s2768_s18 + $0x50] sm:$0xff]  ;;  %v2231_v36 = vld [vmem:[%s2768_s18 + $0x8] sm:$0xff] }
 0x19b   : > { %v2239_v4 = vld [vmem:[%s2768_s18 + $0x48] sm:$0xff] }
 0x19c   : > { %2275 = vmatpush.bf16.msra.mxu2 %v1989_v31  ;;  %970 = vmatpush.bf16.msra.mxu0 %v1989_v31 }
 0x19d   : > { %2283 = vmatpush.bf16.msra.mxu3 %v1993_v27  ;;  %999 = vmatpush.bf16.msra.mxu1 %v1993_v27  ;;  %v2237_v27 = vld [vmem:[%s2768_s18 + $0x38] sm:$0xff] }
 0x1a0   : > { %2276 = vmatpush.bf16.msra.mxu2 %v1981_v46  ;;  %971 = vmatpush.bf16.msra.mxu0 %v1981_v46  ;;  %v2243_v46 = vld [vmem:[%s2768_s18 + $0x68] sm:$0xff] }
 0x1a1   : > { %2284 = vmatpush.bf16.msra.mxu3 %v1985_v44  ;;  %1000 = vmatpush.bf16.msra.mxu1 %v1985_v44  ;;  %v3067_v44 = vperm.slane %v1038_v42, 0 }
 0x1a3   : > { %982 = vmatmul.bf16.vlgmr.msra.gmra.mxu2 %v3002_v50  ;;  %972 = vmatmul.bf16.vlgmr.msra.gmra.mxu0 %v3006_v54 }
 0x1a4   : > { %1124 = vmatpush.bf16.msrb.mxu2 %v2101_v33  ;;  %1011 = vmatmul.bf16.vlgmr.msra.gmra.mxu3 %v3002_v50  ;;  %v3069_v33 = vperm.slane %v1038_v42, 1 }
 0x1a5   : > { %1153 = vmatpush.bf16.msrb.mxu3 %v2105_v45  ;;  %1001 = vmatmul.bf16.vlgmr.msra.gmra.mxu1 %v3006_v54 }
 0x1a6   : > { %1662 = vmatpush.bf16.msrb.mxu0 %v2237_v27  ;;  %1691 = vmatpush.bf16.msrb.mxu1 %v2245_v32 }
 0x1a8   : > { %1125 = vmatpush.bf16.msrb.mxu2 %v2093_v53 }
 0x1a9   : > { %1154 = vmatpush.bf16.msrb.mxu3 %v2097_v57  ;;  %v2233_v57 = vld [vmem:[%s2768_s18 + $0x18] sm:$0xff] }
 0x1aa   : > { %1663 = vmatpush.bf16.msrb.mxu0 %v2236_v35  ;;  %1692 = vmatpush.bf16.msrb.mxu1 %v2244_v39 }
 0x1ac   : > { %1126 = vmatpush.bf16.msrb.mxu2 %v2085_v58 }
 0x1ad   : > { %1155 = vmatpush.bf16.msrb.mxu3 %v2089_v60  ;;  %v2232_v60 = vld [vmem:[%s2768_s18 + $0x10] sm:$0xff] }
 0x1ae   : > { %1664 = vmatpush.bf16.msrb.mxu0 %v2235_v43  ;;  %1693 = vmatpush.bf16.msrb.mxu1 %v2243_v46 }
 0x1b0   : > { %1127 = vmatpush.bf16.msrb.mxu2 %v2077_v2 }
 0x1b1   : > { %1156 = vmatpush.bf16.msrb.mxu3 %v2081_v3 }
 0x1b2   : > { %1665 = vmatpush.bf16.msrb.mxu0 %v2234_v51  ;;  %1694 = vmatpush.bf16.msrb.mxu1 %v2242_v52 }
 0x1b3   : > { %987 = vmatmul.bf16.gmra.mxu2 %v2197_v9  ;;  %977 = vmatmul.bf16.gmra.mxu0 %v2195_v14 }
 0x1b4   : > { %1128 = vmatpush.bf16.msrb.mxu2 %v2069_v37  ;;  %1016 = vmatmul.bf16.gmra.mxu3 %v2197_v9 }
 0x1b5   : > { %1157 = vmatpush.bf16.msrb.mxu3 %v2073_v6  ;;  %1006 = vmatmul.bf16.gmra.mxu1 %v2195_v14 }
 0x1b6   : > { %1666 = vmatpush.bf16.msrb.mxu0 %v2233_v57  ;;  %1695 = vmatpush.bf16.msrb.mxu1 %v2241_v55 }
 0x1b8   : > { %1129 = vmatpush.bf16.msrb.mxu2 %v2061_v13  ;;  %v2230_v13 = vld [vmem:[%s2768_s18] sm:$0xff] }
 0x1b9   : > { %1158 = vmatpush.bf16.msrb.mxu3 %v2065_v15 }
 0x1ba   : > { %1667 = vmatpush.bf16.msrb.mxu0 %v2232_v60  ;;  %1696 = vmatpush.bf16.msrb.mxu1 %v2240_v62 }
 0x1bc   : > { %1130 = vmatpush.bf16.msrb.mxu2 %v2053_v19 }
 0x1bd   : > { %1159 = vmatpush.bf16.msrb.mxu3 %v2057_v20  ;;  %v854_v20 = vld [vmem:[%s588_s29] sm:$0x3]  ;;  %s3643_s29 = sld [smem:[#allocation16_spill]] (!%p2186_p2) }
 0x1be   : > { %1668 = vmatpush.bf16.msrb.mxu0 %v2231_v36  ;;  %1697 = vmatpush.bf16.msrb.mxu1 %v2239_v4  ;;  %v3133_v35 = vperm.slane %v854_v20, 1 }
 0x1c0   : > { %1131 = vmatpush.bf16.msrb.mxu2 %v2045_v23  ;;  %v3129_v23 = vperm.slane %v854_v20, 0 }
 0x1c1   : > { %1160 = vmatpush.bf16.msrb.mxu3 %v2049_v24 }
 0x1c2   : > { %1669 = vmatpush.bf16.msrb.mxu0 %v2230_v13 }
 0x1c3   : > { %1132 = vmatmul.bf16.vlgmr.msrb.gmra.mxu2 %v3006_v54 }
 0x1c4   : > { %1161 = vmatmul.bf16.vlgmr.msrb.gmra.mxu3 %v3006_v54 }
 0x1d3   : > { %1137 = vmatmul.bf16.gmra.mxu2 %v2195_v14 }
 0x1d4   : > { %1166 = vmatmul.bf16.gmra.mxu3 %v2195_v14  ;;  %v2238_v14 = vld [vmem:[%s2768_s18 + $0x40] sm:$0xff] }
 0x1d5   : > { %1698 = vmatpush.bf16.msrb.mxu1 %v2238_v14 }
 0x1e3   : > { %1142 = vmatmul.bf16.gmra.mxu2 %v3002_v50 }
 0x1e4   : > { %1171 = vmatmul.bf16.gmra.mxu3 %v3002_v50 }
 0x1f3   : > { %1147 = vmatmul.bf16.gmra.mxu2 %v2197_v9 }
 0x1f4   : > { %1176 = vmatmul.bf16.gmra.mxu3 %v2197_v9 }
 0x220   : > { %v973_v5 = vpop.f32.mrf.mxu0 }
 0x221   : > { %v3140_v51 = vadd.f32 %v973_v5, %v3129_v23 }
 0x222   : > { %v1002_v11 = vpop.f32.mrf.mxu1 }
 0x223   : > { %v3149_v57 = vadd.f32 %v1002_v11, %v3133_v35 }
 0x226   : > { %v3040_v25 = vpop.f32.mrf.mxu2 }
 0x227   : > { %v3042_v26 = vpop.f32.mrf.mxu3 }
 0x228   : > { %v975_v32 = vpop.f32.mrf.mxu0 }
 0x229   : > { %v3152_v55 = vadd.f32 %v975_v32, %v3129_v23 }
 0x22a   : > { %v3157_v62 = vpop.f32.mrf.mxu1 }
 0x22e   : > { %v3044_v28 = vpop.f32.mrf.mxu2 }
 0x22f   : > { %v3046_v29 = vpop.f32.mrf.mxu3 }
 0x236   : > { %v3048_v31 = vpop.f32.mrf.mxu2 }
 0x237   : > { %v3052_v34 = vpop.f32.mrf.mxu3 }
 0x23e   : > { %v3056_v40 = vpop.f32.mrf.mxu2 }
 0x23f   : > { %v3058_v41 = vpop.f32.mrf.mxu3 }
 0x246   : > { %v1133_v45 = vpop.f32.mrf.mxu2 }
 0x247   : > { %v3072_v38 = vadd.f32 %v1133_v45, %v3067_v44  ;;  %v1162_v48 = vpop.f32.mrf.mxu3 }
 0x248   : > { %v3075_v50 = vadd.f32 %v1162_v48, %v3069_v33 }
 0x249   : > { %v2106_v53 = vmul.f32 -1.442695, %v3072_v38 }
 0x24a   : > { %v2107_v54 = vmul.f32 -1.442695, %v3075_v50 }
 0x24b   : > { %2375 = vpow2.f32 %v2106_v53 }
 0x24c   : > { %2377 = vpow2.f32 %v2107_v54 }
 0x24e   : > { %v1135_v56 = vpop.f32.mrf.mxu2 }
 0x24f   : > { %v3084_v61 = vadd.f32 %v1135_v56, %v3067_v44  ;;  %v1164_v59 = vpop.f32.mrf.mxu3 }
 0x250   : > { %v3087_v58 = vadd.f32 %v1164_v59, %v3069_v33 }
 0x251   : > { %v2376_v63 = vpop.eup %2375  ;;  %v2108_v0 = vmul.f32 -1.442695, %v3084_v61 }
 0x252   : > { %v2378_v1 = vpop.eup %2377  ;;  %v3092_v2 = vadd.f32 1.0, %v2376_v63  ;;  %v2109_v3 = vmul.f32 -1.442695, %v3087_v58 }
 0x253   : > { %v3095_v30 = vadd.f32 1.0, %v2378_v1  ;;  %2379 = vpow2.f32 %v2108_v0 }
 0x254   : > { %2381 = vrcp.f32 %v3092_v2  ;;  %v1257_v24 = vand.u32 2147483648, %v3092_v2  ;;  %v1255_v39 = vand.u32 2147483647, %v3092_v2  ;;  %vm1251_vm9 = vweird.f32 %v3092_v2 }
 0x255   : > { %2383 = vrcp.f32 %v3095_v30  ;;  %v1272_v42 = vand.u32 2147483648, %v3095_v30  ;;  %v1270_v48 = vand.u32 2147483647, %v3095_v30  ;;  %vm1266_vm10 = vweird.f32 %v3095_v30 }
 0x256   : > { %2385 = vpow2.f32 %v2109_v3  ;;  %v1138_v37 = vpop.f32.mrf.mxu2  ;;  %v1258_v56 = vor.u32 1.1754944e-38, %v1257_v24  ;;  %vm3159_vm11 = vcmp.eq.f32.partialorder %v1255_v39, 8.507059e+37 }
 0x257   : > { %v3102_v6 = vadd.f32 %v1138_v37, %v3067_v44  ;;  %v1167_v7 = vpop.f32.mrf.mxu3  ;;  %v1273_v1 = vor.u32 1.1754944e-38, %v1272_v42  ;;  %vm3169_vm14 = vcmp.eq.f32.partialorder %v1270_v48, 8.507059e+37  ;;  %v978_v48 = vpop.f32.mrf.mxu0 }
 0x258   : > { %v3105_v8 = vadd.f32 %v1167_v7, %v3069_v33 }
 0x259   : > { %v2380_v9 = vpop.eup %2379  ;;  %v2110_v10 = vmul.f32 -1.442695, %v3102_v6 }
 0x25a   : > { %v3110_v15 = vpop.eup %2381  ;;  %v3112_v16 = vadd.f32 1.0, %v2380_v9  ;;  %v2111_v47 = vmul.f32 -1.442695, %v3105_v8 }
 0x25b   : > { %v3115_v17 = vpop.eup %2383  ;;  %v1247_v18 = vmul.f32 %v3110_v15, %v3092_v2  ;;  %2387 = vpow2.f32 %v2110_v10  ;;  %vm1252_vm12 = vweird.f32 %v3110_v15 }
 0x25c   : > { %v2386_v19 = vpop.eup %2385  ;;  %v1262_v12 = vmul.f32 %v3115_v17, %v3095_v30  ;;  %2389 = vrcp.f32 %v3112_v16  ;;  %v1287_v3 = vand.u32 2147483648, %v3112_v16  ;;  %vm1267_vm13 = vweird.f32 %v3115_v17  ;;  %vm3184_vm1 = vmor %vm1251_vm9, %vm1252_vm12 }
 0x25d   : > { %v1248_v21 = vsub.f32 1.0, %v1247_v18  ;;  %v3127_v49 = vadd.f32 1.0, %v2386_v19  ;;  %2391 = vpow2.f32 %v2111_v47  ;;  %vm1281_vm15 = vweird.f32 %v3112_v16  ;;  %vm3196_vm2 = vmor %vm1266_vm10, %vm1267_vm13 }
 0x25e   : > { %v1140_v22 = vpop.f32.mrf.mxu2  ;;  %v1263_v27 = vsub.f32 1.0, %v1262_v12  ;;  %v1285_v9 = vand.u32 2147483647, %v3112_v16  ;;  %v1288_v20 = vor.u32 1.1754944e-38, %v1287_v3  ;;  %v3239_v19 = vadd.f32 %v978_v48, %v3129_v23 }
 0x25f   : > { %2393 = vrcp.f32 %v3127_v49  ;;  %v1169_v43 = vpop.f32.mrf.mxu3  ;;  %v1249_v45 = vmul.f32 %v3110_v15, %v1248_v21  ;;  %v3143_v52 = vadd.f32 %v1140_v22, %v3067_v44  ;;  %v1300_v21 = vand.u32 2147483647, %v3127_v49 }
 0x260   : > { %v1264_v59 = vmul.f32 %v3115_v17, %v1263_v27  ;;  %v3177_v11 = vadd.f32 %v1169_v43, %v3069_v33  ;;  %v1302_v27 = vand.u32 2147483648, %v3127_v49  ;;  %vm1286_vm5 = vcmp.eq.f32.partialorder %v1285_v9, 8.507059e+37 }
 0x261   : > { %v2388_v46 = vpop.eup %2387  ;;  %v2112_v36 = vmul.f32 -1.442695, %v3143_v52  ;;  %v1250_v5 = vadd.f32 %v3110_v15, %v1249_v45  ;;  %vm1296_vm6 = vweird.f32 %v3127_v49  ;;  %vm1301_vm8 = vcmp.eq.f32.partialorder %v1300_v21, 8.507059e+37 }
 0x262   : > { %v2390_v53 = vpop.eup %2389  ;;  %v3146_v54 = vadd.f32 1.0, %v2388_v46  ;;  %v1265_v14 = vadd.f32 %v3115_v17, %v1264_v59 }
 0x263   : > { %v1277_v60 = vmul.f32 %v2390_v53, %v3112_v16  ;;  %v2392_v63 = vpop.eup %2391  ;;  %vm1282_vm0 = vweird.f32 %v2390_v53  ;;  %v1254_v22 = vsel %vm3184_vm1, %v3110_v15, %v1250_v5  ;;  %v2113_v15 = vmul.f32 -1.442695, %v3177_v11 }
 0x264   : > { %2395 = vrcp.f32 %v3146_v54  ;;  %v3180_v18 = vadd.f32 1.0, %v2392_v63  ;;  %vm1283_vm3 = vmor %vm1281_vm15, %vm1282_vm0  ;;  %v1269_v43 = vsel %vm3196_vm2, %v3115_v17, %v1265_v14  ;;  %v1303_v63 = vor.u32 1.1754944e-38, %v1302_v27  ;;  %v1007_v17 = vpop.f32.mrf.mxu1 }
 0x265   : > { %v2394_v4 = vpop.eup %2393  ;;  %v1278_v7 = vsub.f32 1.0, %v1277_v60  ;;  %2397 = vpow2.f32 %v2112_v36  ;;  %v1259_v60 = vsel %vm3159_vm11, %v1258_v56, %v1254_v22  ;;  %v1274_v5 = vsel %vm3169_vm14, %v1273_v1, %v1269_v43 }
 0x266   : > { %v1292_v10 = vmul.f32 %v2394_v4, %v3127_v49  ;;  %v1143_v13 = vpop.f32.mrf.mxu2  ;;  %2399 = vrcp.f32 %v3180_v18  ;;  %vm1297_vm4 = vweird.f32 %v2394_v4  ;;  %v1486_v14 = vmul.f32 %v1259_v60, %v3072_v38 }
 0x267   : > { %v1279_v47 = vmul.f32 %v2390_v53, %v1278_v7  ;;  %v3208_v30 = vadd.f32 %v1143_v13, %v3067_v44  ;;  %v1172_v42 = vpop.f32.mrf.mxu3  ;;  %2401 = vpow2.f32 %v2113_v15  ;;  %vm1298_vm7 = vmor %vm1296_vm6, %vm1297_vm4  ;;  %v1487_v38 = vmul.f32 %v1274_v5, %v3075_v50 }
 0x268   : > { %v1293_v12 = vsub.f32 1.0, %v1292_v10  ;;  %v3222_v9 = vadd.f32 %v1172_v42, %v3069_v33  ;;  %v1315_v10 = vand.u32 2147483647, %v3146_v54  ;;  %vm1311_vm9 = vweird.f32 %v3146_v54 }
 0x269   : > { %v1280_v2 = vadd.f32 %v2390_v53, %v1279_v47  ;;  %v2114_v36 = vmul.f32 -1.442695, %v3208_v30  ;;  %v1317_v47 = vand.u32 2147483648, %v3146_v54  ;;  %v1332_v50 = vand.u32 2147483648, %v3180_v18 }
 0x26a   : > { %v3202_v32 = vpop.eup %2395  ;;  %v1294_v39 = vmul.f32 %v2394_v4, %v1293_v12  ;;  %v2115_v21 = vmul.f32 -1.442695, %v3222_v9  ;;  %vm3245_vm10 = vcmp.eq.f32.partialorder %v1315_v10, 8.507059e+37  ;;  %v1330_v43 = vand.u32 2147483647, %v3180_v18 }
 0x26b   : > { %v1284_v46 = vsel %vm1283_vm3, %v2390_v53, %v1280_v2  ;;  %v1307_v45 = vmul.f32 %v3202_v32, %v3146_v54  ;;  %v2398_v53 = vpop.eup %2397  ;;  %2403 = vpow2.f32 %v2114_v36  ;;  %vm1312_vm11 = vweird.f32 %v3202_v32 }
 0x26c   : > { %v1289_v16 = vsel %vm1286_vm5, %v1288_v20, %v1284_v46  ;;  %v1295_v59 = vadd.f32 %v2394_v4, %v1294_v39  ;;  %v3224_v49 = vpop.eup %2399  ;;  %v3228_v13 = vadd.f32 1.0, %v2398_v53  ;;  %v1318_v39 = vor.u32 1.1754944e-38, %v1317_v47  ;;  %v980_v46 = vpop.f32.mrf.mxu0  ;;  %vm3274_vm13 = vmor %vm1311_vm9, %vm1312_vm11 }
 0x26d   : > { %v1308_v3 = vsub.f32 1.0, %v1307_v45  ;;  %v1488_v0 = vmul.f32 %v1289_v16, %v3084_v61  ;;  %v1322_v1 = vmul.f32 %v3224_v49, %v3180_v18  ;;  %v1005_v61 = vadd.f32 %v3157_v62, %v3133_v35  ;;  %v2402_v20 = vpop.eup %2401  ;;  %v1009_v36 = vpop.f32.mrf.mxu1 }
 0x26e   : > { %v1299_v7 = vsel %vm1298_vm7, %v2394_v4, %v1295_v59  ;;  %v1145_v4 = vpop.f32.mrf.mxu2  ;;  %2405 = vrcp.f32 %v3228_v13  ;;  %v3249_v2 = vadd.f32 1.0, %v2402_v20  ;;  %vm1326_vm12 = vweird.f32 %v3180_v18 }
 0x26f   : > { %v1304_v56 = vsel %vm1301_vm8, %v1303_v63, %v1299_v7  ;;  %v1309_v37 = vmul.f32 %v3202_v32, %v1308_v3  ;;  %v1323_v24 = vsub.f32 1.0, %v1322_v1  ;;  %v1504_v62 = vmul.f32 %v1488_v0, %v3152_v55  ;;  %v1174_v15 = vpop.f32.mrf.mxu3 }
 0x270   : > { %v1489_v12 = vmul.f32 %v1304_v56, %v3087_v58  ;;  %v3253_v27 = vadd.f32 %v1145_v4, %v3067_v44  ;;  %v1502_v58 = vmul.f32 %v1486_v14, %v3140_v51  ;;  %2407 = vpow2.f32 %v2115_v21 }
 0x271   : > { %v1310_v42 = vadd.f32 %v3202_v32, %v1309_v37  ;;  %2409 = vrcp.f32 %v3249_v2  ;;  %v2404_v55 = vpop.eup %2403  ;;  %v1503_v45 = vmul.f32 %v1487_v38, %v3149_v57  ;;  %v1324_v59 = vmul.f32 %v3224_v49, %v1323_v24 }
 0x272   : > { %v1505_v48 = vmul.f32 %v1489_v12, %v1005_v61  ;;  %v2116_v16 = vmul.f32 -1.442695, %v3253_v27  ;;  %v3265_v60 = vadd.f32 1.0, %v2404_v55  ;;  %v3268_v63 = vadd.f32 %v1174_v15, %v3069_v33 }
 0x273   : > { %v1526_v3 = vpack.c.bf16 %v1504_v62, %v1502_v58  ;;  %v1333_v57 = vor.u32 1.1754944e-38, %v1332_v50  ;;  %v3280_v7 = vadd.f32 %v1007_v17, %v3133_v35  ;;  %v3283_v0 = vadd.f32 %v980_v46, %v3129_v23 }
 0x274   : > { %v2406_v51 = vpop.eup %2405  ;;  %v1314_v56 = vsel %vm3274_vm13, %v3202_v32, %v1310_v42  ;;  %vm3288_vm14 = vcmp.eq.f32.partialorder %v1330_v43, 8.507059e+37  ;;  %v1345_v54 = vand.u32 2147483647, %v3228_v13  ;;  %v1347_v14 = vand.u32 2147483648, %v3228_v13 }
 0x275   : > { %v1337_v5 = vmul.f32 %v2406_v51, %v3228_v13  ;;  %2411 = vrcp.f32 %v3265_v60  ;;  %1670 = vmatmul.bf16.vlgmr.msrb.gmra.mxu0 %v1526_v3  ;;  %vm1327_vm15 = vweird.f32 %v3224_v49  ;;  %v3297_v1 = vadd.f32 %v1009_v36, %v3133_v35 }
 0x276   : > { %v2408_v17 = vpop.eup %2407  ;;  %2413 = vpow2.f32 %v2116_v16  ;;  %v1148_v32 = vpop.f32.mrf.mxu2  ;;  %v1325_v37 = vadd.f32 %v3224_v49, %v1324_v59  ;;  %v2117_v20 = vmul.f32 -1.442695, %v3268_v63  ;;  %v1527_v38 = vpack.c.bf16 %v1505_v48, %v1503_v45  ;;  %vm3316_vm3 = vmor %vm1326_vm12, %vm1327_vm15 }
 0x277   : > { %v1338_v47 = vsub.f32 1.0, %v1337_v5  ;;  %v2410_v4 = vpop.eup %2409  ;;  %v3300_v61 = vadd.f32 1.0, %v2408_v17  ;;  %v1319_v12 = vsel %vm3245_vm10, %v1318_v39, %v1314_v56  ;;  %vm1342_vm0 = vweird.f32 %v2406_v51  ;;  %v1177_v15 = vpop.f32.mrf.mxu3 }
 0x278   : > { %v1352_v24 = vmul.f32 %v2410_v4, %v3249_v2  ;;  %vm1341_vm1 = vweird.f32 %v3228_v13  ;;  %vm3307_vm2 = vcmp.eq.f32.partialorder %v1345_v54, 8.507059e+37  ;;  %v1348_v50 = vor.u32 1.1754944e-38, %v1347_v14  ;;  %1699 = vmatmul.bf16.vlgmr.msrb.gmra.mxu1 %v1527_v38 }
 0x279   : > { %v1339_v21 = vmul.f32 %v2406_v51, %v1338_v47  ;;  %2415 = vrcp.f32 %v3300_v61  ;;  %v1360_v13 = vand.u32 2147483647, %v3249_v2  ;;  %v1490_v43 = vmul.f32 %v1319_v12, %v3102_v6  ;;  %vm1343_vm4 = vmor %vm1341_vm1, %vm1342_vm0 }
 0x27a   : > { %v1353_v58 = vsub.f32 1.0, %v1352_v24  ;;  %2417 = vpow2.f32 %v2117_v20  ;;  %v1329_v46 = vsel %vm3316_vm3, %v3224_v49, %v1325_v37  ;;  %vm1357_vm5 = vweird.f32 %v2410_v4 }
 0x27b   : > { %v1340_v39 = vadd.f32 %v2406_v51, %v1339_v21  ;;  %v3321_v42 = vpop.eup %2411  ;;  %v1362_v18 = vand.u32 2147483648, %v3249_v2  ;;  %v3332_v59 = vadd.f32 %v1148_v32, %v3067_v44  ;;  %vm1356_vm6 = vweird.f32 %v3249_v2 }
 0x27c   : > { %v2414_v55 = vpop.eup %2413  ;;  %v1354_v48 = vmul.f32 %v2410_v4, %v1353_v58  ;;  %v1367_v16 = vmul.f32 %v3321_v42, %v3265_v60  ;;  %v3340_v3 = vadd.f32 %v1177_v15, %v3069_v33  ;;  %vm1361_vm7 = vcmp.eq.f32.partialorder %v1360_v13, 8.507059e+37  ;;  %vm1358_vm8 = vmor %vm1356_vm6, %vm1357_vm5 }
 0x27d   : > { %v1344_v45 = vsel %vm1343_vm4, %v2406_v51, %v1340_v39  ;;  %v3337_v49 = vadd.f32 1.0, %v2414_v55  ;;  %v1334_v51 = vsel %vm3288_vm14, %v1333_v57, %v1329_v46  ;;  %v1363_v54 = vor.u32 1.1754944e-38, %v1362_v18 }
 0x27e   : > { %v1349_v6 = vsel %vm3307_vm2, %v1348_v50, %v1344_v45  ;;  %v1355_v36 = vadd.f32 %v2410_v4, %v1354_v48  ;;  %v1368_v53 = vsub.f32 1.0, %v1367_v16  ;;  %v1375_v2 = vand.u32 2147483647, %v3265_v60  ;;  %v1150_v32 = vpop.f32.mrf.mxu2 }
 0x27f   : > { %v3344_v5 = vpop.eup %2415  ;;  %v1492_v56 = vmul.f32 %v1349_v6, %v3143_v52  ;;  %2419 = vrcp.f32 %v3337_v49  ;;  %v1377_v47 = vand.u32 2147483648, %v3265_v60  ;;  %v2118_v10 = vmul.f32 -1.442695, %v3332_v59 }
 0x280   : > { %v2418_v14 = vpop.eup %2417  ;;  %v1359_v17 = vsel %vm1358_vm8, %v2410_v4, %v1355_v36  ;;  %v1382_v57 = vmul.f32 %v3344_v5, %v3300_v61  ;;  %v1491_v37 = vmul.f32 %v1334_v51, %v3105_v8  ;;  %v2119_v38 = vmul.f32 -1.442695, %v3340_v3 }
 0x281   : > { %v1364_v52 = vsel %vm1361_vm7, %v1363_v54, %v1359_v17  ;;  %v3355_v20 = vadd.f32 1.0, %v2418_v14  ;;  %v1369_v21 = vmul.f32 %v3321_v42, %v1368_v53  ;;  %v1506_v24 = vmul.f32 %v1490_v43, %v3239_v19  ;;  %v1179_v19 = vpop.f32.mrf.mxu3 }
 0x282   : > { %v1493_v12 = vmul.f32 %v1364_v52, %v3177_v11  ;;  %v1383_v4 = vsub.f32 1.0, %v1382_v57  ;;  %vm1371_vm9 = vweird.f32 %v3265_v60  ;;  %v1508_v62 = vmul.f32 %v1492_v56, %v3283_v0 }
 0x283   : > { %2421 = vrcp.f32 %v3355_v20  ;;  %v3365_v8 = vadd.f32 %v1150_v32, %v3067_v44  ;;  %vm3367_vm10 = vcmp.eq.f32.partialorder %v1375_v2, 8.507059e+37  ;;  %v1378_v22 = vor.u32 1.1754944e-38, %v1377_v47 }
 0x284   : > { %vm1386_vm11 = vweird.f32 %v3300_v61  ;;  %v1509_v11 = vmul.f32 %v1493_v12, %v3297_v1  ;;  %2423 = vpow2.f32 %v2118_v10  ;;  %vm1372_vm12 = vweird.f32 %v3321_v42 }
 0x285   : > { %v2420_v39 = vpop.eup %2419  ;;  %v1384_v58 = vmul.f32 %v3344_v5, %v1383_v4  ;;  %v1507_v0 = vmul.f32 %v1491_v37, %v3280_v7  ;;  %2425 = vpow2.f32 %v2119_v38  ;;  %v1370_v44 = vadd.f32 %v3321_v42, %v1369_v21  ;;  %vm3391_vm14 = vmor %vm1371_vm9, %vm1372_vm12 }
 0x286   : > { %v1397_v13 = vmul.f32 %v2420_v39, %v3337_v49  ;;  %v1405_v15 = vand.u32 2147483647, %v3337_v49  ;;  %v1407_v43 = vand.u32 2147483648, %v3337_v49  ;;  %v2120_v1 = vmul.f32 -1.442695, %v3365_v8 }
 0x287   : > { %v3382_v46 = vadd.f32 %v1179_v19, %v3069_v33  ;;  %v1528_v18 = vpack.c.bf16 %v1508_v62, %v1506_v24  ;;  %v1529_v55 = vpack.c.bf16 %v1509_v11, %v1507_v0  ;;  %v1390_v45 = vand.u32 2147483647, %v3300_v61 }
 0x288   : > { %v1392_v7 = vand.u32 2147483648, %v3300_v61  ;;  %v1398_v48 = vsub.f32 1.0, %v1397_v13  ;;  %vm1401_vm13 = vweird.f32 %v3337_v49  ;;  %v1385_v33 = vadd.f32 %v3344_v5, %v1384_v58 }
 0x289   : > { %v2422_v16 = vpop.eup %2421  ;;  %vm1387_vm15 = vweird.f32 %v3344_v5  ;;  %2427 = vpow2.f32 %v2120_v1  ;;  %v2121_v51 = vmul.f32 -1.442695, %v3382_v46  ;;  %1675 = vmatmul.bf16.gmra.mxu0 %v1528_v18  ;;  %1704 = vmatmul.bf16.gmra.mxu1 %v1529_v55  ;;  %v1374_v53 = vsel %vm3391_vm14, %v3321_v42, %v1370_v44 }
 0x28a   : > { %v2424_v36 = vpop.eup %2423  ;;  %v1399_v56 = vmul.f32 %v2420_v39, %v1398_v48  ;;  %vm1402_vm0 = vweird.f32 %v2420_v39  ;;  %v1412_v60 = vmul.f32 %v2422_v16, %v3355_v20  ;;  %vm3402_vm1 = vcmp.eq.f32.partialorder %v1405_v15, 8.507059e+37  ;;  %vm3412_vm2 = vmor %vm1386_vm11, %vm1387_vm15 }
 0x28b   : > { %v2426_v54 = vpop.eup %2425  ;;  %v1408_v14 = vor.u32 1.1754944e-38, %v1407_v43  ;;  %v3406_v17 = vadd.f32 1.0, %v2424_v36  ;;  %2429 = vpow2.f32 %v2121_v51  ;;  %v1420_v10 = vand.u32 2147483647, %v3355_v20  ;;  %vm1403_vm3 = vmor %vm1401_vm13, %vm1402_vm0 }
 0x28c   : > { %v1400_v42 = vadd.f32 %v2420_v39, %v1399_v56  ;;  %v1413_v57 = vsub.f32 1.0, %v1412_v60  ;;  %v3417_v32 = vadd.f32 1.0, %v2426_v54  ;;  %v1379_v37 = vsel %vm3367_vm10, %v1378_v22, %v1374_v53 }
 0x28d   : > { %v1389_v52 = vsel %vm3412_vm2, %v3344_v5, %v1385_v33  ;;  %v1422_v61 = vand.u32 2147483648, %v3355_v20  ;;  %2431 = vrcp.f32 %v3406_v17  ;;  %vm1417_vm4 = vweird.f32 %v2422_v16 }
 0x28e   : > { %v1404_v38 = vsel %vm1403_vm3, %v2420_v39, %v1400_v42  ;;  %v1414_v12 = vmul.f32 %v2422_v16, %v1413_v57  ;;  %2433 = vrcp.f32 %v3417_v32  ;;  %vm1391_vm5 = vcmp.eq.f32.partialorder %v1390_v45, 8.507059e+37 }
 0x28f   : > { %v2428_v21 = vpop.eup %2427  ;;  %v1393_v4 = vor.u32 1.1754944e-38, %v1392_v7  ;;  %v1409_v24 = vsel %vm3402_vm1, %v1408_v14, %v1404_v38  ;;  %vm1416_vm6 = vweird.f32 %v3355_v20  ;;  %v1494_v22 = vmul.f32 %v1379_v37, %v3208_v30 }
 0x290   : > { %v1496_v5 = vmul.f32 %v1409_v24, %v3253_v27  ;;  %v1415_v62 = vadd.f32 %v2422_v16, %v1414_v12  ;;  %v3433_v49 = vadd.f32 1.0, %v2428_v21  ;;  %vm1418_vm7 = vmor %vm1416_vm6, %vm1417_vm4  ;;  %v1423_v19 = vor.u32 1.1754944e-38, %v1422_v61 }
 0x291   : > { %v2430_v50 = vpop.eup %2429  ;;  %v1394_v11 = vsel %vm1391_vm5, %v1393_v4, %v1389_v52  ;;  %v986_v39 = vadd.f32 %v3044_v28, %v3129_v23  ;;  %vm1421_vm8 = vcmp.eq.f32.partialorder %v1420_v10, 8.507059e+37  ;;  %v984_v27 = vadd.f32 %v3040_v25, %v3129_v23 }
 0x292   : > { %v1419_v58 = vsel %vm1418_vm7, %v2422_v16, %v1415_v62  ;;  %2435 = vrcp.f32 %v3433_v49  ;;  %v3441_v44 = vadd.f32 1.0, %v2430_v50  ;;  %v1495_v30 = vmul.f32 %v1394_v11, %v3222_v9 }
 0x293   : > { %v2432_v0 = vpop.eup %2431  ;;  %v1424_v20 = vsel %vm1421_vm8, %v1423_v19, %v1419_v58  ;;  %v1512_v28 = vmul.f32 %v1496_v5, %v986_v39  ;;  %v1015_v1 = vadd.f32 %v3046_v29, %v3133_v35  ;;  %v1510_v55 = vmul.f32 %v1494_v22, %v984_v27 }
 0x294   : > { %v3443_v13 = vpop.eup %2433  ;;  %v1497_v15 = vmul.f32 %v1424_v20, %v3268_v63  ;;  %v1427_v43 = vmul.f32 %v2432_v0, %v3406_v17  ;;  %v1013_v25 = vadd.f32 %v3042_v26, %v3133_v35  ;;  %2437 = vrcp.f32 %v3441_v44 }
 0x295   : > { %v1442_v18 = vmul.f32 %v3443_v13, %v3417_v32  ;;  %v1530_v9 = vpack.c.bf16 %v1512_v28, %v1510_v55  ;;  %vm1432_vm9 = vweird.f32 %v2432_v0  ;;  %v1437_v6 = vand.u32 2147483648, %v3406_v17 }
 0x296   : > { %v1428_v45 = vsub.f32 1.0, %v1427_v43  ;;  %v1513_v48 = vmul.f32 %v1497_v15, %v1015_v1  ;;  %v1511_v33 = vmul.f32 %v1495_v30, %v1013_v25  ;;  %vm1431_vm10 = vweird.f32 %v3406_v17 }
 0x297   : > { %v1443_v7 = vsub.f32 1.0, %v1442_v18  ;;  %v1435_v29 = vand.u32 2147483647, %v3406_v17  ;;  %v1450_v53 = vand.u32 2147483647, %v3417_v32  ;;  %v1452_v56 = vand.u32 2147483648, %v3417_v32  ;;  %vm3462_vm11 = vmor %vm1431_vm10, %vm1432_vm9 }
 0x298   : > { %v2436_v63 = vpop.eup %2435  ;;  %v1429_v16 = vmul.f32 %v2432_v0, %v1428_v45  ;;  %v1531_v60 = vpack.c.bf16 %v1513_v48, %v1511_v33  ;;  %vm1446_vm12 = vweird.f32 %v3417_v32  ;;  %vm1447_vm13 = vweird.f32 %v3443_v13  ;;  %v1519_v48 = vld [vmem:[#allocation2] sm:$0xff] }
 0x299   : > { %v1444_v51 = vmul.f32 %v3443_v13, %v1443_v7  ;;  %v1457_v26 = vmul.f32 %v2436_v63, %v3433_v49  ;;  %1680 = vmatmul.bf16.gmra.mxu0 %v1530_v9  ;;  %v1438_v42 = vor.u32 1.1754944e-38, %v1437_v6  ;;  %v1465_v57 = vand.u32 2147483647, %v3433_v49  ;;  %vm3474_vm0 = vmor %vm1446_vm12, %vm1447_vm13 }
 0x29a   : > { %v1430_v36 = vadd.f32 %v2432_v0, %v1429_v16  ;;  %v2438_v17 = vpop.eup %2437  ;;  %v1467_v10 = vand.u32 2147483648, %v3433_v49  ;;  %1709 = vmatmul.bf16.gmra.mxu1 %v1531_v60  ;;  %vm1436_vm14 = vcmp.eq.f32.partialorder %v1435_v29, 8.507059e+37  ;;  %vm1462_vm15 = vweird.f32 %v2436_v63  ;;  %v1522_v60 = vld [vmem:[#allocation2 + $0x8] sm:$0xff] }
 0x29b   : > { %v1445_v2 = vadd.f32 %v3443_v13, %v1444_v51  ;;  %v1458_v14 = vsub.f32 1.0, %v1457_v26  ;;  %v1472_v52 = vmul.f32 %v2438_v17, %v3441_v44  ;;  %vm3478_vm1 = vcmp.eq.f32.partialorder %v1450_v53, 8.507059e+37  ;;  %v1521_v51 = vld [vmem:[#allocation2 + $0x10] sm:$0xff] }
 0x29c   : > { %v1434_v47 = vsel %vm3462_vm11, %v2432_v0, %v1430_v36  ;;  %v1453_v12 = vor.u32 1.1754944e-38, %v1452_v56  ;;  %vm1461_vm2 = vweird.f32 %v3433_v49  ;;  %vm1466_vm4 = vcmp.eq.f32.partialorder %v1465_v57, 8.507059e+37 }
 0x29d   : > { %v1459_v37 = vmul.f32 %v2436_v63, %v1458_v14  ;;  %v1439_v61 = vsel %vm1436_vm14, %v1438_v42, %v1434_v47  ;;  %v1449_v21 = vsel %vm3474_vm0, %v3443_v13, %v1445_v2  ;;  %v1473_v24 = vsub.f32 1.0, %v1472_v52  ;;  %vm1463_vm3 = vmor %vm1461_vm2, %vm1462_vm15  ;;  %v1523_v47 = vld [vmem:[#allocation2 + $0x20] sm:$0xff]  ;;  %v1524_v52 = vld [vmem:[#allocation2 + $0x28] sm:$0xff] }
 0x29e   : > { %v1468_v5 = vor.u32 1.1754944e-38, %v1467_v10  ;;  %v1480_v62 = vand.u32 2147483647, %v3441_v44  ;;  %v1482_v50 = vand.u32 2147483648, %v3441_v44  ;;  %v1498_v22 = vmul.f32 %v1439_v61, %v3332_v59 }
 0x29f   : > { %v1460_v4 = vadd.f32 %v2436_v63, %v1459_v37  ;;  %v1474_v19 = vmul.f32 %v2438_v17, %v1473_v24  ;;  %vm1477_vm5 = vweird.f32 %v2438_v17  ;;  %v989_v39 = vadd.f32 %v3048_v31, %v3129_v23 }
 0x2a0   : > { %v1454_v58 = vsel %vm3478_vm1, %v1453_v12, %v1449_v21  ;;  %v991_v0 = vadd.f32 %v3056_v40, %v3129_v23  ;;  %vm1476_vm6 = vweird.f32 %v3441_v44  ;;  %vm1481_vm8 = vcmp.eq.f32.partialorder %v1480_v62, 8.507059e+37  ;;  %v1525_v21 = vld [vmem:[#allocation2 + $0x38] sm:$0xff] }
 0x2a1   : > { %v1464_v11 = vsel %vm1463_vm3, %v2436_v63, %v1460_v4  ;;  %v1475_v20 = vadd.f32 %v2438_v17, %v1474_v19  ;;  %vm1478_vm7 = vmor %vm1476_vm6, %vm1477_vm5  ;;  %v1483_v59 = vor.u32 1.1754944e-38, %v1482_v50  ;;  %v1499_v13 = vmul.f32 %v1454_v58, %v3340_v3  ;;  %v1518_v3 = vld [vmem:[#allocation2 + $0x30] sm:$0xff] }
 0x2a2   : > { %v1469_v49 = vsel %vm1466_vm4, %v1468_v5, %v1464_v11  ;;  %v1514_v15 = vmul.f32 %v1498_v22, %v989_v39  ;;  %v1018_v28 = vadd.f32 %v3052_v34, %v3133_v35  ;;  %v1020_v40 = vadd.f32 %v3058_v41, %v3133_v35  ;;  %v1520_v35 = vld [vmem:[#allocation2 + $0x18] sm:$0xff] }
 0x2a3   : > { %v1500_v27 = vmul.f32 %v1469_v49, %v3365_v8  ;;  %v1479_v30 = vsel %vm1478_vm7, %v2438_v17, %v1475_v20 }
 0x2a4   : > { %v1484_v43 = vsel %vm1481_vm8, %v1483_v59, %v1479_v30  ;;  %v1515_v44 = vmul.f32 %v1499_v13, %v1018_v28 }
 0x2a5   : > { %v1516_v31 = vmul.f32 %v1500_v27, %v991_v0  ;;  %v1501_v23 = vmul.f32 %v1484_v43, %v3382_v46 }
 0x2a7   : > { %v1532_v8 = vpack.c.bf16 %v1516_v31, %v1514_v15  ;;  %v1517_v1 = vmul.f32 %v1501_v23, %v1020_v40 }
 0x2a9   : > { %1685 = vmatmul.bf16.gmra.mxu0 %v1532_v8  ;;  %v1533_v18 = vpack.c.bf16 %v1517_v1, %v1515_v44 }
 0x2ab   : > { %1714 = vmatmul.bf16.gmra.mxu1 %v1533_v18 }
 0x2f2   : > { %v1671_v55 = vpop.f32.mrf.mxu0 }
 0x2f5   : > { %v1700_v25 = vpop.f32.mrf.mxu1 }
 0x2f6   : > { %v1701_v45 = vadd.f32 %v1700_v25, %v1671_v55 }
 0x2f8   : > { %v1720_v7 = vadd.f32 %v1701_v45, %v1518_v3 }
 0x2fa   : > { %1728 = vst [vmem:[#allocation2 + $0x30] sm:$0xff] %v1720_v7  ;;  %v1673_v9 = vpop.f32.mrf.mxu0 }
 0x2fd   : > { %v1702_v34 = vpop.f32.mrf.mxu1 }
 0x2fe   : > { %v1703_v63 = vadd.f32 %v1702_v34, %v1673_v9 }
 0x300   : > { %v1721_v16 = vadd.f32 %v1703_v63, %v1519_v48 }
 0x302   : > { %1729 = vst [vmem:[#allocation2] sm:$0xff] %v1721_v16 }
 0x306   : > { %v1676_v41 = vpop.f32.mrf.mxu0  ;;  %v1705_v46 = vpop.f32.mrf.mxu1 }
 0x307   : > { %v1706_v6 = vadd.f32 %v1705_v46, %v1676_v41 }
 0x309   : > { %v1722_v33 = vadd.f32 %v1706_v6, %v1520_v35 }
 0x30b   : > { %1730 = vst [vmem:[#allocation2 + $0x18] sm:$0xff] %v1722_v33 }
 0x30e   : > { %v1678_v29 = vpop.f32.mrf.mxu0  ;;  %v1707_v26 = vpop.f32.mrf.mxu1 }
 0x30f   : > { %v1708_v36 = vadd.f32 %v1707_v26, %v1678_v29 }
 0x311   : > { %v1723_v53 = vadd.f32 %v1708_v36, %v1521_v51 }
 0x313   : > { %1731 = vst [vmem:[#allocation2 + $0x10] sm:$0xff] %v1723_v53 }
 0x316   : > { %v1681_v56 = vpop.f32.mrf.mxu0 }
 0x317   : > { %v1710_v54 = vpop.f32.mrf.mxu1 }
 0x318   : > { %v1711_v2 = vadd.f32 %v1710_v54, %v1681_v56 }
 0x31a   : > { %v1724_v14 = vadd.f32 %v1711_v2, %v1522_v60 }
 0x31c   : > { %1732 = vst [vmem:[#allocation2 + $0x8] sm:$0xff] %v1724_v14 }
 0x31e   : > { %v1683_v17 = vpop.f32.mrf.mxu0 }
 0x31f   : > { %v1712_v42 = vpop.f32.mrf.mxu1 }
 0x320   : > { %v1713_v57 = vadd.f32 %v1712_v42, %v1683_v17 }
 0x322   : > { %v1725_v10 = vadd.f32 %v1713_v57, %v1523_v47 }
 0x324   : > { %1733 = vst [vmem:[#allocation2 + $0x20] sm:$0xff] %v1725_v10 }
 0x326   : > { %v1686_v37 = vpop.f32.mrf.mxu0 }
 0x328   : > { %v1715_v61 = vpop.f32.mrf.mxu1 }
 0x329   : > { %v1716_v32 = vadd.f32 %v1715_v61, %v1686_v37 }
 0x32b   : > { %v1726_v38 = vadd.f32 %v1716_v32, %v1524_v52 }
 0x32d   : > { %1734 = vst [vmem:[#allocation2 + $0x28] sm:$0xff] %v1726_v38 }
 0x32e   : > { %v1688_v12 = vpop.f32.mrf.mxu0 }
 0x330   : > { %v1717_v4 = vpop.f32.mrf.mxu1 }
 0x331   : > { %v1718_v24 = vadd.f32 %v1717_v4, %v1688_v12  ;;  %1739 = sbr.rel (%p2186_p2) target bundleno = 835 (0x343), region = 114 }
 0x333   : > { %v1727_v5 = vadd.f32 %v1718_v24, %v1525_v21 }
 0x335   : > { %1735 = vst [vmem:[#allocation2 + $0x38] sm:$0xff] %v1727_v5 }
 0x336   : > { %v1740_v62 = vld [vmem:[%s3643_s29] sm:$0xff]  ;;  %v1748_v50 = vld [vmem:[#allocation2 + $0x30] sm:$0xff]  ;;  %v1741_v19 = vld [vmem:[%s3643_s29 + $0x8] sm:$0xff] }
 0x337   : > { %v1756_v22 = vadd.f32 %v1748_v50, %v1740_v62  ;;  %v2439_v11 = vld [vmem:[#allocation9] ss:$0 sm:$0xff]  ;;  %v1742_v49 = vld [vmem:[%s3643_s29 + $0x10] sm:$0xff]  ;;  %v1750_v0 = vld [vmem:[#allocation2 + $0x18] sm:$0xff] }
 0x338   : > { %v1749_v39 = vld [vmem:[#allocation2] sm:$0xff]  ;;  %v1743_v27 = vld [vmem:[%s3643_s29 + $0x18] sm:$0xff]  ;;  %v1758_v59 = vadd.f32 %v1750_v0, %v1742_v49  ;;  %v1751_v13 = vld [vmem:[#allocation2 + $0x10] sm:$0xff] }
 0x339   : > { %v1757_v58 = vadd.f32 %v1749_v39, %v1741_v19  ;;  %v1768_v20 = vadd.f32 %v2439_v11, %v1756_v22  ;;  %v1744_v30 = vld [vmem:[%s3643_s29 + $0x20] sm:$0xff]  ;;  %v1752_v15 = vld [vmem:[#allocation2 + $0x8] sm:$0xff]  ;;  %v1759_v43 = vadd.f32 %v1751_v13, %v1743_v27  ;;  %v1746_v8 = vld [vmem:[%s3643_s29 + $0x30] sm:$0xff] }
 0x33a   : > { %v1760_v28 = vadd.f32 %v1752_v15, %v1744_v30  ;;  %v1745_v40 = vld [vmem:[%s3643_s29 + $0x28] sm:$0xff]  ;;  %v1753_v23 = vld [vmem:[#allocation2 + $0x20] sm:$0xff]  ;;  %v1770_v44 = vadd.f32 %v2439_v11, %v1758_v59  ;;  %v1747_v55 = vld [vmem:[%s3643_s29 + $0x38] sm:$0xff] }
 0x33b   : > { %v1769_v31 = vadd.f32 %v2439_v11, %v1757_v58  ;;  %1776 = vst [vmem:[%s3644_s30] sm:$0xff] %v1768_v20  ;;  %v1761_v1 = vadd.f32 %v1753_v23, %v1745_v40  ;;  %v1754_v18 = vld [vmem:[#allocation2 + $0x28] sm:$0xff]  ;;  %v1771_v25 = vadd.f32 %v2439_v11, %v1759_v43 }
 0x33c   : > { %v1755_v3 = vld [vmem:[#allocation2 + $0x38] sm:$0xff]  ;;  %v1772_v45 = vadd.f32 %v2439_v11, %v1760_v28  ;;  %v1762_v7 = vadd.f32 %v1754_v18, %v1746_v8  ;;  %1778 = vst [vmem:[%s3645_s15 + $0x10] sm:$0xff] %v1770_v44 }
 0x33d   : > { %1777 = vst [vmem:[%s3645_s15 + $0x8] sm:$0xff] %v1769_v31  ;;  %v1763_v9 = vadd.f32 %v1755_v3, %v1747_v55  ;;  %v1773_v48 = vadd.f32 %v2439_v11, %v1761_v1 }
 0x33e   : > { %1779 = vst [vmem:[%s3645_s15 + $0x18] sm:$0xff] %v1771_v25  ;;  %v1774_v34 = vadd.f32 %v2439_v11, %v1762_v7 }
 0x33f   : > { %v1775_v63 = vadd.f32 %v2439_v11, %v1763_v9  ;;  %1780 = vst [vmem:[%s3645_s15 + $0x20] sm:$0xff] %v1772_v45 }
 0x340   : > { %1781 = vst [vmem:[%s3645_s15 + $0x28] sm:$0xff] %v1773_v48 }
 0x341   : > { %1782 = vst [vmem:[%s3645_s15 + $0x30] sm:$0xff] %v1774_v34 }
 0x342   : > { %1783 = vst [vmem:[%s3645_s15 + $0x38] sm:$0xff] %v1775_v63 }
 0x343 PF: > { %s25_s14 = sadd.s32 1, %s2584_s14   ;;  %s3646_s27 = sld [smem:[#allocation13_spill]] }
 0x344   : > { %p22_p3 = scmp.ge.s32.totalorder %s25_s14, 4   ;;  %s3647_s11 = sld [smem:[#allocation15_spill]] }
 0x345   : > { %s3648_s24 = sld [smem:[#allocation14_spill]]  ;;  %s3649_s30 = smov %s2568_s10 }
 0x346   : > { %s3651_s12 = smov %s2580_s13 }
 0x347   :  { %24 = sbr.rel (!%p22_p3) target bundleno = 13 (0xd), region = 176 }
 0x349   : > { %s3650_s10 = smov %s3646_s27 }
 0x34b   : > { %s3652_s13 = smov %s3648_s24 }
 0x34c   :  { %1806 = vsyncpa [#allocation6], 1 }
 0x34d   :  { %1808 = vsyncpa [#allocation6 + $0x1], 1 }
 0x34e   :  { %1809 = vsyncpa [#allocation8], 1 }
 0x34f   :  { %1811 = vsyncpa [#allocation8 + $0x1], 1 }

// kernel: dit_uncond_forward.14
= control target key start
LH: loop header
LB: loop body
LE: loop exit
PB: predicated region body
PF: predicated region fallthrough
CT: control target
= control target key end

     0   :  { %s2290_s24 = smov 0   ;;  %s2292_s25 = smov 0   ;;  %s3065_s0 = inlined_call_operand.vmem [shape: bf16[2,32,384], index: 0, kind: input, shape index: {}, may-alias: {0,1,2}]   ;;  %s3066_s1 = inlined_call_operand.vmem [shape: bf16[2,32,384], index: 1, kind: input, shape index: {}, may-alias: {0,1,2}]   ;;  %s3067_s2 = inlined_call_operand.vmem [shape: bf16[2,32,384], index: 2, kind: input, shape index: {}, may-alias: {0,1,2}]   ;;  %s3068_s3 = inlined_call_operand.vmem [shape: f32[32,32], index: 3, kind: input, shape index: {}, may-alias: {3,5}]   ;;  %s3069_s4 = inlined_call_operand.vmem [shape: f32[32,32], index: 4, kind: input, shape index: {}, may-alias: {4,6}]   ;;  %s3070_s5 = inlined_call_operand.vmem [shape: f32[32,32], index: 5, kind: input, shape index: {}, may-alias: {3,5}]   ;;  %s3071_s6 = inlined_call_operand.vmem [shape: f32[32,32], index: 6, kind: input, shape index: {}, may-alias: {4,6}]   ;;  %s3072_s7 = inlined_call_operand.vmem [shape: bf16[2,32,128], index: 7, kind: output, shape index: {}]  }
   0x1   :  { %s2294_s26 = smov 0   ;;  %s2296_s27 = smov 0  }
   0x2   :  { %s2298_s28 = smov 0  }
   0x3 LB: > { %s36_s29 = sadd.s32 1, %s2237_s27  ;;  %p54_p1 = scmp.ne.s32.totalorder %s2229_s25, %s2225_s24  ;;  %s2241_s28 = sphi %s2298_s28, %s17_s28   ;;  %s2237_s27 = sphi %s2296_s27, %s3077_s27   ;;  %s2233_s26 = sphi %s2294_s26, %s3076_s26   ;;  %s2229_s25 = sphi %s2292_s25, %s3075_s25   ;;  %s2225_s24 = sphi %s2290_s24, %s3074_s24  }
   0x4   : > { %p38_p0 = scmp.ge.s32.totalorder %s36_s29, 2  ;;  %p55_p2 = scmp.eq.s32.totalorder %s2241_s28, 0 }
   0x5   : > { %s47_s9 = sadd.s32 1, %s2229_s25  ;;  %p1943_p5 = scmp.ge.s32.totalorder %s2241_s28, 2 }
   0x6   : > { %s3079_s29 = smov (%p38_p0, %s36_s29), 0  ;;  %p2321_p3 = por %p55_p2, %p54_p1 }
   0x7   : > { %s40_s8 = ssub.s32 %s2237_s27, %s3079_s29  ;;  %288 = sbr.rel (%p1943_p5) target bundleno = 39 (0x27), region = 32 }
   0x8   : > { %p45_p4 = scmp.eq.s32.totalorder %s40_s8, 0 }
   0xa   : > { %s2329_s10 = scalar_select %p45_p4, %s2229_s25, %s47_s9  }
   0xc   : > { %291 = sbr.rel (!%p2321_p3) target bundleno = 21 (0x15), region = 36  ;;  %s293_s11 = sand.u32 (%p2321_p3), 1, %s2229_s25  }
   0xd   : > { %s2011_s12 = smul.u32 (%p2321_p3), 48, %s2237_s27  ;;  %s1944_s13 = sshll.u32 (%p2321_p3), %s293_s11, 4 }
   0xe   : > { %s295_s17 = scalar_lea.vmem (%p2321_p3), [#allocation2], %s1944_s13 }
   0xf   : > { %s302_s16 = scalar_lea.vmem (%p2321_p3), %s3065_s0, %s2011_s12 }
  0x10   : > { %v319_v0 = vld [vmem:[%s302_s16] sm:$0xf] (%p2321_p3)  ;;  %v321_v1 = vld [vmem:[%s302_s16 + $0xc] sm:$0xf] (%p2321_p3)  ;;  %v323_v2 = vld [vmem:[%s302_s16 + $0x18] sm:$0xf] (%p2321_p3) }
  0x11   : > { %320 = vst [vmem:[%s295_s17] sm:$0xf] %v319_v0  ;;  %v325_v3 = vld [vmem:[%s302_s16 + $0x24] sm:$0xf] }
  0x12   : > { %322 = vst [vmem:[%s295_s17 + $0x4] sm:$0xf] %v321_v1 }
  0x13   : > { %324 = vst [vmem:[%s295_s17 + $0x8] sm:$0xf] %v323_v2 }
  0x14   : > { %326 = vst [vmem:[%s295_s17 + $0xc] sm:$0xf] %v325_v3 }
  0x15 PF: > { %358 = sbr.rel (!%p2321_p3) target bundleno = 30 (0x1e), region = 77  ;;  %s360_s18 = sand.u32 (%p2321_p3), 1, %s2229_s25  }
  0x16   : > { %s1947_s19 = smul.u32 (%p2321_p3), 48, %s2237_s27  ;;  %s1946_s20 = sshll.u32 (%p2321_p3), %s360_s18, 4 }
  0x17   : > { %s362_s8 = scalar_lea.vmem (%p2321_p3), [#allocation3], %s1946_s20 }
  0x18   : > { %s1815_s23 = scalar_lea.vmem (%p2321_p3), %s3066_s1, %s1947_s19 }
  0x19   : > { %v1948_v4 = vld [vmem:[%s1815_s23 + $0x4] sm:$0xf] (%p2321_p3)  ;;  %v1949_v5 = vld [vmem:[%s1815_s23 + $0x10] sm:$0xf] (%p2321_p3)  ;;  %v1950_v6 = vld [vmem:[%s1815_s23 + $0x1c] sm:$0xf] (%p2321_p3) }
  0x1a   : > { %385 = vst [vmem:[%s362_s8] sm:$0xf] %v1948_v4  ;;  %v1951_v7 = vld [vmem:[%s1815_s23 + $0x28] sm:$0xf] }
  0x1b   : > { %387 = vst [vmem:[%s362_s8 + $0x4] sm:$0xf] %v1949_v5 }
  0x1c   : > { %389 = vst [vmem:[%s362_s8 + $0x8] sm:$0xf] %v1950_v6 }
  0x1d   : > { %391 = vst [vmem:[%s362_s8 + $0xc] sm:$0xf] %v1951_v7 }
  0x1e PF: > { %423 = sbr.rel (!%p2321_p3) target bundleno = 39 (0x27), region = 118  ;;  %s425_s9 = sand.u32 (%p2321_p3), 1, %s2229_s25  }
  0x1f   : > { %s1953_s11 = smul.u32 (%p2321_p3), 48, %s2237_s27  ;;  %s1952_s12 = sshll.u32 (%p2321_p3), %s425_s9, 4 }
  0x20   : > { %s427_s16 = scalar_lea.vmem (%p2321_p3), [#allocation4], %s1952_s12 }
  0x21   : > { %s1822_s15 = scalar_lea.vmem (%p2321_p3), %s3067_s2, %s1953_s11 }
  0x22   : > { %v1954_v8 = vld [vmem:[%s1822_s15 + $0x8] sm:$0xf] (%p2321_p3)  ;;  %v1955_v9 = vld [vmem:[%s1822_s15 + $0x14] sm:$0xf] (%p2321_p3)  ;;  %v1956_v10 = vld [vmem:[%s1822_s15 + $0x20] sm:$0xf] (%p2321_p3) }
  0x23   : > { %450 = vst [vmem:[%s427_s16] sm:$0xf] %v1954_v8  ;;  %v1957_v11 = vld [vmem:[%s1822_s15 + $0x2c] sm:$0xf] }
  0x24   : > { %452 = vst [vmem:[%s427_s16 + $0x4] sm:$0xf] %v1955_v9 }
  0x25   : > { %454 = vst [vmem:[%s427_s16 + $0x8] sm:$0xf] %v1956_v10 }
  0x26   : > { %456 = vst [vmem:[%s427_s16 + $0xc] sm:$0xf] %v1957_v11 }
  0x27 PF: > { %p1958_p6 = scmp.ge.s32.totalorder %s2241_s28, 1  ;;  %p487_p7 = scmp.lt.s32.totalorder %s2241_s28, 3 }
  0x29   : > { %p488_p8 = pnand %p1958_p6, %p487_p7 }
  0x2a   : > { %s494_s30 = sand.u32 (!%p488_p8), 1, %s2225_s24   ;;  %s2243_s24 = smov (!%p488_p8), 16  }
  0x2b   : > { %491 = sbr.rel (%p488_p8) target bundleno = 1597 (0x63d), region = 159  ;;  %s2356_s17 = sshll.u32 (!%p488_p8), %s494_s30, 4 }
  0x2c   : > { %s503_s18 = scalar_lea.vmem (!%p488_p8), [#allocation3], %s2356_s17  ;;  %s2244_s19 = smov (!%p488_p8), 112  }
  0x2d   : > { %s496_s20 = scalar_lea.vmem (!%p488_p8), [#allocation2], %s2356_s17  ;;  %s2245_s21 = smov (!%p488_p8), 80  }
  0x2e   : > { %s2246_s22 = smov (!%p488_p8), 48   ;;  %s2247_s9 = smov (!%p488_p8), 32  }
  0x2f   : > { %s2248_s30 = smov (!%p488_p8), 64   ;;  %p580_p9 = scmp.lt.s32.totalorder (!%p488_p8), %s2233_s26, 1 }
  0x30   : > { %v2010_v12 = vld [vmem:[%s503_s18 + $0x8] sm:$0xff]   ;;  %v2002_v13 = vld [vmem:[%s503_s18] sm:$0xff]   ;;  %vm672_vm0 = vcmask 130048   ;;  %vm741_vm1 = vcmask 261120   ;;  %s2249_s18 = smov 96   ;;  %vm870_vm3 = vcmask 257024  }
  0x31   : > { %v2359_v14 = vunpack.c.l.bf16 %v2010_v12  ;;  %v2361_v15 = vunpack.c.h.bf16 %v2010_v12  ;;  %v2363_v16 = vunpack.c.h.bf16 %v2002_v13  ;;  %v2365_v17 = vunpack.c.l.bf16 %v2002_v13  ;;  %v1994_v23 = vld [vmem:[%s496_s20] sm:$0xff]   ;;  %v2009_v29 = vld [vmem:[%s496_s20 + $0x8] sm:$0xff]   ;;  %s3081_s26 = smov (!%p580_p9, %s2233_s26), 1 }
  0x32   : > { %v2386_v25 = vunpack.c.h.bf16 %v1994_v23  ;;  %v2388_v26 = vunpack.c.l.bf16 %v1994_v23  ;;  %v2403_v31 = vunpack.c.h.bf16 %v2009_v29  ;;  %v2405_v32 = vunpack.c.l.bf16 %v2009_v29  ;;  %v2451_v36 = vld [vmem:[%s3070_s5 + $0x10] sm:$0xff]  ;;  %v2460_v37 = vld [vmem:[%s3070_s5 + $0x18] sm:$0xff]  ;;  %v2470_v38 = vld [vmem:[%s3070_s5] sm:$0xff] }
  0x33   : > { %v2059_v18 = vpack.i.bf16 %v2361_v15, %v2359_v14  ;;  %v691_v19 = vsub.f32 0.0, %v2359_v14  ;;  %v2372_v20 = vpack.i.bf16 %v2363_v16, %v2365_v17  ;;  %v692_v21 = vsub.f32 0.0, %v2361_v15  ;;  %v2482_v44 = vld [vmem:[%s3071_s6 + $0x10] sm:$0xff]  ;;  %v2488_v50 = vld [vmem:[%s3071_s6 + $0x18] sm:$0xff]  ;;  %v2499_v57 = vld [vmem:[%s3071_s6] sm:$0xff] }
  0x34   : > { %v689_v22 = vsub.f32 0.0, %v2365_v17  ;;  %v2382_v24 = vsub.f32 0.0, %v2363_v16  ;;  %v637_v27 = vsub.f32 0.0, %v2386_v25  ;;  %v2394_v28 = vsub.f32 0.0, %v2388_v26  ;;  %v2505_v59 = vld [vmem:[%s3068_s3 + $0x8] sm:$0xff]  ;;  %v2542_v23 = vld [vmem:[%s3069_s4] sm:$0xff] }
  0x35   : > { %2060 = vrot.lane.b32.xlu1 %v2059_v18, %s2243_s24  ;;  %701 = vrot.lane.b32.xlu0 %v691_v19, %s2244_s19  ;;  %v2398_v30 = vpack.i.bf16 %v2386_v25, %v2388_v26  ;;  %v2410_v33 = vsub.f32 0.0, %v2403_v31  ;;  %v2413_v34 = vsub.f32 0.0, %v2405_v32  ;;  %v2417_v35 = vpack.i.bf16 %v2403_v31, %v2405_v32  ;;  %v2513_v61 = vld [vmem:[%s3071_s6 + $0x8] sm:$0xff] }
  0x36   : > { %2065 = vrot.lane.b32.xlu2 %v2372_v20, %s2243_s24  ;;  %v687_v54 = vmul.f32 %v2359_v14, %v2451_v36  ;;  %v688_v55 = vmul.f32 %v2361_v15, %v2460_v37  ;;  %v2519_v63 = vld [vmem:[%s3070_s5 + $0x8] sm:$0xff]  ;;  %v685_v3 = vmul.f32 %v2365_v17, %v2470_v38  ;;  %vm1171_vm4 = vcmask 519424  }
  0x37   : > { %v686_v6 = vmul.f32 %v2363_v16, %v2519_v63  ;;  %vm1464_vm5 = vcmask 781824   ;;  %vm1757_vm6 = vcmask 1044224  }
  0x3d   : > { %703 = vrot.lane.b32.xlu0 %v692_v21, %s2244_s19  ;;  %697 = vrot.lane.b32.xlu1 %v689_v22, %s2244_s19 }
  0x3e   : > { %699 = vrot.lane.b32.xlu2 %v2382_v24, %s2244_s19 }
  0x45   : > { %646 = vrot.lane.b32.xlu1 %v637_v27, %s2244_s19  ;;  %644 = vrot.lane.b32.xlu0 %v2394_v28, %s2244_s19 }
  0x46   : > { %2070 = vrot.lane.b32.xlu2 %v2398_v30, %s2243_s24 }
  0x4d   : > { %650 = vrot.lane.b32.xlu1 %v2410_v33, %s2244_s19  ;;  %648 = vrot.lane.b32.xlu0 %v2413_v34, %s2244_s19 }
  0x4e   : > { %2075 = vrot.lane.b32.xlu2 %v2417_v35, %s2243_s24 }
  0x55   : > { %973 = vrot.lane.b32.xlu1 %v692_v21, %s2245_s21  ;;  %971 = vrot.lane.b32.xlu0 %v691_v19, %s2245_s21 }
  0x56   : > { %2080 = vrot.lane.b32.xlu2 %v2059_v18, %s2244_s19 }
  0x5d   : > { %967 = vrot.lane.b32.xlu0 %v689_v22, %s2245_s21  ;;  %969 = vrot.lane.b32.xlu1 %v2382_v24, %s2245_s21 }
  0x5e   : > { %2085 = vrot.lane.b32.xlu2 %v2372_v20, %s2244_s19 }
  0x65   : > { %895 = vrot.lane.b32.xlu0 %v2394_v28, %s2245_s21  ;;  %897 = vrot.lane.b32.xlu1 %v637_v27, %s2245_s21 }
  0x66   : > { %2090 = vrot.lane.b32.xlu2 %v2398_v30, %s2244_s19 }
  0x6d   : > { %899 = vrot.lane.b32.xlu0 %v2413_v34, %s2245_s21  ;;  %901 = vrot.lane.b32.xlu1 %v2410_v33, %s2245_s21 }
  0x6e   : > { %2095 = vrot.lane.b32.xlu2 %v2417_v35, %s2244_s19 }
  0x75   : > { %1264 = vrot.lane.b32.xlu0 %v691_v19, %s2246_s22  ;;  %1266 = vrot.lane.b32.xlu1 %v692_v21, %s2246_s22 }
  0x76   : > { %2100 = vrot.lane.b32.xlu2 %v2059_v18, %s2245_s21 }
  0x7d   : > { %1557 = vrot.lane.b32.xlu0 %v691_v19, %s2243_s24  ;;  %1559 = vrot.lane.b32.xlu1 %v692_v21, %s2243_s24  ;;  %v2531_v19 = vld [vmem:[%s3069_s4 + $0x8] sm:$0xff] }
  0x7e   : > { %2105 = vrot.lane.b32.xlu2 %v2059_v18, %s2246_s22 }
  0x85   : > { %955 = vrot.lane.b32.xlu0 %v2451_v36, %s2247_s9  ;;  %957 = vrot.lane.b32.xlu1 %v2460_v37, %s2247_s9 }
  0x8d   : > { %1260 = vrot.lane.b32.xlu0 %v689_v22, %s2246_s22  ;;  %951 = vrot.lane.b32.xlu1 %v2470_v38, %s2247_s9 }
  0x90   : > { %v2066_v39 = vpop.permute.xlu2 %2065 }
  0x91   : > { %v2068_v47 = vunpack.i.h.bf16 %v2066_v39  ;;  %v2067_v48 = vunpack.i.l.bf16 %v2066_v39  ;;  %v633_v39 = vmul.f32 %v2386_v25, %v2505_v59 }
  0x95   : > { %1262 = vrot.lane.b32.xlu0 %v2382_v24, %s2246_s22  ;;  %1194 = vrot.lane.b32.xlu1 %v637_v27, %s2246_s22 }
  0x98   : > { %v700_v40 = vpop.permute.xlu2 %699 }
  0x99   : > { %v726_v62 = vsel %vm672_vm0, %v700_v40, %v2068_v47 }
  0x9a   : > { %v730_v4 = vmul.f32 %v726_v62, %v2513_v61 }
  0x9c   : > { %v734_v18 = vadd.f32 %v730_v4, %v686_v6  ;;  %v2565_v4 = vld [vmem:[%s3069_s4 + $0x18] sm:$0xff]  ;;  %v2571_v6 = vld [vmem:[%s3068_s3 + $0x10] sm:$0xff] }
  0x9d   : > { %2110 = vrot.lane.b32.xlu0 %v2372_v20, %s2245_s21  ;;  %1487 = vrot.lane.b32.xlu1 %v637_v27, %s2243_s24 }
  0xa0   : > { %v2071_v46 = vpop.permute.xlu2 %2070 }
  0xa1   : > { %v2073_v7 = vunpack.i.h.bf16 %v2071_v46  ;;  %v2072_v8 = vunpack.i.l.bf16 %v2071_v46 }
  0xa5   : > { %1553 = vrot.lane.b32.xlu0 %v689_v22, %s2243_s24  ;;  %881 = vrot.lane.b32.xlu1 %v2505_v59, %s2247_s9  ;;  %v2537_v22 = vld [vmem:[%s3068_s3] sm:$0xff] }
  0xa7   : > { %v2061_v41 = vpop.permute.xlu1 %2060  ;;  %v702_v42 = vpop.permute.xlu0 %701 }
  0xa8   : > { %v2062_v43 = vunpack.i.l.bf16 %v2061_v41  ;;  %v2063_v49 = vunpack.i.h.bf16 %v2061_v41  ;;  %v2076_v9 = vpop.permute.xlu2 %2075  ;;  %v632_v41 = vmul.f32 %v2388_v26, %v2537_v22 }
  0xaa   : > { %v727_v45 = vsel %vm672_vm0, %v702_v42, %v2062_v43 }
  0xab   : > { %v731_v51 = vmul.f32 %v727_v45, %v2482_v44 }
  0xad   : > { %v735_v1 = vadd.f32 %v731_v51, %v687_v54  ;;  %v2078_v54 = vunpack.i.h.bf16 %v2076_v9  ;;  %2135 = vrot.lane.b32.xlu1 %v2417_v35, %s2246_s22 }
  0xaf   : > { %v704_v52 = vpop.permute.xlu0 %703  ;;  %v698_v53 = vpop.permute.xlu1 %697 }
  0xb0   : > { %v728_v56 = vsel %vm672_vm0, %v704_v52, %v2063_v49  ;;  %v725_v58 = vsel %vm672_vm0, %v698_v53, %v2067_v48  ;;  %v2081_v49 = vpop.permute.xlu2 %2080 }
  0xb1   : > { %v732_v60 = vmul.f32 %v728_v56, %v2488_v50  ;;  %v729_v0 = vmul.f32 %v725_v58, %v2499_v57  ;;  %v2083_v51 = vunpack.i.h.bf16 %v2081_v49  ;;  %v2082_v52 = vunpack.i.l.bf16 %v2081_v49 }
  0xb3   : > { %v736_v2 = vadd.f32 %v732_v60, %v688_v55  ;;  %v733_v13 = vadd.f32 %v729_v0, %v685_v3  ;;  %v2077_v55 = vunpack.i.l.bf16 %v2076_v9  ;;  %v2558_v0 = vld [vmem:[%s3068_s3 + $0x18] sm:$0xff] }
  0xb4   : > { %v635_v9 = vmul.f32 %v2403_v31, %v2558_v0 }
  0xb5   : > { %v740_v5 = vpack.c.bf16 %v736_v2, %v735_v1  ;;  %v739_v29 = vpack.c.bf16 %v734_v18, %v733_v13  ;;  %1250 = vrot.lane.b32.xlu1 %v2460_v37, %s2248_s30 }
  0xb7   : > { %v647_v10 = vpop.permute.xlu1 %646  ;;  %v645_v11 = vpop.permute.xlu0 %644  ;;  %v752_v12 = vsel %vm741_vm1, %v740_v5, 0  ;;  %v749_v46 = vsel %vm741_vm1, %v739_v29, 0 }
  0xb8   : > { %760 = vmatpush.bf16.xpose.msra.mxu0 %v752_v12  ;;  %v674_v21 = vsel %vm672_vm0, %v647_v10, %v2073_v7  ;;  %v673_v27 = vsel %vm672_vm0, %v645_v11, %v2072_v8  ;;  %v2086_v3 = vpop.permute.xlu2 %2085  ;;  %v2576_v7 = vld [vmem:[%s3069_s4 + $0x10] sm:$0xff]  ;;  %v634_v11 = vmul.f32 %v2405_v32, %v2571_v6 }
  0xb9   : > { %v678_v40 = vmul.f32 %v674_v21, %v2531_v19  ;;  %v677_v42 = vmul.f32 %v673_v27, %v2542_v23 }
  0xbb   : > { %v682_v47 = vadd.f32 %v678_v40, %v633_v39  ;;  %v681_v48 = vadd.f32 %v677_v42, %v632_v41  ;;  %v2087_v42 = vunpack.i.l.bf16 %v2086_v3 }
  0xbd   : > { %v737_v53 = vpack.c.bf16 %v682_v47, %v681_v48  ;;  %v2088_v48 = vunpack.i.h.bf16 %v2086_v3 }
  0xbf   : > { %v651_v43 = vpop.permute.xlu1 %650  ;;  %v649_v45 = vpop.permute.xlu0 %648 }
  0xc0   : > { %761 = vmatpush.bf16.xpose.msra.mxu0 %v749_v46  ;;  %v676_v5 = vsel %vm672_vm0, %v651_v43, %v2078_v54  ;;  %v675_v8 = vsel %vm672_vm0, %v649_v45, %v2077_v55  ;;  %v2091_v29 = vpop.permute.xlu2 %2090 }
  0xc1   : > { %v680_v10 = vmul.f32 %v676_v5, %v2565_v4  ;;  %v679_v12 = vmul.f32 %v675_v8, %v2576_v7 }
  0xc3   : > { %v684_v21 = vadd.f32 %v680_v10, %v635_v9  ;;  %v683_v27 = vadd.f32 %v679_v12, %v634_v11 }
  0xc5   : > { %v738_v39 = vpack.c.bf16 %v684_v21, %v683_v27  ;;  %v2092_v21 = vunpack.i.l.bf16 %v2091_v29 }
  0xc7   : > { %v974_v56 = vpop.permute.xlu1 %973  ;;  %v972_v58 = vpop.permute.xlu0 %971  ;;  %1964 = vmatmul.msk.bf16.vlgmr.msra.gmra.mxu0 %vm741_vm1, %v737_v53 }
  0xc8   : > { %v994_v60 = vsel %vm672_vm0, %v974_v56, %v2083_v51  ;;  %v993_v62 = vsel %vm672_vm0, %v972_v58, %v2082_v52  ;;  %v2594_v43 = vpop.permute.xlu2 %2095 }
  0xc9   : > { %v998_v1 = vmul.f32 %v994_v60, %v2488_v50  ;;  %v997_v2 = vmul.f32 %v993_v62, %v2482_v44  ;;  %v2093_v60 = vunpack.i.h.bf16 %v2091_v29 }
  0xcb   : > { %1009 = vrot.lane.b32.xlu0 %v998_v1, %s2247_s9  ;;  %1007 = vrot.lane.b32.xlu2 %v997_v2, %s2247_s9 }
  0xcf   : > { %v968_v13 = vpop.permute.xlu0 %967  ;;  %v970_v18 = vpop.permute.xlu1 %969 }
  0xd0   : > { %v2101_v51 = vpop.permute.xlu2 %2100  ;;  %v992_v52 = vsel %vm672_vm0, %v970_v18, %v2088_v48 }
  0xd1   : > { %v2103_v53 = vunpack.i.h.bf16 %v2101_v51  ;;  %v2102_v54 = vunpack.i.l.bf16 %v2101_v51  ;;  %v996_v55 = vmul.f32 %v992_v52, %v2513_v61 }
  0xd3   : > { %1555 = vrot.lane.b32.xlu0 %v2382_v24, %s2243_s24  ;;  %2115 = vrot.lane.b32.xlu2 %v2372_v20, %s2246_s22  ;;  %v991_v24 = vsel %vm672_vm0, %v968_v13, %v2087_v42  ;;  %v2098_v20 = vunpack.i.h.bf16 %v2594_v43 }
  0xd4   : > { %v995_v45 = vmul.f32 %v991_v24, %v2499_v57 }
  0xd7   : > { %1965 = vmatmul.msk.bf16.gmra.mxu0 %vm741_vm1, %v738_v39  ;;  %v896_v40 = vpop.permute.xlu0 %895  ;;  %v898_v41 = vpop.permute.xlu1 %897 }
  0xd8   : > { %v2106_v3 = vpop.permute.xlu2 %2105  ;;  %v920_v5 = vsel %vm672_vm0, %v898_v41, %v2093_v60 }
  0xd9   : > { %v2108_v8 = vunpack.i.h.bf16 %v2106_v3  ;;  %v924_v9 = vmul.f32 %v920_v5, %v2531_v19  ;;  %v2107_v24 = vunpack.i.l.bf16 %v2106_v3 }
  0xdb   : > { %953 = vrot.lane.b32.xlu0 %v2519_v63, %s2247_s9  ;;  %1192 = vrot.lane.b32.xlu2 %v2394_v28, %s2246_s22 }
  0xdf   : > { %v2605_v46 = vpop.permute.xlu0 %899  ;;  %v902_v47 = vpop.permute.xlu1 %901 }
  0xe0   : > { %v2608_v49 = vsel %vm672_vm0, %v902_v47, %v2098_v20 }
  0xe3   : > { %1485 = vrot.lane.b32.xlu2 %v2394_v28, %s2243_s24  ;;  %1003 = vrot.lane.b32.xlu0 %v995_v45, %s2247_s9 }
  0xe7   : > { %v1265_v56 = vpop.permute.xlu0 %1264  ;;  %v1267_v58 = vpop.permute.xlu1 %1266 }
  0xe8   : > { %v1287_v62 = vsel %vm672_vm0, %v1267_v58, %v2103_v53  ;;  %v1286_v1 = vsel %vm672_vm0, %v1265_v56, %v2102_v54 }
  0xe9   : > { %v1291_v2 = vmul.f32 %v1287_v62, %v2488_v50  ;;  %v1290_v28 = vmul.f32 %v1286_v1, %v2482_v44 }
  0xeb   : > { %879 = vrot.lane.b32.xlu2 %v2537_v22, %s2247_s9  ;;  %1005 = vrot.lane.b32.xlu0 %v996_v55, %s2247_s9 }
  0xec   : > { %1300 = vrot.lane.b32.xlu1 %v1290_v28, %s2248_s30 }
  0xef   : > { %v1558_v10 = vpop.permute.xlu0 %1557  ;;  %v1560_v11 = vpop.permute.xlu1 %1559 }
  0xf0   : > { %v1580_v12 = vsel %vm672_vm0, %v1560_v11, %v2108_v8 }
  0xf1   : > { %v1584_v13 = vmul.f32 %v1580_v12, %v2488_v50  ;;  %v919_v50 = vsel %vm672_vm0, %v896_v40, %v2092_v21 }
  0xf2   : > { %v923_v39 = vmul.f32 %v919_v50, %v2542_v23 }
  0xf3   : > { %933 = vrot.lane.b32.xlu2 %v924_v9, %s2247_s9  ;;  %2120 = vrot.lane.b32.xlu0 %v2398_v30, %s2245_s21 }
  0xf4   : > { %1595 = vrot.lane.b32.xlu1 %v1584_v13, %s2249_s18 }
  0xf7   : > { %v2631_v18 = vpop.permute.xlu0 %955  ;;  %v958_v60 = vpop.permute.xlu1 %957 }
  0xf8   : > { %v966_v5 = vmul.f32 %v2361_v15, %v958_v60  ;;  %v965_v9 = vmul.f32 %v2359_v14, %v2631_v18 }
  0xfb   : > { %1196 = vrot.lane.b32.xlu2 %v2413_v34, %s2246_s22  ;;  %2125 = vrot.lane.b32.xlu0 %v2398_v30, %s2246_s22 }
  0xfc   : > { %1246 = vrot.lane.b32.xlu1 %v2519_v63, %s2248_s30 }
  0xff   : > { %v1261_v27 = vpop.permute.xlu0 %1260  ;;  %v952_v3 = vpop.permute.xlu1 %951 }
 0x103   : > { %1198 = vrot.lane.b32.xlu2 %v2410_v33, %s2246_s22  ;;  %931 = vrot.lane.b32.xlu0 %v923_v39, %s2247_s9 }
 0x107   : > { %v1263_v29 = vpop.permute.xlu0 %1262  ;;  %v2701_v50 = vpop.permute.xlu1 %1194 }
 0x10b   : > { %2130 = vrot.lane.b32.xlu2 %v2417_v35, %s2245_s21  ;;  %885 = vrot.lane.b32.xlu0 %v2558_v0, %s2247_s9  ;;  %v1579_v35 = vsel %vm672_vm0, %v1558_v10, %v2107_v24 }
 0x10c   : > { %v1583_v20 = vmul.f32 %v1579_v35, %v2482_v44  ;;  %v926_v44 = vmul.f32 %v2608_v49, %v2565_v4 }
 0x10f   : > { %v2111_v30 = vpop.permute.xlu0 %2110 }
 0x110   : > { %v2112_v41 = vunpack.i.l.bf16 %v2111_v30 }
 0x112   : > { %v1284_v42 = vsel %vm672_vm0, %v1261_v27, %v2112_v41 }
 0x113   : > { %1489 = vrot.lane.b32.xlu2 %v2413_v34, %s2243_s24  ;;  %1248 = vrot.lane.b32.xlu0 %v2451_v36, %s2248_s30  ;;  %v1288_v40 = vmul.f32 %v1284_v42, %v2499_v57  ;;  %v2097_v34 = vunpack.i.l.bf16 %v2594_v43 }
 0x115   : > { %1296 = vrot.lane.b32.xlu1 %v1288_v40, %s2248_s30  ;;  %v921_v47 = vsel %vm672_vm0, %v2605_v46, %v2097_v34 }
 0x117   : > { %v1554_v48 = vpop.permute.xlu0 %1553 }
 0x11b   : > { %1491 = vrot.lane.b32.xlu2 %v2410_v33, %s2243_s24  ;;  %1543 = vrot.lane.b32.xlu0 %v2460_v37, %s2249_s18  ;;  %v925_v33 = vmul.f32 %v921_v47, %v2576_v7  ;;  %s510_s24 = scalar_lea.vmem [#allocation4], %s2356_s17  ;;  %s1990_s17 = sshll.u32 %s3081_s26, 4 }
 0x11c   : > { %s2908_s19 = scalar_lea.vmem %s3072_s7, %s1990_s17 }
 0x123   : > { %883 = vrot.lane.b32.xlu2 %v2571_v6, %s2247_s9  ;;  %1593 = vrot.lane.b32.xlu0 %v1583_v20, %s2249_s18 }
 0x125   : > { %v1008_v45 = vpop.permute.xlu2 %1007 }
 0x12b   : > { %935 = vrot.lane.b32.xlu2 %v925_v33, %s2247_s9  ;;  %1244 = vrot.lane.b32.xlu0 %v2470_v38, %s2248_s30 }
 0x12d   : > { %v2116_v37 = vpop.permute.xlu2 %2115 }
 0x12e   : > { %v2117_v43 = vunpack.i.l.bf16 %v2116_v37 }
 0x130   : > { %v1577_v46 = vsel %vm672_vm0, %v1554_v48, %v2117_v43 }
 0x131   : > { %v1581_v52 = vmul.f32 %v1577_v46, %v2499_v57 }
 0x133   : > { %937 = vrot.lane.b32.xlu2 %v926_v44, %s2247_s9  ;;  %1539 = vrot.lane.b32.xlu0 %v2519_v63, %s2249_s18  ;;  %v2118_v63 = vunpack.i.h.bf16 %v2116_v37 }
 0x135   : > { %v2676_v51 = vpop.permute.xlu2 %1192 }
 0x13b   : > { %1541 = vrot.lane.b32.xlu2 %v2451_v36, %s2249_s18  ;;  %1589 = vrot.lane.b32.xlu0 %v1581_v52, %s2249_s18  ;;  %v2113_v36 = vunpack.i.h.bf16 %v2111_v30  ;;  %v2706_v30 = vpop.permute.xlu1 %1487 }
 0x13d   : > { %v2683_v53 = vpop.permute.xlu2 %1485  ;;  %v1010_v49 = vpop.permute.xlu0 %1009  ;;  %v1285_v28 = vsel %vm672_vm0, %v1263_v29, %v2113_v36  ;;  %v621_v29 = vlaneseq }
 0x13e   : > { %v1289_v8 = vmul.f32 %v1285_v28, %v2513_v61  ;;  %v1018_v10 = vadd.f32 %v1010_v49, %v966_v5 }
 0x13f   : > { %v2708_v41 = vand.u32 127, %v621_v29 }
 0x141   : > { %vm623_vm2 = vcmp.lt.s32.totalorder %v2708_v41, 17 }
 0x143   : > { %1302 = vrot.lane.b32.xlu2 %v1291_v2, %s2248_s30  ;;  %1176 = vrot.lane.b32.xlu0 %v2537_v22, %s2248_s30  ;;  %v882_v47 = vpop.permute.xlu1 %881 }
 0x144   : > { %v763_v54 = vpop.f32.mrf.mxu0  ;;  %v892_v37 = vmul.f32 %v2386_v25, %v882_v47 }
 0x145   : > { %v880_v55 = vpop.permute.xlu2 %879  ;;  %v1556_v56 = vpop.permute.xlu0 %1555  ;;  %v773_v35 = vmul.f32 0.17677669, %v763_v54 }
 0x146   : > { %v1578_v58 = vsel %vm672_vm0, %v1556_v56, %v2118_v63  ;;  %v891_v48 = vmul.f32 %v2388_v26, %v880_v55 }
 0x147   : > { %v1582_v57 = vmul.f32 %v1578_v58, %v2513_v61  ;;  %v2723_v33 = vsel %vm623_vm2, %v773_v35, -1e+30 }
 0x148   : > { %v783_v44 = vsel %vm741_vm1, %v2723_v33, -inf }
 0x149   : > { %1591 = vrot.lane.b32.xlu1 %v1582_v57, %s2249_s18 }
 0x14b   : > { %1537 = vrot.lane.b32.xlu2 %v2470_v38, %s2249_s18  ;;  %v1017_v38 = vadd.f32 %v1008_v45, %v965_v9  ;;  %v2743_v57 = vpop.permute.xlu1 %2135 }
 0x14c   : > { %v765_v2 = vpop.f32.mrf.mxu0 }
 0x14d   : > { %v934_v62 = vpop.permute.xlu2 %933  ;;  %v2693_v1 = vpop.permute.xlu0 %953  ;;  %v1022_v21 = vpack.c.bf16 %v1018_v10, %v1017_v38  ;;  %v774_v55 = vmul.f32 0.17677669, %v765_v2 }
 0x14e   : > { %v2731_v49 = vadd.f32 %v934_v62, %v892_v37 }
 0x14f   : > { %v2747_v62 = vsel %vm623_vm2, %v774_v55, -1e+30 }
 0x150   : > { %v786_v28 = vsel %vm741_vm1, %v2747_v62, -inf }
 0x153   : > { %1298 = vrot.lane.b32.xlu2 %v1289_v8, %s2248_s30  ;;  %v1251_v5 = vpop.permute.xlu1 %1250 }
 0x154   : > { %v768_v13 = vpop.f32.mrf.mxu0 }
 0x155   : > { %v1197_v11 = vpop.permute.xlu2 %1196  ;;  %v1004_v12 = vpop.permute.xlu0 %1003  ;;  %v775_v43 = vmul.f32 0.17677669, %v768_v13  ;;  %v963_v13 = vmul.f32 %v2365_v17, %v952_v3 }
 0x157   : > { %v2737_v54 = vsel %vm623_vm2, %v775_v43, -1e+30  ;;  %v1015_v35 = vadd.f32 %v1004_v12, %v963_v13  ;;  %v2137_v43 = vunpack.i.l.bf16 %v2743_v57 }
 0x158   : > { %v789_v58 = vsel %vm741_vm1, %v2737_v54, -inf }
 0x15b   : > { %1033 = vrot.lane.b32.xlu2 %v1022_v21, %s2249_s18  ;;  %v964_v21 = vmul.f32 %v2363_v16, %v2693_v1 }
 0x15c   : > { %v770_v61 = vpop.f32.mrf.mxu0 }
 0x15d   : > { %v2704_v27 = vpop.permute.xlu2 %1198  ;;  %v1006_v39 = vpop.permute.xlu0 %1005  ;;  %v776_v18 = vmul.f32 0.17677669, %v770_v61 }
 0x15e   : > { %v1301_v10 = vpop.permute.xlu1 %1300 }
 0x15f   : > { %v2715_v24 = vsel %vm623_vm2, %v776_v18, -1e+30 }
 0x160   : > { %v792_v20 = vsel %vm741_vm1, %v2715_v24, -inf }
 0x165   : > { %v2131_v42 = vpop.permute.xlu2 %2130  ;;  %v2710_v40 = vpop.permute.xlu0 %2120 }
 0x166   : > { %v2132_v38 = vunpack.i.l.bf16 %v2131_v42  ;;  %v2133_v47 = vunpack.i.h.bf16 %v2131_v42  ;;  %v1596_v37 = vpop.permute.xlu1 %1595 }
 0x168   : > { %v1218_v61 = vsel %vm672_vm0, %v1197_v11, %v2132_v38  ;;  %v1219_v1 = vsel %vm672_vm0, %v2704_v27, %v2133_v47 }
 0x16d   : > { %v1490_v34 = vpop.permute.xlu2 %1489  ;;  %v2719_v45 = vpop.permute.xlu0 %2125  ;;  %793 = vmax.xlane.f32.xlu0 %v792_v20  ;;  %v1222_v20 = vmul.f32 %v1218_v61, %v2576_v7  ;;  %v1259_v61 = vmul.f32 %v2361_v15, %v1251_v5 }
 0x16e   : > { %v2128_v3 = vunpack.i.h.bf16 %v2719_v45  ;;  %v1511_v27 = vsel %vm672_vm0, %v1490_v34, %v2137_v43 }
 0x16f   : > { %v1515_v38 = vmul.f32 %v1511_v27, %v2576_v7  ;;  %v2123_v7 = vunpack.i.h.bf16 %v2710_v40 }
 0x170   : > { %v1510_v42 = vsel %vm672_vm0, %v2706_v30, %v2128_v3 }
 0x173   : > { %784 = vmax.xlane.f32.xlu1 %v783_v44 }
 0x175   : > { %v2729_v46 = vpop.permute.xlu2 %1491  ;;  %v932_v52 = vpop.permute.xlu0 %931 }
 0x176   : > { %v2733_v63 = vadd.f32 %v932_v52, %v891_v48  ;;  %v1514_v52 = vmul.f32 %v1510_v42, %v2531_v19 }
 0x178   : > { %v1019_v56 = vpack.c.bf16 %v2731_v49, %v2733_v63 }
 0x17b   : > { %790 = vmax.xlane.f32.xlu1 %v789_v58  ;;  %v1247_v58 = vpop.permute.xlu1 %1246 }
 0x17d   : > { %v884_v60 = vpop.permute.xlu2 %883  ;;  %v886_v36 = vpop.permute.xlu0 %885 }
 0x17e   : > { %v894_v48 = vmul.f32 %v2403_v31, %v886_v36  ;;  %v893_v55 = vmul.f32 %v2405_v32, %v884_v60  ;;  %v1257_v60 = vmul.f32 %v2363_v16, %v1247_v58 }
 0x181   : > { %1180 = vrot.lane.b32.xlu0 %v2571_v6, %s2248_s30 }
 0x184   : > { %787 = vmax.xlane.f32.xlu2 %v786_v28 }
 0x185   : > { %v936_v8 = vpop.permute.xlu2 %935  ;;  %v1249_v9 = vpop.permute.xlu0 %1248 }
 0x186   : > { %v1258_v34 = vmul.f32 %v2359_v14, %v1249_v9 }
 0x187   : > { %v1297_v5 = vpop.permute.xlu1 %1296 }
 0x189   : > { %1473 = vrot.lane.b32.xlu0 %v2571_v6, %s2249_s18  ;;  %v1016_v6 = vadd.f32 %v1006_v39, %v964_v21  ;;  %v1223_v39 = vmul.f32 %v1219_v1, %v2565_v4  ;;  %v945_v21 = vadd.f32 %v936_v8, %v893_v55 }
 0x18b   : > { %v1021_v44 = vpack.c.bf16 %v1016_v6, %v1015_v35 }
 0x18d   : > { %v938_v2 = vpop.permute.xlu2 %937  ;;  %v1544_v29 = vpop.permute.xlu0 %1543 }
 0x18e   : > { %v946_v28 = vadd.f32 %v938_v2, %v894_v48  ;;  %v1552_v47 = vmul.f32 %v2361_v15, %v1544_v29 }
 0x190   : > { %v1020_v35 = vpack.c.bf16 %v946_v28, %v945_v21  ;;  %v2846_v21 = vld [vmem:[%s510_s24 + $0x8] sm:$0xff] }
 0x191   : > { %1475 = vrot.lane.b32.xlu0 %v2558_v0, %s2249_s18  ;;  %853 = vmatpush.bf16.msra.mxu1 %v2846_v21 }
 0x194   : > { %1178 = vrot.lane.b32.xlu1 %v2505_v59, %s2248_s30 }
 0x195   : > { %v1542_v18 = vpop.permute.xlu2 %1541  ;;  %v1594_v11 = vpop.permute.xlu0 %1593 }
 0x199   : > { %1232 = vrot.lane.b32.xlu0 %v1222_v20, %s2248_s30 }
 0x19c   : > { %1031 = vrot.lane.b32.xlu2 %v1021_v44, %s2249_s18  ;;  %1469 = vrot.lane.b32.xlu1 %v2537_v22, %s2249_s18  ;;  %v2122_v22 = vunpack.i.l.bf16 %v2710_v40  ;;  %v1551_v44 = vmul.f32 %v2359_v14, %v1542_v18  ;;  %v1217_v40 = vsel %vm672_vm0, %v2701_v50, %v2123_v7 }
 0x19d   : > { %v1303_v12 = vpop.permute.xlu2 %1302  ;;  %v1245_v36 = vpop.permute.xlu0 %1244 }
 0x19e   : > { %v1216_v13 = vsel %vm672_vm0, %v2676_v51, %v2122_v22  ;;  %v1311_v6 = vadd.f32 %v1303_v12, %v1259_v61  ;;  %v1310_v51 = vadd.f32 %v1301_v10, %v1258_v34  ;;  %v1221_v10 = vmul.f32 %v1217_v40, %v2531_v19 }
 0x19f   : > { %v1220_v2 = vmul.f32 %v1216_v13, %v2542_v23  ;;  %v2127_v12 = vunpack.i.l.bf16 %v2719_v45  ;;  %v1603_v42 = vadd.f32 %v1594_v11, %v1551_v44  ;;  %v2138_v45 = vunpack.i.h.bf16 %v2743_v57 }
 0x1a0   : > { %v1315_v3 = vpack.c.bf16 %v1311_v6, %v1310_v51 }
 0x1a1   : > { %1234 = vrot.lane.b32.xlu0 %v1223_v39, %s2248_s30  ;;  %v1604_v39 = vadd.f32 %v1596_v37, %v1552_v47  ;;  %v1509_v50 = vsel %vm672_vm0, %v2683_v53, %v2127_v12  ;;  %v1512_v53 = vsel %vm672_vm0, %v2729_v46, %v2138_v45 }
 0x1a2   : > { %v1513_v18 = vmul.f32 %v1509_v50, %v2542_v23  ;;  %v1516_v37 = vmul.f32 %v1512_v53, %v2565_v4 }
 0x1a3   : > { %v1608_v29 = vpack.c.bf16 %v1604_v39, %v1603_v42 }
 0x1a4   : > { %1523 = vrot.lane.b32.xlu2 %v1514_v52, %s2249_s18  ;;  %1471 = vrot.lane.b32.xlu1 %v2505_v59, %s2249_s18  ;;  %v1256_v59 = vmul.f32 %v2365_v17, %v1245_v36 }
 0x1a5   : > { %v2784_v30 = vpop.permute.xlu2 %1537  ;;  %v1540_v19 = vpop.permute.xlu0 %1539 }
 0x1a6   : > { %v2798_v9 = vadd.f32 %v1297_v5, %v1256_v59  ;;  %v1550_v6 = vmul.f32 %v2363_v16, %v1540_v19  ;;  %v1549_v5 = vmul.f32 %v2365_v17, %v2784_v30 }
 0x1a9   : > { %1525 = vrot.lane.b32.xlu0 %v1515_v38, %s2249_s18 }
 0x1ac   : > { %1027 = vrot.lane.b32.xlu2 %v1020_v35, %s2249_s18  ;;  %1228 = vrot.lane.b32.xlu1 %v1220_v2, %s2248_s30 }
 0x1ad   : > { %v1299_v8 = vpop.permute.xlu2 %1298  ;;  %v1590_v11 = vpop.permute.xlu0 %1589 }
 0x1ae   : > { %v2800_v20 = vadd.f32 %v1299_v8, %v1257_v60  ;;  %v2852_v60 = vld [vmem:[%s510_s24] sm:$0xff]  ;;  %v1601_v47 = vadd.f32 %v1590_v11, %v1549_v5 }
 0x1af   : > { %854 = vmatpush.bf16.msra.mxu1 %v2852_v60 }
 0x1b0   : > { %v1314_v1 = vpack.c.bf16 %v2800_v20, %v2798_v9 }
 0x1b1   : > { %1326 = vrot.lane.b32.xlu0 %v1315_v3, %s2248_s30 }
 0x1b4   : > { %1230 = vrot.lane.b32.xlu1 %v1221_v10, %s2248_s30 }
 0x1b5   : > { %v1034_v15 = vpop.permute.xlu2 %1033  ;;  %v1177_v23 = vpop.permute.xlu0 %1176 }
 0x1b6   : > { %v1045_v14 = vsel %vm741_vm1, %v1034_v15, 0  ;;  %v1188_v42 = vmul.f32 %v2388_v26, %v1177_v23 }
 0x1b7   : > { %1053 = vmatpush.bf16.xpose.msra.mxu2 %v1045_v14 }
 0x1b9   : > { %1619 = vrot.lane.b32.xlu0 %v1608_v29, %s2247_s9 }
 0x1bb   : > { %v1592_v43 = vpop.permute.xlu1 %1591 }
 0x1bc   : > { %1521 = vrot.lane.b32.xlu1 %v1513_v18, %s2249_s18  ;;  %v1602_v8 = vadd.f32 %v1592_v43, %v1550_v6 }
 0x1be   : > { %v1607_v3 = vpack.c.bf16 %v1602_v8, %v1601_v47 }
 0x1c4   : > { %1025 = vrot.lane.b32.xlu1 %v1019_v56, %s2249_s18 }
 0x1cc   : > { %1182 = vrot.lane.b32.xlu1 %v2558_v0, %s2248_s30 }
 0x1d4   : > { %1527 = vrot.lane.b32.xlu1 %v1516_v37, %s2249_s18 }
 0x1e0   : > { %v794_v48 = vpop.xlane.xlu0 %793 }
 0x1e1   : > { %v798_v63 = vsub.f32 %v2715_v24, %v794_v48 }
 0x1e3   : > { %v805_v57 = vmul.f32 1.442695, %v798_v63 }
 0x1e6   : > { %v785_v52 = vpop.xlane.xlu1 %784 }
 0x1e7   : > { %v795_v49 = vsub.f32 %v2723_v33, %v785_v52 }
 0x1e9   : > { %v799_v56 = vmul.f32 1.442695, %v795_v49 }
 0x1eb   : > { %2139 = vpow2.f32 %v799_v56 }
 0x1ec   : > { %2141 = vpow2.f32 %v805_v57 }
 0x1ee   : > { %v791_v0 = vpop.xlane.xlu1 %790 }
 0x1ef   : > { %v797_v22 = vsub.f32 %v2737_v54, %v791_v0 }
 0x1f1   : > { %v2832_v46 = vpop.eup %2139  ;;  %v803_v4 = vmul.f32 1.442695, %v797_v22 }
 0x1f2   : > { %v807_v58 = vsel %vm741_vm1, %v2832_v46, 0.0  ;;  %v2836_v33 = vpop.eup %2141 }
 0x1f3   : > { %808 = vadd.xlane.f32.xlu2 %v807_v58  ;;  %v1181_v27 = vpop.permute.xlu0 %1180  ;;  %2143 = vpow2.f32 %v803_v4  ;;  %v816_v54 = vsel %vm741_vm1, %v2836_v33, 0.0 }
 0x1f7   : > { %v788_v24 = vpop.xlane.xlu2 %787 }
 0x1f8   : > { %v796_v55 = vsub.f32 %v2747_v62, %v788_v24 }
 0x1f9   : > { %v2839_v28 = vpop.eup %2143 }
 0x1fa   : > { %v801_v38 = vmul.f32 1.442695, %v796_v55  ;;  %v813_v13 = vsel %vm741_vm1, %v2839_v28, 0.0 }
 0x1fb   : > { %817 = vadd.xlane.f32.xlu2 %v816_v54  ;;  %v1474_v36 = vpop.permute.xlu0 %1473 }
 0x1fc   : > { %2145 = vpow2.f32 %v801_v38 }
 0x1fe   : > { %814 = vadd.xlane.f32.xlu1 %v813_v13 }
 0x1ff   : > { %v1032_v61 = vpop.permute.xlu2 %1031 }
 0x200   : > { %v1042_v34 = vsel %vm741_vm1, %v1032_v61, 0 }
 0x201   : > { %1054 = vmatpush.bf16.xpose.msra.mxu2 %v1042_v34 }
 0x202   : > { %v2850_v62 = vpop.eup %2145 }
 0x203   : > { %v1476_v35 = vpop.permute.xlu0 %1475  ;;  %v810_v59 = vsel %vm741_vm1, %v2850_v62, 0.0 }
 0x204   : > { %811 = vadd.xlane.f32.xlu0 %v810_v59  ;;  %v1484_v63 = vmul.f32 %v2403_v31, %v1476_v35 }
 0x206   : > { %v1179_v2 = vpop.permute.xlu1 %1178 }
 0x207   : > { %v1189_v17 = vmul.f32 %v2386_v25, %v1179_v2  ;;  %v1524_v18 = vpop.permute.xlu2 %1523 }
 0x20b   : > { %v1233_v7 = vpop.permute.xlu0 %1232 }
 0x20e   : > { %v1470_v51 = vpop.permute.xlu1 %1469 }
 0x20f   : > { %v1028_v56 = vpop.permute.xlu2 %1027 }
 0x213   : > { %v1235_v44 = vpop.permute.xlu0 %1234 }
 0x216   : > { %v1472_v40 = vpop.permute.xlu1 %1471 }
 0x217   : > { %1617 = vrot.lane.b32.xlu1 %v1607_v3, %s2247_s9  ;;  %v1482_v50 = vmul.f32 %v2386_v25, %v1472_v40  ;;  %v1190_v25 = vmul.f32 %v2405_v32, %v1181_v27 }
 0x218   : > { %1324 = vrot.lane.b32.xlu0 %v1314_v1, %s2248_s30  ;;  %v1481_v1 = vmul.f32 %v2388_v26, %v1470_v51  ;;  %v1483_v26 = vmul.f32 %v2405_v32, %v1474_v36 }
 0x219   : > { %v1534_v45 = vadd.f32 %v1524_v18, %v1482_v50  ;;  %v1242_v48 = vadd.f32 %v1233_v7, %v1190_v25 }
 0x21b   : > { %v1526_v10 = vpop.permute.xlu0 %1525 }
 0x21c   : > { %v1535_v0 = vadd.f32 %v1526_v10, %v1483_v26 }
 0x21e   : > { %v1229_v12 = vpop.permute.xlu1 %1228 }
 0x21f   : > { %v1240_v15 = vadd.f32 %v1229_v12, %v1188_v42 }
 0x223   : > { %v1327_v39 = vpop.permute.xlu0 %1326 }
 0x224   : > { %v1338_v16 = vsel %vm741_vm1, %v1327_v39, 0 }
 0x225   : > { %1346 = vmatpush.bf16.xpose.msrb.mxu1 %v1338_v16 }
 0x226   : > { %v1231_v30 = vpop.permute.xlu1 %1230 }
 0x227   : > { %v1241_v14 = vadd.f32 %v1231_v30, %v1189_v17 }
 0x229   : > { %v1312_v29 = vpack.c.bf16 %v1241_v14, %v1240_v15 }
 0x22b   : > { %1318 = vrot.lane.b32.xlu2 %v1312_v29, %s2248_s30  ;;  %v1620_v9 = vpop.permute.xlu0 %1619 }
 0x22c   : > { %v1631_v20 = vsel %vm741_vm1, %v1620_v9, 0 }
 0x22d   : > { %1639 = vmatpush.bf16.xpose.msrb.mxu0 %v1631_v20 }
 0x22e   : > { %v1522_v19 = vpop.permute.xlu1 %1521 }
 0x22f   : > { %v1533_v53 = vadd.f32 %v1522_v19, %v1481_v1 }
 0x231   : > { %v1605_v37 = vpack.c.bf16 %v1534_v45, %v1533_v53 }
 0x233   : > { %1611 = vrot.lane.b32.xlu0 %v1605_v37, %s2247_s9 }
 0x236   : > { %v1026_v11 = vpop.permute.xlu1 %1025 }
 0x237   : > { %1976 = vmatmul.msk.bf16.vlgmr.msra.gmra.mxu2 %vm741_vm1, %v1026_v11 }
 0x23e   : > { %v1183_v23 = vpop.permute.xlu1 %1182 }
 0x23f   : > { %v1191_v43 = vmul.f32 %v2403_v31, %v1183_v23 }
 0x241   : > { %v1243_v52 = vadd.f32 %v1235_v44, %v1191_v43 }
 0x243   : > { %v1313_v49 = vpack.c.bf16 %v1243_v52, %v1242_v48 }
 0x245   : > { %1320 = vrot.lane.b32.xlu1 %v1313_v49, %s2248_s30 }
 0x246   : > { %v1528_v57 = vpop.permute.xlu1 %1527 }
 0x247   : > { %v1536_v22 = vadd.f32 %v1528_v57, %v1484_v63  ;;  %1977 = vmatmul.msk.bf16.gmra.mxu2 %vm741_vm1, %v1028_v56 }
 0x249   : > { %v1606_v4 = vpack.c.bf16 %v1536_v22, %v1535_v0 }
 0x24b   : > { %1613 = vrot.lane.b32.xlu2 %v1606_v4, %s2247_s9 }
 0x24d   : > { %1415 = vrot.lane.b32.xlu1 %v2846_v21, %s2248_s30 }
 0x253   : > { %1122 = vrot.lane.b32.xlu2 %v2846_v21, %s2249_s18 }
 0x266   : > { %v809_v32 = vpop.xlane.xlu2 %808 }
 0x267   : > { %2147 = vrcp.f32 %v809_v32 }
 0x26d   : > { %v2148_v58 = vpop.eup %2147 }
 0x26e   : > { %v823_v24 = vmul.f32 %v2148_v58, %v2832_v46  ;;  %v818_v36 = vpop.xlane.xlu2 %817 }
 0x271   : > { %v815_v38 = vpop.xlane.xlu1 %814 }
 0x277   : > { %v812_v31 = vpop.xlane.xlu0 %811 }
 0x278   : > { %2149 = vrcp.f32 %v812_v31 }
 0x279   : > { %2151 = vrcp.f32 %v815_v38 }
 0x27a   : > { %2153 = vrcp.f32 %v818_v36 }
 0x27e   : > { %v2150_v27 = vpop.eup %2149 }
 0x27f   : > { %v824_v55 = vmul.f32 %v2150_v27, %v2850_v62  ;;  %v2152_v61 = vpop.eup %2151 }
 0x280   : > { %v2154_v2 = vpop.eup %2153  ;;  %v825_v46 = vmul.f32 %v2152_v61, %v2839_v28 }
 0x281   : > { %v827_v54 = vpack.c.bf16 %v824_v55, %v823_v24  ;;  %v826_v62 = vmul.f32 %v2154_v2, %v2836_v33 }
 0x283   : > { %1974 = vmatmul.msk.bf16.vlgmr.msra.gmra.mxu1 %vm741_vm1, %v827_v54  ;;  %v828_v7 = vpack.c.bf16 %v826_v62, %v825_v46 }
 0x285   : > { %v1319_v6 = vpop.permute.xlu2 %1318 }
 0x289   : > { %v1618_v13 = vpop.permute.xlu1 %1617 }
 0x28a   : > { %v1325_v34 = vpop.permute.xlu0 %1324  ;;  %v1628_v35 = vsel %vm741_vm1, %v1618_v13, 0 }
 0x28b   : > { %1640 = vmatpush.bf16.xpose.msrb.mxu0 %v1628_v35  ;;  %v1335_v59 = vsel %vm741_vm1, %v1325_v34, 0 }
 0x28c   : > { %1347 = vmatpush.bf16.xpose.msrb.mxu1 %v1335_v59 }
 0x293   : > { %1975 = vmatmul.msk.bf16.gmra.mxu1 %vm741_vm1, %v828_v7 }
 0x2a3   : > { %1980 = vmatmul.msk.bf16.vlgmr.msrb.gmra.mxu1 %vm741_vm1, %v1319_v6 }
 0x2a5   : > { %v1612_v51 = vpop.permute.xlu0 %1611  ;;  %v1614_v5 = vpop.permute.xlu2 %1613 }
 0x2a6   : > { %1984 = vmatmul.msk.bf16.vlgmr.msrb.gmra.mxu0 %vm741_vm1, %v1612_v51 }
 0x2ad   : > { %v1123_v15 = vpop.permute.xlu2 %1122 }
 0x2ae   : > { %1138 = vmatpush.bf16.msra.mxu3 %v1123_v15 }
 0x2b6   : > { %1985 = vmatmul.msk.bf16.gmra.mxu0 %vm741_vm1, %v1614_v5 }
 0x2b7   : > { %v1321_v8 = vpop.permute.xlu1 %1320 }
 0x2b8   : > { %1981 = vmatmul.msk.bf16.gmra.mxu1 %vm741_vm1, %v1321_v8 }
 0x2ba   : > { %v1056_v28 = vpop.f32.mrf.mxu2 }
 0x2bb   : > { %v1066_v1 = vmul.f32 0.17677669, %v1056_v28 }
 0x2bd   : > { %v1070_v45 = vsel %vm623_vm2, %v1066_v1, -1e+30 }
 0x2be   : > { %v1074_v37 = vsel %vm741_vm1, %v1070_v45, -inf }
 0x2bf   : > { %v1416_v27 = vpop.permute.xlu1 %1415 }
 0x2c2   : > { %v1058_v47 = vpop.f32.mrf.mxu2 }
 0x2c3   : > { %v1067_v25 = vmul.f32 0.17677669, %v1058_v47 }
 0x2c5   : > { %v1071_v43 = vsel %vm623_vm2, %v1067_v25, -1e+30 }
 0x2c6   : > { %v1077_v48 = vsel %vm741_vm1, %v1071_v43, -inf }
 0x2ca   : > { %v1061_v33 = vpop.f32.mrf.mxu2 }
 0x2cb   : > { %v1068_v44 = vmul.f32 0.17677669, %v1061_v33 }
 0x2cd   : > { %v2899_v3 = vsel %vm623_vm2, %v1068_v44, -1e+30 }
 0x2ce   : > { %v1080_v40 = vsel %vm741_vm1, %v2899_v3, -inf }
 0x2cf   : > { %1081 = vmax.xlane.f32.xlu2 %v1080_v40 }
 0x2d2   : > { %v1063_v22 = vpop.f32.mrf.mxu2 }
 0x2d3   : > { %v1069_v4 = vmul.f32 0.17677669, %v1063_v22 }
 0x2d5   : > { %v1073_v32 = vsel %vm623_vm2, %v1069_v4, -1e+30 }
 0x2d6   : > { %v1083_v31 = vsel %vm741_vm1, %v1073_v32, -inf }
 0x300   : > { %v856_v10 = vpop.f32.mrf.mxu1 }
 0x301   : > { %v866_v12 = vpack.c.bf16 %v856_v10, %v856_v10 }
 0x303   : > { %871 = vst.msk [vmem:[%s2908_s19] sm:$0xf] %vm870_vm3, %v866_v12 }
 0x308   : > { %v858_v39 = vpop.f32.mrf.mxu1 }
 0x309   : > { %v867_v16 = vpack.c.bf16 %v858_v39, %v858_v39 }
 0x30b   : > { %872 = vst.msk [vmem:[%s2908_s19 + $0x4] sm:$0xf] %vm870_vm3, %v867_v16 }
 0x310   : > { %v861_v42 = vpop.f32.mrf.mxu1 }
 0x311   : > { %v868_v17 = vpack.c.bf16 %v861_v42, %v861_v42 }
 0x313   : > { %873 = vst.msk [vmem:[%s2908_s19 + $0x8] sm:$0xf] %vm870_vm3, %v868_v17 }
 0x318   : > { %v863_v30 = vpop.f32.mrf.mxu1 }
 0x319   : > { %v869_v14 = vpack.c.bf16 %v863_v30, %v863_v30 }
 0x31b   : > { %874 = vst.msk [vmem:[%s2908_s19 + $0xc] sm:$0xf] %vm870_vm3, %v869_v14 }
 0x320   : > { %v2943_v58 = vpop.f32.mrf.mxu1 }
 0x323   : > { %v1642_v29 = vpop.f32.mrf.mxu0 }
 0x324   : > { %v1652_v50 = vmul.f32 0.17677669, %v1642_v29 }
 0x326   : > { %v1656_v9 = vsel %vm623_vm2, %v1652_v50, -1e+30 }
 0x327   : > { %v1660_v20 = vsel %vm741_vm1, %v1656_v9, -inf }
 0x328   : > { %1661 = vmax.xlane.f32.xlu0 %v1660_v20  ;;  %v1351_v24 = vpop.f32.mrf.mxu1 }
 0x329   : > { %v1360_v7 = vmul.f32 0.17677669, %v1351_v24 }
 0x32b   : > { %v1644_v18 = vpop.f32.mrf.mxu0  ;;  %v1364_v8 = vsel %vm623_vm2, %v1360_v7, -1e+30 }
 0x32c   : > { %v1653_v19 = vmul.f32 0.17677669, %v1644_v18  ;;  %v1370_v12 = vsel %vm741_vm1, %v1364_v8, -inf }
 0x32e   : > { %v1657_v53 = vsel %vm623_vm2, %v1653_v19, -1e+30 }
 0x32f   : > { %v1663_v11 = vsel %vm741_vm1, %v1657_v53, -inf }
 0x330   : > { %1075 = vmax.xlane.f32.xlu0 %v1074_v37  ;;  %1664 = vmax.xlane.f32.xlu1 %v1663_v11 }
 0x333   : > { %v1647_v23 = vpop.f32.mrf.mxu0 }
 0x334   : > { %v1654_v52 = vmul.f32 0.17677669, %v1647_v23 }
 0x335   : > { %v1354_v36 = vpop.f32.mrf.mxu1 }
 0x336   : > { %v2928_v63 = vsel %vm623_vm2, %v1654_v52, -1e+30  ;;  %v1361_v42 = vmul.f32 0.17677669, %v1354_v36 }
 0x337   : > { %v1666_v57 = vsel %vm741_vm1, %v2928_v63, -inf }
 0x338   : > { %1078 = vmax.xlane.f32.xlu1 %v1077_v48 }
 0x33b   : > { %v1649_v26 = vpop.f32.mrf.mxu0 }
 0x33c   : > { %v1655_v49 = vmul.f32 0.17677669, %v1649_v26 }
 0x33d   : > { %v1356_v28 = vpop.f32.mrf.mxu1 }
 0x33e   : > { %v2932_v56 = vsel %vm623_vm2, %v1655_v49, -1e+30  ;;  %v1362_v39 = vmul.f32 0.17677669, %v1356_v28 }
 0x33f   : > { %v1669_v0 = vsel %vm741_vm1, %v2932_v56, -inf }
 0x340   : > { %1667 = vmax.xlane.f32.xlu1 %v1666_v57  ;;  %1670 = vmax.xlane.f32.xlu2 %v1669_v0  ;;  %v2960_v30 = vsel %vm623_vm2, %v1362_v39, -1e+30 }
 0x341   : > { %v1376_v29 = vsel %vm741_vm1, %v2960_v30, -inf }
 0x342   : > { %v1082_v51 = vpop.xlane.xlu2 %1081 }
 0x343   : > { %v1088_v40 = vsub.f32 %v2899_v3, %v1082_v51  ;;  %v2964_v3 = vsel %vm623_vm2, %v1361_v42, -1e+30 }
 0x344   : > { %1120 = vrot.lane.b32.xlu0 %v2852_v60, %s2249_s18 }
 0x345   : > { %v1094_v17 = vmul.f32 1.442695, %v1088_v40 }
 0x36e   : > { %1084 = vmax.xlane.f32.xlu0 %v1083_v31 }
 0x39b   : > { %v1662_v55 = vpop.xlane.xlu0 %1661 }
 0x39c   : > { %v1672_v38 = vsub.f32 %v1656_v9, %v1662_v55  ;;  %v1373_v9 = vsel %vm741_vm1, %v2964_v3, -inf }
 0x39e   : > { %v1676_v54 = vmul.f32 1.442695, %v1672_v38 }
 0x3a0   : > { %2155 = vpow2.f32 %v1676_v54 }
 0x3a3   : > { %v1076_v13 = vpop.xlane.xlu0 %1075  ;;  %v1665_v61 = vpop.xlane.xlu1 %1664 }
 0x3a4   : > { %v1086_v34 = vsub.f32 %v1070_v45, %v1076_v13  ;;  %v1673_v35 = vsub.f32 %v1657_v53, %v1665_v61 }
 0x3a6   : > { %v2945_v59 = vpop.eup %2155  ;;  %v1090_v2 = vmul.f32 1.442695, %v1086_v34  ;;  %v1678_v46 = vmul.f32 1.442695, %v1673_v35 }
 0x3a7   : > { %v1684_v62 = vsel %vm741_vm1, %v2945_v59, 0.0 }
 0x3a8   : > { %2157 = vpow2.f32 %v1090_v2  ;;  %1685 = vadd.xlane.f32.xlu2 %v1684_v62 }
 0x3a9   : > { %2159 = vpow2.f32 %v1678_v46 }
 0x3ab   : > { %v1079_v6 = vpop.xlane.xlu1 %1078 }
 0x3ac   : > { %v1087_v5 = vsub.f32 %v1071_v43, %v1079_v6  ;;  %v1359_v43 = vmul.f32 0.17677669, %v2943_v58 }
 0x3ae   : > { %v2951_v47 = vpop.eup %2157  ;;  %v1092_v33 = vmul.f32 1.442695, %v1087_v5  ;;  %v1363_v48 = vsel %vm623_vm2, %v1359_v43, -1e+30 }
 0x3af   : > { %v2160_v44 = vpop.eup %2159  ;;  %v1098_v10 = vsel %vm741_vm1, %v2951_v47, 0.0  ;;  %v1367_v52 = vsel %vm741_vm1, %v1363_v48, -inf }
 0x3b0   : > { %2161 = vpow2.f32 %v1092_v33  ;;  %1099 = vadd.xlane.f32.xlu0 %v1098_v10  ;;  %v1687_v16 = vsel %vm741_vm1, %v2160_v44, 0.0  ;;  %1371 = vmax.xlane.f32.xlu2 %v1370_v12 }
 0x3b1   : > { %1688 = vadd.xlane.f32.xlu1 %v1687_v16  ;;  %2163 = vpow2.f32 %v1094_v17 }
 0x3b3   : > { %v1668_v53 = vpop.xlane.xlu1 %1667 }
 0x3b4   : > { %v1674_v37 = vsub.f32 %v2928_v63, %v1668_v53  ;;  %v1671_v63 = vpop.xlane.xlu2 %1670 }
 0x3b6   : > { %v2162_v15 = vpop.eup %2161  ;;  %v1121_v14 = vpop.permute.xlu0 %1120  ;;  %v1680_v25 = vmul.f32 1.442695, %v1674_v37 }
 0x3b7   : > { %1139 = vmatpush.bf16.msra.mxu3 %v1121_v14  ;;  %v1101_v50 = vsel %vm741_vm1, %v2162_v15, 0.0  ;;  %v2164_v20 = vpop.eup %2163 }
 0x3b8   : > { %1377 = vmax.xlane.f32.xlu0 %v1376_v29  ;;  %1374 = vmax.xlane.f32.xlu2 %v1373_v9  ;;  %v1104_v1 = vsel %vm741_vm1, %v2164_v20, 0.0 }
 0x3b9   : > { %1102 = vadd.xlane.f32.xlu1 %v1101_v50 }
 0x3bb   : > { %1431 = vmatpush.bf16.msrb.mxu3 %v1416_v27 }
 0x3c1   : > { %1105 = vadd.xlane.f32.xlu1 %v1104_v1 }
 0x3d0   : > { %1706 = vrot.lane.b32.xlu2 %v2852_v60, %s2247_s9 }
 0x3e1   : > { %v1085_v18 = vpop.xlane.xlu0 %1084 }
 0x3e2   : > { %v1089_v19 = vsub.f32 %v1073_v32, %v1085_v18 }
 0x3e4   : > { %v1096_v45 = vmul.f32 1.442695, %v1089_v19 }
 0x3e6   : > { %2165 = vpow2.f32 %v1096_v45 }
 0x3e7   : > { %2167 = vpow2.f32 %v1680_v25 }
 0x3ec   : > { %v2166_v11 = vpop.eup %2165 }
 0x3ed   : > { %v1107_v23 = vsel %vm741_vm1, %v2166_v11, 0.0  ;;  %v2980_v26 = vpop.eup %2167 }
 0x3ee   : > { %1108 = vadd.xlane.f32.xlu1 %v1107_v23  ;;  %v1690_v49 = vsel %vm741_vm1, %v2980_v26, 0.0 }
 0x3f6   : > { %1368 = vmax.xlane.f32.xlu1 %v1367_v52 }
 0x3f9   : > { %1691 = vadd.xlane.f32.xlu2 %v1690_v49 }
 0x41b   : > { %v1686_v57 = vpop.xlane.xlu2 %1685 }
 0x41c   : > { %2169 = vrcp.f32 %v1686_v57 }
 0x422   : > { %v2170_v41 = vpop.eup %2169 }
 0x423   : > { %v1372_v0 = vpop.xlane.xlu2 %1371  ;;  %v1100_v31 = vpop.xlane.xlu0 %1099  ;;  %v2985_v27 = vmul.f32 %v2170_v41, %v2945_v59 }
 0x424   : > { %v1689_v22 = vpop.xlane.xlu1 %1688  ;;  %v1380_v4 = vsub.f32 %v1364_v8, %v1372_v0  ;;  %v1675_v8 = vsub.f32 %v2932_v56, %v1671_v63 }
 0x425   : > { %2171 = vrcp.f32 %v1689_v22 }
 0x426   : > { %v1385_v32 = vmul.f32 1.442695, %v1380_v4 }
 0x428   : > { %2173 = vpow2.f32 %v1385_v32 }
 0x429   : > { %2175 = vrcp.f32 %v1100_v31 }
 0x42b   : > { %v2172_v58 = vpop.eup %2171  ;;  %v1375_v46 = vpop.xlane.xlu2 %1374 }
 0x42c   : > { %v2987_v24 = vmul.f32 %v2172_v58, %v2160_v44  ;;  %v1103_v55 = vpop.xlane.xlu1 %1102  ;;  %v1381_v62 = vsub.f32 %v2964_v3, %v1375_v46  ;;  %v1378_v3 = vpop.xlane.xlu0 %1377 }
 0x42d   : > { %2177 = vrcp.f32 %v1103_v55 }
 0x42e   : > { %v2174_v38 = vpop.eup %2173  ;;  %v1704_v54 = vpack.c.bf16 %v2987_v24, %v2985_v27  ;;  %v1387_v6 = vmul.f32 1.442695, %v1381_v62 }
 0x42f   : > { %v1394_v36 = vsel %vm741_vm1, %v2174_v38, 0.0  ;;  %v2176_v13 = vpop.eup %2175 }
 0x430   : > { %1395 = vadd.xlane.f32.xlu1 %v1394_v36  ;;  %v1114_v34 = vmul.f32 %v2176_v13, %v2951_v47 }
 0x433   : > { %v2178_v61 = vpop.eup %2177 }
 0x434   : > { %v1115_v35 = vmul.f32 %v2178_v61, %v2162_v15  ;;  %v1106_v59 = vpop.xlane.xlu1 %1105  ;;  %v1382_v15 = vsub.f32 %v2960_v30, %v1378_v3 }
 0x435   : > { %2179 = vrcp.f32 %v1106_v59 }
 0x436   : > { %v1118_v2 = vpack.c.bf16 %v1115_v35, %v1114_v34  ;;  %v1389_v14 = vmul.f32 1.442695, %v1382_v15 }
 0x438   : > { %1978 = vmatmul.msk.bf16.vlgmr.msra.gmra.mxu3 %vm741_vm1, %v1118_v2 }
 0x43b   : > { %v2180_v51 = vpop.eup %2179 }
 0x43c   : > { %v1116_v47 = vmul.f32 %v2180_v51, %v2164_v20 }
 0x449   : > { %1413 = vrot.lane.b32.xlu1 %v2852_v60, %s2248_s30  ;;  %v1682_v60 = vmul.f32 1.442695, %v1675_v8 }
 0x461   : > { %v1109_v7 = vpop.xlane.xlu1 %1108 }
 0x462   : > { %2181 = vrcp.f32 %v1109_v7 }
 0x463   : > { %2183 = vpow2.f32 %v1387_v6 }
 0x468   : > { %v2182_v5 = vpop.eup %2181 }
 0x469   : > { %v1369_v28 = vpop.xlane.xlu1 %1368  ;;  %v1117_v33 = vmul.f32 %v2182_v5, %v2166_v11  ;;  %v2184_v12 = vpop.eup %2183 }
 0x46a   : > { %v1379_v44 = vsub.f32 %v1363_v48, %v1369_v28  ;;  %v1397_v39 = vsel %vm741_vm1, %v2184_v12, 0.0  ;;  %v1707_v48 = vpop.permute.xlu2 %1706 }
 0x46b   : > { %v1119_v40 = vpack.c.bf16 %v1117_v33, %v1116_v47 }
 0x46c   : > { %v1383_v10 = vmul.f32 1.442695, %v1379_v44 }
 0x46d   : > { %1979 = vmatmul.msk.bf16.gmra.mxu3 %vm741_vm1, %v1119_v40 }
 0x46e   : > { %2185 = vpow2.f32 %v1383_v10 }
 0x46f   : > { %2187 = vpow2.f32 %v1682_v60 }
 0x470   : > { %2189 = vpow2.f32 %v1389_v14 }
 0x472   : > { %v1692_v63 = vpop.xlane.xlu2 %1691 }
 0x473   : > { %1398 = vadd.xlane.f32.xlu1 %v1397_v39 }
 0x474   : > { %v2186_v16 = vpop.eup %2185 }
 0x475   : > { %v1391_v42 = vsel %vm741_vm1, %v2186_v16, 0.0  ;;  %v2188_v56 = vpop.eup %2187 }
 0x476   : > { %1392 = vadd.xlane.f32.xlu0 %v1391_v42  ;;  %v1693_v17 = vsel %vm741_vm1, %v2188_v56, 0.0  ;;  %v2190_v29 = vpop.eup %2189 }
 0x477   : > { %v1400_v9 = vsel %vm741_vm1, %v2190_v29, 0.0 }
 0x47b   : > { %1694 = vadd.xlane.f32.xlu1 %v1693_v17 }
 0x48a   : > { %1708 = vrot.lane.b32.xlu0 %v2846_v21, %s2247_s9 }
 0x4a3   : > { %v1396_v50 = vpop.xlane.xlu1 %1395 }
 0x4a4   : > { %2191 = vrcp.f32 %v1396_v50 }
 0x4aa   : > { %v2192_v21 = vpop.eup %2191 }
 0x4ab   : > { %v1408_v37 = vmul.f32 %v2192_v21, %v2174_v38 }
 0x4b4   : > { %1401 = vadd.xlane.f32.xlu0 %v1400_v9 }
 0x4bb   : > { %v1141_v20 = vpop.f32.mrf.mxu3  ;;  %v1414_v1 = vpop.permute.xlu1 %1413 }
 0x4bc   : > { %v1151_v18 = vpack.c.bf16 %v1141_v20, %v1141_v20  ;;  %1432 = vmatpush.bf16.msrb.mxu3 %v1414_v1 }
 0x4be   : > { %1159 = vrot.lane.b32.xlu1 %v1151_v18, %s2247_s9 }
 0x4c3   : > { %v1143_v19 = vpop.f32.mrf.mxu3 }
 0x4c4   : > { %v1152_v35 = vpack.c.bf16 %v1143_v19, %v1143_v19 }
 0x4e6   : > { %v1399_v43 = vpop.xlane.xlu1 %1398 }
 0x4e9   : > { %v1393_v45 = vpop.xlane.xlu0 %1392 }
 0x4ea   : > { %2193 = vrcp.f32 %v1393_v45 }
 0x4ee   : > { %v1695_v49 = vpop.xlane.xlu1 %1694 }
 0x4ef   : > { %2195 = vrcp.f32 %v1695_v49 }
 0x4f0   : > { %v2194_v53 = vpop.eup %2193  ;;  %v1146_v30 = vpop.f32.mrf.mxu3  ;;  %2197 = vrcp.f32 %v1692_v63 }
 0x4f1   : > { %v1407_v11 = vmul.f32 %v2194_v53, %v2186_v16  ;;  %v1153_v25 = vpack.c.bf16 %v1146_v30, %v1146_v30  ;;  %2199 = vrcp.f32 %v1399_v43 }
 0x4f3   : > { %1163 = vrot.lane.b32.xlu2 %v1153_v25, %s2247_s9  ;;  %v1411_v23 = vpack.c.bf16 %v1408_v37, %v1407_v11 }
 0x4f5   : > { %1982 = vmatmul.msk.bf16.vlgmr.msrb.gmra.mxu3 %vm741_vm1, %v1411_v23  ;;  %v2196_v57 = vpop.eup %2195 }
 0x4f6   : > { %v2198_v0 = vpop.eup %2197  ;;  %v1703_v22 = vmul.f32 %v2196_v57, %v2188_v56 }
 0x4f7   : > { %v1702_v4 = vmul.f32 %v2198_v0, %v2980_v26  ;;  %v2200_v41 = vpop.eup %2199 }
 0x4f8   : > { %v1409_v27 = vmul.f32 %v2200_v41, %v2184_v12  ;;  %v1148_v26 = vpop.f32.mrf.mxu3 }
 0x4f9   : > { %v1705_v32 = vpack.c.bf16 %v1703_v22, %v1702_v4  ;;  %v1154_v59 = vpack.c.bf16 %v1148_v26, %v1148_v26 }
 0x4fc   : > { %v1709_v52 = vpop.permute.xlu0 %1708 }
 0x4fd   : > { %1724 = vmatpush.bf16.msrb.mxu2 %v1709_v52 }
 0x501   : > { %1725 = vmatpush.bf16.msrb.mxu2 %v1707_v48 }
 0x504   : > { %1986 = vmatmul.msk.bf16.vlgmr.msrb.gmra.mxu2 %vm741_vm1, %v1704_v54 }
 0x514   : > { %1987 = vmatmul.msk.bf16.gmra.mxu2 %vm741_vm1, %v1705_v32 }
 0x527   : > { %v1402_v31 = vpop.xlane.xlu0 %1401 }
 0x528   : > { %2201 = vrcp.f32 %v1402_v31 }
 0x52e   : > { %v2202_v58 = vpop.eup %2201 }
 0x52f   : > { %v1410_v24 = vmul.f32 %v2202_v58, %v2190_v29 }
 0x530   : > { %v1160_v55 = vpop.permute.xlu1 %1159 }
 0x531   : > { %1172 = vst.msk [vmem:[%s2908_s19] sm:$0xf] %vm1171_vm4, %v1160_v55  ;;  %v1412_v38 = vpack.c.bf16 %v1410_v24, %v1409_v27 }
 0x533   : > { %1983 = vmatmul.msk.bf16.gmra.mxu3 %vm741_vm1, %v1412_v38 }
 0x54d   : > { %v1164_v54 = vpop.permute.xlu2 %1163 }
 0x54e   : > { %1174 = vst.msk [vmem:[%s2908_s19 + $0x8] sm:$0xf] %vm1171_vm4, %v1164_v54 }
 0x578   : > { %v1434_v36 = vpop.f32.mrf.mxu3 }
 0x579   : > { %v1444_v13 = vpack.c.bf16 %v1434_v36, %v1434_v36 }
 0x57b   : > { %1452 = vrot.lane.b32.xlu1 %v1444_v13, %s2248_s30 }
 0x580   : > { %v1436_v62 = vpop.f32.mrf.mxu3 }
 0x581   : > { %v1445_v7 = vpack.c.bf16 %v1436_v62, %v1436_v62 }
 0x587   : > { %v1727_v61 = vpop.f32.mrf.mxu2 }
 0x588   : > { %v1737_v34 = vpack.c.bf16 %v1727_v61, %v1727_v61 }
 0x58a   : > { %1745 = vrot.lane.b32.xlu0 %v1737_v34, %s2249_s18 }
 0x58f   : > { %v1729_v2 = vpop.f32.mrf.mxu2 }
 0x590   : > { %v1738_v47 = vpack.c.bf16 %v1729_v2, %v1729_v2 }
 0x592   : > { %1161 = vrot.lane.b32.xlu0 %v1152_v35, %s2247_s9 }
 0x597   : > { %v1732_v46 = vpop.f32.mrf.mxu2 }
 0x598   : > { %v1739_v44 = vpack.c.bf16 %v1732_v46, %v1732_v46 }
 0x59a   : > { %1165 = vrot.lane.b32.xlu0 %v1154_v59, %s2247_s9 }
 0x59f   : > { %v1734_v6 = vpop.f32.mrf.mxu2 }
 0x5a0   : > { %v1740_v51 = vpack.c.bf16 %v1734_v6, %v1734_v6 }
 0x5a2   : > { %1454 = vrot.lane.b32.xlu0 %v1445_v7, %s2248_s30 }
 0x5aa   : > { %1751 = vrot.lane.b32.xlu0 %v1740_v51, %s2249_s18 }
 0x5b6   : > { %v1439_v5 = vpop.f32.mrf.mxu3 }
 0x5b7   : > { %v1446_v8 = vpack.c.bf16 %v1439_v5, %v1439_v5 }
 0x5b9   : > { %1456 = vrot.lane.b32.xlu2 %v1446_v8, %s2248_s30 }
 0x5be   : > { %v1441_v28 = vpop.f32.mrf.mxu3 }
 0x5bf   : > { %v1447_v33 = vpack.c.bf16 %v1441_v28, %v1441_v28 }
 0x5c1   : > { %1458 = vrot.lane.b32.xlu1 %v1447_v33, %s2248_s30  ;;  %1747 = vrot.lane.b32.xlu2 %v1738_v47, %s2249_s18 }
 0x5c9   : > { %1749 = vrot.lane.b32.xlu1 %v1739_v44, %s2249_s18 }
 0x5ed   : > { %v1453_v40 = vpop.permute.xlu1 %1452 }
 0x5ee   : > { %1465 = vst.msk [vmem:[%s2908_s19] sm:$0xf] %vm1464_vm5, %v1453_v40 }
 0x5fc   : > { %v1746_v10 = vpop.permute.xlu0 %1745 }
 0x5fd   : > { %1758 = vst.msk [vmem:[%s2908_s19] sm:$0xf] %vm1757_vm6, %v1746_v10 }
 0x604   : > { %v1162_v60 = vpop.permute.xlu0 %1161 }
 0x605   : > { %1173 = vst.msk [vmem:[%s2908_s19 + $0x4] sm:$0xf] %vm1171_vm4, %v1162_v60 }
 0x60c   : > { %v1166_v12 = vpop.permute.xlu0 %1165 }
 0x60d   : > { %1175 = vst.msk [vmem:[%s2908_s19 + $0xc] sm:$0xf] %vm1171_vm4, %v1166_v12 }
 0x613   : > { %v1457_v39 = vpop.permute.xlu2 %1456 }
 0x614   : > { %1467 = vst.msk [vmem:[%s2908_s19 + $0x8] sm:$0xf] %vm1464_vm5, %v1457_v39  ;;  %v1455_v16 = vpop.permute.xlu0 %1454 }
 0x615   : > { %1466 = vst.msk [vmem:[%s2908_s19 + $0x4] sm:$0xf] %vm1464_vm5, %v1455_v16 }
 0x61b   : > { %v1748_v42 = vpop.permute.xlu2 %1747 }
 0x61c   : > { %1759 = vst.msk [vmem:[%s2908_s19 + $0x4] sm:$0xf] %vm1757_vm6, %v1748_v42  ;;  %v1752_v17 = vpop.permute.xlu0 %1751 }
 0x633   : > { %v1459_v56 = vpop.permute.xlu1 %1458 }
 0x634   : > { %1468 = vst.msk [vmem:[%s2908_s19 + $0xc] sm:$0xf] %vm1464_vm5, %v1459_v56 }
 0x635   : > { %1761 = vst.msk [vmem:[%s2908_s19 + $0xc] sm:$0xf] %vm1757_vm6, %v1752_v17 }
 0x63b   : > { %v1750_v3 = vpop.permute.xlu1 %1749 }
 0x63c   : > { %1760 = vst.msk [vmem:[%s2908_s19 + $0x8] sm:$0xf] %vm1757_vm6, %v1750_v3 }
 0x63d PF: > { %s17_s28 = sadd.s32 1, %s2241_s28   ;;  %s3074_s24 = smov %s2229_s25 }
 0x63e   : > { %p14_p10 = scmp.ge.s32.totalorder %s17_s28, 4   ;;  %s3075_s25 = smov %s2329_s10 }
 0x63f   : > { %s3076_s26 = smov %s2237_s27  ;;  %s3077_s27 = smov %s3079_s29 }
 0x640   :  { %16 = sbr.rel (!%p14_p10) target bundleno = 3 (0x3), region = 228 }

// kernel: dit_uncond_forward.21
= control target key start
LH: loop header
LB: loop body
LE: loop exit
PB: predicated region body
PF: predicated region fallthrough
CT: control target
= control target key end

     0   :  { %10 = vsyncpa [#allocation4], 0  ;;  %s849_s0 = inlined_call_operand.vmem [shape: f32[64,128], index: 0, kind: input, shape index: {}]   ;;  %s850_s1 = inlined_call_operand.vmem [shape: f32[1,128], index: 1, kind: input, shape index: {}]   ;;  %s851_s2 = inlined_call_operand.hbm [shape: f32[1,128], index: 2, kind: input, shape index: {}]   ;;  %s852_s3 = inlined_call_operand.hbm [shape: bf16[128,128], index: 3, kind: input, shape index: {}]   ;;  %s853_s4 = inlined_call_operand.vmem [shape: f32[1,128], index: 4, kind: input, shape index: {}]   ;;  %s854_s5 = inlined_call_operand.vmem [shape: f32[64,128], index: 5, kind: output, shape index: {}]  }
   0x1   :  { %s21_s20 = sshll.u32 %s851_s2, 4  ;;  %s22_s20 = int_to_ptr.hbm [resolvable:$true] %s21_s20 }
   0x2   :  { %11 = vsyncpa [#allocation6], 0  ;;  %s597_s21 = smov [#allocation3]   ;;  %s31_s25 = sshll.u32 %s852_s3, 4  ;;  %s32_s25 = int_to_ptr.hbm [resolvable:$true] %s31_s25 }
   0x3   :  { %s23_s22 = sshll.u32 %s597_s21, 4  ;;  %s598_s26 = smov [#allocation5]   ;;  %s24_s22 = int_to_ptr.vmem [resolvable:$true] %s23_s22 }
   0x4   :  { %26 = dma.hbm_to_vmem [thread:$0]  %s22_s20, 16, %s24_s22, [#allocation4]  }
   0x5   :  { %s33_s27 = sshll.u32 %s598_s26, 4  ;;  %s599_s28 = smov 64   ;;  %s34_s27 = int_to_ptr.vmem [resolvable:$true] %s33_s27 }
   0x6   :  { %s600_s29 = smov 4  }
   0x7   :  { %39 = dma.hbm_to_vmem [thread:$0]  %s32_s25, 1024, %s34_s27, [#allocation6], %s599_s28, %s599_s28, %s600_s29  }
   0x8   :  { %593 = dma.done.wait [#allocation4], 16  }
   0x9   :  { %594 = vsyncadd [#allocation4], 4294967280 }
   0xa   :  { %595 = dma.done.wait [#allocation6], 1024  }
   0xb   :  { %596 = vsyncadd [#allocation6], 4294966272  ;;  %v60_v0 = vld [vmem:[%s849_s0 + $0x30] sm:$0xff]  ;;  %v58_v1 = vld [vmem:[%s849_s0 + $0x20] sm:$0xff]  ;;  %v601_v8 = vmov 128.0  }
   0xc   :  { %v54_v2 = vld [vmem:[%s849_s0] sm:$0xff]  ;;  %74 = vadd.xlane.f32.xlu1 %v60_v0  ;;  %70 = vadd.xlane.f32.xlu0 %v58_v1  ;;  %v61_v3 = vld [vmem:[%s849_s0 + $0x38] sm:$0xff]  ;;  %v59_v4 = vld [vmem:[%s849_s0 + $0x28] sm:$0xff]  ;;  %527 = vrcp.f32 %v601_v8 }
   0xd   :  { %62 = vadd.xlane.f32.xlu2 %v54_v2  ;;  %v55_v5 = vld [vmem:[%s849_s0 + $0x8] sm:$0xff]  ;;  %v56_v6 = vld [vmem:[%s849_s0 + $0x10] sm:$0xff]  ;;  %v57_v7 = vld [vmem:[%s849_s0 + $0x18] sm:$0xff] }
   0xe   :  { %v471_v47 = vld [vmem:[#allocation5 + $0x38] sm:$0xff]  ;;  %v470_v48 = vld [vmem:[#allocation5 + $0x30] sm:$0xff]  ;;  %v469_v49 = vld [vmem:[#allocation5 + $0x28] sm:$0xff] }
   0xf   :  { %496 = vmatpush.bf16.msra.mxu2 %v471_v47  ;;  %497 = vmatpush.bf16.msra.mxu3 %v471_v47  ;;  %v468_v50 = vld [vmem:[#allocation5 + $0x20] sm:$0xff]  ;;  %v467_v55 = vld [vmem:[#allocation5 + $0x18] sm:$0xff]  ;;  %v466_v58 = vld [vmem:[#allocation5 + $0x10] sm:$0xff] }
  0x10   :  { %369 = vmatpush.bf16.msra.mxu0 %v471_v47  ;;  %495 = vmatpush.bf16.msra.mxu1 %v471_v47 }
  0x12   :  { %v528_v9 = vpop.eup %527 }
  0x13   :  { %v79_v10 = vmul.f32 128.0, %v528_v9  ;;  %vm83_vm0 = vweird.f32 %v528_v9  ;;  %499 = vmatpush.bf16.msra.mxu2 %v470_v48  ;;  %500 = vmatpush.bf16.msra.mxu3 %v470_v48 }
  0x14   :  { %76 = vadd.xlane.f32.xlu1 %v61_v3  ;;  %72 = vadd.xlane.f32.xlu0 %v59_v4 }
  0x15   :  { %64 = vadd.xlane.f32.xlu2 %v55_v5  ;;  %v80_v11 = vsub.f32 1.0, %v79_v10  ;;  %370 = vmatpush.bf16.msra.mxu0 %v470_v48  ;;  %v464_v10 = vld [vmem:[#allocation5] sm:$0xff] }
  0x16   :  { %498 = vmatpush.bf16.msra.mxu1 %v470_v48 }
  0x17   :  { %v81_v12 = vmul.f32 %v528_v9, %v80_v11  ;;  %502 = vmatpush.bf16.msra.mxu2 %v469_v49  ;;  %503 = vmatpush.bf16.msra.mxu3 %v469_v49 }
  0x19   :  { %v82_v13 = vadd.f32 %v528_v9, %v81_v12  ;;  %371 = vmatpush.bf16.msra.mxu0 %v469_v49 }
  0x1a   :  { %501 = vmatpush.bf16.msra.mxu1 %v469_v49 }
  0x1b   :  { %v662_v14 = vsel %vm83_vm0, %v528_v9, %v82_v13  ;;  %505 = vmatpush.bf16.msra.mxu2 %v468_v50  ;;  %506 = vmatpush.bf16.msra.mxu3 %v468_v50 }
  0x1c   :  { %66 = vadd.xlane.f32.xlu0 %v56_v6  ;;  %68 = vadd.xlane.f32.xlu1 %v57_v7 }
  0x1d   :  { %372 = vmatpush.bf16.msra.mxu0 %v468_v50 }
  0x1e   :  { %504 = vmatpush.bf16.msra.mxu1 %v468_v50  ;;  %v767_v50 = vld [vmem:[%s850_s1] ss:$0 sm:$0xff] }
  0x1f   :  { %508 = vmatpush.bf16.msra.mxu2 %v467_v55  ;;  %509 = vmatpush.bf16.msra.mxu3 %v467_v55 }
  0x21   :  { %373 = vmatpush.bf16.msra.mxu0 %v467_v55 }
  0x22   :  { %507 = vmatpush.bf16.msra.mxu1 %v467_v55 }
  0x23   :  { %511 = vmatpush.bf16.msra.mxu2 %v466_v58  ;;  %512 = vmatpush.bf16.msra.mxu3 %v466_v58 }
  0x25   :  { %374 = vmatpush.bf16.msra.mxu0 %v466_v58 }
  0x26   :  { %510 = vmatpush.bf16.msra.mxu1 %v466_v58 }
  0x7f   :  { %v75_v15 = vpop.xlane.xlu1 %74  ;;  %v71_v16 = vpop.xlane.xlu0 %70 }
  0x80   :  { %v91_v17 = vmul.f32 %v662_v14, %v75_v15  ;;  %v89_v18 = vmul.f32 %v662_v14, %v71_v16  ;;  %v63_v19 = vpop.xlane.xlu2 %62 }
  0x81   :  { %v85_v30 = vmul.f32 %v662_v14, %v63_v19 }
  0x82   :  { %v666_v20 = vsub.f32 %v60_v0, %v91_v17  ;;  %v668_v21 = vsub.f32 %v58_v1, %v89_v18  ;;  %v465_v1 = vld [vmem:[#allocation5 + $0x8] sm:$0xff] }
  0x83   :  { %v690_v37 = vsub.f32 %v54_v2, %v85_v30  ;;  %514 = vmatpush.bf16.msra.mxu2 %v465_v1  ;;  %515 = vmatpush.bf16.msra.mxu3 %v465_v1 }
  0x84   :  { %v107_v22 = vmul.f32 %v666_v20, %v666_v20  ;;  %v105_v23 = vmul.f32 %v668_v21, %v668_v21  ;;  %375 = vmatpush.bf16.msra.mxu0 %v465_v1  ;;  %513 = vmatpush.bf16.msra.mxu1 %v465_v1 }
  0x85   :  { %v101_v42 = vmul.f32 %v690_v37, %v690_v37 }
  0x86   :  { %121 = vadd.xlane.f32.xlu1 %v107_v22  ;;  %117 = vadd.xlane.f32.xlu2 %v105_v23 }
  0x87   :  { %v77_v24 = vpop.xlane.xlu1 %76  ;;  %v73_v25 = vpop.xlane.xlu0 %72  ;;  %517 = vmatpush.bf16.msra.mxu2 %v464_v10  ;;  %518 = vmatpush.bf16.msra.mxu3 %v464_v10 }
  0x88   :  { %v92_v26 = vmul.f32 %v662_v14, %v77_v24  ;;  %v90_v27 = vmul.f32 %v662_v14, %v73_v25  ;;  %v65_v28 = vpop.xlane.xlu2 %64  ;;  %376 = vmatpush.bf16.msra.mxu0 %v464_v10  ;;  %516 = vmatpush.bf16.msra.mxu1 %v464_v10 }
  0x89   :  { %v86_v29 = vmul.f32 %v662_v14, %v65_v28 }
  0x8a   :  { %v678_v31 = vsub.f32 %v61_v3, %v92_v26  ;;  %v680_v32 = vsub.f32 %v59_v4, %v90_v27 }
  0x8b   :  { %v682_v33 = vsub.f32 %v55_v5, %v86_v29 }
  0x8c   :  { %v106_v34 = vmul.f32 %v680_v32, %v680_v32  ;;  %v108_v35 = vmul.f32 %v678_v31, %v678_v31 }
  0x8d   :  { %v102_v36 = vmul.f32 %v682_v33, %v682_v33 }
  0x8e   :  { %119 = vadd.xlane.f32.xlu0 %v106_v34  ;;  %123 = vadd.xlane.f32.xlu2 %v108_v35 }
  0x8f   :  { %111 = vadd.xlane.f32.xlu1 %v102_v36  ;;  %v67_v38 = vpop.xlane.xlu0 %66  ;;  %v69_v39 = vpop.xlane.xlu1 %68 }
  0x90   :  { %v87_v40 = vmul.f32 %v662_v14, %v67_v38  ;;  %v88_v43 = vmul.f32 %v662_v14, %v69_v39 }
  0x92   :  { %v693_v41 = vsub.f32 %v56_v6, %v87_v40  ;;  %v700_v45 = vsub.f32 %v57_v7, %v88_v43 }
  0x94   :  { %v103_v44 = vmul.f32 %v693_v41, %v693_v41  ;;  %v104_v46 = vmul.f32 %v700_v45, %v700_v45 }
  0x96   :  { %113 = vadd.xlane.f32.xlu2 %v103_v44  ;;  %109 = vadd.xlane.f32.xlu0 %v101_v42 }
  0x9e   :  { %115 = vadd.xlane.f32.xlu0 %v104_v46 }
  0xf9   :  { %v122_v51 = vpop.xlane.xlu1 %121  ;;  %v118_v52 = vpop.xlane.xlu2 %117 }
  0xfa   :  { %v131_v53 = vmul.f32 %v122_v51, %v662_v14  ;;  %v129_v54 = vmul.f32 %v118_v52, %v662_v14 }
  0xfc   :  { %v706_v56 = vadd.f32 1e-05, %v131_v53  ;;  %v137_v57 = vadd.f32 1e-05, %v129_v54 }
  0xfe   :  { %529 = vrsqrt.f32 %v706_v56  ;;  %vm207_vm1 = vweird.f32 %v706_v56  ;;  %vm187_vm4 = vweird.f32 %v137_v57 }
  0xff   :  { %531 = vrsqrt.f32 %v137_v57 }
 0x101   :  { %v120_v59 = vpop.xlane.xlu0 %119  ;;  %v124_v60 = vpop.xlane.xlu2 %123 }
 0x102   :  { %v130_v61 = vmul.f32 %v120_v59, %v662_v14  ;;  %v112_v62 = vpop.xlane.xlu1 %111  ;;  %v132_v63 = vmul.f32 %v124_v60, %v662_v14 }
 0x103   :  { %v126_v0 = vmul.f32 %v112_v62, %v662_v14 }
 0x104   :  { %v712_v2 = vpop.eup %529  ;;  %v714_v3 = vadd.f32 1e-05, %v130_v61  ;;  %v716_v4 = vadd.f32 1e-05, %v132_v63 }
 0x105   :  { %v532_v5 = vpop.eup %531  ;;  %v202_v6 = vmul.f32 %v712_v2, %v706_v56  ;;  %v720_v7 = vadd.f32 1e-05, %v126_v0  ;;  %vm208_vm3 = vweird.f32 %v712_v2 }
 0x106   :  { %v182_v8 = vmul.f32 %v532_v5, %v137_v57  ;;  %533 = vrsqrt.f32 %v714_v3  ;;  %vm188_vm2 = vweird.f32 %v532_v5  ;;  %vm197_vm6 = vweird.f32 %v714_v3  ;;  %vm754_vm7 = vmor %vm207_vm1, %vm208_vm3 }
 0x107   :  { %v203_v9 = vmul.f32 %v712_v2, %v202_v6  ;;  %535 = vrsqrt.f32 %v720_v7  ;;  %vm741_vm5 = vmor %vm187_vm4, %vm188_vm2  ;;  %vm157_vm8 = vweird.f32 %v720_v7  ;;  %vm217_vm11 = vweird.f32 %v716_v4 }
 0x108   :  { %v183_v11 = vmul.f32 %v532_v5, %v182_v8  ;;  %537 = vrsqrt.f32 %v716_v4 }
 0x109   :  { %v204_v12 = vmul.f32 0.5, %v203_v9  ;;  %v110_v13 = vpop.xlane.xlu0 %109  ;;  %v114_v15 = vpop.xlane.xlu2 %113 }
 0x10a   :  { %v184_v16 = vmul.f32 0.5, %v183_v11  ;;  %v125_v17 = vmul.f32 %v110_v13, %v662_v14  ;;  %v127_v18 = vmul.f32 %v114_v15, %v662_v14 }
 0x10b   :  { %v205_v19 = vsub.f32 1.5, %v204_v12 }
 0x10c   :  { %v534_v22 = vpop.eup %533  ;;  %v185_v23 = vsub.f32 1.5, %v184_v16  ;;  %v729_v24 = vadd.f32 1e-05, %v125_v17  ;;  %v735_v27 = vadd.f32 1e-05, %v127_v18 }
 0x10d   :  { %v731_v25 = vpop.eup %535  ;;  %v192_v26 = vmul.f32 %v534_v22, %v714_v3  ;;  %v206_v29 = vmul.f32 %v712_v2, %v205_v19  ;;  %vm198_vm9 = vweird.f32 %v534_v22 }
 0x10e   :  { %v538_v28 = vpop.eup %537  ;;  %v186_v30 = vmul.f32 %v532_v5, %v185_v23  ;;  %v152_v34 = vmul.f32 %v731_v25, %v720_v7  ;;  %539 = vrsqrt.f32 %v729_v24  ;;  %vm158_vm10 = vweird.f32 %v731_v25  ;;  %vm199_vm13 = vmor %vm197_vm6, %vm198_vm9 }
 0x10f   :  { %v193_v36 = vmul.f32 %v534_v22, %v192_v26  ;;  %v212_v38 = vmul.f32 %v538_v28, %v716_v4  ;;  %541 = vrsqrt.f32 %v735_v27  ;;  %v210_v47 = vsel %vm754_vm7, %v712_v2, %v206_v29  ;;  %vm782_vm14 = vmor %vm157_vm8, %vm158_vm10 }
 0x110   :  { %v190_v39 = vsel %vm741_vm5, %v532_v5, %v186_v30  ;;  %v153_v40 = vmul.f32 %v731_v25, %v152_v34  ;;  %vm218_vm12 = vweird.f32 %v538_v28  ;;  %vm147_vm0 = vweird.f32 %v729_v24 }
 0x111   :  { %v194_v43 = vmul.f32 0.5, %v193_v36  ;;  %v213_v44 = vmul.f32 %v538_v28, %v212_v38  ;;  %v116_v46 = vpop.xlane.xlu0 %115  ;;  %v225_v51 = vmul.f32 %v190_v39, %v668_v21  ;;  %vm219_vm15 = vmor %vm217_vm11, %vm218_vm12  ;;  %vm167_vm2 = vweird.f32 %v735_v27 }
 0x112   :  { %v154_v48 = vmul.f32 0.5, %v153_v40  ;;  %v128_v49 = vmul.f32 %v116_v46, %v662_v14  ;;  %v227_v14 = vmul.f32 %v210_v47, %v666_v20  ;;  %v787_v20 = vld [vmem:[#allocation3] ss:$0 sm:$0xff] }
 0x113   :  { %v195_v52 = vsub.f32 1.5, %v194_v43  ;;  %v214_v53 = vmul.f32 0.5, %v213_v44  ;;  %v237_v62 = vmul.f32 %v767_v50, %v225_v51 }
 0x114   :  { %v540_v54 = vpop.eup %539  ;;  %v155_v55 = vsub.f32 1.5, %v154_v48  ;;  %v772_v56 = vadd.f32 1e-05, %v128_v49  ;;  %v239_v5 = vmul.f32 %v767_v50, %v227_v14 }
 0x115   :  { %v196_v57 = vmul.f32 %v534_v22, %v195_v52  ;;  %v215_v58 = vsub.f32 1.5, %v214_v53  ;;  %v142_v21 = vmul.f32 %v540_v54, %v729_v24  ;;  %v542_v61 = vpop.eup %541  ;;  %vm148_vm1 = vweird.f32 %v540_v54 }
 0x116   :  { %v156_v59 = vmul.f32 %v731_v25, %v155_v55  ;;  %543 = vrsqrt.f32 %v772_v56  ;;  %v162_v3 = vmul.f32 %v542_v61, %v735_v27  ;;  %v251_v18 = vadd.f32 %v787_v20, %v239_v5  ;;  %vm149_vm3 = vmor %vm147_vm0, %vm148_vm1  ;;  %v526_v55 = vld [vmem:[%s853_s4] ss:$0 sm:$0xff] }
 0x117   :  { %v200_v63 = vsel %vm199_vm13, %v534_v22, %v196_v57  ;;  %v216_v0 = vmul.f32 %v538_v28, %v215_v58  ;;  %v143_v1 = vmul.f32 %v540_v54, %v142_v21  ;;  %vm168_vm4 = vweird.f32 %v542_v61 }
 0x118   :  { %v226_v2 = vmul.f32 %v200_v63, %v680_v32  ;;  %v160_v6 = vsel %vm782_vm14, %v731_v25, %v156_v59  ;;  %v163_v11 = vmul.f32 %v542_v61, %v162_v3  ;;  %v249_v32 = vadd.f32 %v787_v20, %v237_v62  ;;  %vm169_vm5 = vmor %vm167_vm2, %vm168_vm4 }
 0x119   :  { %v220_v7 = vsel %vm219_vm15, %v538_v28, %v216_v0  ;;  %v144_v8 = vmul.f32 0.5, %v143_v1  ;;  %v222_v15 = vmul.f32 %v160_v6, %v682_v33  ;;  %vm177_vm7 = vweird.f32 %v772_v56 }
 0x11a   :  { %v238_v9 = vmul.f32 %v767_v50, %v226_v2  ;;  %v228_v10 = vmul.f32 %v220_v7, %v678_v31  ;;  %v164_v17 = vmul.f32 0.5, %v163_v11 }
 0x11b   :  { %v145_v12 = vsub.f32 1.5, %v144_v8  ;;  %v234_v33 = vmul.f32 %v767_v50, %v222_v15 }
 0x11c   :  { %v544_v4 = vpop.eup %543  ;;  %v250_v13 = vadd.f32 %v787_v20, %v238_v9  ;;  %v240_v16 = vmul.f32 %v767_v50, %v228_v10  ;;  %v165_v24 = vsub.f32 1.5, %v164_v17 }
 0x11d   :  { %v146_v19 = vmul.f32 %v540_v54, %v145_v12  ;;  %v172_v31 = vmul.f32 %v544_v4, %v772_v56  ;;  %vm178_vm6 = vweird.f32 %v544_v4  ;;  %v246_v38 = vadd.f32 %v787_v20, %v234_v33 }
 0x11e   :  { %v485_v22 = vpack.c.bf16 %v250_v13, %v249_v32  ;;  %v252_v23 = vadd.f32 %v787_v20, %v240_v16  ;;  %v166_v30 = vmul.f32 %v542_v61, %v165_v24  ;;  %vm179_vm8 = vmor %vm177_vm7, %vm178_vm6 }
 0x11f   :  { %v150_v25 = vsel %vm149_vm3, %v540_v54, %v146_v19  ;;  %v173_v26 = vmul.f32 %v544_v4, %v172_v31 }
 0x120   :  { %493 = vst [vmem:[#allocation2 + $0x18] sm:$0xff] %v485_v22   ;;  %v490_v28 = vpack.c.bf16 %v252_v23, %v251_v18  ;;  %v221_v29 = vmul.f32 %v150_v25, %v690_v37  ;;  %v170_v35 = vsel %vm169_vm5, %v542_v61, %v166_v30 }
 0x121   :  { %v174_v34 = vmul.f32 0.5, %v173_v26  ;;  %v223_v40 = vmul.f32 %v170_v35, %v693_v41 }
 0x122   :  { %494 = vst [vmem:[#allocation2 + $0x8] sm:$0xff] %v490_v28   ;;  %v233_v27 = vmul.f32 %v767_v50, %v221_v29 }
 0x123   :  { %v175_v36 = vsub.f32 1.5, %v174_v34  ;;  %v235_v46 = vmul.f32 %v767_v50, %v223_v40 }
 0x124   :  { %v245_v39 = vadd.f32 %v787_v20, %v233_v27 }
 0x125   :  { %v176_v42 = vmul.f32 %v544_v4, %v175_v36  ;;  %v247_v51 = vadd.f32 %v787_v20, %v235_v46 }
 0x126   :  { %v475_v43 = vpack.c.bf16 %v246_v38, %v245_v39 }
 0x127   :  { %v180_v37 = vsel %vm179_vm8, %v544_v4, %v176_v42  ;;  %v462_v44 = vld [vmem:[#allocation2 + $0x18] sm:$0xff] }
 0x128   :  { %476 = vst [vmem:[#allocation2 + $0x10] sm:$0xff] %v475_v43   ;;  %v224_v47 = vmul.f32 %v180_v37, %v700_v45  ;;  %387 = vmatmul.bf16.vlgmr.msra.gmra.mxu2 %v462_v44 }
 0x129   :  { %v463_v48 = vld [vmem:[#allocation2 + $0x8] sm:$0xff] }
 0x12a   :  { %v236_v49 = vmul.f32 %v767_v50, %v224_v47  ;;  %392 = vmatmul.bf16.vlgmr.msra.gmra.mxu3 %v463_v48 }
 0x12c   :  { %v248_v41 = vadd.f32 %v787_v20, %v236_v49 }
 0x12e   :  { %v480_v52 = vpack.c.bf16 %v248_v41, %v247_v51 }
 0x12f   :  { %v460_v53 = vld [vmem:[#allocation2 + $0x10] sm:$0xff] }
 0x130   :  { %492 = vst [vmem:[#allocation2] sm:$0xff] %v480_v52   ;;  %377 = vmatmul.bf16.vlgmr.msra.gmra.mxu0 %v460_v53 }
 0x137   :  { %v461_v54 = vld [vmem:[#allocation2] sm:$0xff] }
 0x138   :  { %382 = vmatmul.bf16.vlgmr.msra.gmra.mxu1 %v461_v54 }
 0x1ab   :  { %v388_v45 = vpop.f32.mrf.mxu2 }
 0x1ac   :  { %v389_v56 = vadd.f32 %v526_v55, %v388_v45 }
 0x1ad   :  { %v393_v14 = vpop.f32.mrf.mxu3  ;;  %v378_v57 = vpop.f32.mrf.mxu0 }
 0x1ae   :  { %402 = vst [vmem:[%s854_s5 + $0x20] sm:$0xff] %v389_v56  ;;  %v394_v50 = vadd.f32 %v526_v55, %v393_v14  ;;  %v379_v58 = vadd.f32 %v526_v55, %v378_v57 }
 0x1b0   :  { %404 = vst [vmem:[%s854_s5 + $0x30] sm:$0xff] %v394_v50 }
 0x1b1   :  { %398 = vst [vmem:[%s854_s5] sm:$0xff] %v379_v58 }
 0x1b3   :  { %v390_v21 = vpop.f32.mrf.mxu2 }
 0x1b4   :  { %v391_v59 = vadd.f32 %v526_v55, %v390_v21 }
 0x1b5   :  { %v395_v60 = vpop.f32.mrf.mxu3  ;;  %v380_v61 = vpop.f32.mrf.mxu0 }
 0x1b6   :  { %403 = vst [vmem:[%s854_s5 + $0x28] sm:$0xff] %v391_v59  ;;  %v396_v20 = vadd.f32 %v526_v55, %v395_v60  ;;  %v381_v62 = vadd.f32 %v526_v55, %v380_v61  ;;  %v383_v63 = vpop.f32.mrf.mxu1 }
 0x1b7   :  { %v384_v0 = vadd.f32 %v526_v55, %v383_v63 }
 0x1b8   :  { %405 = vst [vmem:[%s854_s5 + $0x38] sm:$0xff] %v396_v20 }
 0x1b9   :  { %399 = vst [vmem:[%s854_s5 + $0x8] sm:$0xff] %v381_v62 }
 0x1ba   :  { %400 = vst [vmem:[%s854_s5 + $0x10] sm:$0xff] %v384_v0 }
 0x1be   :  { %v385_v1 = vpop.f32.mrf.mxu1 }
 0x1bf   :  { %v386_v2 = vadd.f32 %v526_v55, %v385_v1 }
 0x1c1   :  { %401 = vst [vmem:[%s854_s5 + $0x18] sm:$0xff] %v386_v2 }
 0x1c2   :  { %410 = vsyncpa [#allocation4], 1 }
 0x1c3   :  { %411 = vsyncpa [#allocation6], 1 }

// kernel: dit_uncond_forward.20
= control target key start
LH: loop header
LB: loop body
LE: loop exit
PB: predicated region body
PF: predicated region fallthrough
CT: control target
= control target key end

     0   :  { %s3446_s0 = inlined_call_operand.vmem [shape: f32[64,128], index: 0, kind: input, shape index: {}]   ;;  %s3447_s1 = inlined_call_operand.vmem [shape: f32[1,128], index: 1, kind: input, shape index: {}]   ;;  %s3448_s2 = inlined_call_operand.vmem [shape: f32[1,128], index: 2, kind: input, shape index: {}]   ;;  %s3449_s3 = inlined_call_operand.hbm [shape: bf16[128,512], index: 3, kind: input, shape index: {}]   ;;  %s3450_s4 = inlined_call_operand.vmem [shape: f32[1,512], index: 4, kind: input, shape index: {}]   ;;  %s3451_s5 = inlined_call_operand.hbm [shape: bf16[128,512], index: 5, kind: input, shape index: {}]   ;;  %s3452_s6 = inlined_call_operand.vmem [shape: f32[1,512], index: 6, kind: input, shape index: {}]   ;;  %s3453_s7 = inlined_call_operand.hbm [shape: bf16[512,128], index: 7, kind: input, shape index: {}]   ;;  %s3454_s8 = inlined_call_operand.vmem [shape: f32[1,128], index: 8, kind: input, shape index: {}]   ;;  %s3455_s9 = inlined_call_operand.vmem [shape: f32[64,128], index: 9, kind: output, shape index: {}]  }
   0x1   :  { %3462 = sst [smem:[#allocation14_spill]] %s3446_s0 }
   0x2   :  { %3463 = sst [smem:[#allocation15_spill]] %s3447_s1 }
   0x3   :  { %3464 = sst [smem:[#allocation16_spill]] %s3448_s2 }
   0x4   :  { %3465 = sst [smem:[#allocation17_spill]] %s3451_s5 }
   0x5   :  { %3466 = sst [smem:[#allocation18_spill]] %s3452_s6 }
   0x6   :  { %3467 = sst [smem:[#allocation19_spill]] %s3454_s8 }
   0x7   :  { %3468 = sst [smem:[#allocation20_spill]] %s3455_s9 }
   0x8   :  { %14 = vsyncpa [#allocation5], 0 }
   0x9   :  { %16 = vsyncpa [#allocation5 + $0x1], 0 }
   0xa   :  { %17 = vsyncpa [#allocation7], 0 }
   0xb   :  { %19 = vsyncpa [#allocation7 + $0x1], 0  ;;  %s2545_s30 = smov 0   ;;  %s2547_s10 = smov 0  }
   0xc   :  { %s2549_s11 = smov 0   ;;  %s2551_s12 = smov 0  }
   0xd   :  { %s2553_s13 = smov 0   ;;  %s2555_s14 = smov 0  }
   0xe LB: > { %3469 = sst [smem:[#allocation11_spill]] %s2474_s11  ;;  %s3456_s15 = sadd.s32 4294967295, %s2486_s14   ;;  %s2486_s14 = sphi %s2555_s14, %s25_s14   ;;  %s2482_s13 = sphi %s2553_s13, %s3529_s13   ;;  %s2478_s12 = sphi %s2551_s12, %s3528_s12   ;;  %s2474_s11 = sphi %s2549_s11, %s3524_s11   ;;  %s2470_s10 = sphi %s2547_s10, %s3527_s10   ;;  %s2466_s30 = sphi %s2545_s30, %s3526_s30  }
   0xf   : > { %s34_s16 = sadd.s32 1, %s2482_s13  ;;  %s112_s17 = sadd.s32 1, %s2474_s11 }
  0x10   : > { %p35_p0 = scmp.ge.s32.totalorder %s34_s16, 2  ;;  %p119_p1 = scmp.ne.s32.totalorder %s2474_s11, %s2470_s10 }
  0x11   : > { %p120_p2 = scmp.eq.s32.totalorder %s2486_s14, 0  ;;  %p125_p4 = scmp.ne.s32.totalorder %s2470_s10, %s2466_s30 }
  0x12   : > { %s3531_s16 = smov (%p35_p0, %s34_s16), 0  ;;  %p126_p5 = scmp.eq.s32.totalorder %s3456_s15, 0 }
  0x13   : > { %3470 = sst [smem:[#allocation12_spill]] %s3531_s16  ;;  %p121_p3 = por %p120_p2, %p119_p1 }
  0x14   : > { %s109_s18 = ssub.s32 %s2482_s13, %s3531_s16  ;;  %p2586_p7 = por %p126_p5, %p125_p4 }
  0x15   : > { %p110_p6 = scmp.eq.s32.totalorder %s109_s18, 0  ;;  %p2201_p8 = scmp.lt.s32.totalorder %s2486_s14, 2 }
  0x16   : > { %s318_s21 = sand.u32 1, %s2474_s11   ;;  %s2091_s22 = sshll.u32 %s2482_s13, 3 }
  0x17   : > { %s2592_s20 = scalar_select %p110_p6, %s2474_s11, %s112_s17  }
  0x18   : > { %s2596_s23 = sshll.u32 %s318_s21, 7  ;;  %p2598_p9 = pnand %p2201_p8, %p121_p3 }
  0x19   : > { %3472 = sst [smem:[#allocation13_spill]] %s2592_s20  ;;  %s348_s25 = sand.u32 1, %s2486_s14  }
  0x1a   : > { %s3474_s5 = sld [smem:[#allocation17_spill]]  ;;  %s352_s30 = scalar_lea.vmem [#allocation6], %s2596_s23 }
  0x1b   : > { %s360_s17 = sshll.u32 %s352_s30, 4  ;;  %s2607_s18 = scalar_lea.sflag [#allocation7], %s348_s25  ;;  %s361_s17 = int_to_ptr.vmem [resolvable:$true] %s360_s17 }
  0x1c   : > { %s2488_s15 = smov 256   ;;  %s2489_s16 = smov 128  }
  0x1d   : > { %s2490_s20 = smov 8   ;;  %p1855_p10 = scmp.ge.s32.totalorder %s2486_s14, 1 }
  0x1e   : > { %p398_p11 = scmp.lt.s32.totalorder %s2486_s14, 3  ;;  %s327_s30 = scalar_lea.hbm %s3449_s3, %s2091_s22 }
  0x1f   : > { %s328_s25 = sshll.u32 %s327_s30, 4  ;;  %s319_s9 = scalar_lea.sflag [#allocation5], %s318_s21  ;;  %s329_s25 = int_to_ptr.hbm [resolvable:$true] %s328_s25 }
  0x20   : > { %s357_s28 = scalar_lea.hbm %s3474_s5, %s2091_s22  ;;  %p2614_p12 = pnand %p1855_p10, %p398_p11 }
  0x21   : > { %s358_s29 = sshll.u32 %s357_s28, 4  ;;  %s322_s5 = scalar_lea.vmem [#allocation4], %s2596_s23  ;;  %s359_s29 = int_to_ptr.hbm [resolvable:$true] %s358_s29 }
  0x22   : > { %2197 = dma.hbm_to_vmem [thread:$0]  (!%p2598_p9), %s359_s29, 2048, %s361_s17, %s2607_s18, %s2488_s15, %s2489_s16, %s2490_s20  }
  0x23   : > { %s330_s11 = sshll.u32 %s322_s5, 4  ;;  %s2093_s29 = sshll.u32 %s2482_s13, 7  ;;  %s331_s11 = int_to_ptr.vmem [resolvable:$true] %s330_s11 }
  0x24   : > { %2194 = dma.hbm_to_vmem [thread:$0]  (!%p2598_p9), %s329_s25, 2048, %s331_s11, %s319_s9, %s2488_s15, %s2489_s16, %s2490_s20  }
  0x25   : > { %s387_s2 = scalar_lea.hbm %s3453_s7, %s2093_s29  ;;  %s382_s1 = scalar_lea.vmem [#allocation8], %s2596_s23 }
  0x26   : > { %s390_s0 = sshll.u32 %s382_s1, 4  ;;  %s388_s6 = sshll.u32 %s387_s2, 4  ;;  %s391_s0 = int_to_ptr.vmem [resolvable:$true] %s390_s0  ;;  %s389_s6 = int_to_ptr.hbm [resolvable:$true] %s388_s6 }
  0x27   : > { %s2491_s22 = smov 64   ;;  %s2492_s27 = smov 4  }
  0x28   : > { %2200 = dma.hbm_to_vmem [thread:$0]  (!%p2598_p9), %s389_s6, 2048, %s391_s0, %s2607_s18, %s2491_s22, %s2491_s22, %s2492_s27  }
  0x29   : > { %402 = sbr.rel (%p2614_p12) target bundleno = 805 (0x325), region = 56  ;;  %s404_s5 = sand.u32 (!%p2614_p12), 1, %s2470_s10  }
  0x2a   : > { %s1856_s9 = sshll.u32 (!%p2614_p12), %s404_s5, 7  ;;  %s405_s11 = scalar_lea.sflag (!%p2614_p12), [#allocation5], %s404_s5 }
  0x2b   : > { %s2635_s15 = scalar_lea.vmem (!%p2614_p12), [#allocation4], %s1856_s9 }
  0x2e   : > { %2457 = dma.done.wait (%p2586_p7), %s405_s11, 2048  }
  0x2f   : > { %2459 = vsyncadd (%p2586_p7), %s405_s11, 4294965248  ;;  %s3476_s1 = sadd.s32 4294967295, %s2486_s14   ;;  %s2643_s6 = scalar_lea.vmem [#allocation6], %s1856_s9 }
  0x30   : > { %s414_s2 = sand.u32 1, %s3476_s1  }
  0x31   : > { %s415_s0 = scalar_lea.sflag [#allocation7], %s414_s2 }
  0x32   : > { %2461 = dma.done.wait (%p2586_p7), %s415_s0, 4096  }
  0x33   : > { %2463 = vsyncadd (%p2586_p7), %s415_s0, 4294963200  ;;  %s1859_s8 = sshll.u32 %s2478_s12, 1  ;;  %s3477_s18 = sld [smem:[#allocation18_spill]] }
  0x34   : > { %p495_p13 = scmp.lt.s32.totalorder %s1859_s8, 3  ;;  %s2660_s28 = scalar_lea.vmem [#allocation8], %s1856_s9 }
  0x35   : > { %p1861_p0 = scmp.ne.s32.totalorder %s2478_s12, 0 }
  0x36   : > { %s3533_s8 = smov (!%p495_p13, %s1859_s8), 3  ;;  %s3478_s25 = sld [smem:[#allocation14_spill]] (!%p1861_p0) }
  0x37   : > { %s497_s21 = scalar_lea.vmem %s3450_s4, %s3533_s8  ;;  %515 = sbr.rel (%p1861_p0) target bundleno = 355 (0x163), region = 72 }
  0x38   : > { %s3483_s30 = sld [smem:[#allocation15_spill]] (!%p1861_p0) }
  0x39   : > { %s503_s26 = scalar_lea.vmem %s3477_s18, %s3533_s8  ;;  %s3484_s17 = sld [smem:[#allocation16_spill]] (!%p1861_p0) }
  0x3c   : > { %v520_v0 = vld [vmem:[%s3478_s25 + $0x20] sm:$0xff]  ;;  %v518_v1 = vld [vmem:[%s3478_s25 + $0x10] sm:$0xff]  ;;  %v521_v3 = vld [vmem:[%s3478_s25 + $0x28] sm:$0xff]  ;;  %v2493_v8 = vmov 128.0  }
  0x3d   : > { %v516_v2 = vld [vmem:[%s3478_s25] sm:$0xff]  ;;  %532 = vadd.xlane.f32.xlu2 %v520_v0  ;;  %528 = vadd.xlane.f32.xlu1 %v518_v1  ;;  %v519_v4 = vld [vmem:[%s3478_s25 + $0x18] sm:$0xff]  ;;  %v517_v5 = vld [vmem:[%s3478_s25 + $0x8] sm:$0xff]  ;;  %2259 = vrcp.f32 %v2493_v8 }
  0x3e   : > { %524 = vadd.xlane.f32.xlu0 %v516_v2  ;;  %v523_v6 = vld [vmem:[%s3478_s25 + $0x38] sm:$0xff]  ;;  %v522_v7 = vld [vmem:[%s3478_s25 + $0x30] sm:$0xff] }
  0x43   : > { %v2260_v9 = vpop.eup %2259 }
  0x44   : > { %v541_v10 = vmul.f32 128.0, %v2260_v9  ;;  %vm545_vm0 = vweird.f32 %v2260_v9 }
  0x45   : > { %534 = vadd.xlane.f32.xlu2 %v521_v3  ;;  %530 = vadd.xlane.f32.xlu1 %v519_v4 }
  0x46   : > { %526 = vadd.xlane.f32.xlu0 %v517_v5  ;;  %v542_v11 = vsub.f32 1.0, %v541_v10 }
  0x48   : > { %v543_v12 = vmul.f32 %v2260_v9, %v542_v11 }
  0x4a   : > { %v544_v13 = vadd.f32 %v2260_v9, %v543_v12 }
  0x4c   : > { %v2687_v14 = vsel %vm545_vm0, %v2260_v9, %v544_v13 }
  0x4d   : > { %538 = vadd.xlane.f32.xlu1 %v523_v6 }
  0x4e   : > { %536 = vadd.xlane.f32.xlu0 %v522_v7 }
  0xb0   : > { %v533_v15 = vpop.xlane.xlu2 %532  ;;  %v529_v16 = vpop.xlane.xlu1 %528 }
  0xb1   : > { %v549_v17 = vmul.f32 %v2687_v14, %v529_v16  ;;  %v525_v18 = vpop.xlane.xlu0 %524  ;;  %v551_v32 = vmul.f32 %v2687_v14, %v533_v15 }
  0xb2   : > { %v547_v19 = vmul.f32 %v2687_v14, %v525_v18 }
  0xb3   : > { %v2691_v20 = vsub.f32 %v518_v1, %v549_v17  ;;  %v2715_v37 = vsub.f32 %v520_v0, %v551_v32 }
  0xb4   : > { %v2693_v21 = vsub.f32 %v516_v2, %v547_v19 }
  0xb5   : > { %v565_v22 = vmul.f32 %v2691_v20, %v2691_v20  ;;  %v567_v42 = vmul.f32 %v2715_v37, %v2715_v37 }
  0xb6   : > { %v563_v23 = vmul.f32 %v2693_v21, %v2693_v21 }
  0xb7   : > { %575 = vadd.xlane.f32.xlu1 %v565_v22 }
  0xb8   : > { %571 = vadd.xlane.f32.xlu2 %v563_v23  ;;  %v535_v24 = vpop.xlane.xlu2 %534  ;;  %v531_v25 = vpop.xlane.xlu1 %530 }
  0xb9   : > { %v552_v26 = vmul.f32 %v2687_v14, %v535_v24  ;;  %v550_v27 = vmul.f32 %v2687_v14, %v531_v25  ;;  %v527_v28 = vpop.xlane.xlu0 %526 }
  0xba   : > { %v548_v29 = vmul.f32 %v2687_v14, %v527_v28 }
  0xbb   : > { %v2702_v30 = vsub.f32 %v521_v3, %v552_v26  ;;  %v2704_v31 = vsub.f32 %v519_v4, %v550_v27 }
  0xbc   : > { %v2707_v33 = vsub.f32 %v517_v5, %v548_v29 }
  0xbd   : > { %v568_v34 = vmul.f32 %v2702_v30, %v2702_v30  ;;  %v566_v35 = vmul.f32 %v2704_v31, %v2704_v31 }
  0xbe   : > { %v564_v36 = vmul.f32 %v2707_v33, %v2707_v33 }
  0xbf   : > { %581 = vadd.xlane.f32.xlu1 %v568_v34 }
  0xc0   : > { %577 = vadd.xlane.f32.xlu2 %v566_v35  ;;  %573 = vadd.xlane.f32.xlu0 %v564_v36  ;;  %v539_v39 = vpop.xlane.xlu1 %538 }
  0xc1   : > { %v537_v38 = vpop.xlane.xlu0 %536  ;;  %v554_v43 = vmul.f32 %v2687_v14, %v539_v39 }
  0xc2   : > { %v553_v40 = vmul.f32 %v2687_v14, %v537_v38 }
  0xc3   : > { %v2725_v45 = vsub.f32 %v523_v6, %v554_v43 }
  0xc4   : > { %v2718_v41 = vsub.f32 %v522_v7, %v553_v40 }
  0xc5   : > { %v570_v46 = vmul.f32 %v2725_v45, %v2725_v45 }
  0xc6   : > { %v569_v44 = vmul.f32 %v2718_v41, %v2718_v41 }
  0xc8   : > { %579 = vadd.xlane.f32.xlu0 %v567_v42  ;;  %583 = vadd.xlane.f32.xlu2 %v569_v44  ;;  %v2770_v42 = vld [vmem:[%s3483_s30] ss:$0 sm:$0xff] }
  0xd0   : > { %585 = vadd.xlane.f32.xlu0 %v570_v46 }
 0x12a   : > { %v576_v47 = vpop.xlane.xlu1 %575 }
 0x12b   : > { %v589_v48 = vmul.f32 %v576_v47, %v2687_v14  ;;  %v572_v49 = vpop.xlane.xlu2 %571 }
 0x12c   : > { %v587_v50 = vmul.f32 %v572_v49, %v2687_v14  ;;  %v2494_v49 = vmov 0.0  }
 0x12d   : > { %v597_v51 = vadd.f32 1e-05, %v589_v48  ;;  %731 = vst [vmem:[#allocation2 + $0x30] sm:$0xff] %v2494_v49 }
 0x12e   : > { %v595_v52 = vadd.f32 1e-05, %v587_v50  ;;  %732 = vst [vmem:[#allocation2] sm:$0xff] %v2494_v49 }
 0x12f   : > { %2261 = vrsqrt.f32 %v597_v51  ;;  %vm629_vm1 = vweird.f32 %v597_v51  ;;  %733 = vst [vmem:[#allocation2 + $0x18] sm:$0xff] %v2494_v49 }
 0x130   : > { %2263 = vrsqrt.f32 %v595_v52  ;;  %vm609_vm5 = vweird.f32 %v595_v52  ;;  %734 = vst [vmem:[#allocation2 + $0x10] sm:$0xff] %v2494_v49 }
 0x131   : > { %735 = vst [vmem:[#allocation2 + $0x8] sm:$0xff] %v2494_v49 }
 0x132   : > { %v582_v53 = vpop.xlane.xlu1 %581  ;;  %736 = vst [vmem:[#allocation2 + $0x20] sm:$0xff] %v2494_v49 }
 0x133   : > { %v592_v54 = vmul.f32 %v582_v53, %v2687_v14  ;;  %v578_v55 = vpop.xlane.xlu2 %577  ;;  %v574_v56 = vpop.xlane.xlu0 %573  ;;  %737 = vst [vmem:[#allocation2 + $0x28] sm:$0xff] %v2494_v49 }
 0x134   : > { %v590_v57 = vmul.f32 %v578_v55, %v2687_v14  ;;  %v588_v58 = vmul.f32 %v574_v56, %v2687_v14  ;;  %738 = vst [vmem:[#allocation2 + $0x38] sm:$0xff] %v2494_v49 }
 0x135   : > { %v2262_v59 = vpop.eup %2261  ;;  %v2734_v60 = vadd.f32 1e-05, %v592_v54 }
 0x136   : > { %v2264_v61 = vpop.eup %2263  ;;  %v624_v62 = vmul.f32 %v2262_v59, %v597_v51  ;;  %v598_v63 = vadd.f32 1e-05, %v590_v57  ;;  %v2736_v0 = vadd.f32 1e-05, %v588_v58  ;;  %vm630_vm2 = vweird.f32 %v2262_v59 }
 0x137   : > { %v604_v1 = vmul.f32 %v2264_v61, %v595_v52  ;;  %2265 = vrsqrt.f32 %v2734_v60  ;;  %vm610_vm3 = vweird.f32 %v2264_v61  ;;  %vm2752_vm4 = vmor %vm629_vm1, %vm630_vm2  ;;  %vm659_vm10 = vweird.f32 %v2734_v60 }
 0x138   : > { %v625_v2 = vmul.f32 %v2262_v59, %v624_v62  ;;  %2267 = vrsqrt.f32 %v598_v63  ;;  %vm2759_vm6 = vmor %vm609_vm5, %vm610_vm3  ;;  %vm639_vm7 = vweird.f32 %v598_v63  ;;  %vm619_vm13 = vweird.f32 %v2736_v0 }
 0x139   : > { %v605_v3 = vmul.f32 %v2264_v61, %v604_v1  ;;  %2269 = vrsqrt.f32 %v2736_v0 }
 0x13a   : > { %v626_v4 = vmul.f32 0.5, %v625_v2 }
 0x13b   : > { %v606_v5 = vmul.f32 0.5, %v605_v3  ;;  %v584_v6 = vpop.xlane.xlu2 %583  ;;  %v580_v7 = vpop.xlane.xlu0 %579 }
 0x13c   : > { %v627_v8 = vsub.f32 1.5, %v626_v4  ;;  %v593_v9 = vmul.f32 %v584_v6, %v2687_v14  ;;  %v591_v10 = vmul.f32 %v580_v7, %v2687_v14 }
 0x13d   : > { %v2742_v11 = vpop.eup %2265  ;;  %v607_v12 = vsub.f32 1.5, %v606_v5 }
 0x13e   : > { %v2268_v13 = vpop.eup %2267  ;;  %v628_v15 = vmul.f32 %v2262_v59, %v627_v8  ;;  %v654_v16 = vmul.f32 %v2742_v11, %v2734_v60  ;;  %v2746_v17 = vadd.f32 1e-05, %v593_v9  ;;  %v2748_v22 = vadd.f32 1e-05, %v591_v10 }
 0x13f   : > { %v2270_v18 = vpop.eup %2269  ;;  %v634_v19 = vmul.f32 %v2268_v13, %v598_v63  ;;  %v608_v23 = vmul.f32 %v2264_v61, %v607_v12  ;;  %vm640_vm8 = vweird.f32 %v2268_v13  ;;  %vm660_vm11 = vweird.f32 %v2742_v11 }
 0x140   : > { %v655_v24 = vmul.f32 %v2742_v11, %v654_v16  ;;  %v614_v25 = vmul.f32 %v2270_v18, %v2736_v0  ;;  %2271 = vrsqrt.f32 %v2746_v17  ;;  %v632_v28 = vsel %vm2752_vm4, %v2262_v59, %v628_v15  ;;  %vm641_vm12 = vmor %vm639_vm7, %vm640_vm8 }
 0x141   : > { %v635_v27 = vmul.f32 %v2268_v13, %v634_v19  ;;  %2273 = vrsqrt.f32 %v2748_v22  ;;  %v612_v38 = vsel %vm2759_vm6, %v2264_v61, %v608_v23  ;;  %v685_v43 = vmul.f32 %v632_v28, %v2691_v20  ;;  %vm2802_vm15 = vmor %vm659_vm10, %vm660_vm11 }
 0x142   : > { %v656_v29 = vmul.f32 0.5, %v655_v24  ;;  %v615_v32 = vmul.f32 %v2270_v18, %v614_v25  ;;  %vm620_vm9 = vweird.f32 %v2270_v18  ;;  %v683_v51 = vmul.f32 %v612_v38, %v2693_v21  ;;  %v2788_v21 = vld [vmem:[%s3484_s17] ss:$0 sm:$0xff] }
 0x143   : > { %v636_v35 = vmul.f32 0.5, %v635_v27  ;;  %v586_v36 = vpop.xlane.xlu0 %585  ;;  %v697_v54 = vmul.f32 %v2770_v42, %v685_v43  ;;  %vm621_vm14 = vmor %vm619_vm13, %vm620_vm9  ;;  %vm669_vm0 = vweird.f32 %v2746_v17  ;;  %vm649_vm4 = vweird.f32 %v2748_v22 }
 0x144   : > { %v616_v39 = vmul.f32 0.5, %v615_v32  ;;  %v594_v40 = vmul.f32 %v586_v36, %v2687_v14  ;;  %v657_v44 = vsub.f32 1.5, %v656_v29  ;;  %v695_v62 = vmul.f32 %v2770_v42, %v683_v51 }
 0x145   : > { %v637_v46 = vsub.f32 1.5, %v636_v35  ;;  %v709_v3 = vadd.f32 %v2788_v21, %v697_v54 }
 0x146   : > { %v617_v47 = vsub.f32 1.5, %v616_v39  ;;  %v2773_v48 = vadd.f32 1e-05, %v594_v40  ;;  %v2775_v50 = vpop.eup %2271  ;;  %v658_v55 = vmul.f32 %v2742_v11, %v657_v44  ;;  %v707_v8 = vadd.f32 %v2788_v21, %v695_v62 }
 0x147   : > { %v638_v14 = vmul.f32 %v2268_v13, %v637_v46  ;;  %v664_v52 = vmul.f32 %v2775_v50, %v2746_v17  ;;  %v2274_v53 = vpop.eup %2273  ;;  %vm670_vm1 = vweird.f32 %v2775_v50 }
 0x148   : > { %v618_v20 = vmul.f32 %v2270_v18, %v617_v47  ;;  %2275 = vrsqrt.f32 %v2773_v48  ;;  %v644_v61 = vmul.f32 %v2274_v53, %v2748_v22  ;;  %v662_v60 = vsel %vm2802_vm15, %v2742_v11, %v658_v55  ;;  %vm671_vm3 = vmor %vm669_vm0, %vm670_vm1 }
 0x149   : > { %v642_v56 = vsel %vm641_vm12, %v2268_v13, %v638_v14  ;;  %v665_v59 = vmul.f32 %v2775_v50, %v664_v52  ;;  %vm650_vm2 = vweird.f32 %v2274_v53  ;;  %v688_v11 = vmul.f32 %v662_v60, %v2702_v30 }
 0x14a   : > { %v686_v57 = vmul.f32 %v642_v56, %v2704_v31  ;;  %v622_v58 = vsel %vm621_vm14, %v2270_v18, %v618_v20  ;;  %v645_v2 = vmul.f32 %v2274_v53, %v644_v61  ;;  %vm651_vm5 = vmor %vm649_vm4, %vm650_vm2  ;;  %vm679_vm7 = vweird.f32 %v2773_v48 }
 0x14b   : > { %v684_v0 = vmul.f32 %v622_v58, %v2707_v33  ;;  %v666_v1 = vmul.f32 0.5, %v665_v59  ;;  %v700_v26 = vmul.f32 %v2770_v42, %v688_v11 }
 0x14c   : > { %v698_v31 = vmul.f32 %v2770_v42, %v686_v57  ;;  %v646_v6 = vmul.f32 0.5, %v645_v2 }
 0x14d   : > { %v696_v4 = vmul.f32 %v2770_v42, %v684_v0  ;;  %v667_v33 = vsub.f32 1.5, %v666_v1  ;;  %v712_v22 = vadd.f32 %v2788_v21, %v700_v26 }
 0x14e   : > { %v710_v5 = vadd.f32 %v2788_v21, %v698_v31  ;;  %v2276_v7 = vpop.eup %2275  ;;  %v647_v13 = vsub.f32 1.5, %v646_v6 }
 0x14f   : > { %v708_v9 = vadd.f32 %v2788_v21, %v696_v4  ;;  %v668_v12 = vmul.f32 %v2775_v50, %v667_v33  ;;  %v674_v15 = vmul.f32 %v2276_v7, %v2773_v48  ;;  %vm680_vm6 = vweird.f32 %v2276_v7 }
 0x150   : > { %v2154_v10 = vpack.c.bf16 %v710_v5, %v709_v3  ;;  %v648_v18 = vmul.f32 %v2274_v53, %v647_v13  ;;  %vm681_vm8 = vmor %vm679_vm7, %vm680_vm6 }
 0x151   : > { %v2149_v16 = vpack.c.bf16 %v708_v9, %v707_v8  ;;  %v675_v19 = vmul.f32 %v2276_v7, %v674_v15  ;;  %v672_v23 = vsel %vm671_vm3, %v2775_v50, %v668_v12 }
 0x152   : > { %2166 = vst [vmem:[#allocation3 + $0x18] sm:$0xff] %v2154_v10   ;;  %v652_v24 = vsel %vm651_vm5, %v2274_v53, %v648_v18  ;;  %v689_v28 = vmul.f32 %v672_v23, %v2718_v41 }
 0x153   : > { %2150 = vst [vmem:[#allocation3] sm:$0xff] %v2149_v16   ;;  %v676_v25 = vmul.f32 0.5, %v675_v19  ;;  %v687_v27 = vmul.f32 %v652_v24, %v2715_v37 }
 0x154   : > { %v701_v35 = vmul.f32 %v2770_v42, %v689_v28 }
 0x155   : > { %v677_v30 = vsub.f32 1.5, %v676_v25  ;;  %v699_v17 = vmul.f32 %v2770_v42, %v687_v27 }
 0x156   : > { %v713_v41 = vadd.f32 %v2788_v21, %v701_v35 }
 0x157   : > { %v678_v29 = vmul.f32 %v2276_v7, %v677_v30  ;;  %v711_v32 = vadd.f32 %v2788_v21, %v699_v17 }
 0x159   : > { %v682_v34 = vsel %vm681_vm8, %v2276_v7, %v678_v29  ;;  %v2159_v36 = vpack.c.bf16 %v712_v22, %v711_v32 }
 0x15a   : > { %v690_v37 = vmul.f32 %v682_v34, %v2725_v45 }
 0x15b   : > { %2167 = vst [vmem:[#allocation3 + $0x10] sm:$0xff] %v2159_v36  }
 0x15c   : > { %v702_v38 = vmul.f32 %v2770_v42, %v690_v37 }
 0x15e   : > { %v714_v39 = vadd.f32 %v2788_v21, %v702_v38 }
 0x160   : > { %v2164_v40 = vpack.c.bf16 %v714_v39, %v713_v41 }
 0x162   : > { %2168 = vst [vmem:[#allocation3 + $0x8] sm:$0xff] %v2164_v40  }
 0x163 PF: > { %v1936_v45 = vld [vmem:[%s2635_s15 + $0x70] sm:$0xf]  ;;  %v2113_v43 = vld [vmem:[%s2635_s15 + $0x74] sm:$0xf0]  ;;  %v2112_v42 = vld [vmem:[%s2635_s15 + $0x74] sm:$0xf] }
 0x164   : > { %v1937_v44 = vor.u32 %v2113_v43, %v1936_v45  ;;  %v1938_v46 = vld [vmem:[%s2635_s15 + $0x78] sm:$0xf0]  ;;  %v1928_v47 = vld [vmem:[%s2635_s15 + $0x60] sm:$0xf]  ;;  %v2111_v48 = vld [vmem:[%s2635_s15 + $0x64] sm:$0xf0] }
 0x165   : > { %v1941_v49 = vor.u32 %v2112_v42, %v1938_v46  ;;  %v2110_v50 = vld [vmem:[%s2635_s15 + $0x64] sm:$0xf]  ;;  %v1930_v51 = vld [vmem:[%s2635_s15 + $0x68] sm:$0xf0]  ;;  %v1929_v14 = vor.u32 %v2111_v48, %v1928_v47  ;;  %v1920_v52 = vld [vmem:[%s2635_s15 + $0x50] sm:$0xf] }
 0x166   : > { %2169 = vmatpush.bf16.msra.mxu2 %v1937_v44  ;;  %873 = vmatpush.bf16.msra.mxu0 %v1937_v44  ;;  %v1933_v20 = vor.u32 %v2110_v50, %v1930_v51  ;;  %v2109_v53 = vld [vmem:[%s2635_s15 + $0x54] sm:$0xf0]  ;;  %v2108_v21 = vld [vmem:[%s2635_s15 + $0x54] sm:$0xf]  ;;  %v1922_v54 = vld [vmem:[%s2635_s15 + $0x58] sm:$0xf0] }
 0x167   : > { %2177 = vmatpush.bf16.msra.mxu3 %v1941_v49  ;;  %902 = vmatpush.bf16.msra.mxu1 %v1941_v49  ;;  %v1921_v55 = vor.u32 %v2109_v53, %v1920_v52  ;;  %v1925_v56 = vor.u32 %v2108_v21, %v1922_v54  ;;  %v1912_v57 = vld [vmem:[%s2635_s15 + $0x40] sm:$0xf]  ;;  %v2107_v58 = vld [vmem:[%s2635_s15 + $0x44] sm:$0xf0]  ;;  %v2106_v59 = vld [vmem:[%s2635_s15 + $0x44] sm:$0xf] }
 0x168   : > { %v1914_v61 = vld [vmem:[%s2635_s15 + $0x48] sm:$0xf0]  ;;  %v1913_v62 = vor.u32 %v2107_v58, %v1912_v57  ;;  %v1904_v0 = vld [vmem:[%s2635_s15 + $0x30] sm:$0xf]  ;;  %v2105_v31 = vld [vmem:[%s2635_s15 + $0x34] sm:$0xf0] }
 0x169   : > { %v1917_v63 = vor.u32 %v2106_v59, %v1914_v61  ;;  %v2104_v1 = vld [vmem:[%s2635_s15 + $0x34] sm:$0xf]  ;;  %v1906_v2 = vld [vmem:[%s2635_s15 + $0x38] sm:$0xf0]  ;;  %v1905_v3 = vor.u32 %v2105_v31, %v1904_v0  ;;  %v1896_v60 = vld [vmem:[%s2635_s15 + $0x20] sm:$0xf] }
 0x16a   : > { %2170 = vmatpush.bf16.msra.mxu2 %v1929_v14  ;;  %874 = vmatpush.bf16.msra.mxu0 %v1929_v14  ;;  %v1909_v4 = vor.u32 %v2104_v1, %v1906_v2  ;;  %v2103_v5 = vld [vmem:[%s2635_s15 + $0x24] sm:$0xf0]  ;;  %v2102_v33 = vld [vmem:[%s2635_s15 + $0x24] sm:$0xf]  ;;  %v1898_v6 = vld [vmem:[%s2635_s15 + $0x28] sm:$0xf0] }
 0x16b   : > { %2178 = vmatpush.bf16.msra.mxu3 %v1933_v20  ;;  %903 = vmatpush.bf16.msra.mxu1 %v1933_v20  ;;  %v1897_v7 = vor.u32 %v2103_v5, %v1896_v60  ;;  %v1901_v8 = vor.u32 %v2102_v33, %v1898_v6  ;;  %v1888_v9 = vld [vmem:[%s2635_s15 + $0x10] sm:$0xf]  ;;  %v2101_v10 = vld [vmem:[%s2635_s15 + $0x14] sm:$0xf0]  ;;  %v2100_v12 = vld [vmem:[%s2635_s15 + $0x14] sm:$0xf] }
 0x16c   : > { %v1890_v13 = vld [vmem:[%s2635_s15 + $0x18] sm:$0xf0]  ;;  %v1889_v15 = vor.u32 %v2101_v10, %v1888_v9  ;;  %v1880_v16 = vld [vmem:[%s2635_s15] sm:$0xf]  ;;  %v2099_v18 = vld [vmem:[%s2635_s15 + $0x4] sm:$0xf0] }
 0x16d   : > { %v1893_v11 = vor.u32 %v2100_v12, %v1890_v13  ;;  %v2098_v19 = vld [vmem:[%s2635_s15 + $0x4] sm:$0xf]  ;;  %v1882_v23 = vld [vmem:[%s2635_s15 + $0x8] sm:$0xf0]  ;;  %v2000_v24 = vld [vmem:[%s2643_s6 + $0x70] sm:$0xf]  ;;  %v1881_v30 = vor.u32 %v2099_v18, %v1880_v16 }
 0x16e   : > { %2171 = vmatpush.bf16.msra.mxu2 %v1921_v55  ;;  %875 = vmatpush.bf16.msra.mxu0 %v1921_v55  ;;  %v2129_v25 = vld [vmem:[%s2643_s6 + $0x74] sm:$0xf0]  ;;  %v2128_v26 = vld [vmem:[%s2643_s6 + $0x74] sm:$0xf]  ;;  %v2002_v27 = vld [vmem:[%s2643_s6 + $0x78] sm:$0xf0]  ;;  %v1885_v28 = vor.u32 %v2098_v19, %v1882_v23 }
 0x16f   : > { %2179 = vmatpush.bf16.msra.mxu3 %v1925_v56  ;;  %904 = vmatpush.bf16.msra.mxu1 %v1925_v56  ;;  %v2001_v17 = vor.u32 %v2129_v25, %v2000_v24  ;;  %v2005_v29 = vor.u32 %v2128_v26, %v2002_v27  ;;  %v1992_v22 = vld [vmem:[%s2643_s6 + $0x60] sm:$0xf]  ;;  %v2127_v32 = vld [vmem:[%s2643_s6 + $0x64] sm:$0xf0]  ;;  %v2875_v34 = vld [vmem:[#allocation3 + $0x10] sm:$0xff]  ;;  %p2086_p1 = scmp.ne.s32.totalorder %s2478_s12, 1 }
 0x170   : > { %v2126_v35 = vld [vmem:[%s2643_s6 + $0x64] sm:$0xf]  ;;  %v1994_v36 = vld [vmem:[%s2643_s6 + $0x68] sm:$0xf0]  ;;  %v1993_v37 = vor.u32 %v2127_v32, %v1992_v22  ;;  %v1984_v39 = vld [vmem:[%s2643_s6 + $0x50] sm:$0xf] }
 0x171   : > { %v2879_v38 = vld [vmem:[#allocation3] sm:$0xff]  ;;  %v1997_v41 = vor.u32 %v2126_v35, %v1994_v36  ;;  %v2125_v40 = vld [vmem:[%s2643_s6 + $0x54] sm:$0xf0]  ;;  %v2124_v45 = vld [vmem:[%s2643_s6 + $0x54] sm:$0xf]  ;;  %s3521_s11 = sld [smem:[#allocation19_spill]] (!%p2086_p1) }
 0x172   : > { %2172 = vmatpush.bf16.msra.mxu2 %v1913_v62  ;;  %876 = vmatpush.bf16.msra.mxu0 %v1913_v62  ;;  %v1986_v43 = vld [vmem:[%s2643_s6 + $0x58] sm:$0xf0]  ;;  %v1985_v42 = vor.u32 %v2125_v40, %v1984_v39  ;;  %v1976_v46 = vld [vmem:[%s2643_s6 + $0x40] sm:$0xf]  ;;  %v2123_v47 = vld [vmem:[%s2643_s6 + $0x44] sm:$0xf0] }
 0x173   : > { %2180 = vmatpush.bf16.msra.mxu3 %v1917_v63  ;;  %905 = vmatpush.bf16.msra.mxu1 %v1917_v63  ;;  %v1989_v44 = vor.u32 %v2124_v45, %v1986_v43  ;;  %v2122_v48 = vld [vmem:[%s2643_s6 + $0x44] sm:$0xf]  ;;  %v1978_v49 = vld [vmem:[%s2643_s6 + $0x48] sm:$0xf0]  ;;  %v1977_v50 = vor.u32 %v2123_v47, %v1976_v46  ;;  %v1968_v14 = vld [vmem:[%s2643_s6 + $0x30] sm:$0xf] }
 0x174   : > { %v1981_v51 = vor.u32 %v2122_v48, %v1978_v49  ;;  %v2121_v20 = vld [vmem:[%s2643_s6 + $0x34] sm:$0xf0]  ;;  %v2120_v52 = vld [vmem:[%s2643_s6 + $0x34] sm:$0xf]  ;;  %v1970_v53 = vld [vmem:[%s2643_s6 + $0x38] sm:$0xf0] }
 0x175   : > { %v1969_v21 = vor.u32 %v2121_v20, %v1968_v14  ;;  %v1973_v54 = vor.u32 %v2120_v52, %v1970_v53  ;;  %v1960_v55 = vld [vmem:[%s2643_s6 + $0x20] sm:$0xf]  ;;  %v2119_v56 = vld [vmem:[%s2643_s6 + $0x24] sm:$0xf0]  ;;  %v2118_v58 = vld [vmem:[%s2643_s6 + $0x24] sm:$0xf] }
 0x176   : > { %2173 = vmatpush.bf16.msra.mxu2 %v1905_v3  ;;  %877 = vmatpush.bf16.msra.mxu0 %v1905_v3  ;;  %v2097_v57 = vld [vmem:[#allocation3 + $0x8] sm:$0xff]  ;;  %v1961_v61 = vor.u32 %v2119_v56, %v1960_v55  ;;  %v2095_v62 = vld [vmem:[#allocation3 + $0x18] sm:$0xff]  ;;  %v1952_v0 = vld [vmem:[%s2643_s6 + $0x10] sm:$0xf]  ;;  %s3522_s15 = sld [smem:[#allocation20_spill]] (!%p2086_p1) }
 0x177   : > { %2181 = vmatpush.bf16.msra.mxu3 %v1909_v4  ;;  %906 = vmatpush.bf16.msra.mxu1 %v1909_v4  ;;  %v1962_v59 = vld [vmem:[%s2643_s6 + $0x28] sm:$0xf0]  ;;  %v2117_v31 = vld [vmem:[%s2643_s6 + $0x14] sm:$0xf0]  ;;  %v2116_v1 = vld [vmem:[%s2643_s6 + $0x14] sm:$0xf] }
 0x178   : > { %v1965_v63 = vor.u32 %v2118_v58, %v1962_v59  ;;  %v1954_v2 = vld [vmem:[%s2643_s6 + $0x18] sm:$0xf0]  ;;  %v1953_v3 = vor.u32 %v2117_v31, %v1952_v0  ;;  %v1944_v60 = vld [vmem:[%s2643_s6] sm:$0xf]  ;;  %v2115_v5 = vld [vmem:[%s2643_s6 + $0x4] sm:$0xf0] }
 0x179   : > { %v1957_v4 = vor.u32 %v2116_v1, %v1954_v2  ;;  %v2114_v33 = vld [vmem:[%s2643_s6 + $0x4] sm:$0xf]  ;;  %v1946_v6 = vld [vmem:[%s2643_s6 + $0x8] sm:$0xf0]  ;;  %v2145_v16 = vld [vmem:[%s2660_s28 + $0x78] sm:$0xff] }
 0x17a   : > { %2174 = vmatpush.bf16.msra.mxu2 %v1897_v7  ;;  %878 = vmatpush.bf16.msra.mxu0 %v1897_v7  ;;  %v1945_v7 = vor.u32 %v2115_v5, %v1944_v60  ;;  %v2136_v19 = vld [vmem:[%s2660_s28 + $0x30] sm:$0xff]  ;;  %v947_v26 = vld [vmem:[%s503_s26] sm:$0x3]  ;;  %v2135_v27 = vld [vmem:[%s2660_s28 + $0x28] sm:$0xff] }
 0x17b   : > { %2182 = vmatpush.bf16.msra.mxu3 %v1901_v8  ;;  %907 = vmatpush.bf16.msra.mxu1 %v1901_v8  ;;  %v1949_v8 = vor.u32 %v2114_v33, %v1946_v6  ;;  %v2144_v23 = vld [vmem:[%s2660_s28 + $0x70] sm:$0xff]  ;;  %v2134_v35 = vld [vmem:[%s2660_s28 + $0x20] sm:$0xff]  ;;  %v2141_v39 = vld [vmem:[%s2660_s28 + $0x58] sm:$0xff] }
 0x17c   : > { %v2142_v36 = vld [vmem:[%s2660_s28 + $0x60] sm:$0xff]  ;;  %v2140_v46 = vld [vmem:[%s2660_s28 + $0x50] sm:$0xff]  ;;  %v2131_v20 = vld [vmem:[%s2660_s28 + $0x8] sm:$0xff] }
 0x17d   : > { %v2139_v52 = vld [vmem:[%s2660_s28 + $0x48] sm:$0xff] }
 0x17e   : > { %2175 = vmatpush.bf16.msra.mxu2 %v1889_v15  ;;  %879 = vmatpush.bf16.msra.mxu0 %v1889_v15 }
 0x17f   : > { %2183 = vmatpush.bf16.msra.mxu3 %v1893_v11  ;;  %908 = vmatpush.bf16.msra.mxu1 %v1893_v11  ;;  %v2137_v11 = vld [vmem:[%s2660_s28 + $0x38] sm:$0xff] }
 0x182   : > { %2176 = vmatpush.bf16.msra.mxu2 %v1881_v30  ;;  %880 = vmatpush.bf16.msra.mxu0 %v1881_v30  ;;  %v2143_v30 = vld [vmem:[%s2660_s28 + $0x68] sm:$0xff] }
 0x183   : > { %2184 = vmatpush.bf16.msra.mxu3 %v1885_v28  ;;  %909 = vmatpush.bf16.msra.mxu1 %v1885_v28  ;;  %v2940_v28 = vperm.slane %v947_v26, 0 }
 0x185   : > { %891 = vmatmul.bf16.vlgmr.msra.gmra.mxu2 %v2875_v34  ;;  %881 = vmatmul.bf16.vlgmr.msra.gmra.mxu0 %v2879_v38 }
 0x186   : > { %1033 = vmatpush.bf16.msrb.mxu2 %v2001_v17  ;;  %920 = vmatmul.bf16.vlgmr.msra.gmra.mxu3 %v2875_v34  ;;  %v2942_v17 = vperm.slane %v947_v26, 1 }
 0x187   : > { %1062 = vmatpush.bf16.msrb.mxu3 %v2005_v29  ;;  %910 = vmatmul.bf16.vlgmr.msra.gmra.mxu1 %v2879_v38 }
 0x188   : > { %1571 = vmatpush.bf16.msrb.mxu0 %v2137_v11  ;;  %1600 = vmatpush.bf16.msrb.mxu1 %v2145_v16 }
 0x18a   : > { %1034 = vmatpush.bf16.msrb.mxu2 %v1993_v37 }
 0x18b   : > { %1063 = vmatpush.bf16.msrb.mxu3 %v1997_v41  ;;  %v2133_v41 = vld [vmem:[%s2660_s28 + $0x18] sm:$0xff] }
 0x18c   : > { %1572 = vmatpush.bf16.msrb.mxu0 %v2136_v19  ;;  %1601 = vmatpush.bf16.msrb.mxu1 %v2144_v23 }
 0x18e   : > { %1035 = vmatpush.bf16.msrb.mxu2 %v1985_v42 }
 0x18f   : > { %1064 = vmatpush.bf16.msrb.mxu3 %v1989_v44  ;;  %v2132_v44 = vld [vmem:[%s2660_s28 + $0x10] sm:$0xff] }
 0x190   : > { %1573 = vmatpush.bf16.msrb.mxu0 %v2135_v27  ;;  %1602 = vmatpush.bf16.msrb.mxu1 %v2143_v30 }
 0x192   : > { %1036 = vmatpush.bf16.msrb.mxu2 %v1977_v50 }
 0x193   : > { %1065 = vmatpush.bf16.msrb.mxu3 %v1981_v51 }
 0x194   : > { %1574 = vmatpush.bf16.msrb.mxu0 %v2134_v35  ;;  %1603 = vmatpush.bf16.msrb.mxu1 %v2142_v36 }
 0x195   : > { %896 = vmatmul.bf16.gmra.mxu2 %v2097_v57  ;;  %886 = vmatmul.bf16.gmra.mxu0 %v2095_v62 }
 0x196   : > { %1037 = vmatpush.bf16.msrb.mxu2 %v1969_v21  ;;  %925 = vmatmul.bf16.gmra.mxu3 %v2097_v57 }
 0x197   : > { %1066 = vmatpush.bf16.msrb.mxu3 %v1973_v54  ;;  %915 = vmatmul.bf16.gmra.mxu1 %v2095_v62 }
 0x198   : > { %1575 = vmatpush.bf16.msrb.mxu0 %v2133_v41  ;;  %1604 = vmatpush.bf16.msrb.mxu1 %v2141_v39 }
 0x19a   : > { %1038 = vmatpush.bf16.msrb.mxu2 %v1961_v61  ;;  %v2130_v61 = vld [vmem:[%s2660_s28] sm:$0xff] }
 0x19b   : > { %1067 = vmatpush.bf16.msrb.mxu3 %v1965_v63 }
 0x19c   : > { %1576 = vmatpush.bf16.msrb.mxu0 %v2132_v44  ;;  %1605 = vmatpush.bf16.msrb.mxu1 %v2140_v46 }
 0x19e   : > { %1039 = vmatpush.bf16.msrb.mxu2 %v1953_v3 }
 0x19f   : > { %1068 = vmatpush.bf16.msrb.mxu3 %v1957_v4  ;;  %v763_v4 = vld [vmem:[%s497_s21] sm:$0x3] }
 0x1a0   : > { %1577 = vmatpush.bf16.msrb.mxu0 %v2131_v20  ;;  %1606 = vmatpush.bf16.msrb.mxu1 %v2139_v52  ;;  %v3006_v19 = vperm.slane %v763_v4, 1 }
 0x1a2   : > { %1040 = vmatpush.bf16.msrb.mxu2 %v1945_v7  ;;  %v3002_v7 = vperm.slane %v763_v4, 0 }
 0x1a3   : > { %1069 = vmatpush.bf16.msrb.mxu3 %v1949_v8 }
 0x1a4   : > { %1578 = vmatpush.bf16.msrb.mxu0 %v2130_v61 }
 0x1a5   : > { %1041 = vmatmul.bf16.vlgmr.msrb.gmra.mxu2 %v2879_v38 }
 0x1a6   : > { %1070 = vmatmul.bf16.vlgmr.msrb.gmra.mxu3 %v2879_v38 }
 0x1b5   : > { %1046 = vmatmul.bf16.gmra.mxu2 %v2095_v62 }
 0x1b6   : > { %1075 = vmatmul.bf16.gmra.mxu3 %v2095_v62  ;;  %v2138_v62 = vld [vmem:[%s2660_s28 + $0x40] sm:$0xff]  ;;  %s3520_s28 = sld [smem:[#allocation14_spill]] (!%p2086_p1) }
 0x1b7   : > { %1607 = vmatpush.bf16.msrb.mxu1 %v2138_v62 }
 0x1c5   : > { %1051 = vmatmul.bf16.gmra.mxu2 %v2875_v34 }
 0x1c6   : > { %1080 = vmatmul.bf16.gmra.mxu3 %v2875_v34 }
 0x1d5   : > { %1056 = vmatmul.bf16.gmra.mxu2 %v2097_v57 }
 0x1d6   : > { %1085 = vmatmul.bf16.gmra.mxu3 %v2097_v57 }
 0x202   : > { %v882_v53 = vpop.f32.mrf.mxu0 }
 0x203   : > { %v3013_v35 = vadd.f32 %v882_v53, %v3002_v7 }
 0x204   : > { %v911_v59 = vpop.f32.mrf.mxu1 }
 0x205   : > { %v3022_v41 = vadd.f32 %v911_v59, %v3006_v19 }
 0x208   : > { %v2913_v9 = vpop.f32.mrf.mxu2 }
 0x209   : > { %v2915_v10 = vpop.f32.mrf.mxu3 }
 0x20a   : > { %v884_v16 = vpop.f32.mrf.mxu0 }
 0x20b   : > { %v3025_v39 = vadd.f32 %v884_v16, %v3002_v7 }
 0x20c   : > { %v3030_v46 = vpop.f32.mrf.mxu1 }
 0x210   : > { %v2917_v12 = vpop.f32.mrf.mxu2 }
 0x211   : > { %v2919_v13 = vpop.f32.mrf.mxu3 }
 0x218   : > { %v2921_v15 = vpop.f32.mrf.mxu2 }
 0x219   : > { %v2925_v18 = vpop.f32.mrf.mxu3 }
 0x220   : > { %v2929_v24 = vpop.f32.mrf.mxu2 }
 0x221   : > { %v2931_v25 = vpop.f32.mrf.mxu3 }
 0x228   : > { %v1042_v29 = vpop.f32.mrf.mxu2 }
 0x229   : > { %v2945_v22 = vadd.f32 %v1042_v29, %v2940_v28  ;;  %v1071_v32 = vpop.f32.mrf.mxu3 }
 0x22a   : > { %v2948_v34 = vadd.f32 %v1071_v32, %v2942_v17 }
 0x22b   : > { %v2006_v37 = vmul.f32 -1.442695, %v2945_v22 }
 0x22c   : > { %v2007_v38 = vmul.f32 -1.442695, %v2948_v34 }
 0x22d   : > { %2277 = vpow2.f32 %v2006_v37 }
 0x22e   : > { %2279 = vpow2.f32 %v2007_v38 }
 0x230   : > { %v1044_v40 = vpop.f32.mrf.mxu2 }
 0x231   : > { %v2957_v45 = vadd.f32 %v1044_v40, %v2940_v28  ;;  %v1073_v43 = vpop.f32.mrf.mxu3 }
 0x232   : > { %v2960_v42 = vadd.f32 %v1073_v43, %v2942_v17 }
 0x233   : > { %v2278_v47 = vpop.eup %2277  ;;  %v2008_v48 = vmul.f32 -1.442695, %v2957_v45 }
 0x234   : > { %v2280_v49 = vpop.eup %2279  ;;  %v2965_v50 = vadd.f32 1.0, %v2278_v47  ;;  %v2009_v51 = vmul.f32 -1.442695, %v2960_v42 }
 0x235   : > { %v2968_v14 = vadd.f32 1.0, %v2280_v49  ;;  %2281 = vpow2.f32 %v2008_v48 }
 0x236   : > { %2283 = vrcp.f32 %v2965_v50  ;;  %v1166_v8 = vand.u32 2147483648, %v2965_v50  ;;  %v1164_v23 = vand.u32 2147483647, %v2965_v50  ;;  %vm1160_vm9 = vweird.f32 %v2965_v50 }
 0x237   : > { %2285 = vrcp.f32 %v2968_v14  ;;  %v1181_v26 = vand.u32 2147483648, %v2968_v14  ;;  %v1179_v32 = vand.u32 2147483647, %v2968_v14  ;;  %vm1175_vm10 = vweird.f32 %v2968_v14 }
 0x238   : > { %2287 = vpow2.f32 %v2009_v51  ;;  %v1047_v21 = vpop.f32.mrf.mxu2  ;;  %v1167_v40 = vor.u32 1.1754944e-38, %v1166_v8  ;;  %vm3032_vm11 = vcmp.eq.f32.partialorder %v1164_v23, 8.507059e+37 }
 0x239   : > { %v2975_v54 = vadd.f32 %v1047_v21, %v2940_v28  ;;  %v1076_v55 = vpop.f32.mrf.mxu3  ;;  %v1182_v49 = vor.u32 1.1754944e-38, %v1181_v26  ;;  %vm3042_vm14 = vcmp.eq.f32.partialorder %v1179_v32, 8.507059e+37  ;;  %v887_v32 = vpop.f32.mrf.mxu0 }
 0x23a   : > { %v2978_v56 = vadd.f32 %v1076_v55, %v2942_v17 }
 0x23b   : > { %v2282_v57 = vpop.eup %2281  ;;  %v2010_v58 = vmul.f32 -1.442695, %v2975_v54 }
 0x23c   : > { %v2983_v63 = vpop.eup %2283  ;;  %v2985_v0 = vadd.f32 1.0, %v2282_v57  ;;  %v2011_v31 = vmul.f32 -1.442695, %v2978_v56 }
 0x23d   : > { %v2988_v1 = vpop.eup %2285  ;;  %v1156_v2 = vmul.f32 %v2983_v63, %v2965_v50  ;;  %2289 = vpow2.f32 %v2010_v58  ;;  %vm1161_vm12 = vweird.f32 %v2983_v63 }
 0x23e   : > { %v2288_v3 = vpop.eup %2287  ;;  %v1171_v60 = vmul.f32 %v2988_v1, %v2968_v14  ;;  %2291 = vrcp.f32 %v2985_v0  ;;  %v1196_v51 = vand.u32 2147483648, %v2985_v0  ;;  %vm1176_vm13 = vweird.f32 %v2988_v1  ;;  %vm3057_vm1 = vmor %vm1160_vm9, %vm1161_vm12 }
 0x23f   : > { %v1157_v5 = vsub.f32 1.0, %v1156_v2  ;;  %v3000_v33 = vadd.f32 1.0, %v2288_v3  ;;  %2293 = vpow2.f32 %v2011_v31  ;;  %vm1190_vm15 = vweird.f32 %v2985_v0  ;;  %vm3069_vm2 = vmor %vm1175_vm10, %vm1176_vm13 }
 0x240   : > { %v1049_v6 = vpop.f32.mrf.mxu2  ;;  %v1172_v11 = vsub.f32 1.0, %v1171_v60  ;;  %v1194_v57 = vand.u32 2147483647, %v2985_v0  ;;  %v1197_v4 = vor.u32 1.1754944e-38, %v1196_v51  ;;  %v3112_v3 = vadd.f32 %v887_v32, %v3002_v7 }
 0x241   : > { %2295 = vrcp.f32 %v3000_v33  ;;  %v1078_v27 = vpop.f32.mrf.mxu3  ;;  %v1158_v29 = vmul.f32 %v2983_v63, %v1157_v5  ;;  %v3016_v36 = vadd.f32 %v1049_v6, %v2940_v28  ;;  %v1209_v5 = vand.u32 2147483647, %v3000_v33 }
 0x242   : > { %v1173_v43 = vmul.f32 %v2988_v1, %v1172_v11  ;;  %v3050_v59 = vadd.f32 %v1078_v27, %v2942_v17  ;;  %v1211_v11 = vand.u32 2147483648, %v3000_v33  ;;  %vm1195_vm5 = vcmp.eq.f32.partialorder %v1194_v57, 8.507059e+37 }
 0x243   : > { %v2290_v30 = vpop.eup %2289  ;;  %v2012_v20 = vmul.f32 -1.442695, %v3016_v36  ;;  %v1159_v53 = vadd.f32 %v2983_v63, %v1158_v29  ;;  %vm1205_vm6 = vweird.f32 %v3000_v33  ;;  %vm1210_vm8 = vcmp.eq.f32.partialorder %v1209_v5, 8.507059e+37 }
 0x244   : > { %v2292_v37 = vpop.eup %2291  ;;  %v3019_v38 = vadd.f32 1.0, %v2290_v30  ;;  %v1174_v62 = vadd.f32 %v2988_v1, %v1173_v43 }
 0x245   : > { %v1186_v44 = vmul.f32 %v2292_v37, %v2985_v0  ;;  %v2294_v47 = vpop.eup %2293  ;;  %vm1191_vm0 = vweird.f32 %v2292_v37  ;;  %v1163_v6 = vsel %vm3057_vm1, %v2983_v63, %v1159_v53  ;;  %v2013_v63 = vmul.f32 -1.442695, %v3050_v59 }
 0x246   : > { %2297 = vrcp.f32 %v3019_v38  ;;  %v3053_v2 = vadd.f32 1.0, %v2294_v47  ;;  %vm1192_vm3 = vmor %vm1190_vm15, %vm1191_vm0  ;;  %v1178_v27 = vsel %vm3069_vm2, %v2988_v1, %v1174_v62  ;;  %v1212_v47 = vor.u32 1.1754944e-38, %v1211_v11  ;;  %v916_v1 = vpop.f32.mrf.mxu1 }
 0x247   : > { %v2296_v52 = vpop.eup %2295  ;;  %v1187_v55 = vsub.f32 1.0, %v1186_v44  ;;  %2299 = vpow2.f32 %v2012_v20  ;;  %v1168_v44 = vsel %vm3032_vm11, %v1167_v40, %v1163_v6  ;;  %v1183_v53 = vsel %vm3042_vm14, %v1182_v49, %v1178_v27 }
 0x248   : > { %v1201_v58 = vmul.f32 %v2296_v52, %v3000_v33  ;;  %v1052_v61 = vpop.f32.mrf.mxu2  ;;  %2301 = vrcp.f32 %v3053_v2  ;;  %vm1206_vm4 = vweird.f32 %v2296_v52  ;;  %v1395_v62 = vmul.f32 %v1168_v44, %v2945_v22 }
 0x249   : > { %v1188_v31 = vmul.f32 %v2292_v37, %v1187_v55  ;;  %v3081_v14 = vadd.f32 %v1052_v61, %v2940_v28  ;;  %v1081_v26 = vpop.f32.mrf.mxu3  ;;  %2303 = vpow2.f32 %v2013_v63  ;;  %vm1207_vm7 = vmor %vm1205_vm6, %vm1206_vm4  ;;  %v1396_v22 = vmul.f32 %v1183_v53, %v2948_v34 }
 0x24a   : > { %v1202_v60 = vsub.f32 1.0, %v1201_v58  ;;  %v3095_v57 = vadd.f32 %v1081_v26, %v2942_v17  ;;  %v1224_v58 = vand.u32 2147483647, %v3019_v38  ;;  %vm1220_vm9 = vweird.f32 %v3019_v38 }
 0x24b   : > { %v1189_v50 = vadd.f32 %v2292_v37, %v1188_v31  ;;  %v2014_v20 = vmul.f32 -1.442695, %v3081_v14  ;;  %v1226_v31 = vand.u32 2147483648, %v3019_v38  ;;  %v1241_v34 = vand.u32 2147483648, %v3053_v2 }
 0x24c   : > { %v3075_v16 = vpop.eup %2297  ;;  %v1203_v23 = vmul.f32 %v2296_v52, %v1202_v60  ;;  %v2015_v5 = vmul.f32 -1.442695, %v3095_v57  ;;  %vm3118_vm10 = vcmp.eq.f32.partialorder %v1224_v58, 8.507059e+37  ;;  %v1239_v27 = vand.u32 2147483647, %v3053_v2 }
 0x24d   : > { %v1193_v30 = vsel %vm1192_vm3, %v2292_v37, %v1189_v50  ;;  %v1216_v29 = vmul.f32 %v3075_v16, %v3019_v38  ;;  %v2300_v37 = vpop.eup %2299  ;;  %2305 = vpow2.f32 %v2014_v20  ;;  %vm1221_vm11 = vweird.f32 %v3075_v16 }
 0x24e   : > { %v1198_v0 = vsel %vm1195_vm5, %v1197_v4, %v1193_v30  ;;  %v1204_v43 = vadd.f32 %v2296_v52, %v1203_v23  ;;  %v3097_v33 = vpop.eup %2301  ;;  %v3101_v61 = vadd.f32 1.0, %v2300_v37  ;;  %v1227_v23 = vor.u32 1.1754944e-38, %v1226_v31  ;;  %v889_v30 = vpop.f32.mrf.mxu0  ;;  %vm3147_vm13 = vmor %vm1220_vm9, %vm1221_vm11 }
 0x24f   : > { %v1217_v51 = vsub.f32 1.0, %v1216_v29  ;;  %v1397_v48 = vmul.f32 %v1198_v0, %v2957_v45  ;;  %v1231_v49 = vmul.f32 %v3097_v33, %v3053_v2  ;;  %v914_v45 = vadd.f32 %v3030_v46, %v3006_v19  ;;  %v2304_v4 = vpop.eup %2303  ;;  %v918_v20 = vpop.f32.mrf.mxu1 }
 0x250   : > { %v1208_v55 = vsel %vm1207_vm7, %v2296_v52, %v1204_v43  ;;  %v1054_v52 = vpop.f32.mrf.mxu2  ;;  %2307 = vrcp.f32 %v3101_v61  ;;  %v3122_v50 = vadd.f32 1.0, %v2304_v4  ;;  %vm1235_vm12 = vweird.f32 %v3053_v2 }
 0x251   : > { %v1213_v40 = vsel %vm1210_vm8, %v1212_v47, %v1208_v55  ;;  %v1218_v21 = vmul.f32 %v3075_v16, %v1217_v51  ;;  %v1232_v8 = vsub.f32 1.0, %v1231_v49  ;;  %v1413_v46 = vmul.f32 %v1397_v48, %v3025_v39  ;;  %v1083_v63 = vpop.f32.mrf.mxu3 }
 0x252   : > { %v1398_v60 = vmul.f32 %v1213_v40, %v2960_v42  ;;  %v3126_v11 = vadd.f32 %v1054_v52, %v2940_v28  ;;  %v1411_v42 = vmul.f32 %v1395_v62, %v3013_v35  ;;  %2309 = vpow2.f32 %v2015_v5 }
 0x253   : > { %v1219_v26 = vadd.f32 %v3075_v16, %v1218_v21  ;;  %2311 = vrcp.f32 %v3122_v50  ;;  %v2306_v39 = vpop.eup %2305  ;;  %v1412_v29 = vmul.f32 %v1396_v22, %v3022_v41  ;;  %v1233_v43 = vmul.f32 %v3097_v33, %v1232_v8 }
 0x254   : > { %v1414_v32 = vmul.f32 %v1398_v60, %v914_v45  ;;  %v2016_v0 = vmul.f32 -1.442695, %v3126_v11  ;;  %v3138_v44 = vadd.f32 1.0, %v2306_v39  ;;  %v3141_v47 = vadd.f32 %v1083_v63, %v2942_v17 }
 0x255   : > { %v1435_v51 = vpack.c.bf16 %v1413_v46, %v1411_v42  ;;  %v1242_v41 = vor.u32 1.1754944e-38, %v1241_v34  ;;  %v3153_v55 = vadd.f32 %v916_v1, %v3006_v19  ;;  %v3156_v48 = vadd.f32 %v889_v30, %v3002_v7 }
 0x256   : > { %v2308_v35 = vpop.eup %2307  ;;  %v1223_v40 = vsel %vm3147_vm13, %v3075_v16, %v1219_v26  ;;  %vm3161_vm14 = vcmp.eq.f32.partialorder %v1239_v27, 8.507059e+37  ;;  %v1254_v38 = vand.u32 2147483647, %v3101_v61  ;;  %v1256_v62 = vand.u32 2147483648, %v3101_v61 }
 0x257   : > { %v1246_v53 = vmul.f32 %v2308_v35, %v3101_v61  ;;  %2313 = vrcp.f32 %v3138_v44  ;;  %1579 = vmatmul.bf16.vlgmr.msrb.gmra.mxu0 %v1435_v51  ;;  %vm1236_vm15 = vweird.f32 %v3097_v33  ;;  %v3170_v49 = vadd.f32 %v918_v20, %v3006_v19 }
 0x258   : > { %v2310_v1 = vpop.eup %2309  ;;  %2315 = vpow2.f32 %v2016_v0  ;;  %v1057_v16 = vpop.f32.mrf.mxu2  ;;  %v1234_v21 = vadd.f32 %v3097_v33, %v1233_v43  ;;  %v2017_v4 = vmul.f32 -1.442695, %v3141_v47  ;;  %v1436_v22 = vpack.c.bf16 %v1414_v32, %v1412_v29  ;;  %vm3189_vm3 = vmor %vm1235_vm12, %vm1236_vm15 }
 0x259   : > { %v1247_v31 = vsub.f32 1.0, %v1246_v53  ;;  %v2312_v52 = vpop.eup %2311  ;;  %v3173_v45 = vadd.f32 1.0, %v2310_v1  ;;  %v1228_v60 = vsel %vm3118_vm10, %v1227_v23, %v1223_v40  ;;  %vm1251_vm0 = vweird.f32 %v2308_v35  ;;  %v1086_v63 = vpop.f32.mrf.mxu3 }
 0x25a   : > { %v1261_v8 = vmul.f32 %v2312_v52, %v3122_v50  ;;  %vm1250_vm1 = vweird.f32 %v3101_v61  ;;  %vm3180_vm2 = vcmp.eq.f32.partialorder %v1254_v38, 8.507059e+37  ;;  %v1257_v34 = vor.u32 1.1754944e-38, %v1256_v62  ;;  %1608 = vmatmul.bf16.vlgmr.msrb.gmra.mxu1 %v1436_v22 }
 0x25b   : > { %v1248_v5 = vmul.f32 %v2308_v35, %v1247_v31  ;;  %2317 = vrcp.f32 %v3173_v45  ;;  %v1269_v61 = vand.u32 2147483647, %v3122_v50  ;;  %v1399_v27 = vmul.f32 %v1228_v60, %v2975_v54  ;;  %vm1252_vm4 = vmor %vm1250_vm1, %vm1251_vm0 }
 0x25c   : > { %v1262_v42 = vsub.f32 1.0, %v1261_v8  ;;  %2319 = vpow2.f32 %v2017_v4  ;;  %v1238_v30 = vsel %vm3189_vm3, %v3097_v33, %v1234_v21  ;;  %vm1266_vm5 = vweird.f32 %v2312_v52 }
 0x25d   : > { %v1249_v23 = vadd.f32 %v2308_v35, %v1248_v5  ;;  %v3194_v26 = vpop.eup %2313  ;;  %v1271_v2 = vand.u32 2147483648, %v3122_v50  ;;  %v3205_v43 = vadd.f32 %v1057_v16, %v2940_v28  ;;  %vm1265_vm6 = vweird.f32 %v3122_v50 }
 0x25e   : > { %v2316_v39 = vpop.eup %2315  ;;  %v1263_v32 = vmul.f32 %v2312_v52, %v1262_v42  ;;  %v1276_v0 = vmul.f32 %v3194_v26, %v3138_v44  ;;  %v3213_v51 = vadd.f32 %v1086_v63, %v2942_v17  ;;  %vm1270_vm7 = vcmp.eq.f32.partialorder %v1269_v61, 8.507059e+37  ;;  %vm1267_vm8 = vmor %vm1265_vm6, %vm1266_vm5 }
 0x25f   : > { %v1253_v29 = vsel %vm1252_vm4, %v2308_v35, %v1249_v23  ;;  %v3210_v33 = vadd.f32 1.0, %v2316_v39  ;;  %v1243_v35 = vsel %vm3161_vm14, %v1242_v41, %v1238_v30  ;;  %v1272_v38 = vor.u32 1.1754944e-38, %v1271_v2 }
 0x260   : > { %v1258_v54 = vsel %vm3180_vm2, %v1257_v34, %v1253_v29  ;;  %v1264_v20 = vadd.f32 %v2312_v52, %v1263_v32  ;;  %v1277_v37 = vsub.f32 1.0, %v1276_v0  ;;  %v1284_v50 = vand.u32 2147483647, %v3138_v44  ;;  %v1059_v16 = vpop.f32.mrf.mxu2 }
 0x261   : > { %v3217_v53 = vpop.eup %2317  ;;  %v1401_v40 = vmul.f32 %v1258_v54, %v3016_v36  ;;  %2321 = vrcp.f32 %v3210_v33  ;;  %v1286_v31 = vand.u32 2147483648, %v3138_v44  ;;  %v2018_v58 = vmul.f32 -1.442695, %v3205_v43 }
 0x262   : > { %v2320_v62 = vpop.eup %2319  ;;  %v1268_v1 = vsel %vm1267_vm8, %v2312_v52, %v1264_v20  ;;  %v1291_v41 = vmul.f32 %v3217_v53, %v3173_v45  ;;  %v1400_v21 = vmul.f32 %v1243_v35, %v2978_v56  ;;  %v2019_v22 = vmul.f32 -1.442695, %v3213_v51 }
 0x263   : > { %v1273_v36 = vsel %vm1270_vm7, %v1272_v38, %v1268_v1  ;;  %v3228_v4 = vadd.f32 1.0, %v2320_v62  ;;  %v1278_v5 = vmul.f32 %v3194_v26, %v1277_v37  ;;  %v1415_v8 = vmul.f32 %v1399_v27, %v3112_v3  ;;  %v1088_v3 = vpop.f32.mrf.mxu3 }
 0x264   : > { %v1402_v60 = vmul.f32 %v1273_v36, %v3050_v59  ;;  %v1292_v52 = vsub.f32 1.0, %v1291_v41  ;;  %vm1280_vm9 = vweird.f32 %v3138_v44  ;;  %v1417_v46 = vmul.f32 %v1401_v40, %v3156_v48 }
 0x265   : > { %2323 = vrcp.f32 %v3228_v4  ;;  %v3238_v56 = vadd.f32 %v1059_v16, %v2940_v28  ;;  %vm3240_vm10 = vcmp.eq.f32.partialorder %v1284_v50, 8.507059e+37  ;;  %v1287_v6 = vor.u32 1.1754944e-38, %v1286_v31 }
 0x266   : > { %vm1295_vm11 = vweird.f32 %v3173_v45  ;;  %v1418_v59 = vmul.f32 %v1402_v60, %v3170_v49  ;;  %2325 = vpow2.f32 %v2018_v58  ;;  %vm1281_vm12 = vweird.f32 %v3194_v26 }
 0x267   : > { %v2322_v23 = vpop.eup %2321  ;;  %v1293_v42 = vmul.f32 %v3217_v53, %v1292_v52  ;;  %v1416_v48 = vmul.f32 %v1400_v21, %v3153_v55  ;;  %2327 = vpow2.f32 %v2019_v22  ;;  %v1279_v28 = vadd.f32 %v3194_v26, %v1278_v5  ;;  %vm3264_vm14 = vmor %vm1280_vm9, %vm1281_vm12 }
 0x268   : > { %v1306_v61 = vmul.f32 %v2322_v23, %v3210_v33  ;;  %v1314_v63 = vand.u32 2147483647, %v3210_v33  ;;  %v1316_v27 = vand.u32 2147483648, %v3210_v33  ;;  %v2020_v49 = vmul.f32 -1.442695, %v3238_v56 }
 0x269   : > { %v3255_v30 = vadd.f32 %v1088_v3, %v2942_v17  ;;  %v1437_v2 = vpack.c.bf16 %v1417_v46, %v1415_v8  ;;  %v1438_v39 = vpack.c.bf16 %v1418_v59, %v1416_v48  ;;  %v1299_v29 = vand.u32 2147483647, %v3173_v45 }
 0x26a   : > { %v1301_v55 = vand.u32 2147483648, %v3173_v45  ;;  %v1307_v32 = vsub.f32 1.0, %v1306_v61  ;;  %vm1310_vm13 = vweird.f32 %v3210_v33  ;;  %v1294_v17 = vadd.f32 %v3217_v53, %v1293_v42 }
 0x26b   : > { %v2324_v0 = vpop.eup %2323  ;;  %vm1296_vm15 = vweird.f32 %v3217_v53  ;;  %2329 = vpow2.f32 %v2020_v49  ;;  %v2021_v35 = vmul.f32 -1.442695, %v3255_v30  ;;  %1584 = vmatmul.bf16.gmra.mxu0 %v1437_v2  ;;  %1613 = vmatmul.bf16.gmra.mxu1 %v1438_v39  ;;  %v1283_v37 = vsel %vm3264_vm14, %v3194_v26, %v1279_v28 }
 0x26c   : > { %v2326_v20 = vpop.eup %2325  ;;  %v1308_v40 = vmul.f32 %v2322_v23, %v1307_v32  ;;  %vm1311_vm0 = vweird.f32 %v2322_v23  ;;  %v1321_v44 = vmul.f32 %v2324_v0, %v3228_v4  ;;  %vm3275_vm1 = vcmp.eq.f32.partialorder %v1314_v63, 8.507059e+37  ;;  %vm3285_vm2 = vmor %vm1295_vm11, %vm1296_vm15 }
 0x26d   : > { %v2328_v38 = vpop.eup %2327  ;;  %v1317_v62 = vor.u32 1.1754944e-38, %v1316_v27  ;;  %v3279_v1 = vadd.f32 1.0, %v2326_v20  ;;  %2331 = vpow2.f32 %v2021_v35  ;;  %v1329_v58 = vand.u32 2147483647, %v3228_v4  ;;  %vm1312_vm3 = vmor %vm1310_vm13, %vm1311_vm0 }
 0x26e   : > { %v1309_v26 = vadd.f32 %v2322_v23, %v1308_v40  ;;  %v1322_v41 = vsub.f32 1.0, %v1321_v44  ;;  %v3290_v16 = vadd.f32 1.0, %v2328_v38  ;;  %v1288_v21 = vsel %vm3240_vm10, %v1287_v6, %v1283_v37 }
 0x26f   : > { %v1298_v36 = vsel %vm3285_vm2, %v3217_v53, %v1294_v17  ;;  %v1331_v45 = vand.u32 2147483648, %v3228_v4  ;;  %2333 = vrcp.f32 %v3279_v1  ;;  %vm1326_vm4 = vweird.f32 %v2324_v0 }
 0x270   : > { %v1313_v22 = vsel %vm1312_vm3, %v2322_v23, %v1309_v26  ;;  %v1323_v60 = vmul.f32 %v2324_v0, %v1322_v41  ;;  %2335 = vrcp.f32 %v3290_v16  ;;  %vm1300_vm5 = vcmp.eq.f32.partialorder %v1299_v29, 8.507059e+37 }
 0x271   : > { %v2330_v5 = vpop.eup %2329  ;;  %v1302_v52 = vor.u32 1.1754944e-38, %v1301_v55  ;;  %v1318_v8 = vsel %vm3275_vm1, %v1317_v62, %v1313_v22  ;;  %vm1325_vm6 = vweird.f32 %v3228_v4  ;;  %v1403_v6 = vmul.f32 %v1288_v21, %v3081_v14 }
 0x272   : > { %v1405_v53 = vmul.f32 %v1318_v8, %v3126_v11  ;;  %v1324_v46 = vadd.f32 %v2324_v0, %v1323_v60  ;;  %v3306_v33 = vadd.f32 1.0, %v2330_v5  ;;  %vm1327_vm7 = vmor %vm1325_vm6, %vm1326_vm4  ;;  %v1332_v3 = vor.u32 1.1754944e-38, %v1331_v45 }
 0x273   : > { %v2332_v34 = vpop.eup %2331  ;;  %v1303_v59 = vsel %vm1300_vm5, %v1302_v52, %v1298_v36  ;;  %v895_v23 = vadd.f32 %v2917_v12, %v3002_v7  ;;  %vm1330_vm8 = vcmp.eq.f32.partialorder %v1329_v58, 8.507059e+37  ;;  %v893_v11 = vadd.f32 %v2913_v9, %v3002_v7 }
 0x274   : > { %v1328_v42 = vsel %vm1327_vm7, %v2324_v0, %v1324_v46  ;;  %2337 = vrcp.f32 %v3306_v33  ;;  %v3314_v28 = vadd.f32 1.0, %v2332_v34  ;;  %v1404_v14 = vmul.f32 %v1303_v59, %v3095_v57 }
 0x275   : > { %v2334_v48 = vpop.eup %2333  ;;  %v1333_v4 = vsel %vm1330_vm8, %v1332_v3, %v1328_v42  ;;  %v1421_v12 = vmul.f32 %v1405_v53, %v895_v23  ;;  %v924_v49 = vadd.f32 %v2919_v13, %v3006_v19  ;;  %v1419_v39 = vmul.f32 %v1403_v6, %v893_v11 }
 0x276   : > { %v3316_v61 = vpop.eup %2335  ;;  %v1406_v63 = vmul.f32 %v1333_v4, %v3141_v47  ;;  %v1336_v27 = vmul.f32 %v2334_v48, %v3279_v1  ;;  %v922_v9 = vadd.f32 %v2915_v10, %v3006_v19  ;;  %2339 = vrcp.f32 %v3314_v28 }
 0x277   : > { %v1351_v2 = vmul.f32 %v3316_v61, %v3290_v16  ;;  %v1439_v57 = vpack.c.bf16 %v1421_v12, %v1419_v39  ;;  %vm1341_vm9 = vweird.f32 %v2334_v48  ;;  %v1346_v54 = vand.u32 2147483648, %v3279_v1 }
 0x278   : > { %v1337_v29 = vsub.f32 1.0, %v1336_v27  ;;  %v1422_v32 = vmul.f32 %v1406_v63, %v924_v49  ;;  %v1420_v17 = vmul.f32 %v1404_v14, %v922_v9  ;;  %vm1340_vm10 = vweird.f32 %v3279_v1 }
 0x279   : > { %v1352_v55 = vsub.f32 1.0, %v1351_v2  ;;  %v1344_v13 = vand.u32 2147483647, %v3279_v1  ;;  %v1359_v37 = vand.u32 2147483647, %v3290_v16  ;;  %v1361_v40 = vand.u32 2147483648, %v3290_v16  ;;  %vm3335_vm11 = vmor %vm1340_vm10, %vm1341_vm9 }
 0x27a   : > { %v2338_v47 = vpop.eup %2337  ;;  %v1338_v0 = vmul.f32 %v2334_v48, %v1337_v29  ;;  %v1440_v44 = vpack.c.bf16 %v1422_v32, %v1420_v17  ;;  %vm1355_vm12 = vweird.f32 %v3290_v16  ;;  %vm1356_vm13 = vweird.f32 %v3316_v61  ;;  %v1428_v32 = vld [vmem:[#allocation2] sm:$0xff] }
 0x27b   : > { %v1353_v35 = vmul.f32 %v3316_v61, %v1352_v55  ;;  %v1366_v10 = vmul.f32 %v2338_v47, %v3306_v33  ;;  %1589 = vmatmul.bf16.gmra.mxu0 %v1439_v57  ;;  %v1347_v26 = vor.u32 1.1754944e-38, %v1346_v54  ;;  %v1374_v41 = vand.u32 2147483647, %v3306_v33  ;;  %vm3347_vm0 = vmor %vm1355_vm12, %vm1356_vm13 }
 0x27c   : > { %v1339_v20 = vadd.f32 %v2334_v48, %v1338_v0  ;;  %v2340_v1 = vpop.eup %2339  ;;  %v1376_v58 = vand.u32 2147483648, %v3306_v33  ;;  %1618 = vmatmul.bf16.gmra.mxu1 %v1440_v44  ;;  %vm1345_vm14 = vcmp.eq.f32.partialorder %v1344_v13, 8.507059e+37  ;;  %vm1371_vm15 = vweird.f32 %v2338_v47  ;;  %v1431_v44 = vld [vmem:[#allocation2 + $0x8] sm:$0xff] }
 0x27d   : > { %v1354_v50 = vadd.f32 %v3316_v61, %v1353_v35  ;;  %v1367_v62 = vsub.f32 1.0, %v1366_v10  ;;  %v1381_v36 = vmul.f32 %v2340_v1, %v3314_v28  ;;  %vm3351_vm1 = vcmp.eq.f32.partialorder %v1359_v37, 8.507059e+37  ;;  %v1430_v35 = vld [vmem:[#allocation2 + $0x10] sm:$0xff] }
 0x27e   : > { %v1343_v31 = vsel %vm3335_vm11, %v2334_v48, %v1339_v20  ;;  %v1362_v60 = vor.u32 1.1754944e-38, %v1361_v40  ;;  %vm1370_vm2 = vweird.f32 %v3306_v33  ;;  %vm1375_vm4 = vcmp.eq.f32.partialorder %v1374_v41, 8.507059e+37 }
 0x27f   : > { %v1368_v21 = vmul.f32 %v2338_v47, %v1367_v62  ;;  %v1348_v45 = vsel %vm1345_vm14, %v1347_v26, %v1343_v31  ;;  %v1358_v5 = vsel %vm3347_vm0, %v3316_v61, %v1354_v50  ;;  %v1382_v8 = vsub.f32 1.0, %v1381_v36  ;;  %vm1372_vm3 = vmor %vm1370_vm2, %vm1371_vm15  ;;  %v1432_v31 = vld [vmem:[#allocation2 + $0x20] sm:$0xff]  ;;  %v1433_v36 = vld [vmem:[#allocation2 + $0x28] sm:$0xff] }
 0x280   : > { %v1377_v53 = vor.u32 1.1754944e-38, %v1376_v58  ;;  %v1389_v46 = vand.u32 2147483647, %v3314_v28  ;;  %v1391_v34 = vand.u32 2147483648, %v3314_v28  ;;  %v1407_v6 = vmul.f32 %v1348_v45, %v3205_v43 }
 0x281   : > { %v1369_v52 = vadd.f32 %v2338_v47, %v1368_v21  ;;  %v1383_v3 = vmul.f32 %v2340_v1, %v1382_v8  ;;  %vm1386_vm5 = vweird.f32 %v2340_v1  ;;  %v898_v23 = vadd.f32 %v2921_v15, %v3002_v7 }
 0x282   : > { %v1363_v42 = vsel %vm3351_vm1, %v1362_v60, %v1358_v5  ;;  %v900_v48 = vadd.f32 %v2929_v24, %v3002_v7  ;;  %vm1385_vm6 = vweird.f32 %v3314_v28  ;;  %vm1390_vm8 = vcmp.eq.f32.partialorder %v1389_v46, 8.507059e+37  ;;  %v1434_v5 = vld [vmem:[#allocation2 + $0x38] sm:$0xff] }
 0x283   : > { %v1373_v59 = vsel %vm1372_vm3, %v2338_v47, %v1369_v52  ;;  %v1384_v4 = vadd.f32 %v2340_v1, %v1383_v3  ;;  %vm1387_vm7 = vmor %vm1385_vm6, %vm1386_vm5  ;;  %v1392_v43 = vor.u32 1.1754944e-38, %v1391_v34  ;;  %v1408_v61 = vmul.f32 %v1363_v42, %v3213_v51  ;;  %v1427_v51 = vld [vmem:[#allocation2 + $0x30] sm:$0xff] }
 0x284   : > { %v1378_v33 = vsel %vm1375_vm4, %v1377_v53, %v1373_v59  ;;  %v1423_v63 = vmul.f32 %v1407_v6, %v898_v23  ;;  %v927_v12 = vadd.f32 %v2925_v18, %v3006_v19  ;;  %v929_v24 = vadd.f32 %v2931_v25, %v3006_v19  ;;  %v1429_v19 = vld [vmem:[#allocation2 + $0x18] sm:$0xff] }
 0x285   : > { %v1409_v11 = vmul.f32 %v1378_v33, %v3238_v56  ;;  %v1388_v14 = vsel %vm1387_vm7, %v2340_v1, %v1384_v4 }
 0x286   : > { %v1393_v27 = vsel %vm1390_vm8, %v1392_v43, %v1388_v14  ;;  %v1424_v28 = vmul.f32 %v1408_v61, %v927_v12 }
 0x287   : > { %v1425_v15 = vmul.f32 %v1409_v11, %v900_v48  ;;  %v1410_v7 = vmul.f32 %v1393_v27, %v3255_v30 }
 0x289   : > { %v1441_v56 = vpack.c.bf16 %v1425_v15, %v1423_v63  ;;  %v1426_v49 = vmul.f32 %v1410_v7, %v929_v24 }
 0x28b   : > { %1594 = vmatmul.bf16.gmra.mxu0 %v1441_v56  ;;  %v1442_v2 = vpack.c.bf16 %v1426_v49, %v1424_v28 }
 0x28d   : > { %1623 = vmatmul.bf16.gmra.mxu1 %v1442_v2 }
 0x2d4   : > { %v1580_v39 = vpop.f32.mrf.mxu0 }
 0x2d7   : > { %v1609_v9 = vpop.f32.mrf.mxu1 }
 0x2d8   : > { %v1610_v29 = vadd.f32 %v1609_v9, %v1580_v39 }
 0x2da   : > { %v1629_v55 = vadd.f32 %v1610_v29, %v1427_v51 }
 0x2dc   : > { %1637 = vst [vmem:[#allocation2 + $0x30] sm:$0xff] %v1629_v55  ;;  %v1582_v57 = vpop.f32.mrf.mxu0 }
 0x2df   : > { %v1611_v18 = vpop.f32.mrf.mxu1 }
 0x2e0   : > { %v1612_v47 = vadd.f32 %v1611_v18, %v1582_v57 }
 0x2e2   : > { %v1630_v0 = vadd.f32 %v1612_v47, %v1428_v32 }
 0x2e4   : > { %1638 = vst [vmem:[#allocation2] sm:$0xff] %v1630_v0 }
 0x2e8   : > { %v1585_v25 = vpop.f32.mrf.mxu0  ;;  %v1614_v30 = vpop.f32.mrf.mxu1 }
 0x2e9   : > { %v1615_v54 = vadd.f32 %v1614_v30, %v1585_v25 }
 0x2eb   : > { %v1631_v17 = vadd.f32 %v1615_v54, %v1429_v19 }
 0x2ed   : > { %1639 = vst [vmem:[#allocation2 + $0x18] sm:$0xff] %v1631_v17 }
 0x2f0   : > { %v1587_v13 = vpop.f32.mrf.mxu0  ;;  %v1616_v10 = vpop.f32.mrf.mxu1 }
 0x2f1   : > { %v1617_v20 = vadd.f32 %v1616_v10, %v1587_v13 }
 0x2f3   : > { %v1632_v37 = vadd.f32 %v1617_v20, %v1430_v35 }
 0x2f5   : > { %1640 = vst [vmem:[#allocation2 + $0x10] sm:$0xff] %v1632_v37 }
 0x2f8   : > { %v1590_v40 = vpop.f32.mrf.mxu0 }
 0x2f9   : > { %v1619_v38 = vpop.f32.mrf.mxu1 }
 0x2fa   : > { %v1620_v50 = vadd.f32 %v1619_v38, %v1590_v40 }
 0x2fc   : > { %v1633_v62 = vadd.f32 %v1620_v50, %v1431_v44 }
 0x2fe   : > { %1641 = vst [vmem:[#allocation2 + $0x8] sm:$0xff] %v1633_v62 }
 0x300   : > { %v1592_v1 = vpop.f32.mrf.mxu0 }
 0x301   : > { %v1621_v26 = vpop.f32.mrf.mxu1 }
 0x302   : > { %v1622_v41 = vadd.f32 %v1621_v26, %v1592_v1 }
 0x304   : > { %v1634_v58 = vadd.f32 %v1622_v41, %v1432_v31 }
 0x306   : > { %1642 = vst [vmem:[#allocation2 + $0x20] sm:$0xff] %v1634_v58 }
 0x308   : > { %v1595_v21 = vpop.f32.mrf.mxu0 }
 0x30a   : > { %v1624_v45 = vpop.f32.mrf.mxu1 }
 0x30b   : > { %v1625_v16 = vadd.f32 %v1624_v45, %v1595_v21 }
 0x30d   : > { %v1635_v22 = vadd.f32 %v1625_v16, %v1433_v36 }
 0x30f   : > { %1643 = vst [vmem:[#allocation2 + $0x28] sm:$0xff] %v1635_v22 }
 0x310   : > { %v1597_v60 = vpop.f32.mrf.mxu0 }
 0x312   : > { %v1626_v52 = vpop.f32.mrf.mxu1 }
 0x313   : > { %v1627_v8 = vadd.f32 %v1626_v52, %v1597_v60  ;;  %1648 = sbr.rel (%p2086_p1) target bundleno = 805 (0x325), region = 76 }
 0x315   : > { %v1636_v53 = vadd.f32 %v1627_v8, %v1434_v5 }
 0x317   : > { %1644 = vst [vmem:[#allocation2 + $0x38] sm:$0xff] %v1636_v53 }
 0x318   : > { %v1649_v46 = vld [vmem:[%s3520_s28] sm:$0xff]  ;;  %v1657_v34 = vld [vmem:[#allocation2 + $0x30] sm:$0xff]  ;;  %v1650_v3 = vld [vmem:[%s3520_s28 + $0x8] sm:$0xff] }
 0x319   : > { %v1665_v6 = vadd.f32 %v1657_v34, %v1649_v46  ;;  %v2341_v59 = vld [vmem:[%s3521_s11] ss:$0 sm:$0xff]  ;;  %v1651_v33 = vld [vmem:[%s3520_s28 + $0x10] sm:$0xff]  ;;  %v1659_v48 = vld [vmem:[#allocation2 + $0x18] sm:$0xff] }
 0x31a   : > { %v1658_v23 = vld [vmem:[#allocation2] sm:$0xff]  ;;  %v1652_v11 = vld [vmem:[%s3520_s28 + $0x18] sm:$0xff]  ;;  %v1667_v43 = vadd.f32 %v1659_v48, %v1651_v33  ;;  %v1660_v61 = vld [vmem:[#allocation2 + $0x10] sm:$0xff] }
 0x31b   : > { %v1666_v42 = vadd.f32 %v1658_v23, %v1650_v3  ;;  %v1677_v4 = vadd.f32 %v2341_v59, %v1665_v6  ;;  %v1653_v14 = vld [vmem:[%s3520_s28 + $0x20] sm:$0xff]  ;;  %v1661_v63 = vld [vmem:[#allocation2 + $0x8] sm:$0xff]  ;;  %v1668_v27 = vadd.f32 %v1660_v61, %v1652_v11  ;;  %v1655_v56 = vld [vmem:[%s3520_s28 + $0x30] sm:$0xff] }
 0x31c   : > { %v1669_v12 = vadd.f32 %v1661_v63, %v1653_v14  ;;  %v1654_v24 = vld [vmem:[%s3520_s28 + $0x28] sm:$0xff]  ;;  %v1662_v7 = vld [vmem:[#allocation2 + $0x20] sm:$0xff]  ;;  %v1679_v28 = vadd.f32 %v2341_v59, %v1667_v43  ;;  %v1656_v39 = vld [vmem:[%s3520_s28 + $0x38] sm:$0xff] }
 0x31d   : > { %v1678_v15 = vadd.f32 %v2341_v59, %v1666_v42  ;;  %1685 = vst [vmem:[%s3522_s15] sm:$0xff] %v1677_v4  ;;  %v1670_v49 = vadd.f32 %v1662_v7, %v1654_v24  ;;  %v1663_v2 = vld [vmem:[#allocation2 + $0x28] sm:$0xff]  ;;  %v1680_v9 = vadd.f32 %v2341_v59, %v1668_v27 }
 0x31e   : > { %v1664_v51 = vld [vmem:[#allocation2 + $0x38] sm:$0xff]  ;;  %v1681_v29 = vadd.f32 %v2341_v59, %v1669_v12  ;;  %v1671_v55 = vadd.f32 %v1663_v2, %v1655_v56  ;;  %1687 = vst [vmem:[%s3522_s15 + $0x10] sm:$0xff] %v1679_v28 }
 0x31f   : > { %1686 = vst [vmem:[%s3522_s15 + $0x8] sm:$0xff] %v1678_v15  ;;  %v1672_v57 = vadd.f32 %v1664_v51, %v1656_v39  ;;  %v1682_v32 = vadd.f32 %v2341_v59, %v1670_v49 }
 0x320   : > { %1688 = vst [vmem:[%s3522_s15 + $0x18] sm:$0xff] %v1680_v9  ;;  %v1683_v18 = vadd.f32 %v2341_v59, %v1671_v55 }
 0x321   : > { %v1684_v47 = vadd.f32 %v2341_v59, %v1672_v57  ;;  %1689 = vst [vmem:[%s3522_s15 + $0x20] sm:$0xff] %v1681_v29 }
 0x322   : > { %1690 = vst [vmem:[%s3522_s15 + $0x28] sm:$0xff] %v1682_v32 }
 0x323   : > { %1691 = vst [vmem:[%s3522_s15 + $0x30] sm:$0xff] %v1683_v18 }
 0x324   : > { %1692 = vst [vmem:[%s3522_s15 + $0x38] sm:$0xff] %v1684_v47 }
 0x325 PF: > { %s25_s14 = sadd.s32 1, %s2486_s14   ;;  %s3523_s23 = sld [smem:[#allocation11_spill]] }
 0x326   : > { %p22_p2 = scmp.ge.s32.totalorder %s25_s14, 4   ;;  %s3524_s11 = sld [smem:[#allocation13_spill]] }
 0x327   : > { %s3525_s24 = sld [smem:[#allocation12_spill]]  ;;  %s3526_s30 = smov %s2470_s10 }
 0x328   : > { %s3528_s12 = smov %s2482_s13 }
 0x329   :  { %24 = sbr.rel (!%p22_p2) target bundleno = 14 (0xe), region = 137 }
 0x32b   : > { %s3527_s10 = smov %s3523_s23 }
 0x32d   : > { %s3529_s13 = smov %s3525_s24 }
 0x32e   :  { %1715 = vsyncpa [#allocation5], 1 }
 0x32f   :  { %1717 = vsyncpa [#allocation5 + $0x1], 1 }
 0x330   :  { %1718 = vsyncpa [#allocation7], 1 }
 0x331   :  { %1720 = vsyncpa [#allocation7 + $0x1], 1 }

</bundles_post_ra>
